<compile_context>
chip_gen: v6e
topology: v6e:2x2x1
jax: 0.10.0
libtpu: 0.0.40
codegen_flags: <defaults>
</compile_context>

<pallas_src>
import jax
import jax.numpy as jnp
from jax import lax
from jax.experimental import pallas as pl
from jax.experimental.pallas import tpu as pltpu


# ----------------------------------------------------------------------------
# In-kernel helpers
# ----------------------------------------------------------------------------
def _suffix_max_inplace(buf_ref, axis):
    """In-place reverse (suffix) cumulative max along `axis` (0 or 1) of an
    (H, W, C) VMEM scratch ref using a log2(n) doubling scan (VPU max steps
    on full tiles; no serial per-row loop)."""
    n = buf_ref.shape[axis]
    s = 1
    while s < n:
        m = n - s
        if axis == 0:
            lo = buf_ref[pl.ds(0, m), :, :]
            hi = buf_ref[pl.ds(s, m), :, :]
            buf_ref[pl.ds(0, m), :, :] = jnp.maximum(lo, hi)
        else:
            lo = buf_ref[:, pl.ds(0, m), :]
            hi = buf_ref[:, pl.ds(s, m), :]
            buf_ref[:, pl.ds(0, m), :] = jnp.maximum(lo, hi)
        s *= 2


# ----------------------------------------------------------------------------
# Single fused kernel: whole corner_pool forward for one batch element
# ----------------------------------------------------------------------------
def _corner_pool_kernel(x_ref, w12_ref, s12_ref, b12_ref,
                        pw_ref, ps_ref, pb_ref,
                        c1w_ref, c1s_ref, c1b_ref,
                        c2w_ref, c2s_ref, c2b_ref,
                        o_ref,
                        xpad_ref, p1_ref, p2_ref, ppad_ref, rpad_ref):
    # x_ref  : (1, H, W, Cin)
    # w12_ref: (3, 3, Cin, 2*Cmid)   p1/p2 branch conv weights stacked on Cout
    # s12/b12: (1, 2*Cmid)           folded BN affine (stacked)
    # pw_ref : (9*Cmid, dim)         im2col-flattened p_conv1 weights
    # c1w_ref: (dim, dim)            1x1 conv as a matmul
    # c2w_ref: (3, 3, dim, dim)
    # o_ref  : (1, H, W, dim)
    H, W = o_ref.shape[1], o_ref.shape[2]
    Cin = x_ref.shape[3]
    dim = o_ref.shape[3]
    Cmid = p1_ref.shape[2]            # 128
    C2 = w12_ref.shape[3]             # 2 * Cmid

    # ---- p1_conv1 / p2_conv1 : one shared 9-tap accumulation, BN, ReLU ----
    # 1-px zero halo built in VMEM (no HBM pad copy).
    xpad_ref[...] = jnp.zeros_like(xpad_ref)
    xpad_ref[pl.ds(1, H), pl.ds(1, W), :] = x_ref[0]

    acc = jnp.zeros((H * W, C2), jnp.float32)
    for ky in range(3):
        for kx in range(3):
            patch = xpad_ref[pl.ds(ky, H), pl.ds(kx, W), :].reshape(H * W, Cin)
            acc = acc + jnp.dot(patch, w12_ref[ky, kx],
                                preferred_element_type=jnp.float32)
    y = jnp.maximum(acc * s12_ref[...] + b12_ref[...], 0.0)

    p1_ref[...] = y[:, :Cmid].reshape(H, W, Cmid)
    p2_ref[...] = y[:, Cmid:].reshape(H, W, Cmid)

    # ---- TopPool (suffix max over H) / LeftPool (suffix max over W) ----
    _suffix_max_inplace(p1_ref, axis=0)
    _suffix_max_inplace(p2_ref, axis=1)

    # ---- p_bn1 = BN(p_conv1(pool1 + pool2)) : single im2col matmul ----
    ppad_ref[...] = jnp.zeros_like(ppad_ref)
    ppad_ref[pl.ds(1, H), pl.ds(1, W), :] = p1_ref[...] + p2_ref[...]
    patches = jnp.concatenate(
        [ppad_ref[pl.ds(ky, H), pl.ds(kx, W), :].reshape(H * W, Cmid)
         for ky in range(3) for kx in range(3)],
        axis=1)                                            # (H*W, 9*Cmid)
    p_bn1 = jnp.dot(patches, pw_ref[...], preferred_element_type=jnp.float32)
    p_bn1 = p_bn1 * ps_ref[...] + pb_ref[...]

    # ---- bn1 = BN(conv1x1(x)); relu1 = relu(p_bn1 + bn1) ----
    bn1 = jnp.dot(x_ref[0].reshape(H * W, Cin), c1w_ref[...],
                  preferred_element_type=jnp.float32)
    bn1 = bn1 * c1s_ref[...] + c1b_ref[...]
    relu1 = jnp.maximum(p_bn1 + bn1, 0.0).reshape(H, W, dim)

    # ---- out = relu(BN(conv3x3(relu1))) ----
    rpad_ref[...] = jnp.zeros_like(rpad_ref)
    rpad_ref[pl.ds(1, H), pl.ds(1, W), :] = relu1
    acc2 = jnp.zeros((H * W, dim), jnp.float32)
    for ky in range(3):
        for kx in range(3):
            patch = rpad_ref[pl.ds(ky, H), pl.ds(kx, W), :].reshape(H * W, dim)
            acc2 = acc2 + jnp.dot(patch, c2w_ref[ky, kx],
                                  preferred_element_type=jnp.float32)
    out = jnp.maximum(acc2 * c2s_ref[...] + c2b_ref[...], 0.0)
    o_ref[0] = out.reshape(H, W, dim)


# ----------------------------------------------------------------------------
# Wrapper
# ----------------------------------------------------------------------------
_CPARAMS = pltpu.CompilerParams(dimension_semantics=("parallel",),
                                vmem_limit_bytes=64 * 1024 * 1024)


def corner_pool_fused(x, w12, s12, b12, pw_flat, ps, pb,
                      c1w, c1s, c1b, c2w, c2s, c2b):
    N, H, W, Cin = x.shape
    C2 = w12.shape[-1]
    Cmid = C2 // 2
    dim = c2w.shape[-1]
    return pl.pallas_call(
        _corner_pool_kernel,
        out_shape=jax.ShapeDtypeStruct((N, H, W, dim), jnp.float32),
        grid=(N,),
        in_specs=[
            pl.BlockSpec((1, H, W, Cin), lambda b: (b, 0, 0, 0)),
            pl.BlockSpec((3, 3, Cin, C2), lambda b: (0, 0, 0, 0)),
            pl.BlockSpec((1, C2), lambda b: (0, 0)),
            pl.BlockSpec((1, C2), lambda b: (0, 0)),
            pl.BlockSpec((9 * Cmid, dim), lambda b: (0, 0)),
            pl.BlockSpec((1, dim), lambda b: (0, 0)),
            pl.BlockSpec((1, dim), lambda b: (0, 0)),
            pl.BlockSpec((dim, dim), lambda b: (0, 0)),
            pl.BlockSpec((1, dim), lambda b: (0, 0)),
            pl.BlockSpec((1, dim), lambda b: (0, 0)),
            pl.BlockSpec((3, 3, dim, dim), lambda b: (0, 0, 0, 0)),
            pl.BlockSpec((1, dim), lambda b: (0, 0)),
            pl.BlockSpec((1, dim), lambda b: (0, 0)),
        ],
        out_specs=pl.BlockSpec((1, H, W, dim), lambda b: (b, 0, 0, 0)),
        scratch_shapes=[
            pltpu.VMEM((H + 2, W + 2, Cin), jnp.float32),    # padded input
            pltpu.VMEM((H, W, Cmid), jnp.float32),           # pool1 scan buffer
            pltpu.VMEM((H, W, Cmid), jnp.float32),           # pool2 scan buffer
            pltpu.VMEM((H + 2, W + 2, Cmid), jnp.float32),   # padded pooled
            pltpu.VMEM((H + 2, W + 2, dim), jnp.float32),    # padded relu1
        ],
        compiler_params=_CPARAMS,
    )(x, w12, s12, b12, pw_flat, ps, pb, c1w, c1s, c1b, c2w, c2s, c2b)


# ----------------------------------------------------------------------------
# Parameters (deterministic synthetic init; shapes from the module's __init__)
# ----------------------------------------------------------------------------
def _folded_bn(cout):
    # eval-mode BN with default init: gamma=1, beta=0, mean=0, var=1, eps=1e-5
    eps = 1e-5
    scale = jnp.full((1, cout), 1.0 / jnp.sqrt(1.0 + eps), jnp.float32)
    bias = jnp.zeros((1, cout), jnp.float32)
    return scale, bias


def init_params(key, dim):
    ks = jax.random.split(key, 5)

    def conv_w(k, kh, kw, cin, cout):
        fan_in = kh * kw * cin
        return (jax.random.normal(k, (kh, kw, cin, cout), jnp.float32)
                * (2.0 / fan_in) ** 0.5)

    p = {}
    p["p1_w"] = conv_w(ks[0], 3, 3, dim, 128)             # p1_conv1
    p["p1_scale"], p["p1_bias"] = _folded_bn(128)
    p["p2_w"] = conv_w(ks[1], 3, 3, dim, 128)             # p2_conv1
    p["p2_scale"], p["p2_bias"] = _folded_bn(128)
    p["p_w"] = conv_w(ks[2], 3, 3, 128, dim)              # p_conv1 (no bias)
    p["p_scale"], p["p_bias"] = _folded_bn(dim)           # p_bn1
    p["c1_w"] = conv_w(ks[3], 1, 1, dim, dim)[0, 0]       # conv1 as (dim, dim)
    p["c1_scale"], p["c1_bias"] = _folded_bn(dim)         # bn1
    p["c2_w"] = conv_w(ks[4], 3, 3, dim, dim)             # conv2.conv
    p["c2_scale"], p["c2_bias"] = _folded_bn(dim)         # conv2.bn
    return p


# ----------------------------------------------------------------------------
# Full forward (mirrors corner_pool.forward) -- ONE pallas_call total
# ----------------------------------------------------------------------------
def corner_pool_forward(x_nhwc, p):
    # Stack the two branch convs on Cout so the kernel does one 9-tap pass.
    w12 = jnp.concatenate([p["p1_w"], p["p2_w"]], axis=-1)
    s12 = jnp.concatenate([p["p1_scale"], p["p2_scale"]], axis=-1)
    b12 = jnp.concatenate([p["p1_bias"], p["p2_bias"]], axis=-1)
    pw_flat = p["p_w"].reshape(9 * p["p_w"].shape[2], p["p_w"].shape[3])
    return corner_pool_fused(x_nhwc, w12, s12, b12,
                             pw_flat, p["p_scale"], p["p_bias"],
                             p["c1_w"], p["c1_scale"], p["c1_bias"],
                             p["c2_w"], p["c2_scale"], p["c2_bias"])


# ----------------------------------------------------------------------------
# Pure-JAX reference (for correctness checking only)
# ----------------------------------------------------------------------------
def _ref_forward(x, p):
    hi = lax.Precision.HIGHEST

    def conv(x, w):
        return lax.conv_general_dilated(
            x, w, (1, 1), "SAME",
            dimension_numbers=("NHWC", "HWIO", "NHWC"), precision=hi)

    def bn(y, s, b):
        return y * s.reshape(1, 1, 1, -1) + b.reshape(1, 1, 1, -1)

    p1 = jax.nn.relu(bn(conv(x, p["p1_w"]), p["p1_scale"], p["p1_bias"]))
    pool1 = lax.cummax(p1, axis=1, reverse=True)           # TopPool
    p2 = jax.nn.relu(bn(conv(x, p["p2_w"]), p["p2_scale"], p["p2_bias"]))
    pool2 = lax.cummax(p2, axis=2, reverse=True)           # LeftPool
    p_bn1 = bn(conv(pool1 + pool2, p["p_w"]), p["p_scale"], p["p_bias"])
    bn1 = bn(jnp.einsum("nhwc,cd->nhwd", x, p["c1_w"], precision=hi),
             p["c1_scale"], p["c1_bias"])
    relu1 = jax.nn.relu(p_bn1 + bn1)
    return jax.nn.relu(bn(conv(relu1, p["c2_w"]), p["c2_scale"], p["c2_bias"]))


if __name__ == "__main__":
    key = jax.random.PRNGKey(0)
    k_x, k_p = jax.random.split(key)

    N, DIM, H, W = 2, 4, 16, 16
    x_nchw = jax.random.normal(k_x, (N, DIM, H, W), jnp.float32)   # PyTorch layout
    x_nhwc = jnp.transpose(x_nchw, (0, 2, 3, 1))                   # kernel layout

    params = init_params(k_p, DIM)

    out = jax.jit(corner_pool_forward)(x_nhwc, params)
    out = jax.block_until_ready(out)

    assert out.shape == (N, H, W, DIM), out.shape
    assert bool(jnp.all(jnp.isfinite(out)))

    ref = jax.block_until_ready(jax.jit(_ref_forward)(x_nhwc, params))
    assert bool(jnp.allclose(out, ref, atol=2e-3, rtol=2e-3)), \
        float(jnp.max(jnp.abs(out - ref)))

    print("KERNEL_OK")
</pallas_src>

<mosaic_0001>
module attributes {stable_mosaic.version = 11 : i64} {
  func.func @_corner_pool_kernel(%arg0: i32, %arg1: memref<1x16x16x4xf32, #tpu.memory_space<vmem>>, %arg2: memref<3x3x4x256xf32, #tpu.memory_space<vmem>>, %arg3: memref<1x256xf32, #tpu.memory_space<vmem>>, %arg4: memref<1x256xf32, #tpu.memory_space<vmem>>, %arg5: memref<1152x4xf32, #tpu.memory_space<vmem>>, %arg6: memref<1x4xf32, #tpu.memory_space<vmem>>, %arg7: memref<1x4xf32, #tpu.memory_space<vmem>>, %arg8: memref<4x4xf32, #tpu.memory_space<vmem>>, %arg9: memref<1x4xf32, #tpu.memory_space<vmem>>, %arg10: memref<1x4xf32, #tpu.memory_space<vmem>>, %arg11: memref<3x3x4x4xf32, #tpu.memory_space<vmem>>, %arg12: memref<1x4xf32, #tpu.memory_space<vmem>>, %arg13: memref<1x4xf32, #tpu.memory_space<vmem>>, %arg14: memref<1x16x16x4xf32, #tpu.memory_space<vmem>>, %arg15: memref<18x18x4xf32, #tpu.memory_space<vmem>>, %arg16: memref<16x16x128xf32, #tpu.memory_space<vmem>>, %arg17: memref<16x16x128xf32, #tpu.memory_space<vmem>>, %arg18: memref<18x18x128xf32, #tpu.memory_space<vmem>>, %arg19: memref<18x18x4xf32, #tpu.memory_space<vmem>>) attributes {dimension_semantics = [#tpu.dimension_semantics<parallel>], iteration_bounds = array<i64: 2>, scalar_prefetch = 0 : i64, scratch_operands = 5 : i64, tpu.core_type = #tpu.core_type<tc>, window_params = [{transform_indices = @transform_0, window_bounds = array<i64: 1, 16, 16, 4>}, {pipeline_mode = #tpu.pipeline_mode<synchronous>, transform_indices = @transform_1, window_bounds = array<i64: 3, 3, 4, 256>}, {pipeline_mode = #tpu.pipeline_mode<synchronous>, transform_indices = @transform_2, window_bounds = array<i64: 1, 256>}, {pipeline_mode = #tpu.pipeline_mode<synchronous>, transform_indices = @transform_3, window_bounds = array<i64: 1, 256>}, {pipeline_mode = #tpu.pipeline_mode<synchronous>, transform_indices = @transform_4, window_bounds = array<i64: 1152, 4>}, {pipeline_mode = #tpu.pipeline_mode<synchronous>, transform_indices = @transform_5, window_bounds = array<i64: 1, 4>}, {pipeline_mode = #tpu.pipeline_mode<synchronous>, transform_indices = @transform_6, window_bounds = array<i64: 1, 4>}, {pipeline_mode = #tpu.pipeline_mode<synchronous>, transform_indices = @transform_7, window_bounds = array<i64: 4, 4>}, {pipeline_mode = #tpu.pipeline_mode<synchronous>, transform_indices = @transform_8, window_bounds = array<i64: 1, 4>}, {pipeline_mode = #tpu.pipeline_mode<synchronous>, transform_indices = @transform_9, window_bounds = array<i64: 1, 4>}, {pipeline_mode = #tpu.pipeline_mode<synchronous>, transform_indices = @transform_10, window_bounds = array<i64: 3, 3, 4, 4>}, {pipeline_mode = #tpu.pipeline_mode<synchronous>, transform_indices = @transform_11, window_bounds = array<i64: 1, 4>}, {pipeline_mode = #tpu.pipeline_mode<synchronous>, transform_indices = @transform_12, window_bounds = array<i64: 1, 4>}, {transform_indices = @transform_13, window_bounds = array<i64: 1, 16, 16, 4>}]} {
    %cst = arith.constant 0.000000e+00 : f32
    %0 = vector.broadcast %cst : f32 to vector<18x18x4xf32>
    %c0 = arith.constant 0 : index
    %c0_0 = arith.constant 0 : index
    %c0_1 = arith.constant 0 : index
    %1 = vector.load %arg15[%c0, %c0_0, %c0_1] : memref<18x18x4xf32, #tpu.memory_space<vmem>>, vector<18x18x4xf32>
    tpu.vector_store %arg15[%c0, %c0_0, %c0_1], %0 {strides = array<i32>} : memref<18x18x4xf32, #tpu.memory_space<vmem>>, vector<18x18x4xf32>,
    %c0_2 = arith.constant 0 : index
    %c0_3 = arith.constant 0 : index
    %c0_4 = arith.constant 0 : index
    %c0_5 = arith.constant 0 : index
    %2 = vector.load %arg1[%c0_2, %c0_3, %c0_4, %c0_5] : memref<1x16x16x4xf32, #tpu.memory_space<vmem>>, vector<1x16x16x4xf32>
    %3 = vector.shape_cast %2 : vector<1x16x16x4xf32> to vector<16x16x4xf32>
    %c1 = arith.constant 1 : index
    %c1_6 = arith.constant 1 : index
    %c0_7 = arith.constant 0 : index
    %4 = vector.load %arg15[%c1, %c1_6, %c0_7] : memref<18x18x4xf32, #tpu.memory_space<vmem>>, vector<16x16x4xf32>
    tpu.vector_store %arg15[%c1, %c1_6, %c0_7], %3 {strides = array<i32>} : memref<18x18x4xf32, #tpu.memory_space<vmem>>, vector<16x16x4xf32>,
    %cst_8 = arith.constant 0.000000e+00 : f32
    %5 = vector.broadcast %cst_8 : f32 to vector<256x256xf32>
    %c0_9 = arith.constant 0 : index
    %c0_10 = arith.constant 0 : index
    %c0_11 = arith.constant 0 : index
    %6 = vector.load %arg15[%c0_9, %c0_10, %c0_11] : memref<18x18x4xf32, #tpu.memory_space<vmem>>, vector<16x16x4xf32>
    %7 = vector.shape_cast %6 : vector<16x16x4xf32> to vector<256x4xf32>
    %c0_12 = arith.constant 0 : index
    %c0_13 = arith.constant 0 : index
    %c0_14 = arith.constant 0 : index
    %c0_15 = arith.constant 0 : index
    %8 = vector.load %arg2[%c0_12, %c0_13, %c0_14, %c0_15] : memref<3x3x4x256xf32, #tpu.memory_space<vmem>>, vector<1x1x4x256xf32>
    %9 = vector.shape_cast %8 : vector<1x1x4x256xf32> to vector<4x256xf32>
    %cst_16 = arith.constant dense<0.000000e+00> : vector<256x256xf32>
    %10 = tpu.matmul %7, %9, %cst_16 {dimension_numbers = #tpu.dot_dimension_numbers<[1], [0], [0], [1], [0, 0, 1, 1], [], []>} : vector<256x4xf32>, vector<4x256xf32>, vector<256x256xf32> -> vector<256x256xf32>
    %11 = arith.addf %5, %10 : vector<256x256xf32>
    %c0_17 = arith.constant 0 : index
    %c1_18 = arith.constant 1 : index
    %c0_19 = arith.constant 0 : index
    %12 = vector.load %arg15[%c0_17, %c1_18, %c0_19] : memref<18x18x4xf32, #tpu.memory_space<vmem>>, vector<16x16x4xf32>
    %13 = vector.shape_cast %12 : vector<16x16x4xf32> to vector<256x4xf32>
    %c0_20 = arith.constant 0 : index
    %c1_21 = arith.constant 1 : index
    %c0_22 = arith.constant 0 : index
    %c0_23 = arith.constant 0 : index
    %14 = vector.load %arg2[%c0_20, %c1_21, %c0_22, %c0_23] : memref<3x3x4x256xf32, #tpu.memory_space<vmem>>, vector<1x1x4x256xf32>
    %15 = vector.shape_cast %14 : vector<1x1x4x256xf32> to vector<4x256xf32>
    %cst_24 = arith.constant dense<0.000000e+00> : vector<256x256xf32>
    %16 = tpu.matmul %13, %15, %cst_24 {dimension_numbers = #tpu.dot_dimension_numbers<[1], [0], [0], [1], [0, 0, 1, 1], [], []>} : vector<256x4xf32>, vector<4x256xf32>, vector<256x256xf32> -> vector<256x256xf32>
    %17 = arith.addf %11, %16 : vector<256x256xf32>
    %c0_25 = arith.constant 0 : index
    %c2 = arith.constant 2 : index
    %c0_26 = arith.constant 0 : index
    %18 = vector.load %arg15[%c0_25, %c2, %c0_26] : memref<18x18x4xf32, #tpu.memory_space<vmem>>, vector<16x16x4xf32>
    %19 = vector.shape_cast %18 : vector<16x16x4xf32> to vector<256x4xf32>
    %c0_27 = arith.constant 0 : index
    %c2_28 = arith.constant 2 : index
    %c0_29 = arith.constant 0 : index
    %c0_30 = arith.constant 0 : index
    %20 = vector.load %arg2[%c0_27, %c2_28, %c0_29, %c0_30] : memref<3x3x4x256xf32, #tpu.memory_space<vmem>>, vector<1x1x4x256xf32>
    %21 = vector.shape_cast %20 : vector<1x1x4x256xf32> to vector<4x256xf32>
    %cst_31 = arith.constant dense<0.000000e+00> : vector<256x256xf32>
    %22 = tpu.matmul %19, %21, %cst_31 {dimension_numbers = #tpu.dot_dimension_numbers<[1], [0], [0], [1], [0, 0, 1, 1], [], []>} : vector<256x4xf32>, vector<4x256xf32>, vector<256x256xf32> -> vector<256x256xf32>
    %23 = arith.addf %17, %22 : vector<256x256xf32>
    %c1_32 = arith.constant 1 : index
    %c0_33 = arith.constant 0 : index
    %c0_34 = arith.constant 0 : index
    %24 = vector.load %arg15[%c1_32, %c0_33, %c0_34] : memref<18x18x4xf32, #tpu.memory_space<vmem>>, vector<16x16x4xf32>
    %25 = vector.shape_cast %24 : vector<16x16x4xf32> to vector<256x4xf32>
    %c1_35 = arith.constant 1 : index
    %c0_36 = arith.constant 0 : index
    %c0_37 = arith.constant 0 : index
    %c0_38 = arith.constant 0 : index
    %26 = vector.load %arg2[%c1_35, %c0_36, %c0_37, %c0_38] : memref<3x3x4x256xf32, #tpu.memory_space<vmem>>, vector<1x1x4x256xf32>
    %27 = vector.shape_cast %26 : vector<1x1x4x256xf32> to vector<4x256xf32>
    %cst_39 = arith.constant dense<0.000000e+00> : vector<256x256xf32>
    %28 = tpu.matmul %25, %27, %cst_39 {dimension_numbers = #tpu.dot_dimension_numbers<[1], [0], [0], [1], [0, 0, 1, 1], [], []>} : vector<256x4xf32>, vector<4x256xf32>, vector<256x256xf32> -> vector<256x256xf32>
    %29 = arith.addf %23, %28 : vector<256x256xf32>
    %c1_40 = arith.constant 1 : index
    %c1_41 = arith.constant 1 : index
    %c0_42 = arith.constant 0 : index
    %30 = vector.load %arg15[%c1_40, %c1_41, %c0_42] : memref<18x18x4xf32, #tpu.memory_space<vmem>>, vector<16x16x4xf32>
    %31 = vector.shape_cast %30 : vector<16x16x4xf32> to vector<256x4xf32>
    %c1_43 = arith.constant 1 : index
    %c1_44 = arith.constant 1 : index
    %c0_45 = arith.constant 0 : index
    %c0_46 = arith.constant 0 : index
    %32 = vector.load %arg2[%c1_43, %c1_44, %c0_45, %c0_46] : memref<3x3x4x256xf32, #tpu.memory_space<vmem>>, vector<1x1x4x256xf32>
    %33 = vector.shape_cast %32 : vector<1x1x4x256xf32> to vector<4x256xf32>
    %cst_47 = arith.constant dense<0.000000e+00> : vector<256x256xf32>
    %34 = tpu.matmul %31, %33, %cst_47 {dimension_numbers = #tpu.dot_dimension_numbers<[1], [0], [0], [1], [0, 0, 1, 1], [], []>} : vector<256x4xf32>, vector<4x256xf32>, vector<256x256xf32> -> vector<256x256xf32>
    %35 = arith.addf %29, %34 : vector<256x256xf32>
    %c1_48 = arith.constant 1 : index
    %c2_49 = arith.constant 2 : index
    %c0_50 = arith.constant 0 : index
    %36 = vector.load %arg15[%c1_48, %c2_49, %c0_50] : memref<18x18x4xf32, #tpu.memory_space<vmem>>, vector<16x16x4xf32>
    %37 = vector.shape_cast %36 : vector<16x16x4xf32> to vector<256x4xf32>
    %c1_51 = arith.constant 1 : index
    %c2_52 = arith.constant 2 : index
    %c0_53 = arith.constant 0 : index
    %c0_54 = arith.constant 0 : index
    %38 = vector.load %arg2[%c1_51, %c2_52, %c0_53, %c0_54] : memref<3x3x4x256xf32, #tpu.memory_space<vmem>>, vector<1x1x4x256xf32>
    %39 = vector.shape_cast %38 : vector<1x1x4x256xf32> to vector<4x256xf32>
    %cst_55 = arith.constant dense<0.000000e+00> : vector<256x256xf32>
    %40 = tpu.matmul %37, %39, %cst_55 {dimension_numbers = #tpu.dot_dimension_numbers<[1], [0], [0], [1], [0, 0, 1, 1], [], []>} : vector<256x4xf32>, vector<4x256xf32>, vector<256x256xf32> -> vector<256x256xf32>
    %41 = arith.addf %35, %40 : vector<256x256xf32>
    %c2_56 = arith.constant 2 : index
    %c0_57 = arith.constant 0 : index
    %c0_58 = arith.constant 0 : index
    %42 = vector.load %arg15[%c2_56, %c0_57, %c0_58] : memref<18x18x4xf32, #tpu.memory_space<vmem>>, vector<16x16x4xf32>
    %43 = vector.shape_cast %42 : vector<16x16x4xf32> to vector<256x4xf32>
    %c2_59 = arith.constant 2 : index
    %c0_60 = arith.constant 0 : index
    %c0_61 = arith.constant 0 : index
    %c0_62 = arith.constant 0 : index
    %44 = vector.load %arg2[%c2_59, %c0_60, %c0_61, %c0_62] : memref<3x3x4x256xf32, #tpu.memory_space<vmem>>, vector<1x1x4x256xf32>
    %45 = vector.shape_cast %44 : vector<1x1x4x256xf32> to vector<4x256xf32>
    %cst_63 = arith.constant dense<0.000000e+00> : vector<256x256xf32>
    %46 = tpu.matmul %43, %45, %cst_63 {dimension_numbers = #tpu.dot_dimension_numbers<[1], [0], [0], [1], [0, 0, 1, 1], [], []>} : vector<256x4xf32>, vector<4x256xf32>, vector<256x256xf32> -> vector<256x256xf32>
    %47 = arith.addf %41, %46 : vector<256x256xf32>
    %c2_64 = arith.constant 2 : index
    %c1_65 = arith.constant 1 : index
    %c0_66 = arith.constant 0 : index
    %48 = vector.load %arg15[%c2_64, %c1_65, %c0_66] : memref<18x18x4xf32, #tpu.memory_space<vmem>>, vector<16x16x4xf32>
    %49 = vector.shape_cast %48 : vector<16x16x4xf32> to vector<256x4xf32>
    %c2_67 = arith.constant 2 : index
    %c1_68 = arith.constant 1 : index
    %c0_69 = arith.constant 0 : index
    %c0_70 = arith.constant 0 : index
    %50 = vector.load %arg2[%c2_67, %c1_68, %c0_69, %c0_70] : memref<3x3x4x256xf32, #tpu.memory_space<vmem>>, vector<1x1x4x256xf32>
    %51 = vector.shape_cast %50 : vector<1x1x4x256xf32> to vector<4x256xf32>
    %cst_71 = arith.constant dense<0.000000e+00> : vector<256x256xf32>
    %52 = tpu.matmul %49, %51, %cst_71 {dimension_numbers = #tpu.dot_dimension_numbers<[1], [0], [0], [1], [0, 0, 1, 1], [], []>} : vector<256x4xf32>, vector<4x256xf32>, vector<256x256xf32> -> vector<256x256xf32>
    %53 = arith.addf %47, %52 : vector<256x256xf32>
    %c2_72 = arith.constant 2 : index
    %c2_73 = arith.constant 2 : index
    %c0_74 = arith.constant 0 : index
    %54 = vector.load %arg15[%c2_72, %c2_73, %c0_74] : memref<18x18x4xf32, #tpu.memory_space<vmem>>, vector<16x16x4xf32>
    %55 = vector.shape_cast %54 : vector<16x16x4xf32> to vector<256x4xf32>
    %c2_75 = arith.constant 2 : index
    %c2_76 = arith.constant 2 : index
    %c0_77 = arith.constant 0 : index
    %c0_78 = arith.constant 0 : index
    %56 = vector.load %arg2[%c2_75, %c2_76, %c0_77, %c0_78] : memref<3x3x4x256xf32, #tpu.memory_space<vmem>>, vector<1x1x4x256xf32>
    %57 = vector.shape_cast %56 : vector<1x1x4x256xf32> to vector<4x256xf32>
    %cst_79 = arith.constant dense<0.000000e+00> : vector<256x256xf32>
    %58 = tpu.matmul %55, %57, %cst_79 {dimension_numbers = #tpu.dot_dimension_numbers<[1], [0], [0], [1], [0, 0, 1, 1], [], []>} : vector<256x4xf32>, vector<4x256xf32>, vector<256x256xf32> -> vector<256x256xf32>
    %59 = arith.addf %53, %58 : vector<256x256xf32>
    %c0_80 = arith.constant 0 : index
    %c0_81 = arith.constant 0 : index
    %60 = vector.load %arg3[%c0_80, %c0_81] : memref<1x256xf32, #tpu.memory_space<vmem>>, vector<1x256xf32>
    %61 = vector.broadcast %60 : vector<1x256xf32> to vector<256x256xf32>
    %62 = arith.mulf %59, %61 : vector<256x256xf32>
    %c0_82 = arith.constant 0 : index
    %c0_83 = arith.constant 0 : index
    %63 = vector.load %arg4[%c0_82, %c0_83] : memref<1x256xf32, #tpu.memory_space<vmem>>, vector<1x256xf32>
    %64 = vector.broadcast %63 : vector<1x256xf32> to vector<256x256xf32>
    %65 = arith.addf %62, %64 : vector<256x256xf32>
    %cst_84 = arith.constant 0.000000e+00 : f32
    %66 = vector.broadcast %cst_84 : f32 to vector<256x256xf32>
    %67 = arith.maximumf %65, %66 : vector<256x256xf32>
    %68 = vector.extract_strided_slice %67 {offsets = [0, 0], sizes = [256, 128], strides = [1, 1]} : vector<256x256xf32> to vector<256x128xf32>
    %69 = vector.shape_cast %68 : vector<256x128xf32> to vector<16x16x128xf32>
    %c0_85 = arith.constant 0 : index
    %c0_86 = arith.constant 0 : index
    %c0_87 = arith.constant 0 : index
    %70 = vector.load %arg16[%c0_85, %c0_86, %c0_87] : memref<16x16x128xf32, #tpu.memory_space<vmem>>, vector<16x16x128xf32>
    tpu.vector_store %arg16[%c0_85, %c0_86, %c0_87], %69 {strides = array<i32>} : memref<16x16x128xf32, #tpu.memory_space<vmem>>, vector<16x16x128xf32>,
    %71 = vector.extract_strided_slice %67 {offsets = [0, 128], sizes = [256, 128], strides = [1, 1]} : vector<256x256xf32> to vector<256x128xf32>
    %72 = vector.shape_cast %71 : vector<256x128xf32> to vector<16x16x128xf32>
    %c0_88 = arith.constant 0 : index
    %c0_89 = arith.constant 0 : index
    %c0_90 = arith.constant 0 : index
    %73 = vector.load %arg17[%c0_88, %c0_89, %c0_90] : memref<16x16x128xf32, #tpu.memory_space<vmem>>, vector<16x16x128xf32>
    tpu.vector_store %arg17[%c0_88, %c0_89, %c0_90], %72 {strides = array<i32>} : memref<16x16x128xf32, #tpu.memory_space<vmem>>, vector<16x16x128xf32>,
    %c0_91 = arith.constant 0 : index
    %c0_92 = arith.constant 0 : index
    %c0_93 = arith.constant 0 : index
    %74 = vector.load %arg16[%c0_91, %c0_92, %c0_93] : memref<16x16x128xf32, #tpu.memory_space<vmem>>, vector<15x16x128xf32>
    %c1_94 = arith.constant 1 : index
    %c0_95 = arith.constant 0 : index
    %c0_96 = arith.constant 0 : index
    %75 = vector.load %arg16[%c1_94, %c0_95, %c0_96] : memref<16x16x128xf32, #tpu.memory_space<vmem>>, vector<15x16x128xf32>
    %76 = arith.maximumf %74, %75 : vector<15x16x128xf32>
    %c0_97 = arith.constant 0 : index
    %c0_98 = arith.constant 0 : index
    %c0_99 = arith.constant 0 : index
    %77 = vector.load %arg16[%c0_97, %c0_98, %c0_99] : memref<16x16x128xf32, #tpu.memory_space<vmem>>, vector<15x16x128xf32>
    tpu.vector_store %arg16[%c0_97, %c0_98, %c0_99], %76 {strides = array<i32>} : memref<16x16x128xf32, #tpu.memory_space<vmem>>, vector<15x16x128xf32>,
    %c0_100 = arith.constant 0 : index
    %c0_101 = arith.constant 0 : index
    %c0_102 = arith.constant 0 : index
    %78 = vector.load %arg16[%c0_100, %c0_101, %c0_102] : memref<16x16x128xf32, #tpu.memory_space<vmem>>, vector<14x16x128xf32>
    %c2_103 = arith.constant 2 : index
    %c0_104 = arith.constant 0 : index
    %c0_105 = arith.constant 0 : index
    %79 = vector.load %arg16[%c2_103, %c0_104, %c0_105] : memref<16x16x128xf32, #tpu.memory_space<vmem>>, vector<14x16x128xf32>
    %80 = arith.maximumf %78, %79 : vector<14x16x128xf32>
    %c0_106 = arith.constant 0 : index
    %c0_107 = arith.constant 0 : index
    %c0_108 = arith.constant 0 : index
    %81 = vector.load %arg16[%c0_106, %c0_107, %c0_108] : memref<16x16x128xf32, #tpu.memory_space<vmem>>, vector<14x16x128xf32>
    tpu.vector_store %arg16[%c0_106, %c0_107, %c0_108], %80 {strides = array<i32>} : memref<16x16x128xf32, #tpu.memory_space<vmem>>, vector<14x16x128xf32>,
    %c0_109 = arith.constant 0 : index
    %c0_110 = arith.constant 0 : index
    %c0_111 = arith.constant 0 : index
    %82 = vector.load %arg16[%c0_109, %c0_110, %c0_111] : memref<16x16x128xf32, #tpu.memory_space<vmem>>, vector<12x16x128xf32>
    %c4 = arith.constant 4 : index
    %c0_112 = arith.constant 0 : index
    %c0_113 = arith.constant 0 : index
    %83 = vector.load %arg16[%c4, %c0_112, %c0_113] : memref<16x16x128xf32, #tpu.memory_space<vmem>>, vector<12x16x128xf32>
    %84 = arith.maximumf %82, %83 : vector<12x16x128xf32>
    %c0_114 = arith.constant 0 : index
    %c0_115 = arith.constant 0 : index
    %c0_116 = arith.constant 0 : index
    %85 = vector.load %arg16[%c0_114, %c0_115, %c0_116] : memref<16x16x128xf32, #tpu.memory_space<vmem>>, vector<12x16x128xf32>
    tpu.vector_store %arg16[%c0_114, %c0_115, %c0_116], %84 {strides = array<i32>} : memref<16x16x128xf32, #tpu.memory_space<vmem>>, vector<12x16x128xf32>,
    %c0_117 = arith.constant 0 : index
    %c0_118 = arith.constant 0 : index
    %c0_119 = arith.constant 0 : index
    %86 = vector.load %arg16[%c0_117, %c0_118, %c0_119] : memref<16x16x128xf32, #tpu.memory_space<vmem>>, vector<8x16x128xf32>
    %c8 = arith.constant 8 : index
    %c0_120 = arith.constant 0 : index
    %c0_121 = arith.constant 0 : index
    %87 = vector.load %arg16[%c8, %c0_120, %c0_121] : memref<16x16x128xf32, #tpu.memory_space<vmem>>, vector<8x16x128xf32>
    %88 = arith.maximumf %86, %87 : vector<8x16x128xf32>
    %c0_122 = arith.constant 0 : index
    %c0_123 = arith.constant 0 : index
    %c0_124 = arith.constant 0 : index
    %89 = vector.load %arg16[%c0_122, %c0_123, %c0_124] : memref<16x16x128xf32, #tpu.memory_space<vmem>>, vector<8x16x128xf32>
    tpu.vector_store %arg16[%c0_122, %c0_123, %c0_124], %88 {strides = array<i32>} : memref<16x16x128xf32, #tpu.memory_space<vmem>>, vector<8x16x128xf32>,
    %c0_125 = arith.constant 0 : index
    %c0_126 = arith.constant 0 : index
    %c0_127 = arith.constant 0 : index
    %90 = vector.load %arg17[%c0_125, %c0_126, %c0_127] : memref<16x16x128xf32, #tpu.memory_space<vmem>>, vector<16x15x128xf32>
    %c0_128 = arith.constant 0 : index
    %c1_129 = arith.constant 1 : index
    %c0_130 = arith.constant 0 : index
    %91 = vector.load %arg17[%c0_128, %c1_129, %c0_130] : memref<16x16x128xf32, #tpu.memory_space<vmem>>, vector<16x15x128xf32>
    %92 = arith.maximumf %90, %91 : vector<16x15x128xf32>
    %c0_131 = arith.constant 0 : index
    %c0_132 = arith.constant 0 : index
    %c0_133 = arith.constant 0 : index
    %93 = vector.load %arg17[%c0_131, %c0_132, %c0_133] : memref<16x16x128xf32, #tpu.memory_space<vmem>>, vector<16x15x128xf32>
    tpu.vector_store %arg17[%c0_131, %c0_132, %c0_133], %92 {strides = array<i32>} : memref<16x16x128xf32, #tpu.memory_space<vmem>>, vector<16x15x128xf32>,
    %c0_134 = arith.constant 0 : index
    %c0_135 = arith.constant 0 : index
    %c0_136 = arith.constant 0 : index
    %94 = vector.load %arg17[%c0_134, %c0_135, %c0_136] : memref<16x16x128xf32, #tpu.memory_space<vmem>>, vector<16x14x128xf32>
    %c0_137 = arith.constant 0 : index
    %c2_138 = arith.constant 2 : index
    %c0_139 = arith.constant 0 : index
    %95 = vector.load %arg17[%c0_137, %c2_138, %c0_139] : memref<16x16x128xf32, #tpu.memory_space<vmem>>, vector<16x14x128xf32>
    %96 = arith.maximumf %94, %95 : vector<16x14x128xf32>
    %c0_140 = arith.constant 0 : index
    %c0_141 = arith.constant 0 : index
    %c0_142 = arith.constant 0 : index
    %97 = vector.load %arg17[%c0_140, %c0_141, %c0_142] : memref<16x16x128xf32, #tpu.memory_space<vmem>>, vector<16x14x128xf32>
    tpu.vector_store %arg17[%c0_140, %c0_141, %c0_142], %96 {strides = array<i32>} : memref<16x16x128xf32, #tpu.memory_space<vmem>>, vector<16x14x128xf32>,
    %c0_143 = arith.constant 0 : index
    %c0_144 = arith.constant 0 : index
    %c0_145 = arith.constant 0 : index
    %98 = vector.load %arg17[%c0_143, %c0_144, %c0_145] : memref<16x16x128xf32, #tpu.memory_space<vmem>>, vector<16x12x128xf32>
    %c0_146 = arith.constant 0 : index
    %c4_147 = arith.constant 4 : index
    %c0_148 = arith.constant 0 : index
    %99 = vector.load %arg17[%c0_146, %c4_147, %c0_148] : memref<16x16x128xf32, #tpu.memory_space<vmem>>, vector<16x12x128xf32>
    %100 = arith.maximumf %98, %99 : vector<16x12x128xf32>
    %c0_149 = arith.constant 0 : index
    %c0_150 = arith.constant 0 : index
    %c0_151 = arith.constant 0 : index
    %101 = vector.load %arg17[%c0_149, %c0_150, %c0_151] : memref<16x16x128xf32, #tpu.memory_space<vmem>>, vector<16x12x128xf32>
    tpu.vector_store %arg17[%c0_149, %c0_150, %c0_151], %100 {strides = array<i32>} : memref<16x16x128xf32, #tpu.memory_space<vmem>>, vector<16x12x128xf32>,
    %c0_152 = arith.constant 0 : index
    %c0_153 = arith.constant 0 : index
    %c0_154 = arith.constant 0 : index
    %102 = vector.load %arg17[%c0_152, %c0_153, %c0_154] : memref<16x16x128xf32, #tpu.memory_space<vmem>>, vector<16x8x128xf32>
    %c0_155 = arith.constant 0 : index
    %c8_156 = arith.constant 8 : index
    %c0_157 = arith.constant 0 : index
    %103 = vector.load %arg17[%c0_155, %c8_156, %c0_157] : memref<16x16x128xf32, #tpu.memory_space<vmem>>, vector<16x8x128xf32>
    %104 = arith.maximumf %102, %103 : vector<16x8x128xf32>
    %c0_158 = arith.constant 0 : index
    %c0_159 = arith.constant 0 : index
    %c0_160 = arith.constant 0 : index
    %105 = vector.load %arg17[%c0_158, %c0_159, %c0_160] : memref<16x16x128xf32, #tpu.memory_space<vmem>>, vector<16x8x128xf32>
    tpu.vector_store %arg17[%c0_158, %c0_159, %c0_160], %104 {strides = array<i32>} : memref<16x16x128xf32, #tpu.memory_space<vmem>>, vector<16x8x128xf32>,
    %cst_161 = arith.constant 0.000000e+00 : f32
    %106 = vector.broadcast %cst_161 : f32 to vector<18x18x128xf32>
    %c0_162 = arith.constant 0 : index
    %c0_163 = arith.constant 0 : index
    %c0_164 = arith.constant 0 : index
    %107 = vector.load %arg18[%c0_162, %c0_163, %c0_164] : memref<18x18x128xf32, #tpu.memory_space<vmem>>, vector<18x18x128xf32>
    tpu.vector_store %arg18[%c0_162, %c0_163, %c0_164], %106 {strides = array<i32>} : memref<18x18x128xf32, #tpu.memory_space<vmem>>, vector<18x18x128xf32>,
    %c0_165 = arith.constant 0 : index
    %c0_166 = arith.constant 0 : index
    %c0_167 = arith.constant 0 : index
    %108 = vector.load %arg16[%c0_165, %c0_166, %c0_167] : memref<16x16x128xf32, #tpu.memory_space<vmem>>, vector<16x16x128xf32>
    %c0_168 = arith.constant 0 : index
    %c0_169 = arith.constant 0 : index
    %c0_170 = arith.constant 0 : index
    %109 = vector.load %arg17[%c0_168, %c0_169, %c0_170] : memref<16x16x128xf32, #tpu.memory_space<vmem>>, vector<16x16x128xf32>
    %110 = arith.addf %108, %109 : vector<16x16x128xf32>
    %c1_171 = arith.constant 1 : index
    %c1_172 = arith.constant 1 : index
    %c0_173 = arith.constant 0 : index
    %111 = vector.load %arg18[%c1_171, %c1_172, %c0_173] : memref<18x18x128xf32, #tpu.memory_space<vmem>>, vector<16x16x128xf32>
    tpu.vector_store %arg18[%c1_171, %c1_172, %c0_173], %110 {strides = array<i32>} : memref<18x18x128xf32, #tpu.memory_space<vmem>>, vector<16x16x128xf32>,
    %c0_174 = arith.constant 0 : index
    %c0_175 = arith.constant 0 : index
    %c0_176 = arith.constant 0 : index
    %112 = vector.load %arg18[%c0_174, %c0_175, %c0_176] : memref<18x18x128xf32, #tpu.memory_space<vmem>>, vector<16x16x128xf32>
    %113 = vector.shape_cast %112 : vector<16x16x128xf32> to vector<256x128xf32>
    %c0_177 = arith.constant 0 : index
    %c1_178 = arith.constant 1 : index
    %c0_179 = arith.constant 0 : index
    %114 = vector.load %arg18[%c0_177, %c1_178, %c0_179] : memref<18x18x128xf32, #tpu.memory_space<vmem>>, vector<16x16x128xf32>
    %115 = vector.shape_cast %114 : vector<16x16x128xf32> to vector<256x128xf32>
    %c0_180 = arith.constant 0 : index
    %c2_181 = arith.constant 2 : index
    %c0_182 = arith.constant 0 : index
    %116 = vector.load %arg18[%c0_180, %c2_181, %c0_182] : memref<18x18x128xf32, #tpu.memory_space<vmem>>, vector<16x16x128xf32>
    %117 = vector.shape_cast %116 : vector<16x16x128xf32> to vector<256x128xf32>
    %c1_183 = arith.constant 1 : index
    %c0_184 = arith.constant 0 : index
    %c0_185 = arith.constant 0 : index
    %118 = vector.load %arg18[%c1_183, %c0_184, %c0_185] : memref<18x18x128xf32, #tpu.memory_space<vmem>>, vector<16x16x128xf32>
    %119 = vector.shape_cast %118 : vector<16x16x128xf32> to vector<256x128xf32>
    %c1_186 = arith.constant 1 : index
    %c1_187 = arith.constant 1 : index
    %c0_188 = arith.constant 0 : index
    %120 = vector.load %arg18[%c1_186, %c1_187, %c0_188] : memref<18x18x128xf32, #tpu.memory_space<vmem>>, vector<16x16x128xf32>
    %121 = vector.shape_cast %120 : vector<16x16x128xf32> to vector<256x128xf32>
    %c1_189 = arith.constant 1 : index
    %c2_190 = arith.constant 2 : index
    %c0_191 = arith.constant 0 : index
    %122 = vector.load %arg18[%c1_189, %c2_190, %c0_191] : memref<18x18x128xf32, #tpu.memory_space<vmem>>, vector<16x16x128xf32>
    %123 = vector.shape_cast %122 : vector<16x16x128xf32> to vector<256x128xf32>
    %c2_192 = arith.constant 2 : index
    %c0_193 = arith.constant 0 : index
    %c0_194 = arith.constant 0 : index
    %124 = vector.load %arg18[%c2_192, %c0_193, %c0_194] : memref<18x18x128xf32, #tpu.memory_space<vmem>>, vector<16x16x128xf32>
    %125 = vector.shape_cast %124 : vector<16x16x128xf32> to vector<256x128xf32>
    %c2_195 = arith.constant 2 : index
    %c1_196 = arith.constant 1 : index
    %c0_197 = arith.constant 0 : index
    %126 = vector.load %arg18[%c2_195, %c1_196, %c0_197] : memref<18x18x128xf32, #tpu.memory_space<vmem>>, vector<16x16x128xf32>
    %127 = vector.shape_cast %126 : vector<16x16x128xf32> to vector<256x128xf32>
    %c2_198 = arith.constant 2 : index
    %c2_199 = arith.constant 2 : index
    %c0_200 = arith.constant 0 : index
    %128 = vector.load %arg18[%c2_198, %c2_199, %c0_200] : memref<18x18x128xf32, #tpu.memory_space<vmem>>, vector<16x16x128xf32>
    %129 = vector.shape_cast %128 : vector<16x16x128xf32> to vector<256x128xf32>
    %130 = tpu.concatenate %113, %115, %117, %119, %121, %123, %125, %127, %129 in 1 : vector<256x128xf32>, vector<256x128xf32>, vector<256x128xf32>, vector<256x128xf32>, vector<256x128xf32>, vector<256x128xf32>, vector<256x128xf32>, vector<256x128xf32>, vector<256x128xf32> -> vector<256x1152xf32>
    %c0_201 = arith.constant 0 : index
    %c0_202 = arith.constant 0 : index
    %131 = vector.load %arg5[%c0_201, %c0_202] : memref<1152x4xf32, #tpu.memory_space<vmem>>, vector<1152x4xf32>
    %cst_203 = arith.constant dense<0.000000e+00> : vector<256x4xf32>
    %132 = tpu.matmul %130, %131, %cst_203 {dimension_numbers = #tpu.dot_dimension_numbers<[1], [0], [0], [1], [0, 0, 1, 1], [], []>} : vector<256x1152xf32>, vector<1152x4xf32>, vector<256x4xf32> -> vector<256x4xf32>
    %c0_204 = arith.constant 0 : index
    %c0_205 = arith.constant 0 : index
    %133 = vector.load %arg6[%c0_204, %c0_205] : memref<1x4xf32, #tpu.memory_space<vmem>>, vector<1x4xf32>
    %134 = vector.broadcast %133 : vector<1x4xf32> to vector<256x4xf32>
    %135 = arith.mulf %132, %134 : vector<256x4xf32>
    %c0_206 = arith.constant 0 : index
    %c0_207 = arith.constant 0 : index
    %136 = vector.load %arg7[%c0_206, %c0_207] : memref<1x4xf32, #tpu.memory_space<vmem>>, vector<1x4xf32>
    %137 = vector.broadcast %136 : vector<1x4xf32> to vector<256x4xf32>
    %138 = arith.addf %135, %137 : vector<256x4xf32>
    %c0_208 = arith.constant 0 : index
    %c0_209 = arith.constant 0 : index
    %c0_210 = arith.constant 0 : index
    %c0_211 = arith.constant 0 : index
    %139 = vector.load %arg1[%c0_208, %c0_209, %c0_210, %c0_211] : memref<1x16x16x4xf32, #tpu.memory_space<vmem>>, vector<1x16x16x4xf32>
    %140 = vector.shape_cast %139 : vector<1x16x16x4xf32> to vector<16x16x4xf32>
    %141 = vector.shape_cast %140 : vector<16x16x4xf32> to vector<256x4xf32>
    %c0_212 = arith.constant 0 : index
    %c0_213 = arith.constant 0 : index
    %142 = vector.load %arg8[%c0_212, %c0_213] : memref<4x4xf32, #tpu.memory_space<vmem>>, vector<4x4xf32>
    %cst_214 = arith.constant dense<0.000000e+00> : vector<256x4xf32>
    %143 = tpu.matmul %141, %142, %cst_214 {dimension_numbers = #tpu.dot_dimension_numbers<[1], [0], [0], [1], [0, 0, 1, 1], [], []>} : vector<256x4xf32>, vector<4x4xf32>, vector<256x4xf32> -> vector<256x4xf32>
    %c0_215 = arith.constant 0 : index
    %c0_216 = arith.constant 0 : index
    %144 = vector.load %arg9[%c0_215, %c0_216] : memref<1x4xf32, #tpu.memory_space<vmem>>, vector<1x4xf32>
    %145 = vector.broadcast %144 : vector<1x4xf32> to vector<256x4xf32>
    %146 = arith.mulf %143, %145 : vector<256x4xf32>
    %c0_217 = arith.constant 0 : index
    %c0_218 = arith.constant 0 : index
    %147 = vector.load %arg10[%c0_217, %c0_218] : memref<1x4xf32, #tpu.memory_space<vmem>>, vector<1x4xf32>
    %148 = vector.broadcast %147 : vector<1x4xf32> to vector<256x4xf32>
    %149 = arith.addf %146, %148 : vector<256x4xf32>
    %150 = arith.addf %138, %149 : vector<256x4xf32>
    %cst_219 = arith.constant 0.000000e+00 : f32
    %151 = vector.broadcast %cst_219 : f32 to vector<256x4xf32>
    %152 = arith.maximumf %150, %151 : vector<256x4xf32>
    %153 = vector.shape_cast %152 : vector<256x4xf32> to vector<16x16x4xf32>
    %cst_220 = arith.constant 0.000000e+00 : f32
    %154 = vector.broadcast %cst_220 : f32 to vector<18x18x4xf32>
    %c0_221 = arith.constant 0 : index
    %c0_222 = arith.constant 0 : index
    %c0_223 = arith.constant 0 : index
    %155 = vector.load %arg19[%c0_221, %c0_222, %c0_223] : memref<18x18x4xf32, #tpu.memory_space<vmem>>, vector<18x18x4xf32>
    tpu.vector_store %arg19[%c0_221, %c0_222, %c0_223], %154 {strides = array<i32>} : memref<18x18x4xf32, #tpu.memory_space<vmem>>, vector<18x18x4xf32>,
    %c1_224 = arith.constant 1 : index
    %c1_225 = arith.constant 1 : index
    %c0_226 = arith.constant 0 : index
    %156 = vector.load %arg19[%c1_224, %c1_225, %c0_226] : memref<18x18x4xf32, #tpu.memory_space<vmem>>, vector<16x16x4xf32>
    tpu.vector_store %arg19[%c1_224, %c1_225, %c0_226], %153 {strides = array<i32>} : memref<18x18x4xf32, #tpu.memory_space<vmem>>, vector<16x16x4xf32>,
    %cst_227 = arith.constant 0.000000e+00 : f32
    %157 = vector.broadcast %cst_227 : f32 to vector<256x4xf32>
    %c0_228 = arith.constant 0 : index
    %c0_229 = arith.constant 0 : index
    %c0_230 = arith.constant 0 : index
    %158 = vector.load %arg19[%c0_228, %c0_229, %c0_230] : memref<18x18x4xf32, #tpu.memory_space<vmem>>, vector<16x16x4xf32>
    %159 = vector.shape_cast %158 : vector<16x16x4xf32> to vector<256x4xf32>
    %c0_231 = arith.constant 0 : index
    %c0_232 = arith.constant 0 : index
    %c0_233 = arith.constant 0 : index
    %c0_234 = arith.constant 0 : index
    %160 = vector.load %arg11[%c0_231, %c0_232, %c0_233, %c0_234] : memref<3x3x4x4xf32, #tpu.memory_space<vmem>>, vector<1x1x4x4xf32>
    %161 = vector.shape_cast %160 : vector<1x1x4x4xf32> to vector<4x4xf32>
    %cst_235 = arith.constant dense<0.000000e+00> : vector<256x4xf32>
    %162 = tpu.matmul %159, %161, %cst_235 {dimension_numbers = #tpu.dot_dimension_numbers<[1], [0], [0], [1], [0, 0, 1, 1], [], []>} : vector<256x4xf32>, vector<4x4xf32>, vector<256x4xf32> -> vector<256x4xf32>
    %163 = arith.addf %157, %162 : vector<256x4xf32>
    %c0_236 = arith.constant 0 : index
    %c1_237 = arith.constant 1 : index
    %c0_238 = arith.constant 0 : index
    %164 = vector.load %arg19[%c0_236, %c1_237, %c0_238] : memref<18x18x4xf32, #tpu.memory_space<vmem>>, vector<16x16x4xf32>
    %165 = vector.shape_cast %164 : vector<16x16x4xf32> to vector<256x4xf32>
    %c0_239 = arith.constant 0 : index
    %c1_240 = arith.constant 1 : index
    %c0_241 = arith.constant 0 : index
    %c0_242 = arith.constant 0 : index
    %166 = vector.load %arg11[%c0_239, %c1_240, %c0_241, %c0_242] : memref<3x3x4x4xf32, #tpu.memory_space<vmem>>, vector<1x1x4x4xf32>
    %167 = vector.shape_cast %166 : vector<1x1x4x4xf32> to vector<4x4xf32>
    %cst_243 = arith.constant dense<0.000000e+00> : vector<256x4xf32>
    %168 = tpu.matmul %165, %167, %cst_243 {dimension_numbers = #tpu.dot_dimension_numbers<[1], [0], [0], [1], [0, 0, 1, 1], [], []>} : vector<256x4xf32>, vector<4x4xf32>, vector<256x4xf32> -> vector<256x4xf32>
    %169 = arith.addf %163, %168 : vector<256x4xf32>
    %c0_244 = arith.constant 0 : index
    %c2_245 = arith.constant 2 : index
    %c0_246 = arith.constant 0 : index
    %170 = vector.load %arg19[%c0_244, %c2_245, %c0_246] : memref<18x18x4xf32, #tpu.memory_space<vmem>>, vector<16x16x4xf32>
    %171 = vector.shape_cast %170 : vector<16x16x4xf32> to vector<256x4xf32>
    %c0_247 = arith.constant 0 : index
    %c2_248 = arith.constant 2 : index
    %c0_249 = arith.constant 0 : index
    %c0_250 = arith.constant 0 : index
    %172 = vector.load %arg11[%c0_247, %c2_248, %c0_249, %c0_250] : memref<3x3x4x4xf32, #tpu.memory_space<vmem>>, vector<1x1x4x4xf32>
    %173 = vector.shape_cast %172 : vector<1x1x4x4xf32> to vector<4x4xf32>
    %cst_251 = arith.constant dense<0.000000e+00> : vector<256x4xf32>
    %174 = tpu.matmul %171, %173, %cst_251 {dimension_numbers = #tpu.dot_dimension_numbers<[1], [0], [0], [1], [0, 0, 1, 1], [], []>} : vector<256x4xf32>, vector<4x4xf32>, vector<256x4xf32> -> vector<256x4xf32>
    %175 = arith.addf %169, %174 : vector<256x4xf32>
    %c1_252 = arith.constant 1 : index
    %c0_253 = arith.constant 0 : index
    %c0_254 = arith.constant 0 : index
    %176 = vector.load %arg19[%c1_252, %c0_253, %c0_254] : memref<18x18x4xf32, #tpu.memory_space<vmem>>, vector<16x16x4xf32>
    %177 = vector.shape_cast %176 : vector<16x16x4xf32> to vector<256x4xf32>
    %c1_255 = arith.constant 1 : index
    %c0_256 = arith.constant 0 : index
    %c0_257 = arith.constant 0 : index
    %c0_258 = arith.constant 0 : index
    %178 = vector.load %arg11[%c1_255, %c0_256, %c0_257, %c0_258] : memref<3x3x4x4xf32, #tpu.memory_space<vmem>>, vector<1x1x4x4xf32>
    %179 = vector.shape_cast %178 : vector<1x1x4x4xf32> to vector<4x4xf32>
    %cst_259 = arith.constant dense<0.000000e+00> : vector<256x4xf32>
    %180 = tpu.matmul %177, %179, %cst_259 {dimension_numbers = #tpu.dot_dimension_numbers<[1], [0], [0], [1], [0, 0, 1, 1], [], []>} : vector<256x4xf32>, vector<4x4xf32>, vector<256x4xf32> -> vector<256x4xf32>
    %181 = arith.addf %175, %180 : vector<256x4xf32>
    %c1_260 = arith.constant 1 : index
    %c1_261 = arith.constant 1 : index
    %c0_262 = arith.constant 0 : index
    %182 = vector.load %arg19[%c1_260, %c1_261, %c0_262] : memref<18x18x4xf32, #tpu.memory_space<vmem>>, vector<16x16x4xf32>
    %183 = vector.shape_cast %182 : vector<16x16x4xf32> to vector<256x4xf32>
    %c1_263 = arith.constant 1 : index
    %c1_264 = arith.constant 1 : index
    %c0_265 = arith.constant 0 : index
    %c0_266 = arith.constant 0 : index
    %184 = vector.load %arg11[%c1_263, %c1_264, %c0_265, %c0_266] : memref<3x3x4x4xf32, #tpu.memory_space<vmem>>, vector<1x1x4x4xf32>
    %185 = vector.shape_cast %184 : vector<1x1x4x4xf32> to vector<4x4xf32>
    %cst_267 = arith.constant dense<0.000000e+00> : vector<256x4xf32>
    %186 = tpu.matmul %183, %185, %cst_267 {dimension_numbers = #tpu.dot_dimension_numbers<[1], [0], [0], [1], [0, 0, 1, 1], [], []>} : vector<256x4xf32>, vector<4x4xf32>, vector<256x4xf32> -> vector<256x4xf32>
    %187 = arith.addf %181, %186 : vector<256x4xf32>
    %c1_268 = arith.constant 1 : index
    %c2_269 = arith.constant 2 : index
    %c0_270 = arith.constant 0 : index
    %188 = vector.load %arg19[%c1_268, %c2_269, %c0_270] : memref<18x18x4xf32, #tpu.memory_space<vmem>>, vector<16x16x4xf32>
    %189 = vector.shape_cast %188 : vector<16x16x4xf32> to vector<256x4xf32>
    %c1_271 = arith.constant 1 : index
    %c2_272 = arith.constant 2 : index
    %c0_273 = arith.constant 0 : index
    %c0_274 = arith.constant 0 : index
    %190 = vector.load %arg11[%c1_271, %c2_272, %c0_273, %c0_274] : memref<3x3x4x4xf32, #tpu.memory_space<vmem>>, vector<1x1x4x4xf32>
    %191 = vector.shape_cast %190 : vector<1x1x4x4xf32> to vector<4x4xf32>
    %cst_275 = arith.constant dense<0.000000e+00> : vector<256x4xf32>
    %192 = tpu.matmul %189, %191, %cst_275 {dimension_numbers = #tpu.dot_dimension_numbers<[1], [0], [0], [1], [0, 0, 1, 1], [], []>} : vector<256x4xf32>, vector<4x4xf32>, vector<256x4xf32> -> vector<256x4xf32>
    %193 = arith.addf %187, %192 : vector<256x4xf32>
    %c2_276 = arith.constant 2 : index
    %c0_277 = arith.constant 0 : index
    %c0_278 = arith.constant 0 : index
    %194 = vector.load %arg19[%c2_276, %c0_277, %c0_278] : memref<18x18x4xf32, #tpu.memory_space<vmem>>, vector<16x16x4xf32>
    %195 = vector.shape_cast %194 : vector<16x16x4xf32> to vector<256x4xf32>
    %c2_279 = arith.constant 2 : index
    %c0_280 = arith.constant 0 : index
    %c0_281 = arith.constant 0 : index
    %c0_282 = arith.constant 0 : index
    %196 = vector.load %arg11[%c2_279, %c0_280, %c0_281, %c0_282] : memref<3x3x4x4xf32, #tpu.memory_space<vmem>>, vector<1x1x4x4xf32>
    %197 = vector.shape_cast %196 : vector<1x1x4x4xf32> to vector<4x4xf32>
    %cst_283 = arith.constant dense<0.000000e+00> : vector<256x4xf32>
    %198 = tpu.matmul %195, %197, %cst_283 {dimension_numbers = #tpu.dot_dimension_numbers<[1], [0], [0], [1], [0, 0, 1, 1], [], []>} : vector<256x4xf32>, vector<4x4xf32>, vector<256x4xf32> -> vector<256x4xf32>
    %199 = arith.addf %193, %198 : vector<256x4xf32>
    %c2_284 = arith.constant 2 : index
    %c1_285 = arith.constant 1 : index
    %c0_286 = arith.constant 0 : index
    %200 = vector.load %arg19[%c2_284, %c1_285, %c0_286] : memref<18x18x4xf32, #tpu.memory_space<vmem>>, vector<16x16x4xf32>
    %201 = vector.shape_cast %200 : vector<16x16x4xf32> to vector<256x4xf32>
    %c2_287 = arith.constant 2 : index
    %c1_288 = arith.constant 1 : index
    %c0_289 = arith.constant 0 : index
    %c0_290 = arith.constant 0 : index
    %202 = vector.load %arg11[%c2_287, %c1_288, %c0_289, %c0_290] : memref<3x3x4x4xf32, #tpu.memory_space<vmem>>, vector<1x1x4x4xf32>
    %203 = vector.shape_cast %202 : vector<1x1x4x4xf32> to vector<4x4xf32>
    %cst_291 = arith.constant dense<0.000000e+00> : vector<256x4xf32>
    %204 = tpu.matmul %201, %203, %cst_291 {dimension_numbers = #tpu.dot_dimension_numbers<[1], [0], [0], [1], [0, 0, 1, 1], [], []>} : vector<256x4xf32>, vector<4x4xf32>, vector<256x4xf32> -> vector<256x4xf32>
    %205 = arith.addf %199, %204 : vector<256x4xf32>
    %c2_292 = arith.constant 2 : index
    %c2_293 = arith.constant 2 : index
    %c0_294 = arith.constant 0 : index
    %206 = vector.load %arg19[%c2_292, %c2_293, %c0_294] : memref<18x18x4xf32, #tpu.memory_space<vmem>>, vector<16x16x4xf32>
    %207 = vector.shape_cast %206 : vector<16x16x4xf32> to vector<256x4xf32>
    %c2_295 = arith.constant 2 : index
    %c2_296 = arith.constant 2 : index
    %c0_297 = arith.constant 0 : index
    %c0_298 = arith.constant 0 : index
    %208 = vector.load %arg11[%c2_295, %c2_296, %c0_297, %c0_298] : memref<3x3x4x4xf32, #tpu.memory_space<vmem>>, vector<1x1x4x4xf32>
    %209 = vector.shape_cast %208 : vector<1x1x4x4xf32> to vector<4x4xf32>
    %cst_299 = arith.constant dense<0.000000e+00> : vector<256x4xf32>
    %210 = tpu.matmul %207, %209, %cst_299 {dimension_numbers = #tpu.dot_dimension_numbers<[1], [0], [0], [1], [0, 0, 1, 1], [], []>} : vector<256x4xf32>, vector<4x4xf32>, vector<256x4xf32> -> vector<256x4xf32>
    %211 = arith.addf %205, %210 : vector<256x4xf32>
    %c0_300 = arith.constant 0 : index
    %c0_301 = arith.constant 0 : index
    %212 = vector.load %arg12[%c0_300, %c0_301] : memref<1x4xf32, #tpu.memory_space<vmem>>, vector<1x4xf32>
    %213 = vector.broadcast %212 : vector<1x4xf32> to vector<256x4xf32>
    %214 = arith.mulf %211, %213 : vector<256x4xf32>
    %c0_302 = arith.constant 0 : index
    %c0_303 = arith.constant 0 : index
    %215 = vector.load %arg13[%c0_302, %c0_303] : memref<1x4xf32, #tpu.memory_space<vmem>>, vector<1x4xf32>
    %216 = vector.broadcast %215 : vector<1x4xf32> to vector<256x4xf32>
    %217 = arith.addf %214, %216 : vector<256x4xf32>
    %cst_304 = arith.constant 0.000000e+00 : f32
    %218 = vector.broadcast %cst_304 : f32 to vector<256x4xf32>
    %219 = arith.maximumf %217, %218 : vector<256x4xf32>
    %220 = vector.shape_cast %219 : vector<256x4xf32> to vector<16x16x4xf32>
    %c0_305 = arith.constant 0 : index
    %c0_306 = arith.constant 0 : index
    %c0_307 = arith.constant 0 : index
    %c0_308 = arith.constant 0 : index
    %221 = vector.load %arg14[%c0_305, %c0_306, %c0_307, %c0_308] : memref<1x16x16x4xf32, #tpu.memory_space<vmem>>, vector<1x16x16x4xf32>
    %222 = vector.shape_cast %221 : vector<1x16x16x4xf32> to vector<16x16x4xf32>
    %223 = vector.shape_cast %220 : vector<16x16x4xf32> to vector<1x16x16x4xf32>
    tpu.vector_store %arg14[%c0_305, %c0_306, %c0_307, %c0_308], %223 {strides = array<i32>} : memref<1x16x16x4xf32, #tpu.memory_space<vmem>>, vector<1x16x16x4xf32>,
    return
  }
  func.func @transform_0(%arg0: i32) -> (i32, i32, i32, i32) {
    %c0_i32 = arith.constant 0 : i32
    %c0_i32_0 = arith.constant 0 : i32
    %c0_i32_1 = arith.constant 0 : i32
    %c0_i32_2 = arith.constant 0 : i32
    return %arg0, %c0_i32, %c0_i32_0, %c0_i32_1 : i32, i32, i32, i32
  }
  func.func @transform_1(%arg0: i32) -> (i32, i32, i32, i32) {
    %c0_i32 = arith.constant 0 : i32
    %c0_i32_0 = arith.constant 0 : i32
    %c0_i32_1 = arith.constant 0 : i32
    %c0_i32_2 = arith.constant 0 : i32
    %c0_i32_3 = arith.constant 0 : i32
    return %c0_i32, %c0_i32_0, %c0_i32_1, %c0_i32_2 : i32, i32, i32, i32
  }
  func.func @transform_2(%arg0: i32) -> (i32, i32) {
    %c0_i32 = arith.constant 0 : i32
    %c0_i32_0 = arith.constant 0 : i32
    %c0_i32_1 = arith.constant 0 : i32
    return %c0_i32, %c0_i32_0 : i32, i32
  }
  func.func @transform_3(%arg0: i32) -> (i32, i32) {
    %c0_i32 = arith.constant 0 : i32
    %c0_i32_0 = arith.constant 0 : i32
    %c0_i32_1 = arith.constant 0 : i32
    return %c0_i32, %c0_i32_0 : i32, i32
  }
  func.func @transform_4(%arg0: i32) -> (i32, i32) {
    %c0_i32 = arith.constant 0 : i32
    %c0_i32_0 = arith.constant 0 : i32
    %c0_i32_1 = arith.constant 0 : i32
    return %c0_i32, %c0_i32_0 : i32, i32
  }
  func.func @transform_5(%arg0: i32) -> (i32, i32) {
    %c0_i32 = arith.constant 0 : i32
    %c0_i32_0 = arith.constant 0 : i32
    %c0_i32_1 = arith.constant 0 : i32
    return %c0_i32, %c0_i32_0 : i32, i32
  }
  func.func @transform_6(%arg0: i32) -> (i32, i32) {
    %c0_i32 = arith.constant 0 : i32
    %c0_i32_0 = arith.constant 0 : i32
    %c0_i32_1 = arith.constant 0 : i32
    return %c0_i32, %c0_i32_0 : i32, i32
  }
  func.func @transform_7(%arg0: i32) -> (i32, i32) {
    %c0_i32 = arith.constant 0 : i32
    %c0_i32_0 = arith.constant 0 : i32
    %c0_i32_1 = arith.constant 0 : i32
    return %c0_i32, %c0_i32_0 : i32, i32
  }
  func.func @transform_8(%arg0: i32) -> (i32, i32) {
    %c0_i32 = arith.constant 0 : i32
    %c0_i32_0 = arith.constant 0 : i32
    %c0_i32_1 = arith.constant 0 : i32
    return %c0_i32, %c0_i32_0 : i32, i32
  }
  func.func @transform_9(%arg0: i32) -> (i32, i32) {
    %c0_i32 = arith.constant 0 : i32
    %c0_i32_0 = arith.constant 0 : i32
    %c0_i32_1 = arith.constant 0 : i32
    return %c0_i32, %c0_i32_0 : i32, i32
  }
  func.func @transform_10(%arg0: i32) -> (i32, i32, i32, i32) {
    %c0_i32 = arith.constant 0 : i32
    %c0_i32_0 = arith.constant 0 : i32
    %c0_i32_1 = arith.constant 0 : i32
    %c0_i32_2 = arith.constant 0 : i32
    %c0_i32_3 = arith.constant 0 : i32
    return %c0_i32, %c0_i32_0, %c0_i32_1, %c0_i32_2 : i32, i32, i32, i32
  }
  func.func @transform_11(%arg0: i32) -> (i32, i32) {
    %c0_i32 = arith.constant 0 : i32
    %c0_i32_0 = arith.constant 0 : i32
    %c0_i32_1 = arith.constant 0 : i32
    return %c0_i32, %c0_i32_0 : i32, i32
  }
  func.func @transform_12(%arg0: i32) -> (i32, i32) {
    %c0_i32 = arith.constant 0 : i32
    %c0_i32_0 = arith.constant 0 : i32
    %c0_i32_1 = arith.constant 0 : i32
    return %c0_i32, %c0_i32_0 : i32, i32
  }
  func.func @transform_13(%arg0: i32) -> (i32, i32, i32, i32) {
    %c0_i32 = arith.constant 0 : i32
    %c0_i32_0 = arith.constant 0 : i32
    %c0_i32_1 = arith.constant 0 : i32
    %c0_i32_2 = arith.constant 0 : i32
    return %arg0, %c0_i32, %c0_i32_0, %c0_i32_1 : i32, i32, i32, i32
  }
}

</mosaic_0001>

<bundles_post_ra>
// kernel: corner_pool_forward.1
= control target key start
LH: loop header
LB: loop body
LE: loop exit
PB: predicated region body
PF: predicated region fallthrough
CT: control target
= control target key end

     0   :  { %s13455_s25 = smov 0   ;;  %s20417_s0 = inlined_call_operand.vmem [shape: f32[2,16,16,4], index: 0, kind: input, shape index: {}]   ;;  %s20418_s1 = inlined_call_operand.vmem [shape: f32[3,3,4,256], index: 1, kind: input, shape index: {}]   ;;  %s20419_s2 = inlined_call_operand.vmem [shape: f32[1,256], index: 2, kind: input, shape index: {}]   ;;  %s20420_s3 = inlined_call_operand.vmem [shape: f32[1,256], index: 3, kind: input, shape index: {}]   ;;  %s20421_s4 = inlined_call_operand.vmem [shape: f32[1152,4], index: 4, kind: input, shape index: {}]   ;;  %s20422_s5 = inlined_call_operand.vmem [shape: f32[1,4], index: 5, kind: input, shape index: {}]   ;;  %s20423_s6 = inlined_call_operand.vmem [shape: f32[1,4], index: 6, kind: input, shape index: {}]   ;;  %s20424_s7 = inlined_call_operand.vmem [shape: f32[4,4], index: 7, kind: input, shape index: {}]   ;;  %s20425_s8 = inlined_call_operand.vmem [shape: f32[1,4], index: 8, kind: input, shape index: {}]   ;;  %s20426_s9 = inlined_call_operand.vmem [shape: f32[1,4], index: 9, kind: input, shape index: {}]   ;;  %s20427_s10 = inlined_call_operand.vmem [shape: f32[3,3,4,4], index: 10, kind: input, shape index: {}]   ;;  %s20428_s11 = inlined_call_operand.vmem [shape: f32[1,4], index: 11, kind: input, shape index: {}]   ;;  %s20429_s12 = inlined_call_operand.vmem [shape: f32[1,4], index: 12, kind: input, shape index: {}]   ;;  %s20430_s13 = inlined_call_operand.vmem [shape: f32[2,16,16,4], index: 13, kind: output, shape index: {}]  }
   0x1 LB: > { %s11720_s26 = sadd.s32 4294967295, %s13382_s25   ;;  %p11724_p0 = scmp.ge.s32.totalorder %s13382_s25, 1  ;;  %s13382_s25 = sphi %s13455_s25, %s23_s25  }
   0x2   : > { %p387_p1 = scmp.lt.s32.totalorder %s13382_s25, 3 }
   0x4   : > { %p388_p2 = pnand %p11724_p0, %p387_p1 }
   0x6   : > { %391 = sbr.rel (%p388_p2) target bundleno = 1981 (0x7bd), region = 72 }
   0xb   : > { %v13466_v0 = vld [vmem:[%s20418_s1 + $0x8] sm:$0xff]  ;;  %vm727_vm0 = vcmask 1043456   ;;  %v13471_v1 = vld [vmem:[%s20418_s1 + $0x10] sm:$0xff]  ;;  %vm441_vm1 = vcmask 31744   ;;  %vm444_vm2 = vcmask 25600   ;;  %v13384_v3 = vmov 0.0  }
   0xc   : > { %v13475_v2 = vcombine.high %v13466_v0, %v13466_v0  ;;  %796 = vmatprep.mubr.f32.mxu0 %v13384_v3  ;;  %5672 = vst [vmem:[#allocation5] sm:$0xff] %v13384_v3  ;;  %5673 = vst [vmem:[#allocation5 + $0x8] sm:$0xff] %v13384_v3  ;;  %v1383_v4 = vcombine.high %v13471_v1, %v13471_v1  ;;  %940 = vmatprep.mubr.f32.mxu1 %v13384_v3  ;;  %p431_p3 = scmp.lt.s32.totalorder %s11720_s26, 1  ;;  %v13756_v5 = vld [vmem:[%s20418_s1] sm:$0xff]  ;;  %v13816_v21 = vld [vmem:[%s20418_s1 + $0x18] sm:$0xff] }
   0xd   : > { %5674 = vst [vmem:[#allocation5 + $0x10] sm:$0x3] %v13384_v3  ;;  %5675 = vst [vmem:[#allocation5 + $0x18] sm:$0xff] %v13384_v3  ;;  %v990_v6 = vcombine.high %v13756_v5, %v13756_v5  ;;  %v13775_v7 = vld [vmem:[%s20418_s1 + $0x20] sm:$0xff]  ;;  %v1840_v34 = vcombine.high %v13816_v21, %v13816_v21 }
   0xe   : > { %5676 = vst [vmem:[#allocation5 + $0x20] sm:$0xff] %v13384_v3  ;;  %5677 = vst [vmem:[#allocation5 + $0x28] sm:$0x3] %v13384_v3  ;;  %11730 = vmatprep.subr.msk.mxu0 %vm727_vm0, %v13475_v2  ;;  %13349 = vmatprep.subr.msk.mxu1 %vm727_vm0, %v13475_v2  ;;  %s21095_s26 = smov (!%p431_p3, %s11720_s26), 1  ;;  %v2297_v11 = vcombine.high %v13775_v7, %v13775_v7 }
   0xf   : > { %5678 = vst [vmem:[#allocation5 + $0x30] sm:$0xff] %v13384_v3  ;;  %5679 = vst [vmem:[#allocation5 + $0x38] sm:$0xff] %v13384_v3  ;;  %11731 = vmatpush1.msk.msra.mxu0 %vm727_vm0, %v13466_v0  ;;  %13350 = vmatpush1.msk.msra.mxu1 %vm727_vm0, %v13466_v0  ;;  %s12389_s18 = sshll.u32 %s21095_s26, 8 }
  0x10   : > { %5680 = vst [vmem:[#allocation5 + $0x40] sm:$0x3] %v13384_v3  ;;  %5681 = vst [vmem:[#allocation5 + $0x48] sm:$0xff] %v13384_v3  ;;  %11799 = vmatprep.subr.msk.mxu0 %vm727_vm0, %v1383_v4  ;;  %11764 = vmatprep.subr.msk.mxu1 %vm727_vm0, %v990_v6  ;;  %s13788_s21 = scalar_lea.vmem %s20417_s0, %s12389_s18  ;;  %s20177_s15 = scalar_lea.vmem %s20430_s13, %s12389_s18 }
  0x11   : > { %5682 = vst [vmem:[#allocation5 + $0x50] sm:$0xff] %v13384_v3  ;;  %5683 = vst [vmem:[#allocation5 + $0x58] sm:$0x3] %v13384_v3  ;;  %v519_v8 = vld [vmem:[%s13788_s21 + $0xb0] sm:$0xff]  ;;  %v497_v9 = vld [vmem:[%s13788_s21] sm:$0xff] }
  0x12   : > { %5684 = vst [vmem:[#allocation5 + $0x60] sm:$0xff] %v13384_v3  ;;  %5685 = vst [vmem:[#allocation5 + $0x68] sm:$0xff] %v13384_v3  ;;  %v520_v10 = vld [vmem:[%s13788_s21 + $0xb8] sm:$0xff]  ;;  %v498_v14 = vld [vmem:[%s13788_s21 + $0x8] sm:$0xff] }
  0x13   : > { %5686 = vst [vmem:[#allocation5 + $0x70] sm:$0x3] %v13384_v3  ;;  %5687 = vst [vmem:[#allocation5 + $0x78] sm:$0xff] %v13384_v3  ;;  %v521_v15 = vld [vmem:[%s13788_s21 + $0xc0] sm:$0xff]  ;;  %v499_v16 = vld [vmem:[%s13788_s21 + $0x10] sm:$0xff] }
  0x14   : > { %5688 = vst [vmem:[#allocation5 + $0x80] sm:$0xff] %v13384_v3  ;;  %5689 = vst [vmem:[#allocation5 + $0x88] sm:$0x3] %v13384_v3  ;;  %v522_v17 = vld [vmem:[%s13788_s21 + $0xc8] sm:$0xff]  ;;  %v500_v18 = vld [vmem:[%s13788_s21 + $0x18] sm:$0xff] }
  0x15   : > { %5690 = vst [vmem:[#allocation5 + $0x90] sm:$0xff] %v13384_v3  ;;  %5691 = vst [vmem:[#allocation5 + $0x98] sm:$0xff] %v13384_v3  ;;  %v523_v19 = vld [vmem:[%s13788_s21 + $0xd0] sm:$0xff]  ;;  %v501_v20 = vld [vmem:[%s13788_s21 + $0x20] sm:$0xff] }
  0x16   : > { %5692 = vst [vmem:[#allocation5 + $0xa0] sm:$0x3] %v13384_v3  ;;  %5693 = vst [vmem:[#allocation5 + $0xa8] sm:$0xff] %v13384_v3  ;;  %v524_v22 = vld [vmem:[%s13788_s21 + $0xd8] sm:$0xff]  ;;  %v502_v23 = vld [vmem:[%s13788_s21 + $0x28] sm:$0xff] }
  0x17   : > { %5694 = vst [vmem:[#allocation5 + $0xb0] sm:$0xff] %v13384_v3  ;;  %5695 = vst [vmem:[#allocation5 + $0xb8] sm:$0x3] %v13384_v3  ;;  %v525_v24 = vld [vmem:[%s13788_s21 + $0xe0] sm:$0xff]  ;;  %v503_v25 = vld [vmem:[%s13788_s21 + $0x30] sm:$0xff] }
  0x18   : > { %5696 = vst [vmem:[#allocation5 + $0xc0] sm:$0xff] %v13384_v3  ;;  %5697 = vst [vmem:[#allocation5 + $0xc8] sm:$0xff] %v13384_v3  ;;  %v526_v26 = vld [vmem:[%s13788_s21 + $0xe8] sm:$0xff]  ;;  %v504_v27 = vld [vmem:[%s13788_s21 + $0x38] sm:$0xff] }
  0x19   : > { %5698 = vst [vmem:[#allocation5 + $0xd0] sm:$0x3] %v13384_v3  ;;  %5699 = vst [vmem:[#allocation5 + $0xd8] sm:$0xff] %v13384_v3  ;;  %v505_v28 = vld [vmem:[%s13788_s21 + $0x40] sm:$0xff]  ;;  %v506_v29 = vld [vmem:[%s13788_s21 + $0x48] sm:$0xff] }
  0x1a   : > { %5700 = vst [vmem:[#allocation5 + $0xe0] sm:$0xff] %v13384_v3  ;;  %5701 = vst [vmem:[#allocation5 + $0xe8] sm:$0x3] %v13384_v3  ;;  %v507_v30 = vld [vmem:[%s13788_s21 + $0x50] sm:$0xff]  ;;  %v508_v31 = vld [vmem:[%s13788_s21 + $0x58] sm:$0xff] }
  0x1b   : > { %5702 = vst [vmem:[#allocation5 + $0xf0] sm:$0xff] %v13384_v3  ;;  %5703 = vst [vmem:[#allocation5 + $0xf8] sm:$0xff] %v13384_v3  ;;  %v509_v38 = vld [vmem:[%s13788_s21 + $0x60] sm:$0xff]  ;;  %v510_v40 = vld [vmem:[%s13788_s21 + $0x68] sm:$0xff] }
  0x1c   : > { %5704 = vst [vmem:[#allocation5 + $0x100] sm:$0x3] %v13384_v3  ;;  %5705 = vst [vmem:[#allocation5 + $0x108] sm:$0xff] %v13384_v3  ;;  %v511_v41 = vld [vmem:[%s13788_s21 + $0x70] sm:$0xff]  ;;  %v512_v42 = vld [vmem:[%s13788_s21 + $0x78] sm:$0xff] }
  0x1d   : > { %5706 = vst [vmem:[#allocation5 + $0x110] sm:$0xff] %v13384_v3  ;;  %5707 = vst [vmem:[#allocation5 + $0x118] sm:$0x3] %v13384_v3  ;;  %v513_v44 = vld [vmem:[%s13788_s21 + $0x80] sm:$0xff]  ;;  %v514_v46 = vld [vmem:[%s13788_s21 + $0x88] sm:$0xff] }
  0x1e   : > { %5708 = vst [vmem:[#allocation5 + $0x120] sm:$0xff] %v13384_v3  ;;  %5709 = vst [vmem:[#allocation5 + $0x128] sm:$0xff] %v13384_v3  ;;  %v515_v47 = vld [vmem:[%s13788_s21 + $0x90] sm:$0xff]  ;;  %v516_v48 = vld [vmem:[%s13788_s21 + $0x98] sm:$0xff] }
  0x1f   : > { %5710 = vst [vmem:[#allocation5 + $0x130] sm:$0x3] %v13384_v3  ;;  %5711 = vst [vmem:[#allocation5 + $0x138] sm:$0xff] %v13384_v3  ;;  %v517_v49 = vld [vmem:[%s13788_s21 + $0xa0] sm:$0xff]  ;;  %v518_v50 = vld [vmem:[%s13788_s21 + $0xa8] sm:$0xff] }
  0x20   : > { %5712 = vst [vmem:[#allocation5 + $0x140] sm:$0xff] %v13384_v3  ;;  %5713 = vst [vmem:[#allocation5 + $0x148] sm:$0x3] %v13384_v3 }
  0x21   : > { %5714 = vst [vmem:[#allocation5 + $0x150] sm:$0xff] %v13384_v3  ;;  %5715 = vst [vmem:[#allocation5 + $0x158] sm:$0xff] %v13384_v3 }
  0x22   : > { %5716 = vst [vmem:[#allocation5 + $0x160] sm:$0x3] %v13384_v3  ;;  %5717 = vst [vmem:[#allocation5 + $0x168] sm:$0xff] %v13384_v3 }
  0x23   : > { %5718 = vst [vmem:[#allocation5 + $0x170] sm:$0xff] %v13384_v3  ;;  %5719 = vst [vmem:[#allocation5 + $0x178] sm:$0x3] %v13384_v3 }
  0x24   : > { %5720 = vst [vmem:[#allocation5 + $0x180] sm:$0xff] %v13384_v3  ;;  %5721 = vst [vmem:[#allocation5 + $0x188] sm:$0xff] %v13384_v3 }
  0x25   : > { %5722 = vst [vmem:[#allocation5 + $0x190] sm:$0x3] %v13384_v3  ;;  %5723 = vst [vmem:[#allocation5 + $0x198] sm:$0xff] %v13384_v3 }
  0x26   : > { %5724 = vst [vmem:[#allocation5 + $0x1a0] sm:$0xff] %v13384_v3  ;;  %5725 = vst [vmem:[#allocation5 + $0x1a8] sm:$0x3] %v13384_v3 }
  0x27   : > { %442 = vst.msk [vmem:[#allocation2] sm:$0xff] %vm441_vm1, %v13384_v3  ;;  %443 = vst.msk [vmem:[#allocation2 + $0x8] sm:$0xff] %vm441_vm1, %v13384_v3 }
  0x28   : > { %446 = vst.msk [vmem:[#allocation2 + $0x18] sm:$0xff] %vm441_vm1, %v13384_v3  ;;  %447 = vst.msk [vmem:[#allocation2 + $0x20] sm:$0xff] %vm441_vm1, %v13384_v3 }
  0x29   : > { %449 = vst.msk [vmem:[#allocation2 + $0x30] sm:$0xff] %vm441_vm1, %v13384_v3  ;;  %450 = vst.msk [vmem:[#allocation2 + $0x38] sm:$0xff] %vm441_vm1, %v13384_v3 }
  0x2a   : > { %452 = vst.msk [vmem:[#allocation2 + $0x48] sm:$0xff] %vm441_vm1, %v13384_v3  ;;  %453 = vst.msk [vmem:[#allocation2 + $0x50] sm:$0xff] %vm441_vm1, %v13384_v3 }
  0x2b   : > { %455 = vst.msk [vmem:[#allocation2 + $0x60] sm:$0xff] %vm441_vm1, %v13384_v3  ;;  %456 = vst.msk [vmem:[#allocation2 + $0x68] sm:$0xff] %vm441_vm1, %v13384_v3 }
  0x2c   : > { %458 = vst.msk [vmem:[#allocation2 + $0x78] sm:$0xff] %vm441_vm1, %v13384_v3  ;;  %459 = vst.msk [vmem:[#allocation2 + $0x80] sm:$0xff] %vm441_vm1, %v13384_v3 }
  0x2d   : > { %461 = vst.msk [vmem:[#allocation2 + $0x90] sm:$0xff] %vm441_vm1, %v13384_v3  ;;  %462 = vst.msk [vmem:[#allocation2 + $0x98] sm:$0xff] %vm441_vm1, %v13384_v3 }
  0x2e   : > { %464 = vst.msk [vmem:[#allocation2 + $0xa8] sm:$0xff] %vm441_vm1, %v13384_v3  ;;  %465 = vst.msk [vmem:[#allocation2 + $0xb0] sm:$0xff] %vm441_vm1, %v13384_v3  ;;  %v595_v12 = vld [vmem:[#allocation2 + $0x1] sm:$0xff] }
  0x2f   : > { %467 = vst.msk [vmem:[#allocation2 + $0xc0] sm:$0xff] %vm441_vm1, %v13384_v3  ;;  %468 = vst.msk [vmem:[#allocation2 + $0xc8] sm:$0xff] %vm441_vm1, %v13384_v3  ;;  %11732 = vmatmul.mubr.msk.f32.vlgmr.msra.gmra.mxu0 %vm441_vm1, %v595_v12  ;;  %v562_v59 = vld [vmem:[#allocation2] sm:$0xff]  ;;  %v563_v61 = vld [vmem:[#allocation2 + $0x8] sm:$0xff] }
  0x30   : > { %470 = vst.msk [vmem:[#allocation2 + $0xd8] sm:$0xff] %vm441_vm1, %v13384_v3  ;;  %471 = vst.msk [vmem:[#allocation2 + $0xe0] sm:$0xff] %vm441_vm1, %v13384_v3  ;;  %11800 = vmatpush1.msk.msra.mxu0 %vm727_vm0, %v13471_v1  ;;  %802 = vmatprep.mubr.f32.mxu0 %v13384_v3 }
  0x31   : > { %473 = vst.msk [vmem:[#allocation2 + $0xf0] sm:$0xff] %vm441_vm1, %v13384_v3  ;;  %474 = vst.msk [vmem:[#allocation2 + $0xf8] sm:$0xff] %vm441_vm1, %v13384_v3  ;;  %11869 = vmatprep.subr.msk.mxu0 %vm727_vm0, %v2297_v11 }
  0x32   : > { %476 = vst.msk [vmem:[#allocation2 + $0x108] sm:$0xff] %vm441_vm1, %v13384_v3  ;;  %477 = vst.msk [vmem:[#allocation2 + $0x110] sm:$0xff] %vm441_vm1, %v13384_v3 }
  0x33   : > { %479 = vst.msk [vmem:[#allocation2 + $0x120] sm:$0xff] %vm441_vm1, %v13384_v3  ;;  %480 = vst.msk [vmem:[#allocation2 + $0x128] sm:$0xff] %vm441_vm1, %v13384_v3 }
  0x34   : > { %482 = vst.msk [vmem:[#allocation2 + $0x138] sm:$0xff] %vm441_vm1, %v13384_v3  ;;  %483 = vst.msk [vmem:[#allocation2 + $0x140] sm:$0xff] %vm441_vm1, %v13384_v3 }
  0x35   : > { %485 = vst.msk [vmem:[#allocation2 + $0x150] sm:$0xff] %vm441_vm1, %v13384_v3  ;;  %486 = vst.msk [vmem:[#allocation2 + $0x158] sm:$0xff] %vm441_vm1, %v13384_v3 }
  0x36   : > { %488 = vst.msk [vmem:[#allocation2 + $0x168] sm:$0xff] %vm441_vm1, %v13384_v3  ;;  %489 = vst.msk [vmem:[#allocation2 + $0x170] sm:$0xff] %vm441_vm1, %v13384_v3 }
  0x37   : > { %491 = vst.msk [vmem:[#allocation2 + $0x180] sm:$0xff] %vm441_vm1, %v13384_v3  ;;  %492 = vst.msk [vmem:[#allocation2 + $0x188] sm:$0xff] %vm441_vm1, %v13384_v3 }
  0x38   : > { %494 = vst.msk [vmem:[#allocation2 + $0x198] sm:$0xff] %vm441_vm1, %v13384_v3  ;;  %495 = vst.msk [vmem:[#allocation2 + $0x1a0] sm:$0xff] %vm441_vm1, %v13384_v3 }
  0x39   : > { %7990 = vst.msk [vmem:[#allocation6] sm:$0xff] %vm441_vm1, %v13384_v3  ;;  %7991 = vst.msk [vmem:[#allocation6 + $0x8] sm:$0xff] %vm441_vm1, %v13384_v3 }
  0x3a   : > { %7993 = vst.msk [vmem:[#allocation6 + $0x18] sm:$0xff] %vm441_vm1, %v13384_v3  ;;  %7994 = vst.msk [vmem:[#allocation6 + $0x20] sm:$0xff] %vm441_vm1, %v13384_v3 }
  0x3b   : > { %7996 = vst.msk [vmem:[#allocation6 + $0x30] sm:$0xff] %vm441_vm1, %v13384_v3  ;;  %7997 = vst.msk [vmem:[#allocation6 + $0x38] sm:$0xff] %vm441_vm1, %v13384_v3 }
  0x3c   : > { %7999 = vst.msk [vmem:[#allocation6 + $0x48] sm:$0xff] %vm441_vm1, %v13384_v3  ;;  %8000 = vst.msk [vmem:[#allocation6 + $0x50] sm:$0xff] %vm441_vm1, %v13384_v3 }
  0x3d   : > { %8002 = vst.msk [vmem:[#allocation6 + $0x60] sm:$0xff] %vm441_vm1, %v13384_v3  ;;  %8003 = vst.msk [vmem:[#allocation6 + $0x68] sm:$0xff] %vm441_vm1, %v13384_v3 }
  0x3e   : > { %8005 = vst.msk [vmem:[#allocation6 + $0x78] sm:$0xff] %vm441_vm1, %v13384_v3  ;;  %8006 = vst.msk [vmem:[#allocation6 + $0x80] sm:$0xff] %vm441_vm1, %v13384_v3 }
  0x3f   : > { %8008 = vst.msk [vmem:[#allocation6 + $0x90] sm:$0xff] %vm441_vm1, %v13384_v3  ;;  %8009 = vst.msk [vmem:[#allocation6 + $0x98] sm:$0xff] %vm441_vm1, %v13384_v3 }
  0x40   : > { %8011 = vst.msk [vmem:[#allocation6 + $0xa8] sm:$0xff] %vm441_vm1, %v13384_v3  ;;  %8012 = vst.msk [vmem:[#allocation6 + $0xb0] sm:$0xff] %vm441_vm1, %v13384_v3 }
  0x41   : > { %8014 = vst.msk [vmem:[#allocation6 + $0xc0] sm:$0xff] %vm441_vm1, %v13384_v3  ;;  %8015 = vst.msk [vmem:[#allocation6 + $0xc8] sm:$0xff] %vm441_vm1, %v13384_v3 }
  0x42   : > { %8017 = vst.msk [vmem:[#allocation6 + $0xd8] sm:$0xff] %vm441_vm1, %v13384_v3  ;;  %8018 = vst.msk [vmem:[#allocation6 + $0xe0] sm:$0xff] %vm441_vm1, %v13384_v3 }
  0x43   : > { %8020 = vst.msk [vmem:[#allocation6 + $0xf0] sm:$0xff] %vm441_vm1, %v13384_v3  ;;  %8021 = vst.msk [vmem:[#allocation6 + $0xf8] sm:$0xff] %vm441_vm1, %v13384_v3 }
  0x44   : > { %8023 = vst.msk [vmem:[#allocation6 + $0x108] sm:$0xff] %vm441_vm1, %v13384_v3  ;;  %8024 = vst.msk [vmem:[#allocation6 + $0x110] sm:$0xff] %vm441_vm1, %v13384_v3 }
  0x45   : > { %8026 = vst.msk [vmem:[#allocation6 + $0x120] sm:$0xff] %vm441_vm1, %v13384_v3  ;;  %8027 = vst.msk [vmem:[#allocation6 + $0x128] sm:$0xff] %vm441_vm1, %v13384_v3 }
  0x46   : > { %8029 = vst.msk [vmem:[#allocation6 + $0x138] sm:$0xff] %vm441_vm1, %v13384_v3  ;;  %8030 = vst.msk [vmem:[#allocation6 + $0x140] sm:$0xff] %vm441_vm1, %v13384_v3 }
  0x47   : > { %8032 = vst.msk [vmem:[#allocation6 + $0x150] sm:$0xff] %vm441_vm1, %v13384_v3  ;;  %8033 = vst.msk [vmem:[#allocation6 + $0x158] sm:$0xff] %vm441_vm1, %v13384_v3 }
  0x48   : > { %8035 = vst.msk [vmem:[#allocation6 + $0x168] sm:$0xff] %vm441_vm1, %v13384_v3  ;;  %8036 = vst.msk [vmem:[#allocation6 + $0x170] sm:$0xff] %vm441_vm1, %v13384_v3 }
  0x49   : > { %8038 = vst.msk [vmem:[#allocation6 + $0x180] sm:$0xff] %vm441_vm1, %v13384_v3  ;;  %8039 = vst.msk [vmem:[#allocation6 + $0x188] sm:$0xff] %vm441_vm1, %v13384_v3 }
  0x4a   : > { %8041 = vst.msk [vmem:[#allocation6 + $0x198] sm:$0xff] %vm441_vm1, %v13384_v3  ;;  %8042 = vst.msk [vmem:[#allocation6 + $0x1a0] sm:$0xff] %vm441_vm1, %v13384_v3 }
  0x4b   : > { %445 = vst.msk [vmem:[#allocation2 + $0x10] sm:$0x3] %vm444_vm2, %v13384_v3  ;;  %448 = vst.msk [vmem:[#allocation2 + $0x28] sm:$0x3] %vm444_vm2, %v13384_v3 }
  0x4c   : > { %451 = vst.msk [vmem:[#allocation2 + $0x40] sm:$0x3] %vm444_vm2, %v13384_v3  ;;  %454 = vst.msk [vmem:[#allocation2 + $0x58] sm:$0x3] %vm444_vm2, %v13384_v3 }
  0x4d   : > { %457 = vst.msk [vmem:[#allocation2 + $0x70] sm:$0x3] %vm444_vm2, %v13384_v3  ;;  %460 = vst.msk [vmem:[#allocation2 + $0x88] sm:$0x3] %vm444_vm2, %v13384_v3 }
  0x4e   : > { %463 = vst.msk [vmem:[#allocation2 + $0xa0] sm:$0x3] %vm444_vm2, %v13384_v3  ;;  %466 = vst.msk [vmem:[#allocation2 + $0xb8] sm:$0x3] %vm444_vm2, %v13384_v3 }
  0x4f   : > { %469 = vst.msk [vmem:[#allocation2 + $0xd0] sm:$0x3] %vm444_vm2, %v13384_v3  ;;  %472 = vst.msk [vmem:[#allocation2 + $0xe8] sm:$0x3] %vm444_vm2, %v13384_v3 }
  0x50   : > { %475 = vst.msk [vmem:[#allocation2 + $0x100] sm:$0x3] %vm444_vm2, %v13384_v3  ;;  %478 = vst.msk [vmem:[#allocation2 + $0x118] sm:$0x3] %vm444_vm2, %v13384_v3 }
  0x51   : > { %481 = vst.msk [vmem:[#allocation2 + $0x130] sm:$0x3] %vm444_vm2, %v13384_v3  ;;  %484 = vst.msk [vmem:[#allocation2 + $0x148] sm:$0x3] %vm444_vm2, %v13384_v3 }
  0x52   : > { %487 = vst.msk [vmem:[#allocation2 + $0x160] sm:$0x3] %vm444_vm2, %v13384_v3  ;;  %490 = vst.msk [vmem:[#allocation2 + $0x178] sm:$0x3] %vm444_vm2, %v13384_v3  ;;  %v596_v13 = vld [vmem:[#allocation2 + $0x9] sm:$0xff] }
  0x53   : > { %493 = vst.msk [vmem:[#allocation2 + $0x190] sm:$0x3] %vm444_vm2, %v13384_v3  ;;  %496 = vst.msk [vmem:[#allocation2 + $0x1a8] sm:$0x3] %vm444_vm2, %v13384_v3  ;;  %11733 = vmatmul.mubr.msk.f32.gmra.mxu0 %vm441_vm1, %v596_v13 }
  0x54   : > { %7992 = vst.msk [vmem:[#allocation6 + $0x10] sm:$0x3] %vm444_vm2, %v13384_v3  ;;  %7995 = vst.msk [vmem:[#allocation6 + $0x28] sm:$0x3] %vm444_vm2, %v13384_v3  ;;  %808 = vmatprep.mubr.f32.mxu0 %v13384_v3 }
  0x55   : > { %7998 = vst.msk [vmem:[#allocation6 + $0x40] sm:$0x3] %vm444_vm2, %v13384_v3  ;;  %8001 = vst.msk [vmem:[#allocation6 + $0x58] sm:$0x3] %vm444_vm2, %v13384_v3 }
  0x56   : > { %8004 = vst.msk [vmem:[#allocation6 + $0x70] sm:$0x3] %vm444_vm2, %v13384_v3  ;;  %8007 = vst.msk [vmem:[#allocation6 + $0x88] sm:$0x3] %vm444_vm2, %v13384_v3 }
  0x57   : > { %8010 = vst.msk [vmem:[#allocation6 + $0xa0] sm:$0x3] %vm444_vm2, %v13384_v3  ;;  %8013 = vst.msk [vmem:[#allocation6 + $0xb8] sm:$0x3] %vm444_vm2, %v13384_v3 }
  0x58   : > { %8016 = vst.msk [vmem:[#allocation6 + $0xd0] sm:$0x3] %vm444_vm2, %v13384_v3  ;;  %8019 = vst.msk [vmem:[#allocation6 + $0xe8] sm:$0x3] %vm444_vm2, %v13384_v3 }
  0x59   : > { %8022 = vst.msk [vmem:[#allocation6 + $0x100] sm:$0x3] %vm444_vm2, %v13384_v3  ;;  %8025 = vst.msk [vmem:[#allocation6 + $0x118] sm:$0x3] %vm444_vm2, %v13384_v3 }
  0x5a   : > { %8028 = vst.msk [vmem:[#allocation6 + $0x130] sm:$0x3] %vm444_vm2, %v13384_v3  ;;  %8031 = vst.msk [vmem:[#allocation6 + $0x148] sm:$0x3] %vm444_vm2, %v13384_v3 }
  0x5b   : > { %8034 = vst.msk [vmem:[#allocation6 + $0x160] sm:$0x3] %vm444_vm2, %v13384_v3  ;;  %8037 = vst.msk [vmem:[#allocation6 + $0x178] sm:$0x3] %vm444_vm2, %v13384_v3 }
  0x5c   : > { %8040 = vst.msk [vmem:[#allocation6 + $0x190] sm:$0x3] %vm444_vm2, %v13384_v3  ;;  %8043 = vst.msk [vmem:[#allocation6 + $0x1a8] sm:$0x3] %vm444_vm2, %v13384_v3 }
  0x5d   : > { %552 = vst.msk [vmem:[#allocation2 + $0x121] sm:$0xff] %vm441_vm1, %v519_v8  ;;  %530 = vst.msk [vmem:[#allocation2 + $0x19] sm:$0xff] %vm441_vm1, %v497_v9 }
  0x5e   : > { %553 = vst.msk [vmem:[#allocation2 + $0x129] sm:$0xff] %vm441_vm1, %v520_v10  ;;  %531 = vst.msk [vmem:[#allocation2 + $0x21] sm:$0xff] %vm441_vm1, %v498_v14 }
  0x5f   : > { %554 = vst.msk [vmem:[#allocation2 + $0x139] sm:$0xff] %vm441_vm1, %v521_v15  ;;  %532 = vst.msk [vmem:[#allocation2 + $0x31] sm:$0xff] %vm441_vm1, %v499_v16 }
  0x60   : > { %555 = vst.msk [vmem:[#allocation2 + $0x141] sm:$0xff] %vm441_vm1, %v522_v17  ;;  %533 = vst.msk [vmem:[#allocation2 + $0x39] sm:$0xff] %vm441_vm1, %v500_v18 }
  0x61   : > { %556 = vst.msk [vmem:[#allocation2 + $0x151] sm:$0xff] %vm441_vm1, %v523_v19  ;;  %534 = vst.msk [vmem:[#allocation2 + $0x49] sm:$0xff] %vm441_vm1, %v501_v20 }
  0x62   : > { %557 = vst.msk [vmem:[#allocation2 + $0x159] sm:$0xff] %vm441_vm1, %v524_v22  ;;  %535 = vst.msk [vmem:[#allocation2 + $0x51] sm:$0xff] %vm441_vm1, %v502_v23 }
  0x63   : > { %558 = vst.msk [vmem:[#allocation2 + $0x169] sm:$0xff] %vm441_vm1, %v525_v24  ;;  %536 = vst.msk [vmem:[#allocation2 + $0x61] sm:$0xff] %vm441_vm1, %v503_v25 }
  0x64   : > { %559 = vst.msk [vmem:[#allocation2 + $0x171] sm:$0xff] %vm441_vm1, %v526_v26  ;;  %537 = vst.msk [vmem:[#allocation2 + $0x69] sm:$0xff] %vm441_vm1, %v504_v27  ;;  %v619_v32 = vld [vmem:[#allocation2 + $0x121] sm:$0xff]  ;;  %v13841_v33 = vld [vmem:[#allocation2 + $0x19] sm:$0xff] }
  0x65   : > { %538 = vst.msk [vmem:[#allocation2 + $0x79] sm:$0xff] %vm441_vm1, %v505_v28  ;;  %539 = vst.msk [vmem:[#allocation2 + $0x81] sm:$0xff] %vm441_vm1, %v506_v29  ;;  %11756 = vmatmul.mubr.msk.f32.vlgmr.msra.gmra.mxu1 %vm441_vm1, %v619_v32  ;;  %11734 = vmatmul.mubr.msk.f32.gmra.mxu0 %vm441_vm1, %v13841_v33  ;;  %v620_v35 = vld [vmem:[#allocation2 + $0x129] sm:$0xff]  ;;  %v13853_v36 = vld [vmem:[#allocation2 + $0x21] sm:$0xff] }
  0x66   : > { %540 = vst.msk [vmem:[#allocation2 + $0x91] sm:$0xff] %vm441_vm1, %v507_v30  ;;  %541 = vst.msk [vmem:[#allocation2 + $0x99] sm:$0xff] %vm441_vm1, %v508_v31  ;;  %946 = vmatprep.mubr.f32.mxu1 %v13384_v3  ;;  %814 = vmatprep.mubr.f32.mxu0 %v13384_v3  ;;  %v621_v37 = vld [vmem:[#allocation2 + $0x139] sm:$0xff]  ;;  %v13864_v39 = vld [vmem:[#allocation2 + $0x31] sm:$0xff] }
  0x67   : > { %11765 = vmatpush1.msk.msra.mxu1 %vm727_vm0, %v13756_v5  ;;  %542 = vst.msk [vmem:[#allocation2 + $0xa9] sm:$0xff] %vm441_vm1, %v509_v38  ;;  %543 = vst.msk [vmem:[#allocation2 + $0xb1] sm:$0xff] %vm441_vm1, %v510_v40  ;;  %v622_v43 = vld [vmem:[#allocation2 + $0x141] sm:$0xff]  ;;  %v13879_v45 = vld [vmem:[#allocation2 + $0x39] sm:$0xff] }
  0x68   : > { %11834 = vmatprep.subr.msk.mxu1 %vm727_vm0, %v1840_v34  ;;  %544 = vst.msk [vmem:[#allocation2 + $0xc1] sm:$0xff] %vm441_vm1, %v511_v41  ;;  %545 = vst.msk [vmem:[#allocation2 + $0xc9] sm:$0xff] %vm441_vm1, %v512_v42  ;;  %v623_v51 = vld [vmem:[#allocation2 + $0x151] sm:$0xff]  ;;  %v13897_v52 = vld [vmem:[#allocation2 + $0x49] sm:$0xff] }
  0x69   : > { %11757 = vmatmul.mubr.msk.f32.gmra.mxu1 %vm441_vm1, %v620_v35  ;;  %11735 = vmatmul.mubr.msk.f32.gmra.mxu0 %vm441_vm1, %v13853_v36  ;;  %546 = vst.msk [vmem:[#allocation2 + $0xd9] sm:$0xff] %vm441_vm1, %v513_v44  ;;  %547 = vst.msk [vmem:[#allocation2 + $0xe1] sm:$0xff] %vm441_vm1, %v514_v46  ;;  %v624_v53 = vld [vmem:[#allocation2 + $0x159] sm:$0xff]  ;;  %v13904_v54 = vld [vmem:[#allocation2 + $0x51] sm:$0xff] }
  0x6a   : > { %952 = vmatprep.mubr.f32.mxu1 %v13384_v3  ;;  %820 = vmatprep.mubr.f32.mxu0 %v13384_v3  ;;  %548 = vst.msk [vmem:[#allocation2 + $0xf1] sm:$0xff] %vm441_vm1, %v515_v47  ;;  %549 = vst.msk [vmem:[#allocation2 + $0xf9] sm:$0xff] %vm441_vm1, %v516_v48  ;;  %v625_v55 = vld [vmem:[#allocation2 + $0x169] sm:$0xff]  ;;  %v13911_v56 = vld [vmem:[#allocation2 + $0x61] sm:$0xff] }
  0x6b   : > { %550 = vst.msk [vmem:[#allocation2 + $0x109] sm:$0xff] %vm441_vm1, %v517_v49  ;;  %551 = vst.msk [vmem:[#allocation2 + $0x111] sm:$0xff] %vm441_vm1, %v518_v50  ;;  %v626_v57 = vld [vmem:[#allocation2 + $0x171] sm:$0xff]  ;;  %v13918_v58 = vld [vmem:[#allocation2 + $0x69] sm:$0xff] }
  0x6c   : > { %v13925_v60 = vld [vmem:[#allocation2 + $0x79] sm:$0xff]  ;;  %v13932_v62 = vld [vmem:[#allocation2 + $0x81] sm:$0xff]  ;;  %v13960_v4 = vld [vmem:[#allocation2 + $0x30] sm:$0xff] }
  0x6d   : > { %11758 = vmatmul.mubr.msk.f32.gmra.mxu1 %vm441_vm1, %v621_v37  ;;  %11736 = vmatmul.mubr.msk.f32.gmra.mxu0 %vm441_vm1, %v13864_v39  ;;  %v13940_v63 = vld [vmem:[#allocation2 + $0x18] sm:$0xff]  ;;  %v13950_v1 = vld [vmem:[#allocation2 + $0x20] sm:$0xff]  ;;  %v13980_v9 = vld [vmem:[#allocation2 + $0x48] sm:$0xff] }
  0x6e   : > { %958 = vmatprep.mubr.f32.mxu1 %v13384_v3  ;;  %826 = vmatprep.mubr.f32.mxu0 %v13384_v3  ;;  %v13943_v0 = vld [vmem:[#allocation2 + $0x91] sm:$0xff]  ;;  %v13953_v2 = vld [vmem:[#allocation2 + $0x99] sm:$0xff]  ;;  %v13963_v5 = vld [vmem:[#allocation2 + $0xa9] sm:$0xff] }
  0x6f   : > { %v13970_v6 = vld [vmem:[#allocation2 + $0x38] sm:$0xff]  ;;  %v13983_v10 = vld [vmem:[#allocation2 + $0xc1] sm:$0xff]  ;;  %v13990_v11 = vld [vmem:[#allocation2 + $0x50] sm:$0xff] }
  0x70   : > { %v13973_v8 = vld [vmem:[#allocation2 + $0xb1] sm:$0xff]  ;;  %v13993_v12 = vld [vmem:[#allocation2 + $0xc9] sm:$0xff]  ;;  %v14000_v13 = vld [vmem:[#allocation2 + $0x60] sm:$0xff] }
  0x71   : > { %11759 = vmatmul.mubr.msk.f32.gmra.mxu1 %vm441_vm1, %v622_v43  ;;  %11737 = vmatmul.mubr.msk.f32.gmra.mxu0 %vm441_vm1, %v13879_v45  ;;  %v14003_v14 = vld [vmem:[#allocation2 + $0xd9] sm:$0xff]  ;;  %v14010_v15 = vld [vmem:[#allocation2 + $0x68] sm:$0xff]  ;;  %v14023_v18 = vld [vmem:[#allocation2 + $0xf1] sm:$0xff] }
  0x72   : > { %964 = vmatprep.mubr.f32.mxu1 %v13384_v3  ;;  %832 = vmatprep.mubr.f32.mxu0 %v13384_v3  ;;  %v14013_v16 = vld [vmem:[#allocation2 + $0xe1] sm:$0xff]  ;;  %v14020_v17 = vld [vmem:[#allocation2 + $0x78] sm:$0xff]  ;;  %v14043_v22 = vld [vmem:[#allocation2 + $0x109] sm:$0xff] }
  0x73   : > { %v14030_v19 = vld [vmem:[#allocation2 + $0x80] sm:$0xff]  ;;  %20502 = vst [vmem:[#allocation7_spill] sm:$0xff] %v14043_v22  ;;  %v14050_v23 = vld [vmem:[#allocation2 + $0x98] sm:$0xff]  ;;  %v14060_v25 = vld [vmem:[#allocation2 + $0xa8] sm:$0xff] }
  0x74   : > { %v14033_v20 = vld [vmem:[#allocation2 + $0xf9] sm:$0xff]  ;;  %v14053_v24 = vld [vmem:[#allocation2 + $0x111] sm:$0xff]  ;;  %v1348_v26 = vld [vmem:[#allocation2 + $0x2] sm:$0xff] }
  0x75   : > { %11760 = vmatmul.mubr.msk.f32.gmra.mxu1 %vm441_vm1, %v623_v51  ;;  %11738 = vmatmul.mubr.msk.f32.gmra.mxu0 %vm441_vm1, %v13897_v52  ;;  %20503 = vst [vmem:[#allocation8_spill] sm:$0xff] %v14053_v24  ;;  %v14066_v27 = vld [vmem:[%s20418_s1 + $0x28] sm:$0xff]  ;;  %v14075_v29 = vld [vmem:[%s20418_s1 + $0x30] sm:$0xff]  ;;  %v14092_v34 = vld [vmem:[#allocation2 + $0xc0] sm:$0xff] }
  0x76   : > { %970 = vmatprep.mubr.f32.mxu1 %v13384_v3  ;;  %838 = vmatprep.mubr.f32.mxu0 %v13384_v3  ;;  %v2754_v28 = vcombine.high %v14066_v27, %v14066_v27  ;;  %v14079_v30 = vld [vmem:[#allocation2 + $0xb0] sm:$0xff]  ;;  %v3212_v31 = vcombine.high %v14075_v29, %v14075_v29  ;;  %v14095_v35 = vld [vmem:[#allocation2 + $0x1a] sm:$0xff]  ;;  %v14105_v37 = vld [vmem:[#allocation2 + $0x22] sm:$0xff] }
  0x77   : > { %v1349_v32 = vld [vmem:[#allocation2 + $0xa] sm:$0xff]  ;;  %v14112_v38 = vld [vmem:[#allocation2 + $0xd8] sm:$0xff]  ;;  %v14122_v41 = vld [vmem:[#allocation2 + $0xe0] sm:$0xff] }
  0x78   : > { %v14115_v40 = vld [vmem:[#allocation2 + $0x32] sm:$0xff]  ;;  %v14125_v42 = vld [vmem:[#allocation2 + $0x3a] sm:$0xff]  ;;  %v14135_v44 = vld [vmem:[#allocation2 + $0x4a] sm:$0xff] }
  0x79   : > { %11761 = vmatmul.mubr.msk.f32.gmra.mxu1 %vm441_vm1, %v624_v53  ;;  %11739 = vmatmul.mubr.msk.f32.gmra.mxu0 %vm441_vm1, %v13904_v54  ;;  %20504 = vst [vmem:[#allocation9_spill] sm:$0xff] %v14125_v42  ;;  %v14132_v43 = vld [vmem:[#allocation2 + $0xf0] sm:$0xff]  ;;  %20505 = vst [vmem:[#allocation10_spill] sm:$0xff] %v14135_v44  ;;  %v14142_v46 = vld [vmem:[#allocation2 + $0xf8] sm:$0xff] }
  0x7a   : > { %976 = vmatprep.mubr.f32.mxu1 %v13384_v3  ;;  %844 = vmatprep.mubr.f32.mxu0 %v13384_v3  ;;  %v14145_v47 = vld [vmem:[#allocation2 + $0x52] sm:$0xff]  ;;  %v14152_v48 = vld [vmem:[#allocation2 + $0x108] sm:$0xff]  ;;  %v14172_v53 = vld [vmem:[#allocation2 + $0x120] sm:$0xff] }
  0x7b   : > { %20506 = vst [vmem:[#allocation11_spill] sm:$0xff] %v14145_v47  ;;  %v14155_v49 = vld [vmem:[#allocation2 + $0x62] sm:$0xff]  ;;  %v14162_v50 = vld [vmem:[#allocation2 + $0x110] sm:$0xff] }
  0x7c   : > { %20507 = vst [vmem:[#allocation12_spill] sm:$0xff] %v14155_v49  ;;  %v14165_v51 = vld [vmem:[#allocation2 + $0x6a] sm:$0xff] }
  0x7d   : > { %11762 = vmatmul.mubr.msk.f32.gmra.mxu1 %vm441_vm1, %v625_v55  ;;  %11740 = vmatmul.mubr.msk.f32.gmra.mxu0 %vm441_vm1, %v13911_v56  ;;  %20508 = vst [vmem:[#allocation13_spill] sm:$0xff] %v14165_v51  ;;  %v14175_v55 = vld [vmem:[#allocation2 + $0x7a] sm:$0xff] }
  0x7e   : > { %982 = vmatprep.mubr.f32.mxu1 %v13384_v3  ;;  %850 = vmatprep.mubr.f32.mxu0 %v13384_v3  ;;  %20509 = vst [vmem:[#allocation14_spill] sm:$0xff] %v14175_v55 }
  0x81   : > { %11763 = vmatmul.mubr.msk.f32.gmra.mxu1 %vm441_vm1, %v626_v57  ;;  %11741 = vmatmul.mubr.msk.f32.gmra.mxu0 %vm441_vm1, %v13918_v58  ;;  %v14182_v57 = vld [vmem:[#allocation2 + $0x128] sm:$0xff] }
  0x82   : > { %1155 = vmatprep.mubr.f32.mxu1 %v13384_v3  ;;  %856 = vmatprep.mubr.f32.mxu0 %v13384_v3 }
  0x85   : > { %11766 = vmatmul.mubr.msk.f32.vlgmr.msra.gmra.mxu1 %vm441_vm1, %v562_v59  ;;  %11742 = vmatmul.mubr.msk.f32.gmra.mxu0 %vm441_vm1, %v13925_v60  ;;  %v14185_v59 = vld [vmem:[#allocation2 + $0x82] sm:$0xff] }
  0x86   : > { %1161 = vmatprep.mubr.f32.mxu1 %v13384_v3  ;;  %862 = vmatprep.mubr.f32.mxu0 %v13384_v3  ;;  %20510 = vst [vmem:[#allocation15_spill] sm:$0xff] %v14185_v59 }
  0x87   : > { %11835 = vmatpush1.msk.msra.mxu1 %vm727_vm0, %v13816_v21  ;;  %v14040_v21 = vld [vmem:[#allocation2 + $0x90] sm:$0xff] }
  0x88   : > { %11904 = vmatprep.subr.msk.mxu1 %vm727_vm0, %v2754_v28  ;;  %v14199_v28 = vld [vmem:[#allocation2 + $0x140] sm:$0xff] }
  0x89   : > { %11767 = vmatmul.mubr.msk.f32.gmra.mxu1 %vm441_vm1, %v563_v61  ;;  %11743 = vmatmul.mubr.msk.f32.gmra.mxu0 %vm441_vm1, %v13932_v62  ;;  %v14192_v61 = vld [vmem:[#allocation2 + $0x138] sm:$0xff] }
  0x8a   : > { %1167 = vmatprep.mubr.f32.mxu1 %v13384_v3  ;;  %868 = vmatprep.mubr.f32.mxu0 %v13384_v3 }
  0x8d   : > { %11768 = vmatmul.mubr.msk.f32.gmra.mxu1 %vm441_vm1, %v13940_v63  ;;  %11744 = vmatmul.mubr.msk.f32.gmra.mxu0 %vm441_vm1, %v13943_v0 }
  0x8e   : > { %1173 = vmatprep.mubr.f32.mxu1 %v13384_v3  ;;  %874 = vmatprep.mubr.f32.mxu0 %v13384_v3 }
  0x91   : > { %11769 = vmatmul.mubr.msk.f32.gmra.mxu1 %vm441_vm1, %v13950_v1  ;;  %11745 = vmatmul.mubr.msk.f32.gmra.mxu0 %vm441_vm1, %v13953_v2 }
  0x92   : > { %1179 = vmatprep.mubr.f32.mxu1 %v13384_v3  ;;  %880 = vmatprep.mubr.f32.mxu0 %v13384_v3 }
  0x95   : > { %11770 = vmatmul.mubr.msk.f32.gmra.mxu1 %vm441_vm1, %v13960_v4  ;;  %11746 = vmatmul.mubr.msk.f32.gmra.mxu0 %vm441_vm1, %v13963_v5 }
  0x96   : > { %1185 = vmatprep.mubr.f32.mxu1 %v13384_v3  ;;  %886 = vmatprep.mubr.f32.mxu0 %v13384_v3 }
  0x99   : > { %11771 = vmatmul.mubr.msk.f32.gmra.mxu1 %vm441_vm1, %v13970_v6  ;;  %11747 = vmatmul.mubr.msk.f32.gmra.mxu0 %vm441_vm1, %v13973_v8 }
  0x9a   : > { %1191 = vmatprep.mubr.f32.mxu1 %v13384_v3  ;;  %892 = vmatprep.mubr.f32.mxu0 %v13384_v3 }
  0x9d   : > { %11772 = vmatmul.mubr.msk.f32.gmra.mxu1 %vm441_vm1, %v13980_v9  ;;  %11748 = vmatmul.mubr.msk.f32.gmra.mxu0 %vm441_vm1, %v13983_v10 }
  0x9e   : > { %1197 = vmatprep.mubr.f32.mxu1 %v13384_v3  ;;  %898 = vmatprep.mubr.f32.mxu0 %v13384_v3 }
  0xa1   : > { %11773 = vmatmul.mubr.msk.f32.gmra.mxu1 %vm441_vm1, %v13990_v11  ;;  %11749 = vmatmul.mubr.msk.f32.gmra.mxu0 %vm441_vm1, %v13993_v12 }
  0xa2   : > { %1203 = vmatprep.mubr.f32.mxu1 %v13384_v3  ;;  %904 = vmatprep.mubr.f32.mxu0 %v13384_v3 }
  0xa5   : > { %11774 = vmatmul.mubr.msk.f32.gmra.mxu1 %vm441_vm1, %v14000_v13  ;;  %11750 = vmatmul.mubr.msk.f32.gmra.mxu0 %vm441_vm1, %v14003_v14 }
  0xa6   : > { %1209 = vmatprep.mubr.f32.mxu1 %v13384_v3  ;;  %910 = vmatprep.mubr.f32.mxu0 %v13384_v3 }
  0xa9   : > { %11775 = vmatmul.mubr.msk.f32.gmra.mxu1 %vm441_vm1, %v14010_v15  ;;  %11751 = vmatmul.mubr.msk.f32.gmra.mxu0 %vm441_vm1, %v14013_v16 }
  0xaa   : > { %1215 = vmatprep.mubr.f32.mxu1 %v13384_v3  ;;  %916 = vmatprep.mubr.f32.mxu0 %v13384_v3 }
  0xad   : > { %11776 = vmatmul.mubr.msk.f32.gmra.mxu1 %vm441_vm1, %v14020_v17  ;;  %11752 = vmatmul.mubr.msk.f32.gmra.mxu0 %vm441_vm1, %v14023_v18 }
  0xae   : > { %1221 = vmatprep.mubr.f32.mxu1 %v13384_v3  ;;  %922 = vmatprep.mubr.f32.mxu0 %v13384_v3 }
  0xb1   : > { %11777 = vmatmul.mubr.msk.f32.gmra.mxu1 %vm441_vm1, %v14030_v19  ;;  %11753 = vmatmul.mubr.msk.f32.gmra.mxu0 %vm441_vm1, %v14033_v20 }
  0xb2   : > { %1227 = vmatprep.mubr.f32.mxu1 %v13384_v3  ;;  %928 = vmatprep.mubr.f32.mxu0 %v13384_v3 }
  0xb5   : > { %11778 = vmatmul.mubr.msk.f32.gmra.mxu1 %vm441_vm1, %v14040_v21  ;;  %11754 = vmatmul.mubr.msk.f32.gmra.mxu0 %vm441_vm1, %v14043_v22 }
  0xb6   : > { %1233 = vmatprep.mubr.f32.mxu1 %v13384_v3  ;;  %934 = vmatprep.mubr.f32.mxu0 %v13384_v3 }
  0xb9   : > { %11779 = vmatmul.mubr.msk.f32.gmra.mxu1 %vm441_vm1, %v14050_v23  ;;  %11755 = vmatmul.mubr.msk.f32.gmra.mxu0 %vm441_vm1, %v14053_v24 }
  0xba   : > { %1239 = vmatprep.mubr.f32.mxu1 %v13384_v3  ;;  %1548 = vmatprep.mubr.f32.mxu0 %v13384_v3 }
  0xbd   : > { %11780 = vmatmul.mubr.msk.f32.gmra.mxu1 %vm441_vm1, %v14060_v25  ;;  %11801 = vmatmul.mubr.msk.f32.vlgmr.msra.gmra.mxu0 %vm441_vm1, %v1348_v26  ;;  %v1360_v26 = vld [vmem:[#allocation2 + $0x92] sm:$0xff] }
  0xbe   : > { %1245 = vmatprep.mubr.f32.mxu1 %v13384_v3  ;;  %11870 = vmatpush1.msk.msra.mxu0 %vm727_vm0, %v13775_v7  ;;  %v14102_v7 = vld [vmem:[#allocation2 + $0xc8] sm:$0xff] }
  0xbf   : > { %1554 = vmatprep.mubr.f32.mxu0 %v13384_v3  ;;  %11939 = vmatprep.subr.msk.mxu0 %vm727_vm0, %v3212_v31  ;;  %v1361_v31 = vld [vmem:[#allocation2 + $0x9a] sm:$0xff] }
  0xc1   : > { %11781 = vmatmul.mubr.msk.f32.gmra.mxu1 %vm441_vm1, %v14079_v30  ;;  %11802 = vmatmul.mubr.msk.f32.gmra.mxu0 %vm441_vm1, %v1349_v32  ;;  %v14206_v32 = vld [vmem:[#allocation2 + $0x150] sm:$0xff] }
  0xc2   : > { %1251 = vmatprep.mubr.f32.mxu1 %v13384_v3  ;;  %1560 = vmatprep.mubr.f32.mxu0 %v13384_v3 }
  0xc5   : > { %11782 = vmatmul.mubr.msk.f32.gmra.mxu1 %vm441_vm1, %v14092_v34  ;;  %11803 = vmatmul.mubr.msk.f32.gmra.mxu0 %vm441_vm1, %v14095_v35 }
  0xc6   : > { %1257 = vmatprep.mubr.f32.mxu1 %v13384_v3  ;;  %1566 = vmatprep.mubr.f32.mxu0 %v13384_v3 }
  0xc9   : > { %11783 = vmatmul.mubr.msk.f32.gmra.mxu1 %vm441_vm1, %v14102_v7  ;;  %11804 = vmatmul.mubr.msk.f32.gmra.mxu0 %vm441_vm1, %v14105_v37 }
  0xca   : > { %1263 = vmatprep.mubr.f32.mxu1 %v13384_v3  ;;  %1572 = vmatprep.mubr.f32.mxu0 %v13384_v3 }
  0xcd   : > { %11784 = vmatmul.mubr.msk.f32.gmra.mxu1 %vm441_vm1, %v14112_v38  ;;  %11805 = vmatmul.mubr.msk.f32.gmra.mxu0 %vm441_vm1, %v14115_v40 }
  0xce   : > { %1269 = vmatprep.mubr.f32.mxu1 %v13384_v3  ;;  %1578 = vmatprep.mubr.f32.mxu0 %v13384_v3 }
  0xd1   : > { %11785 = vmatmul.mubr.msk.f32.gmra.mxu1 %vm441_vm1, %v14122_v41  ;;  %11806 = vmatmul.mubr.msk.f32.gmra.mxu0 %vm441_vm1, %v14125_v42 }
  0xd2   : > { %1275 = vmatprep.mubr.f32.mxu1 %v13384_v3  ;;  %1584 = vmatprep.mubr.f32.mxu0 %v13384_v3 }
  0xd5   : > { %11786 = vmatmul.mubr.msk.f32.gmra.mxu1 %vm441_vm1, %v14132_v43  ;;  %11807 = vmatmul.mubr.msk.f32.gmra.mxu0 %vm441_vm1, %v14135_v44 }
  0xd6   : > { %1281 = vmatprep.mubr.f32.mxu1 %v13384_v3  ;;  %1590 = vmatprep.mubr.f32.mxu0 %v13384_v3 }
  0xd9   : > { %11787 = vmatmul.mubr.msk.f32.gmra.mxu1 %vm441_vm1, %v14142_v46  ;;  %11808 = vmatmul.mubr.msk.f32.gmra.mxu0 %vm441_vm1, %v14145_v47 }
  0xda   : > { %1287 = vmatprep.mubr.f32.mxu1 %v13384_v3  ;;  %1596 = vmatprep.mubr.f32.mxu0 %v13384_v3 }
  0xdd   : > { %11788 = vmatmul.mubr.msk.f32.gmra.mxu1 %vm441_vm1, %v14152_v48  ;;  %11809 = vmatmul.mubr.msk.f32.gmra.mxu0 %vm441_vm1, %v14155_v49  ;;  %v14231_v49 = vld [vmem:[#allocation2 + $0x170] sm:$0xff] }
  0xde   : > { %1293 = vmatprep.mubr.f32.mxu1 %v13384_v3  ;;  %1602 = vmatprep.mubr.f32.mxu0 %v13384_v3 }
  0xe1   : > { %11789 = vmatmul.mubr.msk.f32.gmra.mxu1 %vm441_vm1, %v14162_v50  ;;  %11810 = vmatmul.mubr.msk.f32.gmra.mxu0 %vm441_vm1, %v14165_v51  ;;  %v528_v51 = vld [vmem:[%s13788_s21 + $0xf8] sm:$0xff] }
  0xe2   : > { %1299 = vmatprep.mubr.f32.mxu1 %v13384_v3  ;;  %1608 = vmatprep.mubr.f32.mxu0 %v13384_v3  ;;  %561 = vst.msk [vmem:[#allocation2 + $0x189] sm:$0xff] %vm441_vm1, %v528_v51  ;;  %v1365_v51 = vld [vmem:[#allocation2 + $0xca] sm:$0xff] }
  0xe5   : > { %11790 = vmatmul.mubr.msk.f32.gmra.mxu1 %vm441_vm1, %v14172_v53  ;;  %11811 = vmatmul.mubr.msk.f32.gmra.mxu0 %vm441_vm1, %v14175_v55  ;;  %v14215_v55 = vld [vmem:[#allocation2 + $0x158] sm:$0xff] }
  0xe6   : > { %1305 = vmatprep.mubr.f32.mxu1 %v13384_v3  ;;  %1614 = vmatprep.mubr.f32.mxu0 %v13384_v3 }
  0xe9   : > { %11791 = vmatmul.mubr.msk.f32.gmra.mxu1 %vm441_vm1, %v14182_v57  ;;  %11812 = vmatmul.mubr.msk.f32.gmra.mxu0 %vm441_vm1, %v14185_v59  ;;  %v527_v59 = vld [vmem:[%s13788_s21 + $0xf0] sm:$0xff] }
  0xea   : > { %1311 = vmatprep.mubr.f32.mxu1 %v13384_v3  ;;  %1620 = vmatprep.mubr.f32.mxu0 %v13384_v3  ;;  %560 = vst.msk [vmem:[#allocation2 + $0x181] sm:$0xff] %vm441_vm1, %v527_v59  ;;  %v14224_v59 = vld [vmem:[#allocation2 + $0x168] sm:$0xff] }
  0xed   : > { %11792 = vmatmul.mubr.msk.f32.gmra.mxu1 %vm441_vm1, %v14192_v61  ;;  %11813 = vmatmul.mubr.msk.f32.gmra.mxu0 %vm441_vm1, %v1360_v26  ;;  %v1362_v26 = vld [vmem:[#allocation2 + $0xaa] sm:$0xff] }
  0xee   : > { %1317 = vmatprep.mubr.f32.mxu1 %v13384_v3  ;;  %1626 = vmatprep.mubr.f32.mxu0 %v13384_v3 }
  0xf1   : > { %11793 = vmatmul.mubr.msk.f32.gmra.mxu1 %vm441_vm1, %v14199_v28  ;;  %11814 = vmatmul.mubr.msk.f32.gmra.mxu0 %vm441_vm1, %v1361_v31  ;;  %v1363_v31 = vld [vmem:[#allocation2 + $0xb2] sm:$0xff] }
  0xf2   : > { %1323 = vmatprep.mubr.f32.mxu1 %v13384_v3  ;;  %1632 = vmatprep.mubr.f32.mxu0 %v13384_v3 }
  0xf5   : > { %11794 = vmatmul.mubr.msk.f32.gmra.mxu1 %vm441_vm1, %v14206_v32  ;;  %11815 = vmatmul.mubr.msk.f32.gmra.mxu0 %vm441_vm1, %v1362_v26  ;;  %v1364_v26 = vld [vmem:[#allocation2 + $0xc2] sm:$0xff] }
  0xf6   : > { %1329 = vmatprep.mubr.f32.mxu1 %v13384_v3  ;;  %1638 = vmatprep.mubr.f32.mxu0 %v13384_v3 }
  0xf9   : > { %11795 = vmatmul.mubr.msk.f32.gmra.mxu1 %vm441_vm1, %v14215_v55  ;;  %11816 = vmatmul.mubr.msk.f32.gmra.mxu0 %vm441_vm1, %v1363_v31  ;;  %v1366_v31 = vld [vmem:[#allocation2 + $0xda] sm:$0xff] }
  0xfa   : > { %1335 = vmatprep.mubr.f32.mxu1 %v13384_v3  ;;  %1644 = vmatprep.mubr.f32.mxu0 %v13384_v3 }
  0xfd   : > { %11796 = vmatmul.mubr.msk.f32.gmra.mxu1 %vm441_vm1, %v14224_v59  ;;  %11817 = vmatmul.mubr.msk.f32.gmra.mxu0 %vm441_vm1, %v1364_v26  ;;  %v1367_v26 = vld [vmem:[#allocation2 + $0xe2] sm:$0xff] }
  0xfe   : > { %1341 = vmatprep.mubr.f32.mxu1 %v13384_v3  ;;  %1650 = vmatprep.mubr.f32.mxu0 %v13384_v3 }
 0x101   : > { %11797 = vmatmul.mubr.msk.f32.gmra.mxu1 %vm441_vm1, %v14231_v49  ;;  %11818 = vmatmul.mubr.msk.f32.gmra.mxu0 %vm441_vm1, %v1365_v51  ;;  %v14250_v51 = vld [vmem:[#allocation5] sm:$0xff] }
 0x102   : > { %2005 = vmatprep.mubr.f32.mxu1 %v13384_v3  ;;  %1656 = vmatprep.mubr.f32.mxu0 %v13384_v3 }
 0x105   : > { %11836 = vmatmul.mubr.msk.f32.vlgmr.msra.gmra.mxu1 %vm441_vm1, %v13940_v63  ;;  %11819 = vmatmul.mubr.msk.f32.gmra.mxu0 %vm441_vm1, %v1366_v31  ;;  %v1368_v63 = vld [vmem:[#allocation2 + $0xf2] sm:$0xff] }
 0x106   : > { %2011 = vmatprep.mubr.f32.mxu1 %v13384_v3  ;;  %1662 = vmatprep.mubr.f32.mxu0 %v13384_v3 }
 0x107   : > { %11905 = vmatpush1.msk.msra.mxu1 %vm727_vm0, %v14066_v27  ;;  %v1369_v27 = vld [vmem:[#allocation2 + $0xfa] sm:$0xff] }
 0x109   : > { %11837 = vmatmul.mubr.msk.f32.gmra.mxu1 %vm441_vm1, %v13950_v1  ;;  %11820 = vmatmul.mubr.msk.f32.gmra.mxu0 %vm441_vm1, %v1367_v26  ;;  %v1371_v1 = vld [vmem:[#allocation2 + $0x112] sm:$0xff] }
 0x10a   : > { %2017 = vmatprep.mubr.f32.mxu1 %v13384_v3  ;;  %1668 = vmatprep.mubr.f32.mxu0 %v14250_v51  ;;  %v1370_v3 = vld [vmem:[#allocation2 + $0x10a] sm:$0xff] }
 0x10d   : > { %11838 = vmatmul.mubr.msk.f32.gmra.mxu1 %vm441_vm1, %v13960_v4  ;;  %11821 = vmatmul.mubr.msk.f32.gmra.mxu0 %vm441_vm1, %v1368_v63  ;;  %v1372_v4 = vld [vmem:[#allocation2 + $0x122] sm:$0xff] }
 0x10e   : > { %2023 = vmatprep.mubr.f32.mxu1 %v14250_v51  ;;  %1674 = vmatprep.mubr.f32.mxu0 %v14250_v51 }
 0x111   : > { %11839 = vmatmul.mubr.msk.f32.gmra.mxu1 %vm441_vm1, %v13970_v6  ;;  %11822 = vmatmul.mubr.msk.f32.gmra.mxu0 %vm441_vm1, %v1369_v27  ;;  %v14275_v6 = vpop.f32.mrf.mxu0 }
 0x112   : > { %2029 = vmatprep.mubr.f32.mxu1 %v14250_v51  ;;  %1680 = vmatprep.mubr.f32.mxu0 %v14250_v51 }
 0x115   : > { %11840 = vmatmul.mubr.msk.f32.gmra.mxu1 %vm441_vm1, %v13980_v9  ;;  %11823 = vmatmul.mubr.msk.f32.gmra.mxu0 %vm441_vm1, %v1370_v3  ;;  %v1373_v9 = vld [vmem:[#allocation2 + $0x12a] sm:$0xff]  ;;  %v1375_v3 = vld [vmem:[#allocation2 + $0x142] sm:$0xff] }
 0x116   : > { %2035 = vmatprep.mubr.f32.mxu1 %v14250_v51  ;;  %1686 = vmatprep.mubr.f32.mxu0 %v14250_v51 }
 0x119   : > { %11841 = vmatmul.mubr.msk.f32.gmra.mxu1 %vm441_vm1, %v13990_v11  ;;  %11824 = vmatmul.mubr.msk.f32.gmra.mxu0 %vm441_vm1, %v1371_v1  ;;  %v14280_v11 = vpop.f32.mrf.mxu0 }
 0x11a   : > { %2041 = vmatprep.mubr.f32.mxu1 %v14250_v51  ;;  %1692 = vmatprep.mubr.f32.mxu0 %v14250_v51 }
 0x11b   : > { %v14284_v31 = vpop.f32.mrf.mxu0 }
 0x11d   : > { %11842 = vmatmul.mubr.msk.f32.gmra.mxu1 %vm441_vm1, %v14000_v13  ;;  %11825 = vmatmul.mubr.msk.f32.gmra.mxu0 %vm441_vm1, %v1372_v4  ;;  %v1374_v13 = vld [vmem:[#allocation2 + $0x13a] sm:$0xff]  ;;  %v14289_v26 = vpop.f32.mrf.mxu0 }
 0x11e   : > { %2047 = vmatprep.mubr.f32.mxu1 %v14250_v51  ;;  %1698 = vmatprep.mubr.f32.mxu0 %v14250_v51 }
 0x121   : > { %11843 = vmatmul.mubr.msk.f32.gmra.mxu1 %vm441_vm1, %v14010_v15  ;;  %11826 = vmatmul.mubr.msk.f32.gmra.mxu0 %vm441_vm1, %v1373_v9 }
 0x122   : > { %2053 = vmatprep.mubr.f32.mxu1 %v14250_v51  ;;  %1704 = vmatprep.mubr.f32.mxu0 %v14250_v51 }
 0x125   : > { %v14291_v63 = vpop.f32.mrf.mxu1  ;;  %11844 = vmatmul.mubr.msk.f32.gmra.mxu1 %vm441_vm1, %v14020_v17  ;;  %v14295_v27 = vpop.f32.mrf.mxu0  ;;  %11827 = vmatmul.mubr.msk.f32.gmra.mxu0 %vm441_vm1, %v1374_v13  ;;  %v1376_v13 = vld [vmem:[#allocation2 + $0x152] sm:$0xff] }
 0x126   : > { %20511 = vst [vmem:[#allocation16_spill] sm:$0xff] %v14291_v63  ;;  %2059 = vmatprep.mubr.f32.mxu1 %v14250_v51  ;;  %1710 = vmatprep.mubr.f32.mxu0 %v14250_v51 }
 0x127   : > { %v14299_v15 = vpop.f32.mrf.mxu1  ;;  %v14302_v1 = vpop.f32.mrf.mxu0 }
 0x128   : > { %20512 = vst [vmem:[#allocation17_spill] sm:$0xff] %v14299_v15 }
 0x129   : > { %v14304_v4 = vpop.f32.mrf.mxu1  ;;  %11845 = vmatmul.mubr.msk.f32.gmra.mxu1 %vm441_vm1, %v14030_v19  ;;  %v14308_v9 = vpop.f32.mrf.mxu0  ;;  %11828 = vmatmul.mubr.msk.f32.gmra.mxu0 %vm441_vm1, %v1375_v3  ;;  %v1377_v3 = vld [vmem:[#allocation2 + $0x15a] sm:$0xff] }
 0x12a   : > { %20513 = vst [vmem:[#allocation18_spill] sm:$0xff] %v14304_v4  ;;  %2065 = vmatprep.mubr.f32.mxu1 %v14250_v51  ;;  %1716 = vmatprep.mubr.f32.mxu0 %v14250_v51 }
 0x12b   : > { %v14312_v17 = vpop.f32.mrf.mxu1  ;;  %v14315_v15 = vpop.f32.mrf.mxu0 }
 0x12c   : > { %20514 = vst [vmem:[#allocation19_spill] sm:$0xff] %v14312_v17 }
 0x12d   : > { %v14317_v63 = vpop.f32.mrf.mxu1  ;;  %11846 = vmatmul.mubr.msk.f32.gmra.mxu1 %vm441_vm1, %v14040_v21  ;;  %v14321_v4 = vpop.f32.mrf.mxu0  ;;  %11829 = vmatmul.mubr.msk.f32.gmra.mxu0 %vm441_vm1, %v1376_v13  ;;  %v1378_v13 = vld [vmem:[#allocation2 + $0x16a] sm:$0xff] }
 0x12e   : > { %20515 = vst [vmem:[#allocation20_spill] sm:$0xff] %v14317_v63  ;;  %2071 = vmatprep.mubr.f32.mxu1 %v14250_v51  ;;  %1722 = vmatprep.mubr.f32.mxu0 %v14250_v51 }
 0x12f   : > { %v14325_v19 = vpop.f32.mrf.mxu1  ;;  %v14328_v17 = vpop.f32.mrf.mxu0 }
 0x130   : > { %20516 = vst [vmem:[#allocation21_spill] sm:$0xff] %v14325_v19 }
 0x131   : > { %v14330_v47 = vpop.f32.mrf.mxu1  ;;  %11847 = vmatmul.mubr.msk.f32.gmra.mxu1 %vm441_vm1, %v14050_v23  ;;  %v14334_v63 = vpop.f32.mrf.mxu0  ;;  %11830 = vmatmul.mubr.msk.f32.gmra.mxu0 %vm441_vm1, %v1377_v3  ;;  %v1379_v3 = vld [vmem:[#allocation2 + $0x172] sm:$0xff] }
 0x132   : > { %20517 = vst [vmem:[#allocation22_spill] sm:$0xff] %v14330_v47  ;;  %2077 = vmatprep.mubr.f32.mxu1 %v14250_v51  ;;  %1728 = vmatprep.mubr.f32.mxu0 %v14250_v51 }
 0x133   : > { %v14338_v21 = vpop.f32.mrf.mxu1  ;;  %v14341_v19 = vpop.f32.mrf.mxu0 }
 0x134   : > { %20518 = vst [vmem:[#allocation23_spill] sm:$0xff] %v14338_v21 }
 0x135   : > { %v14343_v44 = vpop.f32.mrf.mxu1  ;;  %11848 = vmatmul.mubr.msk.f32.gmra.mxu1 %vm441_vm1, %v14060_v25  ;;  %v14347_v47 = vpop.f32.mrf.mxu0  ;;  %11831 = vmatmul.mubr.msk.f32.gmra.mxu0 %vm441_vm1, %v1378_v13 }
 0x136   : > { %20519 = vst [vmem:[#allocation24_spill] sm:$0xff] %v14343_v44  ;;  %2083 = vmatprep.mubr.f32.mxu1 %v14250_v51  ;;  %1734 = vmatprep.mubr.f32.mxu0 %v14250_v51 }
 0x137   : > { %v14351_v23 = vpop.f32.mrf.mxu1  ;;  %v14354_v21 = vpop.f32.mrf.mxu0 }
 0x138   : > { %20520 = vst [vmem:[#allocation25_spill] sm:$0xff] %v14351_v23  ;;  %v14372_v23 = vld [vmem:[%s20418_s1 + $0x38] sm:$0xff] }
 0x139   : > { %v14356_v24 = vpop.f32.mrf.mxu1  ;;  %11849 = vmatmul.mubr.msk.f32.gmra.mxu1 %vm441_vm1, %v14079_v30  ;;  %v14360_v44 = vpop.f32.mrf.mxu0  ;;  %11832 = vmatmul.mubr.msk.f32.gmra.mxu0 %vm441_vm1, %v1379_v3  ;;  %v3669_v30 = vcombine.high %v14372_v23, %v14372_v23 }
 0x13a   : > { %20521 = vst [vmem:[#allocation26_spill] sm:$0xff] %v14356_v24  ;;  %2089 = vmatprep.mubr.f32.mxu1 %v14250_v51  ;;  %2462 = vmatprep.mubr.f32.mxu0 %v14250_v51 }
 0x13b   : > { %v14364_v25 = vpop.f32.mrf.mxu1  ;;  %v14367_v13 = vpop.f32.mrf.mxu0  ;;  %11974 = vmatprep.subr.msk.mxu1 %vm727_vm0, %v3669_v30 }
 0x13c   : > { %20522 = vst [vmem:[#allocation27_spill] sm:$0xff] %v14364_v25  ;;  %v14388_v25 = vld [vmem:[%s20418_s1 + $0x40] sm:$0xff] }
 0x13d   : > { %v14374_v24 = vpop.f32.mrf.mxu1  ;;  %11850 = vmatmul.mubr.msk.f32.gmra.mxu1 %vm441_vm1, %v14092_v34  ;;  %v14380_v3 = vpop.f32.mrf.mxu0  ;;  %11871 = vmatmul.mubr.msk.f32.vlgmr.msra.gmra.mxu0 %vm441_vm1, %v13841_v33  ;;  %20524 = vst [vmem:[#allocation29_spill] sm:$0xff] %v14388_v25  ;;  %v4126_v34 = vcombine.high %v14388_v25, %v14388_v25 }
 0x13e   : > { %20523 = vst [vmem:[#allocation28_spill] sm:$0xff] %v14374_v24  ;;  %2095 = vmatprep.mubr.f32.mxu1 %v14250_v51  ;;  %11940 = vmatpush1.msk.msra.mxu0 %vm727_vm0, %v14075_v29 }
 0x13f   : > { %v14390_v42 = vpop.f32.mrf.mxu1  ;;  %2468 = vmatprep.mubr.f32.mxu0 %v14250_v51  ;;  %v14397_v24 = vpop.f32.mrf.mxu0  ;;  %12009 = vmatprep.subr.msk.mxu0 %vm727_vm0, %v4126_v34 }
 0x140   : > { %20525 = vst [vmem:[#allocation30_spill] sm:$0xff] %v14390_v42 }
 0x141   : > { %v14400_v33 = vpop.f32.mrf.mxu1  ;;  %11851 = vmatmul.mubr.msk.f32.gmra.mxu1 %vm441_vm1, %v14102_v7  ;;  %v14405_v42 = vpop.f32.mrf.mxu0  ;;  %11872 = vmatmul.mubr.msk.f32.gmra.mxu0 %vm441_vm1, %v13853_v36 }
 0x142   : > { %20526 = vst [vmem:[#allocation31_spill] sm:$0xff] %v14400_v33  ;;  %2101 = vmatprep.mubr.f32.mxu1 %v14250_v51  ;;  %2474 = vmatprep.mubr.f32.mxu0 %v14250_v51 }
 0x143   : > { %v14410_v29 = vpop.f32.mrf.mxu1  ;;  %v14413_v25 = vpop.f32.mrf.mxu0 }
 0x144   : > { %20527 = vst [vmem:[#allocation32_spill] sm:$0xff] %v14410_v29 }
 0x145   : > { %v1157_v30 = vpop.f32.mrf.mxu1  ;;  %11852 = vmatmul.mubr.msk.f32.gmra.mxu1 %vm441_vm1, %v14112_v38  ;;  %v14420_v34 = vpop.f32.mrf.mxu0  ;;  %11873 = vmatmul.mubr.msk.f32.gmra.mxu0 %vm441_vm1, %v13864_v39 }
 0x146   : > { %v14418_v7 = vadd.f32 %v1157_v30, %v14275_v6  ;;  %2107 = vmatprep.mubr.f32.mxu1 %v14250_v51  ;;  %2480 = vmatprep.mubr.f32.mxu0 %v14250_v51 }
 0x147   : > { %v1159_v36 = vpop.f32.mrf.mxu1  ;;  %v14429_v33 = vpop.f32.mrf.mxu0 }
 0x148   : > { %v14427_v29 = vadd.f32 %v1159_v36, %v14280_v11 }
 0x149   : > { %v1163_v22 = vpop.f32.mrf.mxu1  ;;  %11853 = vmatmul.mubr.msk.f32.gmra.mxu1 %vm441_vm1, %v14122_v41  ;;  %v14436_v6 = vpop.f32.mrf.mxu0  ;;  %11874 = vmatmul.mubr.msk.f32.gmra.mxu0 %vm441_vm1, %v13879_v45 }
 0x14a   : > { %v14434_v38 = vadd.f32 %v1163_v22, %v14284_v31  ;;  %2113 = vmatprep.mubr.f32.mxu1 %v14250_v51  ;;  %2486 = vmatprep.mubr.f32.mxu0 %v14250_v51 }
 0x14b   : > { %v1165_v39 = vpop.f32.mrf.mxu1  ;;  %v14445_v30 = vpop.f32.mrf.mxu0 }
 0x14c   : > { %v14443_v11 = vadd.f32 %v1165_v39, %v14289_v26 }
 0x14d   : > { %v1169_v36 = vpop.f32.mrf.mxu1  ;;  %11854 = vmatmul.mubr.msk.f32.gmra.mxu1 %vm441_vm1, %v14132_v43  ;;  %v14452_v41 = vpop.f32.mrf.mxu0  ;;  %11875 = vmatmul.mubr.msk.f32.gmra.mxu0 %vm441_vm1, %v13897_v52 }
 0x14e   : > { %v14450_v22 = vadd.f32 %v1169_v36, %v14295_v27  ;;  %2119 = vmatprep.mubr.f32.mxu1 %v14250_v51  ;;  %2492 = vmatprep.mubr.f32.mxu0 %v14250_v51 }
 0x14f   : > { %v1171_v45 = vpop.f32.mrf.mxu1  ;;  %v14461_v26 = vpop.f32.mrf.mxu0 }
 0x150   : > { %v14459_v31 = vadd.f32 %v1171_v45, %v14302_v1 }
 0x151   : > { %v1175_v39 = vpop.f32.mrf.mxu1  ;;  %11855 = vmatmul.mubr.msk.f32.gmra.mxu1 %vm441_vm1, %v14142_v46  ;;  %v14468_v27 = vpop.f32.mrf.mxu0  ;;  %11876 = vmatmul.mubr.msk.f32.gmra.mxu0 %vm441_vm1, %v13904_v54 }
 0x152   : > { %v14466_v43 = vadd.f32 %v1175_v39, %v14308_v9  ;;  %2125 = vmatprep.mubr.f32.mxu1 %v14250_v51  ;;  %2498 = vmatprep.mubr.f32.mxu0 %v14250_v51 }
 0x153   : > { %v1177_v52 = vpop.f32.mrf.mxu1  ;;  %v14477_v36 = vpop.f32.mrf.mxu0 }
 0x154   : > { %v14475_v1 = vadd.f32 %v1177_v52, %v14315_v15 }
 0x155   : > { %v1181_v45 = vpop.f32.mrf.mxu1  ;;  %11856 = vmatmul.mubr.msk.f32.gmra.mxu1 %vm441_vm1, %v14152_v48  ;;  %v14484_v9 = vpop.f32.mrf.mxu0  ;;  %11877 = vmatmul.mubr.msk.f32.gmra.mxu0 %vm441_vm1, %v13911_v56 }
 0x156   : > { %v14482_v46 = vadd.f32 %v1181_v45, %v14321_v4  ;;  %2131 = vmatprep.mubr.f32.mxu1 %v14250_v51  ;;  %2504 = vmatprep.mubr.f32.mxu0 %v14250_v51 }
 0x157   : > { %v1183_v54 = vpop.f32.mrf.mxu1  ;;  %v14493_v39 = vpop.f32.mrf.mxu0 }
 0x158   : > { %v14491_v15 = vadd.f32 %v1183_v54, %v14328_v17 }
 0x159   : > { %v1187_v52 = vpop.f32.mrf.mxu1  ;;  %11857 = vmatmul.mubr.msk.f32.gmra.mxu1 %vm441_vm1, %v14162_v50  ;;  %v14500_v4 = vpop.f32.mrf.mxu0  ;;  %11878 = vmatmul.mubr.msk.f32.gmra.mxu0 %vm441_vm1, %v13918_v58 }
 0x15a   : > { %v14498_v48 = vadd.f32 %v1187_v52, %v14334_v63  ;;  %2137 = vmatprep.mubr.f32.mxu1 %v14250_v51  ;;  %2510 = vmatprep.mubr.f32.mxu0 %v14250_v51 }
 0x15b   : > { %v1189_v56 = vpop.f32.mrf.mxu1  ;;  %v14509_v45 = vpop.f32.mrf.mxu0 }
 0x15c   : > { %v14507_v17 = vadd.f32 %v1189_v56, %v14341_v19 }
 0x15d   : > { %v1193_v54 = vpop.f32.mrf.mxu1  ;;  %11858 = vmatmul.mubr.msk.f32.gmra.mxu1 %vm441_vm1, %v14172_v53  ;;  %v14516_v63 = vpop.f32.mrf.mxu0  ;;  %11879 = vmatmul.mubr.msk.f32.gmra.mxu0 %vm441_vm1, %v13925_v60 }
 0x15e   : > { %v14514_v50 = vadd.f32 %v1193_v54, %v14347_v47  ;;  %2143 = vmatprep.mubr.f32.mxu1 %v14250_v51  ;;  %2516 = vmatprep.mubr.f32.mxu0 %v14250_v51 }
 0x15f   : > { %v1195_v58 = vpop.f32.mrf.mxu1  ;;  %v14525_v52 = vpop.f32.mrf.mxu0 }
 0x160   : > { %v14523_v19 = vadd.f32 %v1195_v58, %v14354_v21 }
 0x161   : > { %v1199_v56 = vpop.f32.mrf.mxu1  ;;  %11859 = vmatmul.mubr.msk.f32.gmra.mxu1 %vm441_vm1, %v14182_v57  ;;  %v14532_v53 = vpop.f32.mrf.mxu0  ;;  %11880 = vmatmul.mubr.msk.f32.gmra.mxu0 %vm441_vm1, %v13932_v62 }
 0x162   : > { %v14530_v47 = vadd.f32 %v1199_v56, %v14360_v44  ;;  %2149 = vmatprep.mubr.f32.mxu1 %v14250_v51  ;;  %2522 = vmatprep.mubr.f32.mxu0 %v14250_v51 }
 0x163   : > { %v1201_v60 = vpop.f32.mrf.mxu1  ;;  %v14541_v54 = vpop.f32.mrf.mxu0 }
 0x164   : > { %v14539_v21 = vadd.f32 %v1201_v60, %v14367_v13 }
 0x165   : > { %v1205_v58 = vpop.f32.mrf.mxu1  ;;  %11860 = vmatmul.mubr.msk.f32.gmra.mxu1 %vm441_vm1, %v14192_v61  ;;  %v14548_v57 = vpop.f32.mrf.mxu0  ;;  %11881 = vmatmul.mubr.msk.f32.gmra.mxu0 %vm441_vm1, %v13943_v0 }
 0x166   : > { %v14546_v44 = vadd.f32 %v1205_v58, %v14380_v3  ;;  %2155 = vmatprep.mubr.f32.mxu1 %v14250_v51  ;;  %2528 = vmatprep.mubr.f32.mxu0 %v14250_v51 }
 0x167   : > { %v1207_v62 = vpop.f32.mrf.mxu1  ;;  %v14557_v56 = vpop.f32.mrf.mxu0 }
 0x168   : > { %v14555_v13 = vadd.f32 %v1207_v62, %v14397_v24 }
 0x169   : > { %v1211_v60 = vpop.f32.mrf.mxu1  ;;  %11861 = vmatmul.mubr.msk.f32.gmra.mxu1 %vm441_vm1, %v14199_v28  ;;  %v14564_v3 = vpop.f32.mrf.mxu0  ;;  %11882 = vmatmul.mubr.msk.f32.gmra.mxu0 %vm441_vm1, %v13953_v2 }
 0x16a   : > { %v14562_v61 = vadd.f32 %v1211_v60, %v14405_v42  ;;  %2161 = vmatprep.mubr.f32.mxu1 %v14250_v51  ;;  %2534 = vmatprep.mubr.f32.mxu0 %v14250_v51 }
 0x16b   : > { %v1213_v0 = vpop.f32.mrf.mxu1  ;;  %v14573_v58 = vpop.f32.mrf.mxu0 }
 0x16c   : > { %v14571_v24 = vadd.f32 %v1213_v0, %v14413_v25 }
 0x16d   : > { %v1217_v62 = vpop.f32.mrf.mxu1  ;;  %11862 = vmatmul.mubr.msk.f32.gmra.mxu1 %vm441_vm1, %v14206_v32  ;;  %v14580_v28 = vpop.f32.mrf.mxu0  ;;  %11883 = vmatmul.mubr.msk.f32.gmra.mxu0 %vm441_vm1, %v13963_v5 }
 0x16e   : > { %v14578_v42 = vadd.f32 %v1217_v62, %v14420_v34  ;;  %2167 = vmatprep.mubr.f32.mxu1 %v14250_v51  ;;  %2540 = vmatprep.mubr.f32.mxu0 %v14250_v51 }
 0x16f   : > { %v1219_v2 = vpop.f32.mrf.mxu1  ;;  %v14589_v60 = vpop.f32.mrf.mxu0 }
 0x170   : > { %v14587_v25 = vadd.f32 %v1219_v2, %v14429_v33 }
 0x171   : > { %v1223_v0 = vpop.f32.mrf.mxu1  ;;  %11863 = vmatmul.mubr.msk.f32.gmra.mxu1 %vm441_vm1, %v14215_v55  ;;  %v14596_v34 = vpop.f32.mrf.mxu0  ;;  %11884 = vmatmul.mubr.msk.f32.gmra.mxu0 %vm441_vm1, %v13973_v8 }
 0x172   : > { %v14594_v32 = vadd.f32 %v1223_v0, %v14436_v6  ;;  %2173 = vmatprep.mubr.f32.mxu1 %v14250_v51  ;;  %2546 = vmatprep.mubr.f32.mxu0 %v14250_v51 }
 0x173   : > { %v1225_v5 = vpop.f32.mrf.mxu1  ;;  %v14605_v62 = vpop.f32.mrf.mxu0 }
 0x174   : > { %v14603_v33 = vadd.f32 %v1225_v5, %v14445_v30 }
 0x175   : > { %v1229_v2 = vpop.f32.mrf.mxu1  ;;  %11864 = vmatmul.mubr.msk.f32.gmra.mxu1 %vm441_vm1, %v14224_v59  ;;  %v14612_v6 = vpop.f32.mrf.mxu0  ;;  %11885 = vmatmul.mubr.msk.f32.gmra.mxu0 %vm441_vm1, %v13983_v10  ;;  %v1835_v10 = vld [vmem:[#allocation2 + $0x180] sm:$0xff] }
 0x176   : > { %v14610_v55 = vadd.f32 %v1229_v2, %v14452_v41  ;;  %2179 = vmatprep.mubr.f32.mxu1 %v14250_v51  ;;  %2552 = vmatprep.mubr.f32.mxu0 %v14250_v51 }
 0x177   : > { %v1231_v8 = vpop.f32.mrf.mxu1  ;;  %v14621_v0 = vpop.f32.mrf.mxu0 }
 0x178   : > { %v14619_v30 = vadd.f32 %v1231_v8, %v14461_v26 }
 0x179   : > { %v1235_v5 = vpop.f32.mrf.mxu1  ;;  %11865 = vmatmul.mubr.msk.f32.gmra.mxu1 %vm441_vm1, %v14231_v49  ;;  %v14628_v41 = vpop.f32.mrf.mxu0  ;;  %11886 = vmatmul.mubr.msk.f32.gmra.mxu0 %vm441_vm1, %v13993_v12  ;;  %v1836_v12 = vld [vmem:[#allocation2 + $0x188] sm:$0xff] }
 0x17a   : > { %20528 = vst [vmem:[#allocation33_spill] sm:$0xff] %v14619_v30  ;;  %v14626_v59 = vadd.f32 %v1235_v5, %v14468_v27  ;;  %2185 = vmatprep.mubr.f32.mxu1 %v14250_v51  ;;  %2558 = vmatprep.mubr.f32.mxu0 %v14250_v51 }
 0x17b   : > { %v1237_v2 = vpop.f32.mrf.mxu1  ;;  %v14637_v8 = vpop.f32.mrf.mxu0 }
 0x17c   : > { %20529 = vst [vmem:[#allocation34_spill] sm:$0xff] %v14626_v59  ;;  %v14635_v26 = vadd.f32 %v1237_v2, %v14477_v36 }
 0x17d   : > { %v1241_v49 = vpop.f32.mrf.mxu1  ;;  %11866 = vmatmul.mubr.msk.f32.gmra.mxu1 %vm441_vm1, %v1835_v10  ;;  %v1550_v5 = vpop.f32.mrf.mxu0  ;;  %11887 = vmatmul.mubr.msk.f32.gmra.mxu0 %vm441_vm1, %v14003_v14 }
 0x17e   : > { %v14641_v27 = vadd.f32 %v1241_v49, %v14484_v9  ;;  %2191 = vmatprep.mubr.f32.mxu1 %v14250_v51  ;;  %v14647_v30 = vadd.f32 %v1550_v5, %v14418_v7  ;;  %2564 = vmatprep.mubr.f32.mxu0 %v14250_v51 }
 0x17f   : > { %v1243_v59 = vpop.f32.mrf.mxu1  ;;  %v1552_v10 = vpop.f32.mrf.mxu0 }
 0x180   : > { %v14651_v36 = vadd.f32 %v1243_v59, %v14493_v39  ;;  %v14654_v9 = vadd.f32 %v1552_v10, %v14427_v29 }
 0x181   : > { %v1247_v2 = vpop.f32.mrf.mxu1  ;;  %11867 = vmatmul.mubr.msk.f32.gmra.mxu1 %vm441_vm1, %v1836_v12  ;;  %v1556_v49 = vpop.f32.mrf.mxu0  ;;  %11888 = vmatmul.mubr.msk.f32.gmra.mxu0 %vm441_vm1, %v14013_v16 }
 0x182   : > { %v14658_v14 = vadd.f32 %v1247_v2, %v14500_v4  ;;  %2919 = vmatprep.mubr.f32.mxu1 %v14250_v51  ;;  %v14664_v39 = vadd.f32 %v1556_v49, %v14434_v38  ;;  %2570 = vmatprep.mubr.f32.mxu0 %v14250_v51 }
 0x183   : > { %v1249_v7 = vpop.f32.mrf.mxu1  ;;  %v1558_v59 = vpop.f32.mrf.mxu0 }
 0x184   : > { %v14668_v29 = vadd.f32 %v1249_v7, %v14509_v45  ;;  %v14671_v4 = vadd.f32 %v1558_v59, %v14443_v11  ;;  %v20530_v7 = vld [vmem:[#allocation7_spill] sm:$0xff] }
 0x185   : > { %v1253_v5 = vpop.f32.mrf.mxu1  ;;  %11906 = vmatmul.mubr.msk.f32.vlgmr.msra.gmra.mxu1 %vm441_vm1, %v14095_v35  ;;  %v1562_v12 = vpop.f32.mrf.mxu0  ;;  %11889 = vmatmul.mubr.msk.f32.gmra.mxu0 %vm441_vm1, %v14023_v18 }
 0x186   : > { %v14676_v16 = vadd.f32 %v1253_v5, %v14516_v63  ;;  %2925 = vmatprep.mubr.f32.mxu1 %v14250_v51  ;;  %v14682_v45 = vadd.f32 %v1562_v12, %v14450_v22  ;;  %2576 = vmatprep.mubr.f32.mxu0 %v14250_v51  ;;  %v20531_v5 = vld [vmem:[#allocation9_spill] sm:$0xff] }
 0x187   : > { %v1255_v38 = vpop.f32.mrf.mxu1  ;;  %11975 = vmatpush1.msk.msra.mxu1 %vm727_vm0, %v14372_v23  ;;  %v1564_v11 = vpop.f32.mrf.mxu0 }
 0x188   : > { %v14688_v35 = vadd.f32 %v1255_v38, %v14525_v52  ;;  %6288 = vmatprep.subr.mxu1 %v14250_v51  ;;  %v14692_v18 = vadd.f32 %v1564_v11, %v14459_v31  ;;  %v20532_v11 = vld [vmem:[#allocation8_spill] sm:$0xff] }
 0x189   : > { %v1259_v63 = vpop.f32.mrf.mxu1  ;;  %11907 = vmatmul.mubr.msk.f32.gmra.mxu1 %vm441_vm1, %v14105_v37  ;;  %v1568_v10 = vpop.f32.mrf.mxu0  ;;  %11890 = vmatmul.mubr.msk.f32.gmra.mxu0 %vm441_vm1, %v14033_v20 }
 0x18a   : > { %v14697_v22 = vadd.f32 %v1259_v63, %v14532_v53  ;;  %2931 = vmatprep.mubr.f32.mxu1 %v14250_v51  ;;  %v14703_v52 = vadd.f32 %v1568_v10, %v14466_v43  ;;  %2582 = vmatprep.mubr.f32.mxu0 %v14250_v51 }
 0x18b   : > { %v1261_v23 = vpop.f32.mrf.mxu1  ;;  %v1570_v2 = vpop.f32.mrf.mxu0 }
 0x18c   : > { %v14707_v31 = vadd.f32 %v1261_v23, %v14541_v54  ;;  %v14710_v53 = vadd.f32 %v1570_v2, %v14475_v1  ;;  %v20533_v2 = vld [vmem:[#allocation10_spill] sm:$0xff] }
 0x18d   : > { %v1265_v37 = vpop.f32.mrf.mxu1  ;;  %11908 = vmatmul.mubr.msk.f32.gmra.mxu1 %vm441_vm1, %v14115_v40  ;;  %v1574_v49 = vpop.f32.mrf.mxu0  ;;  %11891 = vmatmul.mubr.msk.f32.gmra.mxu0 %vm441_vm1, %v20530_v7  ;;  %v2285_v7 = vld [vmem:[#allocation2 + $0x129] sm:$0xff] }
 0x18e   : > { %v14715_v20 = vadd.f32 %v1265_v37, %v14548_v57  ;;  %2937 = vmatprep.mubr.f32.mxu1 %v14250_v51  ;;  %v14721_v54 = vadd.f32 %v1574_v49, %v14482_v46  ;;  %2588 = vmatprep.mubr.f32.mxu0 %v14250_v51 }
 0x18f   : > { %v1267_v43 = vpop.f32.mrf.mxu1  ;;  %v1576_v59 = vpop.f32.mrf.mxu0 }
 0x190   : > { %v14725_v1 = vadd.f32 %v1267_v43, %v14557_v56  ;;  %v14728_v57 = vadd.f32 %v1576_v59, %v14491_v15  ;;  %v2284_v15 = vld [vmem:[#allocation2 + $0x121] sm:$0xff] }
 0x191   : > { %v1271_v40 = vpop.f32.mrf.mxu1  ;;  %11909 = vmatmul.mubr.msk.f32.gmra.mxu1 %vm441_vm1, %v20531_v5  ;;  %v1580_v38 = vpop.f32.mrf.mxu0  ;;  %11892 = vmatmul.mubr.msk.f32.gmra.mxu0 %vm441_vm1, %v20532_v11  ;;  %v2286_v11 = vld [vmem:[#allocation2 + $0x139] sm:$0xff] }
 0x192   : > { %v14733_v12 = vadd.f32 %v1271_v40, %v14564_v3  ;;  %2943 = vmatprep.mubr.f32.mxu1 %v14250_v51  ;;  %v14739_v56 = vadd.f32 %v1580_v38, %v14498_v48  ;;  %2594 = vmatprep.mubr.f32.mxu0 %v14250_v51  ;;  %v20534_v40 = vld [vmem:[#allocation11_spill] sm:$0xff] }
 0x193   : > { %v1273_v46 = vpop.f32.mrf.mxu1  ;;  %v1582_v10 = vpop.f32.mrf.mxu0 }
 0x194   : > { %v14743_v63 = vadd.f32 %v1273_v46, %v14573_v58  ;;  %v14746_v3 = vadd.f32 %v1582_v10, %v14507_v17  ;;  %v20535_v10 = vld [vmem:[#allocation12_spill] sm:$0xff] }
 0x195   : > { %v1277_v23 = vpop.f32.mrf.mxu1  ;;  %11910 = vmatmul.mubr.msk.f32.gmra.mxu1 %vm441_vm1, %v20533_v2  ;;  %v1586_v49 = vpop.f32.mrf.mxu0  ;;  %11893 = vmatmul.mubr.msk.f32.gmra.mxu0 %vm441_vm1, %v2284_v15 }
 0x196   : > { %v14751_v37 = vadd.f32 %v1277_v23, %v14580_v28  ;;  %2949 = vmatprep.mubr.f32.mxu1 %v14250_v51  ;;  %v14756_v58 = vadd.f32 %v1586_v49, %v14514_v50  ;;  %2600 = vmatprep.mubr.f32.mxu0 %v14250_v51  ;;  %v2287_v49 = vld [vmem:[#allocation2 + $0x141] sm:$0xff] }
 0x197   : > { %v1279_v48 = vpop.f32.mrf.mxu1  ;;  %v1588_v43 = vpop.f32.mrf.mxu0 }
 0x198   : > { %v14760_v17 = vadd.f32 %v1279_v48, %v14589_v60  ;;  %v14763_v28 = vadd.f32 %v1588_v43, %v14523_v19  ;;  %v20536_v43 = vld [vmem:[#allocation13_spill] sm:$0xff] }
 0x199   : > { %v1283_v59 = vpop.f32.mrf.mxu1  ;;  %11911 = vmatmul.mubr.msk.f32.gmra.mxu1 %vm441_vm1, %v20534_v40  ;;  %v1592_v38 = vpop.f32.mrf.mxu0  ;;  %11894 = vmatmul.mubr.msk.f32.gmra.mxu0 %vm441_vm1, %v2285_v7 }
 0x19a   : > { %v14768_v5 = vadd.f32 %v1283_v59, %v14596_v34  ;;  %2955 = vmatprep.mubr.f32.mxu1 %v14250_v51  ;;  %v14773_v60 = vadd.f32 %v1592_v38, %v14530_v47  ;;  %2606 = vmatprep.mubr.f32.mxu0 %v14250_v51  ;;  %v2288_v38 = vld [vmem:[#allocation2 + $0x151] sm:$0xff] }
 0x19b   : > { %v1285_v50 = vpop.f32.mrf.mxu1  ;;  %v1594_v46 = vpop.f32.mrf.mxu0 }
 0x19c   : > { %v14777_v19 = vadd.f32 %v1285_v50, %v14605_v62  ;;  %v14780_v34 = vadd.f32 %v1594_v46, %v14539_v21  ;;  %v20537_v46 = vld [vmem:[#allocation14_spill] sm:$0xff] }
 0x19d   : > { %v1289_v15 = vpop.f32.mrf.mxu1  ;;  %11912 = vmatmul.mubr.msk.f32.gmra.mxu1 %vm441_vm1, %v20535_v10  ;;  %v1598_v2 = vpop.f32.mrf.mxu0  ;;  %11895 = vmatmul.mubr.msk.f32.gmra.mxu0 %vm441_vm1, %v2286_v11 }
 0x19e   : > { %v14785_v23 = vadd.f32 %v1289_v15, %v14612_v6  ;;  %2961 = vmatprep.mubr.f32.mxu1 %v14250_v51  ;;  %v14790_v62 = vadd.f32 %v1598_v2, %v14546_v44  ;;  %2612 = vmatprep.mubr.f32.mxu0 %v14250_v51 }
 0x19f   : > { %v1291_v47 = vpop.f32.mrf.mxu1  ;;  %v1600_v48 = vpop.f32.mrf.mxu0 }
 0x1a0   : > { %v14794_v21 = vadd.f32 %v1291_v47, %v14621_v0  ;;  %v14797_v6 = vadd.f32 %v1600_v48, %v14555_v13 }
 0x1a1   : > { %v1295_v7 = vpop.f32.mrf.mxu1  ;;  %11913 = vmatmul.mubr.msk.f32.gmra.mxu1 %vm441_vm1, %v20536_v43  ;;  %v1604_v40 = vpop.f32.mrf.mxu0  ;;  %11896 = vmatmul.mubr.msk.f32.gmra.mxu0 %vm441_vm1, %v2287_v49  ;;  %v20538_v49 = vld [vmem:[#allocation15_spill] sm:$0xff] }
 0x1a2   : > { %v14802_v59 = vadd.f32 %v1295_v7, %v14628_v41  ;;  %2967 = vmatprep.mubr.f32.mxu1 %v14250_v51  ;;  %v14807_v0 = vadd.f32 %v1604_v40, %v14562_v61  ;;  %2618 = vmatprep.mubr.f32.mxu0 %v14250_v51  ;;  %v2729_v7 = vld [vmem:[#allocation2 + $0x92] sm:$0xff]  ;;  %v2290_v40 = vld [vmem:[#allocation2 + $0x169] sm:$0xff] }
 0x1a3   : > { %v1297_v44 = vpop.f32.mrf.mxu1  ;;  %v1606_v50 = vpop.f32.mrf.mxu0 }
 0x1a4   : > { %v14811_v13 = vadd.f32 %v1297_v44, %v14637_v8  ;;  %v14816_v41 = vadd.f32 %v1606_v50, %v14571_v24  ;;  %v2289_v8 = vld [vmem:[#allocation2 + $0x159] sm:$0xff] }
 0x1a5   : > { %v14813_v11 = vpop.f32.mrf.mxu1  ;;  %11914 = vmatmul.mubr.msk.f32.gmra.mxu1 %vm441_vm1, %v20537_v46  ;;  %v1610_v15 = vpop.f32.mrf.mxu0  ;;  %11897 = vmatmul.mubr.msk.f32.gmra.mxu0 %vm441_vm1, %v2288_v38  ;;  %v2730_v46 = vld [vmem:[#allocation2 + $0x9a] sm:$0xff] }
 0x1a6   : > { %2973 = vmatprep.mubr.f32.mxu1 %v14250_v51  ;;  %v14825_v10 = vadd.f32 %v1610_v15, %v14578_v42  ;;  %2624 = vmatprep.mubr.f32.mxu0 %v14250_v51 }
 0x1a7   : > { %v14822_v61 = vpop.f32.mrf.mxu1  ;;  %v1612_v2 = vpop.f32.mrf.mxu0 }
 0x1a8   : > { %v14831_v24 = vadd.f32 %v1612_v2, %v14587_v25 }
 0x1a9   : > { %v14828_v47 = vpop.f32.mrf.mxu1  ;;  %11915 = vmatmul.mubr.msk.f32.gmra.mxu1 %vm441_vm1, %v20538_v49  ;;  %v1616_v48 = vpop.f32.mrf.mxu0  ;;  %11898 = vmatmul.mubr.msk.f32.gmra.mxu0 %vm441_vm1, %v2289_v8  ;;  %v2291_v8 = vld [vmem:[#allocation2 + $0x171] sm:$0xff] }
 0x1aa   : > { %2979 = vmatprep.mubr.f32.mxu1 %v14250_v51  ;;  %v14840_v43 = vadd.f32 %v1616_v48, %v14594_v32  ;;  %2630 = vmatprep.mubr.f32.mxu0 %v14250_v51 }
 0x1ab   : > { %v14837_v42 = vpop.f32.mrf.mxu1  ;;  %v1618_v44 = vpop.f32.mrf.mxu0 }
 0x1ac   : > { %20539 = vst [vmem:[#allocation7_spill] sm:$0xff] %v14840_v43  ;;  %v14846_v38 = vadd.f32 %v1618_v44, %v14603_v33  ;;  %v20542_v33 = vld [vmem:[#allocation33_spill] sm:$0xff] }
 0x1ad   : > { %v14843_v25 = vpop.f32.mrf.mxu1  ;;  %11916 = vmatmul.mubr.msk.f32.gmra.mxu1 %vm441_vm1, %v2729_v7  ;;  %v1622_v50 = vpop.f32.mrf.mxu0  ;;  %11899 = vmatmul.mubr.msk.f32.gmra.mxu0 %vm441_vm1, %v2290_v40  ;;  %v2731_v40 = vld [vmem:[#allocation2 + $0xaa] sm:$0xff] }
 0x1ae   : > { %20540 = vst [vmem:[#allocation9_spill] sm:$0xff] %v14846_v38  ;;  %2985 = vmatprep.mubr.f32.mxu1 %v14250_v51  ;;  %v14854_v32 = vadd.f32 %v1622_v50, %v14610_v55  ;;  %2636 = vmatprep.mubr.f32.mxu0 %v14250_v51  ;;  %v20544_v55 = vld [vmem:[#allocation34_spill] sm:$0xff] }
 0x1af   : > { %v14851_v15 = vpop.f32.mrf.mxu1  ;;  %v1624_v2 = vpop.f32.mrf.mxu0 }
 0x1b0   : > { %20541 = vst [vmem:[#allocation8_spill] sm:$0xff] %v14854_v32  ;;  %v14860_v48 = vadd.f32 %v1624_v2, %v20542_v33  ;;  %v2292_v32 = vld [vmem:[#allocation2 + $0x181] sm:$0xff] }
 0x1b1   : > { %v14857_v49 = vpop.f32.mrf.mxu1  ;;  %11917 = vmatmul.mubr.msk.f32.gmra.mxu1 %vm441_vm1, %v2730_v46  ;;  %v1628_v7 = vpop.f32.mrf.mxu0  ;;  %11900 = vmatmul.mubr.msk.f32.gmra.mxu0 %vm441_vm1, %v2291_v8  ;;  %v2732_v8 = vld [vmem:[#allocation2 + $0xb2] sm:$0xff] }
 0x1b2   : > { %20543 = vst [vmem:[#allocation10_spill] sm:$0xff] %v14860_v48  ;;  %2991 = vmatprep.mubr.f32.mxu1 %v14250_v51  ;;  %v14868_v50 = vadd.f32 %v1628_v7, %v20544_v55  ;;  %2642 = vmatprep.mubr.f32.mxu0 %v14250_v51  ;;  %v2293_v55 = vld [vmem:[#allocation2 + $0x189] sm:$0xff] }
 0x1b3   : > { %v14865_v44 = vpop.f32.mrf.mxu1  ;;  %v1630_v38 = vpop.f32.mrf.mxu0 }
 0x1b4   : > { %20545 = vst [vmem:[#allocation11_spill] sm:$0xff] %v14868_v50  ;;  %v14874_v2 = vadd.f32 %v1630_v38, %v14635_v26 }
 0x1b5   : > { %v14871_v43 = vpop.f32.mrf.mxu1  ;;  %11918 = vmatmul.mubr.msk.f32.gmra.mxu1 %vm441_vm1, %v2731_v40  ;;  %v1634_v46 = vpop.f32.mrf.mxu0  ;;  %11901 = vmatmul.mubr.msk.f32.gmra.mxu0 %vm441_vm1, %v2292_v32  ;;  %v2733_v32 = vld [vmem:[#allocation2 + $0xc2] sm:$0xff] }
 0x1b6   : > { %20546 = vst [vmem:[#allocation12_spill] sm:$0xff] %v14874_v2  ;;  %2997 = vmatprep.mubr.f32.mxu1 %v14250_v51  ;;  %v14882_v7 = vadd.f32 %v1634_v46, %v14641_v27  ;;  %2648 = vmatprep.mubr.f32.mxu0 %v14250_v51  ;;  %v3177_v46 = vld [vmem:[#allocation2 + $0x30] sm:$0xff] }
 0x1b7   : > { %v14879_v33 = vpop.f32.mrf.mxu1  ;;  %v1636_v50 = vpop.f32.mrf.mxu0 }
 0x1b8   : > { %20547 = vst [vmem:[#allocation13_spill] sm:$0xff] %v14882_v7  ;;  %v14888_v26 = vadd.f32 %v1636_v50, %v14651_v36 }
 0x1b9   : > { %v14885_v48 = vpop.f32.mrf.mxu1  ;;  %11919 = vmatmul.mubr.msk.f32.gmra.mxu1 %vm441_vm1, %v2732_v8  ;;  %v1640_v38 = vpop.f32.mrf.mxu0  ;;  %11902 = vmatmul.mubr.msk.f32.gmra.mxu0 %vm441_vm1, %v2293_v55  ;;  %v2734_v8 = vld [vmem:[#allocation2 + $0xca] sm:$0xff] }
 0x1ba   : > { %3003 = vmatprep.mubr.f32.mxu1 %v14250_v51  ;;  %v14896_v27 = vadd.f32 %v1640_v38, %v14658_v14  ;;  %3377 = vmatprep.mubr.f32.mxu0 %v14250_v51  ;;  %v20551_v38 = vld [vmem:[#allocation29_spill] sm:$0xff] }
 0x1bb   : > { %v14893_v40 = vpop.f32.mrf.mxu1  ;;  %v1642_v7 = vpop.f32.mrf.mxu0 }
 0x1bc   : > { %20548 = vst [vmem:[#allocation14_spill] sm:$0xff] %v14896_v27  ;;  %v14902_v36 = vadd.f32 %v1642_v7, %v14668_v29  ;;  %v3178_v29 = vld [vmem:[#allocation2 + $0x38] sm:$0xff] }
 0x1bd   : > { %v14899_v2 = vpop.f32.mrf.mxu1  ;;  %11920 = vmatmul.mubr.msk.f32.gmra.mxu1 %vm441_vm1, %v2733_v32  ;;  %v1646_v50 = vpop.f32.mrf.mxu0  ;;  %11941 = vmatmul.mubr.msk.f32.vlgmr.msra.gmra.mxu0 %vm441_vm1, %v3177_v46 }
 0x1be   : > { %20549 = vst [vmem:[#allocation15_spill] sm:$0xff] %v14902_v36  ;;  %3009 = vmatprep.mubr.f32.mxu1 %v14250_v51  ;;  %v14910_v14 = vadd.f32 %v1646_v50, %v14676_v16  ;;  %12010 = vmatpush1.msk.msra.mxu0 %vm727_vm0, %v20551_v38  ;;  %v2735_v16 = vld [vmem:[#allocation2 + $0xda] sm:$0xff] }
 0x1bf   : > { %v14907_v55 = vpop.f32.mrf.mxu1  ;;  %3383 = vmatprep.mubr.f32.mxu0 %v14250_v51  ;;  %v1648_v7 = vpop.f32.mrf.mxu0  ;;  %6513 = vmatprep.subr.mxu0 %v14250_v51 }
 0x1c0   : > { %20550 = vst [vmem:[#allocation33_spill] sm:$0xff] %v14910_v14  ;;  %v14919_v46 = vadd.f32 %v1648_v7, %v14688_v35  ;;  %v3179_v14 = vld [vmem:[#allocation2 + $0x48] sm:$0xff] }
 0x1c1   : > { %v14916_v32 = vpop.f32.mrf.mxu1  ;;  %11921 = vmatmul.mubr.msk.f32.gmra.mxu1 %vm441_vm1, %v2734_v8  ;;  %v1652_v36 = vpop.f32.mrf.mxu0  ;;  %11942 = vmatmul.mubr.msk.f32.gmra.mxu0 %vm441_vm1, %v3178_v29 }
 0x1c2   : > { %3015 = vmatprep.mubr.f32.mxu1 %v14250_v51  ;;  %v14927_v38 = vadd.f32 %v1652_v36, %v14697_v22  ;;  %3389 = vmatprep.mubr.f32.mxu0 %v14250_v51  ;;  %v2736_v22 = vld [vmem:[#allocation2 + $0xe2] sm:$0xff] }
 0x1c3   : > { %v14924_v50 = vpop.f32.mrf.mxu1  ;;  %v1654_v27 = vpop.f32.mrf.mxu0 }
 0x1c4   : > { %20552 = vst [vmem:[#allocation34_spill] sm:$0xff] %v14927_v38  ;;  %v14931_v35 = vadd.f32 %v1654_v27, %v14707_v31  ;;  %v3180_v31 = vld [vmem:[#allocation2 + $0x50] sm:$0xff] }
 0x1c5   : > { %v2007_v7 = vpop.f32.mrf.mxu1  ;;  %11922 = vmatmul.mubr.msk.f32.gmra.mxu1 %vm441_vm1, %v2735_v16  ;;  %v1658_v29 = vpop.f32.mrf.mxu0  ;;  %11943 = vmatmul.mubr.msk.f32.gmra.mxu0 %vm441_vm1, %v3179_v14 }
 0x1c6   : > { %20553 = vst [vmem:[#allocation29_spill] sm:$0xff] %v14931_v35  ;;  %v14935_v8 = vadd.f32 %v2007_v7, %v14647_v30  ;;  %3021 = vmatprep.mubr.f32.mxu1 %v14250_v51  ;;  %v14940_v36 = vadd.f32 %v1658_v29, %v14715_v20  ;;  %3395 = vmatprep.mubr.f32.mxu0 %v14250_v51  ;;  %v2737_v20 = vld [vmem:[#allocation2 + $0xf2] sm:$0xff] }
 0x1c7   : > { %v2009_v38 = vpop.f32.mrf.mxu1  ;;  %v1660_v16 = vpop.f32.mrf.mxu0 }
 0x1c8   : > { %v14944_v27 = vadd.f32 %v2009_v38, %v14654_v9  ;;  %v14947_v30 = vadd.f32 %v1660_v16, %v14725_v1  ;;  %v3181_v1 = vld [vmem:[#allocation2 + $0x60] sm:$0xff] }
 0x1c9   : > { %v2013_v7 = vpop.f32.mrf.mxu1  ;;  %11923 = vmatmul.mubr.msk.f32.gmra.mxu1 %vm441_vm1, %v2736_v22  ;;  %v1664_v35 = vpop.f32.mrf.mxu0  ;;  %11944 = vmatmul.mubr.msk.f32.gmra.mxu0 %vm441_vm1, %v3180_v31 }
 0x1ca   : > { %v14951_v14 = vadd.f32 %v2013_v7, %v14664_v39  ;;  %3027 = vmatprep.mubr.f32.mxu1 %v14250_v51  ;;  %v14956_v29 = vadd.f32 %v1664_v35, %v14733_v12  ;;  %3401 = vmatprep.mubr.f32.mxu0 %v14250_v51  ;;  %v2738_v12 = vld [vmem:[#allocation2 + $0xfa] sm:$0xff] }
 0x1cb   : > { %v2015_v9 = vpop.f32.mrf.mxu1  ;;  %v1666_v22 = vpop.f32.mrf.mxu0 }
 0x1cc   : > { %v14960_v38 = vadd.f32 %v2015_v9, %v14671_v4  ;;  %v14963_v39 = vadd.f32 %v1666_v22, %v14743_v63  ;;  %v14974_v9 = vld [vmem:[#allocation5] sm:$0xff]  ;;  %v3182_v63 = vld [vmem:[#allocation2 + $0x68] sm:$0xff] }
 0x1cd   : > { %v2019_v16 = vpop.f32.mrf.mxu1  ;;  %11924 = vmatmul.mubr.msk.f32.gmra.mxu1 %vm441_vm1, %v2737_v20  ;;  %v1670_v7 = vpop.f32.mrf.mxu0  ;;  %11945 = vmatmul.mubr.msk.f32.gmra.mxu0 %vm441_vm1, %v3181_v1 }
 0x1ce   : > { %v14967_v31 = vadd.f32 %v2019_v16, %v14682_v45  ;;  %3033 = vmatprep.mubr.f32.mxu1 %v14250_v51  ;;  %v14972_v35 = vadd.f32 %v1670_v7, %v14751_v37  ;;  %3407 = vmatprep.mubr.f32.mxu0 %v14974_v9  ;;  %v2739_v16 = vld [vmem:[#allocation2 + $0x10a] sm:$0xff] }
 0x1cf   : > { %v2021_v4 = vpop.f32.mrf.mxu1  ;;  %v1672_v45 = vpop.f32.mrf.mxu0 }
 0x1d0   : > { %v14978_v20 = vadd.f32 %v2021_v4, %v14692_v18  ;;  %v14981_v22 = vadd.f32 %v1672_v45, %v14760_v17  ;;  %v3183_v17 = vld [vmem:[#allocation2 + $0x78] sm:$0xff] }
 0x1d1   : > { %v2025_v1 = vpop.f32.mrf.mxu1  ;;  %11925 = vmatmul.mubr.msk.f32.gmra.mxu1 %vm441_vm1, %v2738_v12  ;;  %v1676_v37 = vpop.f32.mrf.mxu0  ;;  %11946 = vmatmul.mubr.msk.f32.gmra.mxu0 %vm441_vm1, %v3182_v63 }
 0x1d2   : > { %v14985_v51 = vadd.f32 %v2025_v1, %v14703_v52  ;;  %3039 = vmatprep.mubr.f32.mxu1 %v14974_v9  ;;  %v14990_v7 = vadd.f32 %v1676_v37, %v14768_v5  ;;  %3413 = vmatprep.mubr.f32.mxu0 %v14974_v9  ;;  %v2740_v5 = vld [vmem:[#allocation2 + $0x112] sm:$0xff] }
 0x1d3   : > { %v2027_v18 = vpop.f32.mrf.mxu1  ;;  %v1678_v12 = vpop.f32.mrf.mxu0 }
 0x1d4   : > { %v14994_v4 = vadd.f32 %v2027_v18, %v14710_v53  ;;  %v14997_v52 = vadd.f32 %v1678_v12, %v14777_v19  ;;  %v3184_v19 = vld [vmem:[#allocation2 + $0x80] sm:$0xff] }
 0x1d5   : > { %v2031_v45 = vpop.f32.mrf.mxu1  ;;  %11926 = vmatmul.mubr.msk.f32.gmra.mxu1 %vm441_vm1, %v2739_v16  ;;  %v1682_v1 = vpop.f32.mrf.mxu0  ;;  %11947 = vmatmul.mubr.msk.f32.gmra.mxu0 %vm441_vm1, %v3183_v17 }
 0x1d6   : > { %v15001_v63 = vadd.f32 %v2031_v45, %v14721_v54  ;;  %3045 = vmatprep.mubr.f32.mxu1 %v14974_v9  ;;  %v15006_v37 = vadd.f32 %v1682_v1, %v14785_v23  ;;  %3419 = vmatprep.mubr.f32.mxu0 %v14974_v9  ;;  %v2741_v23 = vld [vmem:[#allocation2 + $0x122] sm:$0xff] }
 0x1d7   : > { %v2033_v53 = vpop.f32.mrf.mxu1  ;;  %v1684_v16 = vpop.f32.mrf.mxu0 }
 0x1d8   : > { %v15010_v18 = vadd.f32 %v2033_v53, %v14728_v57  ;;  %v15013_v54 = vadd.f32 %v1684_v16, %v14794_v21  ;;  %v3185_v21 = vld [vmem:[#allocation2 + $0x90] sm:$0xff]  ;;  %v20556_v16 = vld [vmem:[#allocation16_spill] sm:$0xff] }
 0x1d9   : > { %v2037_v12 = vpop.f32.mrf.mxu1  ;;  %11927 = vmatmul.mubr.msk.f32.gmra.mxu1 %vm441_vm1, %v2740_v5  ;;  %v1688_v45 = vpop.f32.mrf.mxu0  ;;  %11948 = vmatmul.mubr.msk.f32.gmra.mxu0 %vm441_vm1, %v3184_v19 }
 0x1da   : > { %20554 = vst [vmem:[#allocation35_spill] sm:$0xff] %v15013_v54  ;;  %v15017_v17 = vadd.f32 %v2037_v12, %v14739_v56  ;;  %3051 = vmatprep.mubr.f32.mxu1 %v14974_v9  ;;  %v15022_v1 = vadd.f32 %v1688_v45, %v14802_v59  ;;  %3425 = vmatprep.mubr.f32.mxu0 %v14974_v9 }
 0x1db   : > { %v2039_v57 = vpop.f32.mrf.mxu1  ;;  %v1690_v5 = vpop.f32.mrf.mxu0  ;;  %v1302_v56 = vadd.f32 %v14813_v11, %v20556_v16 }
 0x1dc   : > { %20555 = vst [vmem:[#allocation36_spill] sm:$0xff] %v15022_v1  ;;  %v15026_v53 = vadd.f32 %v2039_v57, %v14746_v3  ;;  %v15031_v12 = vadd.f32 %v1690_v5, %v14811_v13  ;;  %v2742_v3 = vld [vmem:[#allocation2 + $0x12a] sm:$0xff]  ;;  %v20557_v57 = vld [vmem:[#allocation17_spill] sm:$0xff]  ;;  %v3186_v13 = vld [vmem:[#allocation2 + $0x98] sm:$0xff] }
 0x1dd   : > { %v2043_v19 = vpop.f32.mrf.mxu1  ;;  %11928 = vmatmul.mubr.msk.f32.gmra.mxu1 %vm441_vm1, %v2741_v23  ;;  %v1694_v45 = vpop.f32.mrf.mxu0  ;;  %11949 = vmatmul.mubr.msk.f32.gmra.mxu0 %vm441_vm1, %v3185_v21  ;;  %v1304_v1 = vadd.f32 %v14822_v61, %v20557_v57  ;;  %v20558_v5 = vld [vmem:[#allocation18_spill] sm:$0xff] }
 0x1de   : > { %v15035_v59 = vadd.f32 %v2043_v19, %v14756_v58  ;;  %3057 = vmatprep.mubr.f32.mxu1 %v14974_v9  ;;  %v15041_v54 = vadd.f32 %v1694_v45, %v1302_v56  ;;  %3431 = vmatprep.mubr.f32.mxu0 %v14974_v9  ;;  %v1308_v16 = vadd.f32 %v14828_v47, %v20558_v5  ;;  %v2743_v45 = vld [vmem:[#allocation2 + $0x13a] sm:$0xff] }
 0x1df   : > { %v2045_v11 = vpop.f32.mrf.mxu1  ;;  %v1696_v58 = vpop.f32.mrf.mxu0 }
 0x1e0   : > { %v15045_v23 = vadd.f32 %v2045_v11, %v14763_v28  ;;  %v15049_v21 = vadd.f32 %v1696_v58, %v1304_v1  ;;  %v20559_v28 = vld [vmem:[#allocation19_spill] sm:$0xff]  ;;  %v3187_v1 = vld [vmem:[#allocation2 + $0xa8] sm:$0xff]  ;;  %v20560_v58 = vld [vmem:[#allocation20_spill] sm:$0xff] }
 0x1e1   : > { %v2049_v19 = vpop.f32.mrf.mxu1  ;;  %11929 = vmatmul.mubr.msk.f32.gmra.mxu1 %vm441_vm1, %v2742_v3  ;;  %v1700_v56 = vpop.f32.mrf.mxu0  ;;  %11950 = vmatmul.mubr.msk.f32.gmra.mxu0 %vm441_vm1, %v3186_v13  ;;  %v1310_v57 = vadd.f32 %v14837_v42, %v20559_v28  ;;  %v1314_v5 = vadd.f32 %v14843_v25, %v20560_v58 }
 0x1e2   : > { %v15053_v61 = vadd.f32 %v2049_v19, %v14773_v60  ;;  %3063 = vmatprep.mubr.f32.mxu1 %v14974_v9  ;;  %v15059_v11 = vadd.f32 %v1700_v56, %v1308_v16  ;;  %3437 = vmatprep.mubr.f32.mxu0 %v14974_v9  ;;  %v2744_v56 = vld [vmem:[#allocation2 + $0x142] sm:$0xff] }
 0x1e3   : > { %v2051_v47 = vpop.f32.mrf.mxu1  ;;  %v1702_v60 = vpop.f32.mrf.mxu0 }
 0x1e4   : > { %v15063_v3 = vadd.f32 %v2051_v47, %v14780_v34  ;;  %v15067_v13 = vadd.f32 %v1702_v60, %v1310_v57  ;;  %v20561_v34 = vld [vmem:[#allocation21_spill] sm:$0xff]  ;;  %v3188_v57 = vld [vmem:[#allocation2 + $0xb0] sm:$0xff]  ;;  %v20562_v60 = vld [vmem:[#allocation22_spill] sm:$0xff] }
 0x1e5   : > { %v2055_v19 = vpop.f32.mrf.mxu1  ;;  %11930 = vmatmul.mubr.msk.f32.gmra.mxu1 %vm441_vm1, %v2743_v45  ;;  %v1706_v16 = vpop.f32.mrf.mxu0  ;;  %11951 = vmatmul.mubr.msk.f32.gmra.mxu0 %vm441_vm1, %v3187_v1  ;;  %v1316_v28 = vadd.f32 %v14851_v15, %v20561_v34  ;;  %v1320_v58 = vadd.f32 %v14857_v49, %v20562_v60 }
 0x1e6   : > { %v15071_v42 = vadd.f32 %v2055_v19, %v14790_v62  ;;  %3069 = vmatprep.mubr.f32.mxu1 %v14974_v9  ;;  %v15077_v47 = vadd.f32 %v1706_v16, %v1314_v5  ;;  %3443 = vmatprep.mubr.f32.mxu0 %v14974_v9  ;;  %v2745_v16 = vld [vmem:[#allocation2 + $0x152] sm:$0xff] }
 0x1e7   : > { %v2057_v25 = vpop.f32.mrf.mxu1  ;;  %v1708_v62 = vpop.f32.mrf.mxu0 }
 0x1e8   : > { %v15081_v45 = vadd.f32 %v2057_v25, %v14797_v6  ;;  %v15085_v1 = vadd.f32 %v1708_v62, %v1316_v28  ;;  %v20563_v6 = vld [vmem:[#allocation23_spill] sm:$0xff]  ;;  %v3189_v28 = vld [vmem:[#allocation2 + $0xc0] sm:$0xff]  ;;  %v20564_v62 = vld [vmem:[#allocation24_spill] sm:$0xff] }
 0x1e9   : > { %v2061_v19 = vpop.f32.mrf.mxu1  ;;  %11931 = vmatmul.mubr.msk.f32.gmra.mxu1 %vm441_vm1, %v2744_v56  ;;  %v1712_v5 = vpop.f32.mrf.mxu0  ;;  %11952 = vmatmul.mubr.msk.f32.gmra.mxu0 %vm441_vm1, %v3188_v57  ;;  %v1322_v34 = vadd.f32 %v14865_v44, %v20563_v6  ;;  %v1326_v60 = vadd.f32 %v14871_v43, %v20564_v62 }
 0x1ea   : > { %v15089_v15 = vadd.f32 %v2061_v19, %v14807_v0  ;;  %3075 = vmatprep.mubr.f32.mxu1 %v14974_v9  ;;  %v15095_v25 = vadd.f32 %v1712_v5, %v1320_v58  ;;  %3449 = vmatprep.mubr.f32.mxu0 %v14974_v9  ;;  %v2746_v5 = vld [vmem:[#allocation2 + $0x15a] sm:$0xff] }
 0x1eb   : > { %v2063_v49 = vpop.f32.mrf.mxu1  ;;  %v1714_v0 = vpop.f32.mrf.mxu0 }
 0x1ec   : > { %v15099_v56 = vadd.f32 %v2063_v49, %v14816_v41  ;;  %v15103_v57 = vadd.f32 %v1714_v0, %v1322_v34  ;;  %v20566_v41 = vld [vmem:[#allocation25_spill] sm:$0xff]  ;;  %v3190_v34 = vld [vmem:[#allocation2 + $0xc8] sm:$0xff] }
 0x1ed   : > { %v2067_v19 = vpop.f32.mrf.mxu1  ;;  %11932 = vmatmul.mubr.msk.f32.gmra.mxu1 %vm441_vm1, %v2745_v16  ;;  %v1718_v58 = vpop.f32.mrf.mxu0  ;;  %11953 = vmatmul.mubr.msk.f32.gmra.mxu0 %vm441_vm1, %v3189_v28  ;;  %v1328_v6 = vadd.f32 %v14879_v33, %v20566_v41  ;;  %v20568_v0 = vld [vmem:[#allocation26_spill] sm:$0xff] }
 0x1ee   : > { %20565 = vst [vmem:[#allocation16_spill] sm:$0xff] %v15103_v57  ;;  %v15107_v44 = vadd.f32 %v2067_v19, %v14825_v10  ;;  %3081 = vmatprep.mubr.f32.mxu1 %v14974_v9  ;;  %v15113_v49 = vadd.f32 %v1718_v58, %v1326_v60  ;;  %3455 = vmatprep.mubr.f32.mxu0 %v14974_v9  ;;  %v20570_v57 = vld [vmem:[#allocation7_spill] sm:$0xff] }
 0x1ef   : > { %v2069_v43 = vpop.f32.mrf.mxu1  ;;  %v1720_v10 = vpop.f32.mrf.mxu0  ;;  %v1332_v62 = vadd.f32 %v14885_v48, %v20568_v0  ;;  %v2747_v58 = vld [vmem:[#allocation2 + $0x16a] sm:$0xff]  ;;  %v20574_v0 = vld [vmem:[#allocation28_spill] sm:$0xff] }
 0x1f0   : > { %20567 = vst [vmem:[#allocation17_spill] sm:$0xff] %v15113_v49  ;;  %v15117_v16 = vadd.f32 %v2069_v43, %v14831_v24  ;;  %v15121_v28 = vadd.f32 %v1720_v10, %v1328_v6  ;;  %v20571_v24 = vld [vmem:[#allocation27_spill] sm:$0xff]  ;;  %v3191_v6 = vld [vmem:[#allocation2 + $0xd8] sm:$0xff]  ;;  %v20573_v10 = vld [vmem:[#allocation9_spill] sm:$0xff] }
 0x1f1   : > { %v2073_v19 = vpop.f32.mrf.mxu1  ;;  %11933 = vmatmul.mubr.msk.f32.gmra.mxu1 %vm441_vm1, %v2746_v5  ;;  %v1724_v60 = vpop.f32.mrf.mxu0  ;;  %11954 = vmatmul.mubr.msk.f32.gmra.mxu0 %vm441_vm1, %v3190_v34  ;;  %v1334_v41 = vadd.f32 %v14893_v40, %v20571_v24  ;;  %v20576_v49 = vld [vmem:[#allocation8_spill] sm:$0xff]  ;;  %v20577_v24 = vld [vmem:[#allocation30_spill] sm:$0xff] }
 0x1f2   : > { %20569 = vst [vmem:[#allocation18_spill] sm:$0xff] %v15121_v28  ;;  %v15125_v33 = vadd.f32 %v2073_v19, %v20570_v57  ;;  %3087 = vmatprep.mubr.f32.mxu1 %v14974_v9  ;;  %v15131_v43 = vadd.f32 %v1724_v60, %v1332_v62  ;;  %3461 = vmatprep.mubr.f32.mxu0 %v14974_v9  ;;  %v2748_v60 = vld [vmem:[#allocation2 + $0x172] sm:$0xff] }
 0x1f3   : > { %v2075_v48 = vpop.f32.mrf.mxu1  ;;  %v1726_v57 = vpop.f32.mrf.mxu0  ;;  %v1338_v19 = vadd.f32 %v14899_v2, %v20574_v0 }
 0x1f4   : > { %20572 = vst [vmem:[#allocation19_spill] sm:$0xff] %v15131_v43  ;;  %v15135_v5 = vadd.f32 %v2075_v48, %v20573_v10  ;;  %v15139_v34 = vadd.f32 %v1726_v57, %v1334_v41  ;;  %v1340_v48 = vadd.f32 %v14907_v55, %v20577_v24  ;;  %v3192_v41 = vld [vmem:[#allocation2 + $0xe0] sm:$0xff]  ;;  %v20579_v57 = vld [vmem:[#allocation10_spill] sm:$0xff]  ;;  %v20582_v43 = vld [vmem:[#allocation11_spill] sm:$0xff] }
 0x1f5   : > { %v2079_v28 = vpop.f32.mrf.mxu1  ;;  %11934 = vmatmul.mubr.msk.f32.gmra.mxu1 %vm441_vm1, %v2747_v58  ;;  %v1730_v62 = vpop.f32.mrf.mxu0  ;;  %11955 = vmatmul.mubr.msk.f32.gmra.mxu0 %vm441_vm1, %v3191_v6  ;;  %v20583_v24 = vld [vmem:[#allocation32_spill] sm:$0xff] }
 0x1f6   : > { %20575 = vst [vmem:[#allocation20_spill] sm:$0xff] %v15139_v34  ;;  %v15143_v40 = vadd.f32 %v2079_v28, %v20576_v49  ;;  %3093 = vmatprep.mubr.f32.mxu1 %v14974_v9  ;;  %v15149_v10 = vadd.f32 %v1730_v62, %v1338_v19  ;;  %3467 = vmatprep.mubr.f32.mxu0 %v14974_v9  ;;  %v20580_v28 = vld [vmem:[#allocation31_spill] sm:$0xff]  ;;  %v2749_v62 = vld [vmem:[#allocation2 + $0x182] sm:$0xff] }
 0x1f7   : > { %v2081_v2 = vpop.f32.mrf.mxu1  ;;  %v1732_v49 = vpop.f32.mrf.mxu0  ;;  %v1344_v0 = vadd.f32 %v14916_v32, %v20580_v28 }
 0x1f8   : > { %20578 = vst [vmem:[#allocation21_spill] sm:$0xff] %v15149_v10  ;;  %v15153_v58 = vadd.f32 %v2081_v2, %v20579_v57  ;;  %v15157_v6 = vadd.f32 %v1732_v49, %v1340_v48  ;;  %v1346_v2 = vadd.f32 %v14924_v50, %v20583_v24  ;;  %v3193_v48 = vld [vmem:[#allocation2 + $0xf0] sm:$0xff]  ;;  %v20584_v49 = vld [vmem:[#allocation12_spill] sm:$0xff] }
 0x1f9   : > { %v2085_v34 = vpop.f32.mrf.mxu1  ;;  %11935 = vmatmul.mubr.msk.f32.gmra.mxu1 %vm441_vm1, %v2748_v60  ;;  %v1736_v19 = vpop.f32.mrf.mxu0  ;;  %11956 = vmatmul.mubr.msk.f32.gmra.mxu0 %vm441_vm1, %v3192_v41  ;;  %v20585_v41 = vld [vmem:[#allocation13_spill] sm:$0xff]  ;;  %v2750_v50 = vld [vmem:[#allocation2 + $0x18a] sm:$0xff]  ;;  %v3194_v24 = vld [vmem:[#allocation2 + $0xf8] sm:$0xff] }
 0x1fa   : > { %20581 = vst [vmem:[#allocation22_spill] sm:$0xff] %v15157_v6  ;;  %v15161_v55 = vadd.f32 %v2085_v34, %v20582_v43  ;;  %3099 = vmatprep.mubr.f32.mxu1 %v14974_v9  ;;  %v15167_v57 = vadd.f32 %v1736_v19, %v1344_v0  ;;  %3473 = vmatprep.mubr.f32.mxu0 %v14974_v9 }
 0x1fb   : > { %v2087_v32 = vpop.f32.mrf.mxu1  ;;  %v1738_v43 = vpop.f32.mrf.mxu0 }
 0x1fc   : > { %v15171_v60 = vadd.f32 %v2087_v32, %v20584_v49  ;;  %v15173_v34 = vadd.f32 %v1738_v43, %v1346_v2 }
 0x1fd   : > { %v2091_v28 = vpop.f32.mrf.mxu1  ;;  %11936 = vmatmul.mubr.msk.f32.gmra.mxu1 %vm441_vm1, %v2749_v62  ;;  %v2464_v10 = vpop.f32.mrf.mxu0  ;;  %11957 = vmatmul.mubr.msk.f32.gmra.mxu0 %vm441_vm1, %v3193_v48  ;;  %v20587_v48 = vld [vmem:[#allocation14_spill] sm:$0xff] }
 0x1fe   : > { %v15177_v6 = vadd.f32 %v2091_v28, %v20585_v41  ;;  %3105 = vmatprep.mubr.f32.mxu1 %v14974_v9  ;;  %v15182_v19 = vadd.f32 %v2464_v10, %v14935_v8  ;;  %3479 = vmatprep.mubr.f32.mxu0 %v14974_v9  ;;  %v3634_v8 = vld [vmem:[#allocation2 + $0x31] sm:$0xff]  ;;  %v3195_v41 = vld [vmem:[#allocation2 + $0x108] sm:$0xff] }
 0x1ff   : > { %v2093_v0 = vpop.f32.mrf.mxu1  ;;  %v2466_v62 = vpop.f32.mrf.mxu0 }
 0x200   : > { %v15186_v2 = vadd.f32 %v2093_v0, %v14888_v26  ;;  %v15189_v49 = vadd.f32 %v2466_v62, %v14944_v27  ;;  %v20588_v27 = vld [vmem:[#allocation15_spill] sm:$0xff] }
 0x201   : > { %v2097_v32 = vpop.f32.mrf.mxu1  ;;  %11937 = vmatmul.mubr.msk.f32.gmra.mxu1 %vm441_vm1, %v2750_v50  ;;  %v2470_v28 = vpop.f32.mrf.mxu0  ;;  %11958 = vmatmul.mubr.msk.f32.gmra.mxu0 %vm441_vm1, %v3194_v24  ;;  %v20590_v24 = vld [vmem:[#allocation33_spill] sm:$0xff] }
 0x202   : > { %20586 = vst [vmem:[#allocation23_spill] sm:$0xff] %v15189_v49  ;;  %v15193_v43 = vadd.f32 %v2097_v32, %v20587_v48  ;;  %3834 = vmatprep.mubr.f32.mxu1 %v14974_v9  ;;  %v15198_v26 = vadd.f32 %v2470_v28, %v14951_v14  ;;  %3485 = vmatprep.mubr.f32.mxu0 %v14974_v9  ;;  %v3635_v14 = vld [vmem:[#allocation2 + $0x39] sm:$0xff] }
 0x203   : > { %v2099_v10 = vpop.f32.mrf.mxu1  ;;  %v2472_v50 = vpop.f32.mrf.mxu0 }
 0x204   : > { %v15202_v0 = vadd.f32 %v2099_v10, %v20588_v27  ;;  %v15205_v32 = vadd.f32 %v2472_v50, %v14960_v38  ;;  %v3196_v27 = vld [vmem:[#allocation2 + $0x110] sm:$0xff] }
 0x205   : > { %v2103_v62 = vpop.f32.mrf.mxu1  ;;  %11976 = vmatmul.mubr.msk.f32.vlgmr.msra.gmra.mxu1 %vm441_vm1, %v3634_v8  ;;  %v2476_v49 = vpop.f32.mrf.mxu0  ;;  %11959 = vmatmul.mubr.msk.f32.gmra.mxu0 %vm441_vm1, %v3195_v41  ;;  %v20592_v41 = vld [vmem:[#allocation34_spill] sm:$0xff] }
 0x206   : > { %20589 = vst [vmem:[#allocation24_spill] sm:$0xff] %v15205_v32  ;;  %v15209_v48 = vadd.f32 %v2103_v62, %v20590_v24  ;;  %3840 = vmatprep.mubr.f32.mxu1 %v14974_v9  ;;  %v15214_v10 = vadd.f32 %v2476_v49, %v14967_v31  ;;  %3491 = vmatprep.mubr.f32.mxu0 %v14974_v9  ;;  %v3636_v31 = vld [vmem:[#allocation2 + $0x49] sm:$0xff] }
 0x207   : > { %v2105_v28 = vpop.f32.mrf.mxu1  ;;  %v2478_v8 = vpop.f32.mrf.mxu0 }
 0x208   : > { %v15218_v38 = vadd.f32 %v2105_v28, %v14919_v46  ;;  %v15221_v62 = vadd.f32 %v2478_v8, %v14978_v20  ;;  %v3197_v28 = vld [vmem:[#allocation2 + $0x120] sm:$0xff] }
 0x209   : > { %v2109_v50 = vpop.f32.mrf.mxu1  ;;  %11977 = vmatmul.mubr.msk.f32.gmra.mxu1 %vm441_vm1, %v3635_v14  ;;  %v2482_v32 = vpop.f32.mrf.mxu0  ;;  %11960 = vmatmul.mubr.msk.f32.gmra.mxu0 %vm441_vm1, %v3196_v27  ;;  %v20593_v20 = vld [vmem:[#allocation29_spill] sm:$0xff] }
 0x20a   : > { %20591 = vst [vmem:[#allocation25_spill] sm:$0xff] %v15221_v62  ;;  %v15225_v24 = vadd.f32 %v2109_v50, %v20592_v41  ;;  %3846 = vmatprep.mubr.f32.mxu1 %v14974_v9  ;;  %v15230_v46 = vadd.f32 %v2482_v32, %v14985_v51  ;;  %3497 = vmatprep.mubr.f32.mxu0 %v14974_v9  ;;  %v3637_v51 = vld [vmem:[#allocation2 + $0x51] sm:$0xff] }
 0x20b   : > { %v2111_v49 = vpop.f32.mrf.mxu1  ;;  %v2484_v14 = vpop.f32.mrf.mxu0 }
 0x20c   : > { %v15234_v8 = vadd.f32 %v2111_v49, %v20593_v20  ;;  %v15237_v50 = vadd.f32 %v2484_v14, %v14994_v4  ;;  %v3198_v20 = vld [vmem:[#allocation2 + $0x128] sm:$0xff] }
 0x20d   : > { %v2115_v62 = vpop.f32.mrf.mxu1  ;;  %11978 = vmatmul.mubr.msk.f32.gmra.mxu1 %vm441_vm1, %v3636_v31  ;;  %v2488_v41 = vpop.f32.mrf.mxu0  ;;  %11961 = vmatmul.mubr.msk.f32.gmra.mxu0 %vm441_vm1, %v3197_v28 }
 0x20e   : > { %v15241_v27 = vadd.f32 %v2115_v62, %v14940_v36  ;;  %3852 = vmatprep.mubr.f32.mxu1 %v14974_v9  ;;  %v15246_v49 = vadd.f32 %v2488_v41, %v15001_v63  ;;  %3503 = vmatprep.mubr.f32.mxu0 %v14974_v9  ;;  %v3638_v63 = vld [vmem:[#allocation2 + $0x61] sm:$0xff] }
 0x20f   : > { %v2117_v32 = vpop.f32.mrf.mxu1  ;;  %v2490_v31 = vpop.f32.mrf.mxu0 }
 0x210   : > { %v15250_v4 = vadd.f32 %v2117_v32, %v14947_v30  ;;  %v15253_v36 = vadd.f32 %v2490_v31, %v15010_v18  ;;  %v3199_v32 = vld [vmem:[#allocation2 + $0x138] sm:$0xff] }
 0x211   : > { %v2121_v14 = vpop.f32.mrf.mxu1  ;;  %11979 = vmatmul.mubr.msk.f32.gmra.mxu1 %vm441_vm1, %v3637_v51  ;;  %v2494_v28 = vpop.f32.mrf.mxu0  ;;  %11962 = vmatmul.mubr.msk.f32.gmra.mxu0 %vm441_vm1, %v3198_v20 }
 0x212   : > { %v15257_v62 = vadd.f32 %v2121_v14, %v14956_v29  ;;  %3858 = vmatprep.mubr.f32.mxu1 %v14974_v9  ;;  %v15262_v30 = vadd.f32 %v2494_v28, %v15017_v17  ;;  %3509 = vmatprep.mubr.f32.mxu0 %v14974_v9  ;;  %v3639_v17 = vld [vmem:[#allocation2 + $0x69] sm:$0xff] }
 0x213   : > { %v2123_v41 = vpop.f32.mrf.mxu1  ;;  %v2496_v51 = vpop.f32.mrf.mxu0 }
 0x214   : > { %v15266_v18 = vadd.f32 %v2123_v41, %v14963_v39  ;;  %v15269_v29 = vadd.f32 %v2496_v51, %v15026_v53  ;;  %v3200_v41 = vld [vmem:[#allocation2 + $0x140] sm:$0xff] }
 0x215   : > { %v2127_v31 = vpop.f32.mrf.mxu1  ;;  %11980 = vmatmul.mubr.msk.f32.gmra.mxu1 %vm441_vm1, %v3638_v63  ;;  %v2500_v14 = vpop.f32.mrf.mxu0  ;;  %11963 = vmatmul.mubr.msk.f32.gmra.mxu0 %vm441_vm1, %v3199_v32 }
 0x216   : > { %v15273_v20 = vadd.f32 %v2127_v31, %v14972_v35  ;;  %3864 = vmatprep.mubr.f32.mxu1 %v14974_v9  ;;  %v15278_v39 = vadd.f32 %v2500_v14, %v15035_v59  ;;  %3515 = vmatprep.mubr.f32.mxu0 %v14974_v9  ;;  %v3640_v59 = vld [vmem:[#allocation2 + $0x79] sm:$0xff] }
 0x217   : > { %v2129_v28 = vpop.f32.mrf.mxu1  ;;  %v2502_v63 = vpop.f32.mrf.mxu0 }
 0x218   : > { %v15282_v53 = vadd.f32 %v2129_v28, %v14981_v22  ;;  %v15285_v35 = vadd.f32 %v2502_v63, %v15045_v23  ;;  %v3201_v28 = vld [vmem:[#allocation2 + $0x150] sm:$0xff] }
 0x219   : > { %v2133_v51 = vpop.f32.mrf.mxu1  ;;  %11981 = vmatmul.mubr.msk.f32.gmra.mxu1 %vm441_vm1, %v3639_v17  ;;  %v2506_v31 = vpop.f32.mrf.mxu0  ;;  %11964 = vmatmul.mubr.msk.f32.gmra.mxu0 %vm441_vm1, %v3200_v41 }
 0x21a   : > { %v15289_v32 = vadd.f32 %v2133_v51, %v14990_v7  ;;  %3870 = vmatprep.mubr.f32.mxu1 %v14974_v9  ;;  %v15294_v22 = vadd.f32 %v2506_v31, %v15053_v61  ;;  %3521 = vmatprep.mubr.f32.mxu0 %v14974_v9  ;;  %v3641_v61 = vld [vmem:[#allocation2 + $0x81] sm:$0xff] }
 0x21b   : > { %v2135_v14 = vpop.f32.mrf.mxu1  ;;  %v2508_v17 = vpop.f32.mrf.mxu0 }
 0x21c   : > { %20594 = vst [vmem:[#allocation26_spill] sm:$0xff] %v15294_v22  ;;  %v15298_v23 = vadd.f32 %v2135_v14, %v14997_v52  ;;  %v15301_v7 = vadd.f32 %v2508_v17, %v15063_v3  ;;  %v3202_v14 = vld [vmem:[#allocation2 + $0x158] sm:$0xff]  ;;  %v20596_v3 = vld [vmem:[#allocation35_spill] sm:$0xff] }
 0x21d   : > { %v2139_v63 = vpop.f32.mrf.mxu1  ;;  %11982 = vmatmul.mubr.msk.f32.gmra.mxu1 %vm441_vm1, %v3640_v59  ;;  %v2512_v51 = vpop.f32.mrf.mxu0  ;;  %11965 = vmatmul.mubr.msk.f32.gmra.mxu0 %vm441_vm1, %v3201_v28  ;;  %v20597_v28 = vld [vmem:[#allocation36_spill] sm:$0xff] }
 0x21e   : > { %20595 = vst [vmem:[#allocation7_spill] sm:$0xff] %v15301_v7  ;;  %v15305_v41 = vadd.f32 %v2139_v63, %v15006_v37  ;;  %3876 = vmatprep.mubr.f32.mxu1 %v14974_v9  ;;  %v15310_v52 = vadd.f32 %v2512_v51, %v15071_v42  ;;  %3527 = vmatprep.mubr.f32.mxu0 %v14974_v9  ;;  %v3642_v42 = vld [vmem:[#allocation2 + $0x91] sm:$0xff] }
 0x21f   : > { %v2141_v31 = vpop.f32.mrf.mxu1  ;;  %v2514_v59 = vpop.f32.mrf.mxu0 }
 0x220   : > { %v15314_v17 = vadd.f32 %v2141_v31, %v20596_v3  ;;  %v15317_v37 = vadd.f32 %v2514_v59, %v15081_v45  ;;  %v3203_v3 = vld [vmem:[#allocation2 + $0x168] sm:$0xff] }
 0x221   : > { %v2145_v7 = vpop.f32.mrf.mxu1  ;;  %11983 = vmatmul.mubr.msk.f32.gmra.mxu1 %vm441_vm1, %v3641_v61  ;;  %v2518_v22 = vpop.f32.mrf.mxu0  ;;  %11966 = vmatmul.mubr.msk.f32.gmra.mxu0 %vm441_vm1, %v3202_v14 }
 0x222   : > { %v15321_v63 = vadd.f32 %v2145_v7, %v20597_v28  ;;  %3882 = vmatprep.mubr.f32.mxu1 %v14974_v9  ;;  %v15326_v31 = vadd.f32 %v2518_v22, %v15089_v15  ;;  %3533 = vmatprep.mubr.f32.mxu0 %v14974_v9  ;;  %v3643_v15 = vld [vmem:[#allocation2 + $0x99] sm:$0xff] }
 0x223   : > { %v2147_v51 = vpop.f32.mrf.mxu1  ;;  %v2520_v61 = vpop.f32.mrf.mxu0 }
 0x224   : > { %v15330_v45 = vadd.f32 %v2147_v51, %v15031_v12  ;;  %v15333_v7 = vadd.f32 %v2520_v61, %v15099_v56  ;;  %v3204_v51 = vld [vmem:[#allocation2 + $0x170] sm:$0xff] }
 0x225   : > { %v2151_v59 = vpop.f32.mrf.mxu1  ;;  %11984 = vmatmul.mubr.msk.f32.gmra.mxu1 %vm441_vm1, %v3642_v42  ;;  %v2524_v28 = vpop.f32.mrf.mxu0  ;;  %11967 = vmatmul.mubr.msk.f32.gmra.mxu0 %vm441_vm1, %v3203_v3 }
 0x226   : > { %20598 = vst [vmem:[#allocation27_spill] sm:$0xff] %v15333_v7  ;;  %v15337_v14 = vadd.f32 %v2151_v59, %v15041_v54  ;;  %3888 = vmatprep.mubr.f32.mxu1 %v14974_v9  ;;  %v15342_v12 = vadd.f32 %v2524_v28, %v15107_v44  ;;  %3539 = vmatprep.mubr.f32.mxu0 %v14974_v9  ;;  %v3644_v44 = vld [vmem:[#allocation2 + $0xa9] sm:$0xff] }
 0x227   : > { %v2153_v22 = vpop.f32.mrf.mxu1  ;;  %v2526_v42 = vpop.f32.mrf.mxu0 }
 0x228   : > { %v15346_v56 = vadd.f32 %v2153_v22, %v15049_v21  ;;  %v15349_v54 = vadd.f32 %v2526_v42, %v15117_v16  ;;  %v3205_v22 = vld [vmem:[#allocation2 + $0x180] sm:$0xff] }
 0x229   : > { %v2157_v61 = vpop.f32.mrf.mxu1  ;;  %11985 = vmatmul.mubr.msk.f32.gmra.mxu1 %vm441_vm1, %v3643_v15  ;;  %v2530_v59 = vpop.f32.mrf.mxu0  ;;  %11968 = vmatmul.mubr.msk.f32.gmra.mxu0 %vm441_vm1, %v3204_v51 }
 0x22a   : > { %20599 = vst [vmem:[#allocation9_spill] sm:$0xff] %v15349_v54  ;;  %v15353_v3 = vadd.f32 %v2157_v61, %v15059_v11  ;;  %3894 = vmatprep.mubr.f32.mxu1 %v14974_v9  ;;  %v15358_v21 = vadd.f32 %v2530_v59, %v15125_v33  ;;  %3545 = vmatprep.mubr.f32.mxu0 %v14974_v9  ;;  %v3645_v33 = vld [vmem:[#allocation2 + $0xb1] sm:$0xff] }
 0x22b   : > { %v2159_v28 = vpop.f32.mrf.mxu1  ;;  %v2532_v15 = vpop.f32.mrf.mxu0 }
 0x22c   : > { %v15362_v16 = vadd.f32 %v2159_v28, %v15067_v13  ;;  %v15365_v11 = vadd.f32 %v2532_v15, %v15135_v5  ;;  %v3206_v28 = vld [vmem:[#allocation2 + $0x188] sm:$0xff] }
 0x22d   : > { %v2163_v42 = vpop.f32.mrf.mxu1  ;;  %11986 = vmatmul.mubr.msk.f32.gmra.mxu1 %vm441_vm1, %v3644_v44  ;;  %v2536_v61 = vpop.f32.mrf.mxu0  ;;  %11969 = vmatmul.mubr.msk.f32.gmra.mxu0 %vm441_vm1, %v3205_v22 }
 0x22e   : > { %20600 = vst [vmem:[#allocation28_spill] sm:$0xff] %v15365_v11  ;;  %v15369_v51 = vadd.f32 %v2163_v42, %v15077_v47  ;;  %3900 = vmatprep.mubr.f32.mxu1 %v14974_v9  ;;  %v15374_v13 = vadd.f32 %v2536_v61, %v15143_v40  ;;  %3551 = vmatprep.mubr.f32.mxu0 %v14974_v9  ;;  %v3646_v40 = vld [vmem:[#allocation2 + $0xc1] sm:$0xff] }
 0x22f   : > { %v2165_v59 = vpop.f32.mrf.mxu1  ;;  %v2538_v44 = vpop.f32.mrf.mxu0 }
 0x230   : > { %v15378_v5 = vadd.f32 %v2165_v59, %v15085_v1  ;;  %v15381_v47 = vadd.f32 %v2538_v44, %v15153_v58  ;;  %v3207_v59 = vld [vmem:[#allocation2 + $0x198] sm:$0xff] }
 0x231   : > { %v2169_v15 = vpop.f32.mrf.mxu1  ;;  %11987 = vmatmul.mubr.msk.f32.gmra.mxu1 %vm441_vm1, %v3645_v33  ;;  %v2542_v42 = vpop.f32.mrf.mxu0  ;;  %11970 = vmatmul.mubr.msk.f32.gmra.mxu0 %vm441_vm1, %v3206_v28  ;;  %v20602_v58 = vld [vmem:[#allocation16_spill] sm:$0xff]  ;;  %v20604_v28 = vld [vmem:[#allocation17_spill] sm:$0xff] }
 0x232   : > { %20601 = vst [vmem:[#allocation8_spill] sm:$0xff] %v15381_v47  ;;  %v15385_v22 = vadd.f32 %v2169_v15, %v15095_v25  ;;  %3906 = vmatprep.mubr.f32.mxu1 %v14974_v9  ;;  %v15390_v1 = vadd.f32 %v2542_v42, %v15161_v55  ;;  %3557 = vmatprep.mubr.f32.mxu0 %v14974_v9  ;;  %v3647_v55 = vld [vmem:[#allocation2 + $0xc9] sm:$0xff] }
 0x233   : > { %v2171_v61 = vpop.f32.mrf.mxu1  ;;  %v2544_v33 = vpop.f32.mrf.mxu0 }
 0x234   : > { %v15394_v44 = vadd.f32 %v2171_v61, %v20602_v58  ;;  %v15397_v25 = vadd.f32 %v2544_v33, %v15171_v60  ;;  %v3208_v58 = vld [vmem:[#allocation2 + $0x1a0] sm:$0xff]  ;;  %v20605_v60 = vld [vmem:[#allocation18_spill] sm:$0xff] }
 0x235   : > { %v2175_v47 = vpop.f32.mrf.mxu1  ;;  %11988 = vmatmul.mubr.msk.f32.gmra.mxu1 %vm441_vm1, %v3646_v40  ;;  %v2548_v11 = vpop.f32.mrf.mxu0  ;;  %11971 = vmatmul.mubr.msk.f32.gmra.mxu0 %vm441_vm1, %v3207_v59  ;;  %v20607_v59 = vld [vmem:[#allocation19_spill] sm:$0xff] }
 0x236   : > { %20603 = vst [vmem:[#allocation30_spill] sm:$0xff] %v15397_v25  ;;  %v15401_v15 = vadd.f32 %v2175_v47, %v20604_v28  ;;  %3912 = vmatprep.mubr.f32.mxu1 %v14974_v9  ;;  %v15406_v61 = vadd.f32 %v2548_v11, %v15177_v6  ;;  %3563 = vmatprep.mubr.f32.mxu0 %v14974_v9  ;;  %v3648_v6 = vld [vmem:[#allocation2 + $0xd9] sm:$0xff] }
 0x237   : > { %v2177_v42 = vpop.f32.mrf.mxu1  ;;  %v2550_v40 = vpop.f32.mrf.mxu0 }
 0x238   : > { %v15410_v33 = vadd.f32 %v2177_v42, %v20605_v60  ;;  %v15413_v47 = vadd.f32 %v2550_v40, %v15186_v2  ;;  %v4091_v60 = vld [vmem:[#allocation2 + $0x32] sm:$0xff] }
 0x239   : > { %v2181_v25 = vpop.f32.mrf.mxu1  ;;  %11989 = vmatmul.mubr.msk.f32.gmra.mxu1 %vm441_vm1, %v3647_v55  ;;  %v2554_v54 = vpop.f32.mrf.mxu0  ;;  %11972 = vmatmul.mubr.msk.f32.gmra.mxu0 %vm441_vm1, %v3208_v58  ;;  %v20608_v2 = vld [vmem:[#allocation20_spill] sm:$0xff]  ;;  %v20610_v58 = vld [vmem:[#allocation21_spill] sm:$0xff] }
 0x23a   : > { %20606 = vst [vmem:[#allocation10_spill] sm:$0xff] %v15413_v47  ;;  %v15417_v28 = vadd.f32 %v2181_v25, %v20607_v59  ;;  %3918 = vmatprep.mubr.f32.mxu1 %v14974_v9  ;;  %v15422_v42 = vadd.f32 %v2554_v54, %v15193_v43  ;;  %4291 = vmatprep.mubr.f32.mxu0 %v14974_v9  ;;  %v3649_v43 = vld [vmem:[#allocation2 + $0xe1] sm:$0xff] }
 0x23b   : > { %v2183_v11 = vpop.f32.mrf.mxu1  ;;  %v2556_v55 = vpop.f32.mrf.mxu0 }
 0x23c   : > { %v15426_v40 = vadd.f32 %v2183_v11, %v20608_v2  ;;  %v15429_v25 = vadd.f32 %v2556_v55, %v15202_v0  ;;  %v4092_v2 = vld [vmem:[#allocation2 + $0x3a] sm:$0xff]  ;;  %v20611_v0 = vld [vmem:[#allocation22_spill] sm:$0xff] }
 0x23d   : > { %v2187_v47 = vpop.f32.mrf.mxu1  ;;  %11990 = vmatmul.mubr.msk.f32.gmra.mxu1 %vm441_vm1, %v3648_v6  ;;  %v2560_v7 = vpop.f32.mrf.mxu0  ;;  %12011 = vmatmul.mubr.msk.f32.vlgmr.msra.gmra.mxu0 %vm441_vm1, %v4091_v60 }
 0x23e   : > { %20609 = vst [vmem:[#allocation31_spill] sm:$0xff] %v15429_v25  ;;  %v15433_v59 = vadd.f32 %v2187_v47, %v20610_v58  ;;  %3924 = vmatprep.mubr.f32.mxu1 %v14974_v9  ;;  %v15438_v11 = vadd.f32 %v2560_v7, %v15209_v48  ;;  %4297 = vmatprep.mubr.f32.mxu0 %v14974_v9  ;;  %v3650_v48 = vld [vmem:[#allocation2 + $0xf1] sm:$0xff] }
 0x23f   : > { %v2189_v54 = vpop.f32.mrf.mxu1  ;;  %v2562_v6 = vpop.f32.mrf.mxu0 }
 0x240   : > { %v15442_v55 = vadd.f32 %v2189_v54, %v20611_v0  ;;  %v15445_v47 = vadd.f32 %v2562_v6, %v15218_v38  ;;  %v4093_v0 = vld [vmem:[#allocation2 + $0x4a] sm:$0xff] }
 0x241   : > { %v2193_v25 = vpop.f32.mrf.mxu1  ;;  %11991 = vmatmul.mubr.msk.f32.gmra.mxu1 %vm441_vm1, %v3649_v43  ;;  %v2566_v58 = vpop.f32.mrf.mxu0  ;;  %12012 = vmatmul.mubr.msk.f32.gmra.mxu0 %vm441_vm1, %v4092_v2 }
 0x242   : > { %20612 = vst [vmem:[#allocation11_spill] sm:$0xff] %v15445_v47  ;;  %v15449_v60 = vadd.f32 %v2193_v25, %v15167_v57  ;;  %3930 = vmatprep.mubr.f32.mxu1 %v14974_v9  ;;  %v15454_v54 = vadd.f32 %v2566_v58, %v15225_v24  ;;  %4303 = vmatprep.mubr.f32.mxu0 %v14974_v9  ;;  %v3651_v24 = vld [vmem:[#allocation2 + $0xf9] sm:$0xff] }
 0x243   : > { %v2195_v7 = vpop.f32.mrf.mxu1  ;;  %v2568_v43 = vpop.f32.mrf.mxu0 }
 0x244   : > { %v15458_v38 = vadd.f32 %v2195_v7, %v15173_v34  ;;  %v15461_v57 = vadd.f32 %v2568_v43, %v15234_v8  ;;  %v4094_v8 = vld [vmem:[#allocation2 + $0x52] sm:$0xff] }
 0x245   : > { %v2921_v25 = vpop.f32.mrf.mxu1  ;;  %11992 = vmatmul.mubr.msk.f32.gmra.mxu1 %vm441_vm1, %v3650_v48  ;;  %v2572_v6 = vpop.f32.mrf.mxu0  ;;  %12013 = vmatmul.mubr.msk.f32.gmra.mxu0 %vm441_vm1, %v4093_v0  ;;  %v20614_v7 = vld [vmem:[#allocation23_spill] sm:$0xff] }
 0x246   : > { %20613 = vst [vmem:[#allocation32_spill] sm:$0xff] %v15461_v57  ;;  %v15465_v2 = vadd.f32 %v2921_v25, %v15182_v19  ;;  %3936 = vmatprep.mubr.f32.mxu1 %v14974_v9  ;;  %v15470_v58 = vadd.f32 %v2572_v6, %v15241_v27  ;;  %4309 = vmatprep.mubr.f32.mxu0 %v14974_v9  ;;  %v3652_v27 = vld [vmem:[#allocation2 + $0x109] sm:$0xff] }
 0x247   : > { %v2923_v34 = vpop.f32.mrf.mxu1  ;;  %v2574_v48 = vpop.f32.mrf.mxu0 }
 0x248   : > { %v15474_v43 = vadd.f32 %v2923_v34, %v20614_v7  ;;  %v15477_v19 = vadd.f32 %v2574_v48, %v15250_v4  ;;  %v4095_v4 = vld [vmem:[#allocation2 + $0x62] sm:$0xff]  ;;  %v20616_v7 = vld [vmem:[#allocation24_spill] sm:$0xff] }
 0x249   : > { %v2927_v25 = vpop.f32.mrf.mxu1  ;;  %11993 = vmatmul.mubr.msk.f32.gmra.mxu1 %vm441_vm1, %v3651_v24  ;;  %v2578_v57 = vpop.f32.mrf.mxu0  ;;  %12014 = vmatmul.mubr.msk.f32.gmra.mxu0 %vm441_vm1, %v4094_v8 }
 0x24a   : > { %20615 = vst [vmem:[#allocation12_spill] sm:$0xff] %v15477_v19  ;;  %v15481_v0 = vadd.f32 %v2927_v25, %v15198_v26  ;;  %3942 = vmatprep.mubr.f32.mxu1 %v14974_v9  ;;  %v15486_v6 = vadd.f32 %v2578_v57, %v15257_v62  ;;  %4315 = vmatprep.mubr.f32.mxu0 %v14974_v9  ;;  %v3653_v62 = vld [vmem:[#allocation2 + $0x111] sm:$0xff] }
 0x24b   : > { %v2929_v34 = vpop.f32.mrf.mxu1  ;;  %v2580_v24 = vpop.f32.mrf.mxu0 }
 0x24c   : > { %v15490_v48 = vadd.f32 %v2929_v34, %v20616_v7  ;;  %v15493_v26 = vadd.f32 %v2580_v24, %v15266_v18  ;;  %v4096_v18 = vld [vmem:[#allocation2 + $0x6a] sm:$0xff]  ;;  %v20618_v7 = vld [vmem:[#allocation25_spill] sm:$0xff] }
 0x24d   : > { %v2933_v25 = vpop.f32.mrf.mxu1  ;;  %11994 = vmatmul.mubr.msk.f32.gmra.mxu1 %vm441_vm1, %v3652_v27  ;;  %v2584_v19 = vpop.f32.mrf.mxu0  ;;  %12015 = vmatmul.mubr.msk.f32.gmra.mxu0 %vm441_vm1, %v4095_v4 }
 0x24e   : > { %20617 = vst [vmem:[#allocation13_spill] sm:$0xff] %v15493_v26  ;;  %v15497_v8 = vadd.f32 %v2933_v25, %v15214_v10  ;;  %3948 = vmatprep.mubr.f32.mxu1 %v14974_v9  ;;  %v15502_v57 = vadd.f32 %v2584_v19, %v15273_v20  ;;  %4321 = vmatprep.mubr.f32.mxu0 %v14974_v9  ;;  %v3654_v20 = vld [vmem:[#allocation2 + $0x121] sm:$0xff] }
 0x24f   : > { %v2935_v34 = vpop.f32.mrf.mxu1  ;;  %v2586_v27 = vpop.f32.mrf.mxu0 }
 0x250   : > { %v15506_v24 = vadd.f32 %v2935_v34, %v20618_v7  ;;  %v15509_v10 = vadd.f32 %v2586_v27, %v15282_v53  ;;  %v4097_v53 = vld [vmem:[#allocation2 + $0x7a] sm:$0xff] }
 0x251   : > { %v2939_v25 = vpop.f32.mrf.mxu1  ;;  %11995 = vmatmul.mubr.msk.f32.gmra.mxu1 %vm441_vm1, %v3653_v62  ;;  %v2590_v26 = vpop.f32.mrf.mxu0  ;;  %12016 = vmatmul.mubr.msk.f32.gmra.mxu0 %vm441_vm1, %v4096_v18 }
 0x252   : > { %20619 = vst [vmem:[#allocation14_spill] sm:$0xff] %v15509_v10  ;;  %v15513_v4 = vadd.f32 %v2939_v25, %v15230_v46  ;;  %3954 = vmatprep.mubr.f32.mxu1 %v14974_v9  ;;  %v15518_v19 = vadd.f32 %v2590_v26, %v15289_v32  ;;  %4327 = vmatprep.mubr.f32.mxu0 %v14974_v9  ;;  %v3655_v32 = vld [vmem:[#allocation2 + $0x129] sm:$0xff] }
 0x253   : > { %v2941_v34 = vpop.f32.mrf.mxu1  ;;  %v2592_v62 = vpop.f32.mrf.mxu0 }
 0x254   : > { %v15522_v7 = vadd.f32 %v2941_v34, %v15237_v50  ;;  %v15525_v46 = vadd.f32 %v2592_v62, %v15298_v23  ;;  %v4098_v23 = vld [vmem:[#allocation2 + $0x82] sm:$0xff] }
 0x255   : > { %v2945_v27 = vpop.f32.mrf.mxu1  ;;  %11996 = vmatmul.mubr.msk.f32.gmra.mxu1 %vm441_vm1, %v3654_v20  ;;  %v2596_v25 = vpop.f32.mrf.mxu0  ;;  %12017 = vmatmul.mubr.msk.f32.gmra.mxu0 %vm441_vm1, %v4097_v53 }
 0x256   : > { %20620 = vst [vmem:[#allocation15_spill] sm:$0xff] %v15525_v46  ;;  %v15529_v18 = vadd.f32 %v2945_v27, %v15246_v49  ;;  %3960 = vmatprep.mubr.f32.mxu1 %v14974_v9  ;;  %v15534_v26 = vadd.f32 %v2596_v25, %v15305_v41  ;;  %4333 = vmatprep.mubr.f32.mxu0 %v14974_v9  ;;  %v3656_v41 = vld [vmem:[#allocation2 + $0x139] sm:$0xff] }
 0x257   : > { %v2947_v50 = vpop.f32.mrf.mxu1  ;;  %v2598_v20 = vpop.f32.mrf.mxu0 }
 0x258   : > { %v15538_v34 = vadd.f32 %v2947_v50, %v15253_v36  ;;  %v15541_v49 = vadd.f32 %v2598_v20, %v15314_v17  ;;  %v4099_v17 = vld [vmem:[#allocation2 + $0x92] sm:$0xff] }
 0x259   : > { %v2951_v62 = vpop.f32.mrf.mxu1  ;;  %11997 = vmatmul.mubr.msk.f32.gmra.mxu1 %vm441_vm1, %v3655_v32  ;;  %v2602_v27 = vpop.f32.mrf.mxu0  ;;  %12018 = vmatmul.mubr.msk.f32.gmra.mxu0 %vm441_vm1, %v4098_v23 }
 0x25a   : > { %20621 = vst [vmem:[#allocation33_spill] sm:$0xff] %v15541_v49  ;;  %v15545_v53 = vadd.f32 %v2951_v62, %v15262_v30  ;;  %3966 = vmatprep.mubr.f32.mxu1 %v14974_v9  ;;  %v15550_v25 = vadd.f32 %v2602_v27, %v15321_v63  ;;  %4339 = vmatprep.mubr.f32.mxu0 %v14974_v9  ;;  %v15564_v63 = vld [vmem:[#allocation5] sm:$0xff]  ;;  %v3657_v9 = vld [vmem:[#allocation2 + $0x141] sm:$0xff] }
 0x25b   : > { %v2953_v36 = vpop.f32.mrf.mxu1  ;;  %v2604_v32 = vpop.f32.mrf.mxu0 }
 0x25c   : > { %v15554_v50 = vadd.f32 %v2953_v36, %v15269_v29  ;;  %v15557_v30 = vadd.f32 %v2604_v32, %v15330_v45  ;;  %v4100_v45 = vld [vmem:[#allocation2 + $0x9a] sm:$0xff]  ;;  %v20624_v32 = vld [vmem:[#allocation26_spill] sm:$0xff] }
 0x25d   : > { %v2957_v20 = vpop.f32.mrf.mxu1  ;;  %11998 = vmatmul.mubr.msk.f32.gmra.mxu1 %vm441_vm1, %v3656_v41  ;;  %v2608_v62 = vpop.f32.mrf.mxu0  ;;  %12019 = vmatmul.mubr.msk.f32.gmra.mxu0 %vm441_vm1, %v4099_v17 }
 0x25e   : > { %20622 = vst [vmem:[#allocation34_spill] sm:$0xff] %v15557_v30  ;;  %v15561_v23 = vadd.f32 %v2957_v20, %v15278_v39  ;;  %3972 = vmatprep.mubr.f32.mxu1 %v15564_v63  ;;  %v15568_v29 = vadd.f32 %v2608_v62, %v15337_v14  ;;  %4345 = vmatprep.mubr.f32.mxu0 %v15564_v63  ;;  %v3658_v14 = vld [vmem:[#allocation2 + $0x151] sm:$0xff] }
 0x25f   : > { %v2959_v27 = vpop.f32.mrf.mxu1  ;;  %v2610_v39 = vpop.f32.mrf.mxu0 }
 0x260   : > { %v15572_v41 = vadd.f32 %v2959_v27, %v15285_v35  ;;  %v15575_v36 = vadd.f32 %v2610_v39, %v15346_v56  ;;  %v4101_v56 = vld [vmem:[#allocation2 + $0xaa] sm:$0xff] }
 0x261   : > { %v2963_v17 = vpop.f32.mrf.mxu1  ;;  %11999 = vmatmul.mubr.msk.f32.gmra.mxu1 %vm441_vm1, %v3657_v9  ;;  %v2614_v30 = vpop.f32.mrf.mxu0  ;;  %12020 = vmatmul.mubr.msk.f32.gmra.mxu0 %vm441_vm1, %v4100_v45  ;;  %v20625_v27 = vld [vmem:[#allocation7_spill] sm:$0xff] }
 0x262   : > { %20623 = vst [vmem:[#allocation29_spill] sm:$0xff] %v15575_v36  ;;  %v15579_v20 = vadd.f32 %v2963_v17, %v20624_v32  ;;  %3978 = vmatprep.mubr.f32.mxu1 %v15564_v63  ;;  %v15584_v62 = vadd.f32 %v2614_v30, %v15353_v3  ;;  %4351 = vmatprep.mubr.f32.mxu0 %v15564_v63  ;;  %v3659_v3 = vld [vmem:[#allocation2 + $0x159] sm:$0xff] }
 0x263   : > { %v2965_v35 = vpop.f32.mrf.mxu1  ;;  %v2616_v9 = vpop.f32.mrf.mxu0 }
 0x264   : > { %v15588_v39 = vadd.f32 %v2965_v35, %v20625_v27  ;;  %v15591_v17 = vadd.f32 %v2616_v9, %v15362_v16  ;;  %v4102_v16 = vld [vmem:[#allocation2 + $0xb2] sm:$0xff] }
 0x265   : > { %v2969_v32 = vpop.f32.mrf.mxu1  ;;  %12000 = vmatmul.mubr.msk.f32.gmra.mxu1 %vm441_vm1, %v3658_v14  ;;  %v2620_v36 = vpop.f32.mrf.mxu0  ;;  %12021 = vmatmul.mubr.msk.f32.gmra.mxu0 %vm441_vm1, %v4101_v56 }
 0x266   : > { %20626 = vst [vmem:[#allocation35_spill] sm:$0xff] %v15591_v17  ;;  %v15595_v45 = vadd.f32 %v2969_v32, %v15310_v52  ;;  %3984 = vmatprep.mubr.f32.mxu1 %v15564_v63  ;;  %v15600_v30 = vadd.f32 %v2620_v36, %v15369_v51  ;;  %4357 = vmatprep.mubr.f32.mxu0 %v15564_v63  ;;  %v3660_v51 = vld [vmem:[#allocation2 + $0x169] sm:$0xff] }
 0x267   : > { %v15602_v35 = vpop.f32.mrf.mxu1  ;;  %v2622_v27 = vpop.f32.mrf.mxu0 }
 0x268   : > { %v15606_v14 = vadd.f32 %v2622_v27, %v15378_v5  ;;  %v4103_v5 = vld [vmem:[#allocation2 + $0xc2] sm:$0xff] }
 0x269   : > { %v2975_v52 = vpop.f32.mrf.mxu1  ;;  %12001 = vmatmul.mubr.msk.f32.gmra.mxu1 %vm441_vm1, %v3659_v3  ;;  %v2626_v9 = vpop.f32.mrf.mxu0  ;;  %12022 = vmatmul.mubr.msk.f32.gmra.mxu0 %vm441_vm1, %v4102_v16 }
 0x26a   : > { %20627 = vst [vmem:[#allocation36_spill] sm:$0xff] %v15606_v14  ;;  %v15610_v56 = vadd.f32 %v2975_v52, %v15326_v31  ;;  %3990 = vmatprep.mubr.f32.mxu1 %v15564_v63  ;;  %v15615_v36 = vadd.f32 %v2626_v9, %v15385_v22  ;;  %4363 = vmatprep.mubr.f32.mxu0 %v15564_v63  ;;  %v3661_v22 = vld [vmem:[#allocation2 + $0x171] sm:$0xff] }
 0x26b   : > { %v15617_v32 = vpop.f32.mrf.mxu1  ;;  %v2628_v27 = vpop.f32.mrf.mxu0 }
 0x26c   : > { %v15621_v3 = vadd.f32 %v2628_v27, %v15394_v44  ;;  %v4104_v44 = vld [vmem:[#allocation2 + $0xca] sm:$0xff] }
 0x26d   : > { %v2981_v31 = vpop.f32.mrf.mxu1  ;;  %12002 = vmatmul.mubr.msk.f32.gmra.mxu1 %vm441_vm1, %v3660_v51  ;;  %v2632_v52 = vpop.f32.mrf.mxu0  ;;  %12023 = vmatmul.mubr.msk.f32.gmra.mxu0 %vm441_vm1, %v4103_v5 }
 0x26e   : > { %20628 = vst [vmem:[#allocation16_spill] sm:$0xff] %v15621_v3  ;;  %v15625_v16 = vadd.f32 %v2981_v31, %v15342_v12  ;;  %3996 = vmatprep.mubr.f32.mxu1 %v15564_v63  ;;  %v15630_v9 = vadd.f32 %v2632_v52, %v15401_v15  ;;  %4369 = vmatprep.mubr.f32.mxu0 %v15564_v63  ;;  %v3662_v15 = vld [vmem:[#allocation2 + $0x181] sm:$0xff] }
 0x26f   : > { %v15632_v14 = vpop.f32.mrf.mxu1  ;;  %v2634_v27 = vpop.f32.mrf.mxu0 }
 0x270   : > { %v15636_v51 = vadd.f32 %v2634_v27, %v15410_v33  ;;  %v4105_v33 = vld [vmem:[#allocation2 + $0xda] sm:$0xff] }
 0x271   : > { %v2987_v12 = vpop.f32.mrf.mxu1  ;;  %12003 = vmatmul.mubr.msk.f32.gmra.mxu1 %vm441_vm1, %v3661_v22  ;;  %v2638_v31 = vpop.f32.mrf.mxu0  ;;  %12024 = vmatmul.mubr.msk.f32.gmra.mxu0 %vm441_vm1, %v4104_v44 }
 0x272   : > { %20629 = vst [vmem:[#allocation17_spill] sm:$0xff] %v15636_v51  ;;  %v15640_v5 = vadd.f32 %v2987_v12, %v15358_v21  ;;  %4002 = vmatprep.mubr.f32.mxu1 %v15564_v63  ;;  %v15645_v52 = vadd.f32 %v2638_v31, %v15417_v28  ;;  %4375 = vmatprep.mubr.f32.mxu0 %v15564_v63  ;;  %v3663_v28 = vld [vmem:[#allocation2 + $0x189] sm:$0xff] }
 0x273   : > { %v15647_v3 = vpop.f32.mrf.mxu1  ;;  %v2640_v27 = vpop.f32.mrf.mxu0 }
 0x274   : > { %v15651_v22 = vadd.f32 %v2640_v27, %v15426_v40  ;;  %v4106_v40 = vld [vmem:[#allocation2 + $0xe2] sm:$0xff] }
 0x275   : > { %v2993_v21 = vpop.f32.mrf.mxu1  ;;  %12004 = vmatmul.mubr.msk.f32.gmra.mxu1 %vm441_vm1, %v3662_v15  ;;  %v2644_v12 = vpop.f32.mrf.mxu0  ;;  %12025 = vmatmul.mubr.msk.f32.gmra.mxu0 %vm441_vm1, %v4105_v33 }
 0x276   : > { %20630 = vst [vmem:[#allocation18_spill] sm:$0xff] %v15651_v22  ;;  %v15655_v44 = vadd.f32 %v2993_v21, %v15374_v13  ;;  %4008 = vmatprep.mubr.f32.mxu1 %v15564_v63  ;;  %v15660_v31 = vadd.f32 %v2644_v12, %v15433_v59  ;;  %4381 = vmatprep.mubr.f32.mxu0 %v15564_v63  ;;  %v3664_v59 = vld [vmem:[#allocation2 + $0x199] sm:$0xff]  ;;  %v4550_v12 = vlaneseq }
 0x277   : > { %v15662_v51 = vpop.f32.mrf.mxu1  ;;  %v2646_v27 = vpop.f32.mrf.mxu0 }
 0x278   : > { %v15666_v15 = vadd.f32 %v2646_v27, %v15442_v55  ;;  %v4107_v55 = vld [vmem:[#allocation2 + $0xf2] sm:$0xff] }
 0x279   : > { %v2999_v13 = vpop.f32.mrf.mxu1  ;;  %12005 = vmatmul.mubr.msk.f32.gmra.mxu1 %vm441_vm1, %v3663_v28  ;;  %v2650_v21 = vpop.f32.mrf.mxu0  ;;  %12026 = vmatmul.mubr.msk.f32.gmra.mxu0 %vm441_vm1, %v4106_v40  ;;  %v15680_v28 = vshrl.u32 %v4550_v12, 7 }
 0x27a   : > { %20631 = vst [vmem:[#allocation19_spill] sm:$0xff] %v15666_v15  ;;  %v15670_v33 = vadd.f32 %v2999_v13, %v15390_v1  ;;  %4014 = vmatprep.mubr.f32.mxu1 %v15564_v63  ;;  %v15675_v22 = vadd.f32 %v2650_v21, %v15449_v60  ;;  %4387 = vmatprep.mubr.f32.mxu0 %v15564_v63  ;;  %v3665_v60 = vld [vmem:[#allocation2 + $0x1a1] sm:$0xff] }
 0x27b   : > { %v15677_v17 = vpop.f32.mrf.mxu1  ;;  %v2652_v27 = vpop.f32.mrf.mxu0  ;;  %v4552_v21 = vsub.s32 0, %v15680_v28 }
 0x27c   : > { %20632 = vst [vmem:[#allocation20_spill] sm:$0xff] %v15677_v17  ;;  %v15683_v1 = vadd.f32 %v2652_v27, %v15458_v38  ;;  %v4108_v38 = vld [vmem:[#allocation2 + $0xfa] sm:$0xff] }
 0x27d   : > { %v3005_v13 = vpop.f32.mrf.mxu1  ;;  %12006 = vmatmul.mubr.msk.f32.gmra.mxu1 %vm441_vm1, %v3664_v59  ;;  %v3379_v15 = vpop.f32.mrf.mxu0  ;;  %12027 = vmatmul.mubr.msk.f32.gmra.mxu0 %vm441_vm1, %v4107_v55 }
 0x27e   : > { %20633 = vst [vmem:[#allocation21_spill] sm:$0xff] %v15683_v1  ;;  %v15687_v40 = vadd.f32 %v3005_v13, %v15406_v61  ;;  %4020 = vmatprep.mubr.f32.mxu1 %v15564_v63  ;;  %v15695_v12 = vadd.f32 %v3379_v15, %v15465_v2  ;;  %4393 = vmatprep.mubr.f32.mxu0 %v15564_v63  ;;  %v15701_v61 = vld [vmem:[%s20419_s2] sm:$0x3] }
 0x27f   : > { %v15692_v49 = vpop.f32.mrf.mxu1  ;;  %v3381_v59 = vpop.f32.mrf.mxu0  ;;  %v15704_v55 = vrot.slane %v15701_v61, %v4552_v21  ;;  %v15713_v2 = vld [vmem:[%s20420_s3] sm:$0x3] }
 0x280   : > { %20634 = vst [vmem:[#allocation22_spill] sm:$0xff] %v15692_v49  ;;  %v15707_v13 = vadd.f32 %v3381_v59, %v15474_v43  ;;  %v15720_v46 = vrot.slane %v15713_v2, %v4552_v21 }
 0x281   : > { %v3011_v27 = vpop.f32.mrf.mxu1  ;;  %12007 = vmatmul.mubr.msk.f32.gmra.mxu1 %vm441_vm1, %v3665_v60  ;;  %v3385_v1 = vpop.f32.mrf.mxu0  ;;  %12028 = vmatmul.mubr.msk.f32.gmra.mxu0 %vm441_vm1, %v4108_v38  ;;  %v4109_v60 = vld [vmem:[#allocation2 + $0x10a] sm:$0xff] }
 0x282   : > { %v15716_v15 = vadd.f32 %v3011_v27, %v15422_v42  ;;  %v15725_v43 = vadd.f32 %v3385_v1, %v15481_v0  ;;  %4399 = vmatprep.mubr.f32.mxu0 %v15564_v63  ;;  %v4110_v0 = vld [vmem:[#allocation2 + $0x112] sm:$0xff] }
 0x283   : > { %v15722_v10 = vpop.f32.mrf.mxu1  ;;  %v3387_v59 = vpop.f32.mrf.mxu0 }
 0x284   : > { %20635 = vst [vmem:[#allocation23_spill] sm:$0xff] %v15722_v10  ;;  %v15729_v49 = vadd.f32 %v3387_v59, %v15490_v48 }
 0x285   : > { %v3017_v47 = vpop.f32.mrf.mxu1  ;;  %v3391_v38 = vpop.f32.mrf.mxu0  ;;  %12029 = vmatmul.mubr.msk.f32.gmra.mxu0 %vm441_vm1, %v4109_v60 }
 0x286   : > { %v15732_v42 = vadd.f32 %v3017_v47, %v15438_v11  ;;  %v15738_v27 = vadd.f32 %v3391_v38, %v15497_v8  ;;  %4405 = vmatprep.mubr.f32.mxu0 %v15564_v63  ;;  %v4111_v8 = vld [vmem:[#allocation2 + $0x122] sm:$0xff] }
 0x287   : > { %v15735_v21 = vpop.f32.mrf.mxu1  ;;  %v3393_v1 = vpop.f32.mrf.mxu0 }
 0x288   : > { %20636 = vst [vmem:[#allocation24_spill] sm:$0xff] %v15735_v21  ;;  %v15742_v17 = vadd.f32 %v3393_v1, %v15506_v24 }
 0x289   : > { %v3023_v10 = vpop.f32.mrf.mxu1  ;;  %v3397_v11 = vpop.f32.mrf.mxu0  ;;  %12030 = vmatmul.mubr.msk.f32.gmra.mxu0 %vm441_vm1, %v4110_v0 }
 0x28a   : > { %v15745_v48 = vadd.f32 %v3023_v10, %v15454_v54  ;;  %v15751_v60 = vadd.f32 %v3397_v11, %v15513_v4  ;;  %4411 = vmatprep.mubr.f32.mxu0 %v15564_v63  ;;  %v4112_v4 = vld [vmem:[#allocation2 + $0x12a] sm:$0xff] }
 0x28b   : > { %v15748_v47 = vpop.f32.mrf.mxu1  ;;  %v3399_v59 = vpop.f32.mrf.mxu0 }
 0x28c   : > { %20637 = vst [vmem:[#allocation25_spill] sm:$0xff] %v15748_v47  ;;  %v15755_v21 = vadd.f32 %v3399_v59, %v15522_v7 }
 0x28d   : > { %v3029_v38 = vpop.f32.mrf.mxu1  ;;  %v3403_v54 = vpop.f32.mrf.mxu0  ;;  %12031 = vmatmul.mubr.msk.f32.gmra.mxu0 %vm441_vm1, %v4111_v8 }
 0x28e   : > { %20638 = vst [vmem:[#allocation26_spill] sm:$0xff] %v15755_v21  ;;  %v15758_v24 = vadd.f32 %v3029_v38, %v15470_v58  ;;  %v15764_v0 = vadd.f32 %v3403_v54, %v15529_v18  ;;  %4417 = vmatprep.mubr.f32.mxu0 %v15564_v63  ;;  %v4113_v18 = vld [vmem:[#allocation2 + $0x13a] sm:$0xff] }
 0x28f   : > { %v15761_v10 = vpop.f32.mrf.mxu1  ;;  %v3405_v1 = vpop.f32.mrf.mxu0 }
 0x290   : > { %v15768_v47 = vadd.f32 %v3405_v1, %v15538_v34 }
 0x291   : > { %v3035_v11 = vpop.f32.mrf.mxu1  ;;  %v3409_v58 = vpop.f32.mrf.mxu0  ;;  %12032 = vmatmul.mubr.msk.f32.gmra.mxu0 %vm441_vm1, %v4112_v4 }
 0x292   : > { %20639 = vst [vmem:[#allocation7_spill] sm:$0xff] %v15768_v47  ;;  %v15771_v7 = vadd.f32 %v3035_v11, %v15486_v6  ;;  %v15777_v59 = vadd.f32 %v3409_v58, %v15545_v53  ;;  %4423 = vmatprep.mubr.f32.mxu0 %v15564_v63  ;;  %v4114_v53 = vld [vmem:[#allocation2 + $0x142] sm:$0xff] }
 0x293   : > { %v15774_v8 = vpop.f32.mrf.mxu1  ;;  %v3411_v38 = vpop.f32.mrf.mxu0 }
 0x294   : > { %v15781_v21 = vadd.f32 %v3411_v38, %v15554_v50 }
 0x295   : > { %v3041_v54 = vpop.f32.mrf.mxu1  ;;  %v3415_v6 = vpop.f32.mrf.mxu0  ;;  %12033 = vmatmul.mubr.msk.f32.gmra.mxu0 %vm441_vm1, %v4113_v18 }
 0x296   : > { %20640 = vst [vmem:[#allocation37_spill] sm:$0xff] %v15781_v21  ;;  %v15784_v34 = vadd.f32 %v3041_v54, %v15502_v57  ;;  %v15790_v1 = vadd.f32 %v3415_v6, %v15561_v23  ;;  %4429 = vmatprep.mubr.f32.mxu0 %v15564_v63  ;;  %v4115_v23 = vld [vmem:[#allocation2 + $0x152] sm:$0xff] }
 0x297   : > { %v15787_v4 = vpop.f32.mrf.mxu1  ;;  %v3417_v11 = vpop.f32.mrf.mxu0 }
 0x298   : > { %v15794_v47 = vadd.f32 %v3417_v11, %v15572_v41 }
 0x299   : > { %v3047_v58 = vpop.f32.mrf.mxu1  ;;  %v3421_v57 = vpop.f32.mrf.mxu0  ;;  %12034 = vmatmul.mubr.msk.f32.gmra.mxu0 %vm441_vm1, %v4114_v53 }
 0x29a   : > { %20641 = vst [vmem:[#allocation38_spill] sm:$0xff] %v15794_v47  ;;  %v15797_v50 = vadd.f32 %v3047_v58, %v15518_v19  ;;  %v15803_v38 = vadd.f32 %v3421_v57, %v15579_v20  ;;  %4435 = vmatprep.mubr.f32.mxu0 %v15564_v63  ;;  %v4116_v20 = vld [vmem:[#allocation2 + $0x15a] sm:$0xff] }
 0x29b   : > { %v15800_v18 = vpop.f32.mrf.mxu1  ;;  %v3423_v54 = vpop.f32.mrf.mxu0 }
 0x29c   : > { %v15807_v21 = vadd.f32 %v3423_v54, %v15588_v39 }
 0x29d   : > { %v3053_v6 = vpop.f32.mrf.mxu1  ;;  %v3427_v19 = vpop.f32.mrf.mxu0  ;;  %12035 = vmatmul.mubr.msk.f32.gmra.mxu0 %vm441_vm1, %v4115_v23 }
 0x29e   : > { %20642 = vst [vmem:[#allocation39_spill] sm:$0xff] %v15807_v21  ;;  %v15810_v41 = vadd.f32 %v3053_v6, %v15534_v26  ;;  %v15816_v11 = vadd.f32 %v3427_v19, %v15595_v45  ;;  %4441 = vmatprep.mubr.f32.mxu0 %v15564_v63  ;;  %v4117_v45 = vld [vmem:[#allocation2 + $0x16a] sm:$0xff] }
 0x29f   : > { %v15813_v53 = vpop.f32.mrf.mxu1  ;;  %v15819_v58 = vpop.f32.mrf.mxu0 }
 0x2a1   : > { %v3059_v57 = vpop.f32.mrf.mxu1  ;;  %v3433_v54 = vpop.f32.mrf.mxu0  ;;  %12036 = vmatmul.mubr.msk.f32.gmra.mxu0 %vm441_vm1, %v4116_v20 }
 0x2a2   : > { %v15822_v39 = vadd.f32 %v3059_v57, %v15550_v25  ;;  %v15828_v23 = vadd.f32 %v3433_v54, %v15610_v56  ;;  %4447 = vmatprep.mubr.f32.mxu0 %v15564_v63  ;;  %v4118_v56 = vld [vmem:[#allocation2 + $0x172] sm:$0xff] }
 0x2a3   : > { %v15825_v26 = vpop.f32.mrf.mxu1  ;;  %v15831_v6 = vpop.f32.mrf.mxu0 }
 0x2a4   : > { %20643 = vst [vmem:[#allocation40_spill] sm:$0xff] %v15825_v26  ;;  %20644 = vst [vmem:[#allocation41_spill] sm:$0xff] %v15831_v6 }
 0x2a5   : > { %v3065_v19 = vpop.f32.mrf.mxu1  ;;  %v3439_v47 = vpop.f32.mrf.mxu0  ;;  %12037 = vmatmul.mubr.msk.f32.gmra.mxu0 %vm441_vm1, %v4117_v45 }
 0x2a6   : > { %v15834_v21 = vadd.f32 %v3065_v19, %v15568_v29  ;;  %v15840_v20 = vadd.f32 %v3439_v47, %v15625_v16  ;;  %4453 = vmatprep.mubr.f32.mxu0 %v15564_v63  ;;  %v4119_v16 = vld [vmem:[#allocation2 + $0x182] sm:$0xff] }
 0x2a7   : > { %v15837_v25 = vpop.f32.mrf.mxu1  ;;  %v15843_v57 = vpop.f32.mrf.mxu0 }
 0x2a8   : > { %20645 = vst [vmem:[#allocation42_spill] sm:$0xff] %v15837_v25  ;;  %20646 = vst [vmem:[#allocation43_spill] sm:$0xff] %v15843_v57 }
 0x2a9   : > { %v3071_v54 = vpop.f32.mrf.mxu1  ;;  %v3445_v26 = vpop.f32.mrf.mxu0  ;;  %12038 = vmatmul.mubr.msk.f32.gmra.mxu0 %vm441_vm1, %v4118_v56 }
 0x2aa   : > { %v15846_v6 = vadd.f32 %v3071_v54, %v15584_v62  ;;  %v15852_v45 = vadd.f32 %v3445_v26, %v15640_v5  ;;  %4459 = vmatprep.mubr.f32.mxu0 %v15564_v63  ;;  %v4120_v5 = vld [vmem:[#allocation2 + $0x18a] sm:$0xff] }
 0x2ab   : > { %v15849_v29 = vpop.f32.mrf.mxu1  ;;  %v15855_v47 = vpop.f32.mrf.mxu0 }
 0x2ac   : > { %20647 = vst [vmem:[#allocation44_spill] sm:$0xff] %v15849_v29  ;;  %20648 = vst [vmem:[#allocation45_spill] sm:$0xff] %v15855_v47 }
 0x2ad   : > { %v3077_v19 = vpop.f32.mrf.mxu1  ;;  %v3451_v25 = vpop.f32.mrf.mxu0  ;;  %12039 = vmatmul.mubr.msk.f32.gmra.mxu0 %vm441_vm1, %v4119_v16 }
 0x2ae   : > { %v15858_v57 = vadd.f32 %v3077_v19, %v15600_v30  ;;  %v15864_v56 = vadd.f32 %v3451_v25, %v15655_v44  ;;  %4465 = vmatprep.mubr.f32.mxu0 %v15564_v63  ;;  %v4121_v44 = vld [vmem:[#allocation2 + $0x19a] sm:$0xff] }
 0x2af   : > { %v15861_v62 = vpop.f32.mrf.mxu1  ;;  %v15867_v26 = vpop.f32.mrf.mxu0 }
 0x2b0   : > { %20649 = vst [vmem:[#allocation46_spill] sm:$0xff] %v15867_v26  ;;  %v6159_v26 = vld [vmem:[%s20421_s4 + $0x78] sm:$0xff] }
 0x2b1   : > { %v3083_v54 = vpop.f32.mrf.mxu1  ;;  %v3457_v29 = vpop.f32.mrf.mxu0  ;;  %12040 = vmatmul.mubr.msk.f32.gmra.mxu0 %vm441_vm1, %v4120_v5  ;;  %6289 = vmatpush1.msra.mxu1 %v6159_v26 }
 0x2b2   : > { %v15870_v47 = vadd.f32 %v3083_v54, %v15615_v36  ;;  %v15876_v16 = vadd.f32 %v3457_v29, %v15670_v33  ;;  %4471 = vmatprep.mubr.f32.mxu0 %v15564_v63  ;;  %v4122_v29 = vld [vmem:[#allocation2 + $0x1a2] sm:$0xff]  ;;  %6290 = vmatprep.subr.mxu1 %v15564_v63 }
 0x2b3   : > { %v15873_v30 = vpop.f32.mrf.mxu1  ;;  %v15879_v25 = vpop.f32.mrf.mxu0 }
 0x2b4   : > { %20650 = vst [vmem:[#allocation47_spill] sm:$0xff] %v15873_v30  ;;  %20651 = vst [vmem:[#allocation48_spill] sm:$0xff] %v15879_v25 }
 0x2b5   : > { %v3089_v19 = vpop.f32.mrf.mxu1  ;;  %v3463_v54 = vpop.f32.mrf.mxu0  ;;  %12041 = vmatmul.mubr.msk.f32.gmra.mxu0 %vm441_vm1, %v4121_v44 }
 0x2b6   : > { %v15885_v36 = vadd.f32 %v3089_v19, %v15630_v9  ;;  %v15891_v33 = vadd.f32 %v3463_v54, %v15687_v40  ;;  %4477 = vmatprep.mubr.f32.mxu0 %v15564_v63 }
 0x2b7   : > { %v15888_v5 = vpop.f32.mrf.mxu1  ;;  %v15895_v25 = vpop.f32.mrf.mxu0 }
 0x2b8   : > { %20652 = vst [vmem:[#allocation49_spill] sm:$0xff] %v15891_v33  ;;  %20653 = vst [vmem:[#allocation50_spill] sm:$0xff] %v15895_v25  ;;  %v6158_v33 = vld [vmem:[%s20421_s4 + $0x70] sm:$0xff] }
 0x2b9   : > { %v3095_v30 = vpop.f32.mrf.mxu1  ;;  %v3469_v19 = vpop.f32.mrf.mxu0  ;;  %12042 = vmatmul.mubr.msk.f32.gmra.mxu0 %vm441_vm1, %v4122_v29  ;;  %6291 = vmatpush1.msra.mxu1 %v6158_v33 }
 0x2ba   : > { %v15898_v9 = vadd.f32 %v3095_v30, %v15645_v52  ;;  %v15904_v44 = vadd.f32 %v3469_v19, %v15716_v15  ;;  %v6157_v52 = vld [vmem:[%s20421_s4 + $0x68] sm:$0xff]  ;;  %6292 = vmatprep.subr.mxu1 %v15564_v63 }
 0x2bb   : > { %v15901_v26 = vpop.f32.mrf.mxu1  ;;  %v15906_v40 = vpop.f32.mrf.mxu0  ;;  %6293 = vmatpush1.msra.mxu1 %v6157_v52  ;;  %v6156_v52 = vld [vmem:[%s20421_s4 + $0x60] sm:$0xff] }
 0x2bc   : > { %20654 = vst [vmem:[#allocation51_spill] sm:$0xff] %v15901_v26  ;;  %20655 = vst [vmem:[#allocation52_spill] sm:$0xff] %v15906_v40  ;;  %6294 = vmatprep.subr.mxu1 %v15564_v63 }
 0x2bd   : > { %v3101_v54 = vpop.f32.mrf.mxu1  ;;  %v3475_v29 = vpop.f32.mrf.mxu0  ;;  %6295 = vmatpush1.msra.mxu1 %v6156_v52 }
 0x2be   : > { %v15915_v30 = vadd.f32 %v3101_v54, %v15660_v31  ;;  %v15920_v15 = vadd.f32 %v3475_v29, %v15732_v42  ;;  %6296 = vmatprep.subr.mxu1 %v15564_v63 }
 0x2bf   : > { %v15917_v26 = vpop.f32.mrf.mxu1  ;;  %v15923_v19 = vpop.f32.mrf.mxu0 }
 0x2c0   : > { %20656 = vst [vmem:[#allocation53_spill] sm:$0xff] %v15917_v26  ;;  %20657 = vst [vmem:[#allocation54_spill] sm:$0xff] %v15920_v15 }
 0x2c1   : > { %v3107_v40 = vpop.f32.mrf.mxu1  ;;  %v3481_v31 = vpop.f32.mrf.mxu0 }
 0x2c2   : > { %v15927_v25 = vadd.f32 %v3107_v40, %v15675_v22  ;;  %v15932_v33 = vadd.f32 %v3481_v31, %v15745_v48  ;;  %v6155_v22 = vld [vmem:[%s20421_s4 + $0x58] sm:$0xff] }
 0x2c3   : > { %v15929_v54 = vpop.f32.mrf.mxu1  ;;  %v15934_v26 = vpop.f32.mrf.mxu0  ;;  %6297 = vmatpush1.msra.mxu1 %v6155_v22  ;;  %v6153_v22 = vld [vmem:[%s20421_s4 + $0x48] sm:$0xff] }
 0x2c4   : > { %20658 = vst [vmem:[#allocation55_spill] sm:$0xff] %v15932_v33  ;;  %20659 = vst [vmem:[#allocation56_spill] sm:$0xff] %v15934_v26  ;;  %6298 = vmatprep.subr.mxu1 %v15564_v63 }
 0x2c5   : > { %v3836_v42 = vpop.f32.mrf.mxu1  ;;  %v3487_v15 = vpop.f32.mrf.mxu0 }
 0x2c6   : > { %v15937_v29 = vadd.f32 %v3836_v42, %v15695_v12  ;;  %v15946_v40 = vadd.f32 %v3487_v15, %v15758_v24 }
 0x2c7   : > { %v15948_v48 = vpop.f32.mrf.mxu1  ;;  %v15950_v31 = vpop.f32.mrf.mxu0 }
 0x2c8   : > { %20660 = vst [vmem:[#allocation57_spill] sm:$0xff] %v15946_v40  ;;  %20661 = vst [vmem:[#allocation58_spill] sm:$0xff] %v15950_v31 }
 0x2c9   : > { %v3842_v12 = vpop.f32.mrf.mxu1  ;;  %v3493_v33 = vpop.f32.mrf.mxu0 }
 0x2ca   : > { %v15954_v42 = vadd.f32 %v3842_v12, %v15725_v43  ;;  %v15958_v26 = vadd.f32 %v3493_v33, %v15771_v7  ;;  %v6154_v43 = vld [vmem:[%s20421_s4 + $0x50] sm:$0xff] }
 0x2cb   : > { %v15960_v24 = vpop.f32.mrf.mxu1  ;;  %v15962_v15 = vpop.f32.mrf.mxu0  ;;  %6299 = vmatpush1.msra.mxu1 %v6154_v43 }
 0x2cc   : > { %20662 = vst [vmem:[#allocation59_spill] sm:$0xff] %v15958_v26  ;;  %20663 = vst [vmem:[#allocation60_spill] sm:$0xff] %v15962_v15  ;;  %6300 = vmatprep.subr.mxu1 %v15564_v63 }
 0x2cd   : > { %v3848_v52 = vpop.f32.mrf.mxu1  ;;  %v3499_v31 = vpop.f32.mrf.mxu0  ;;  %6301 = vmatpush1.msra.mxu1 %v6153_v22 }
 0x2ce   : > { %v15965_v40 = vadd.f32 %v3848_v52, %v15738_v27  ;;  %v15974_v7 = vadd.f32 %v3499_v31, %v15784_v34  ;;  %6302 = vmatprep.subr.mxu1 %v15564_v63 }
 0x2cf   : > { %v15976_v33 = vpop.f32.mrf.mxu1  ;;  %v15978_v12 = vpop.f32.mrf.mxu0 }
 0x2d0   : > { %20664 = vst [vmem:[#allocation61_spill] sm:$0xff] %v15974_v7  ;;  %v6152_v7 = vld [vmem:[%s20421_s4 + $0x40] sm:$0xff] }
 0x2d1   : > { %v3854_v27 = vpop.f32.mrf.mxu1  ;;  %v3505_v26 = vpop.f32.mrf.mxu0  ;;  %6303 = vmatpush1.msra.mxu1 %v6152_v7 }
 0x2d2   : > { %v15982_v52 = vadd.f32 %v3854_v27, %v15751_v60  ;;  %v15986_v15 = vadd.f32 %v3505_v26, %v15797_v50  ;;  %v6191_v60 = vld [vmem:[%s20421_s4 + $0x178] sm:$0xff]  ;;  %6304 = vmatprep.subr.mxu1 %v15564_v63 }
 0x2d3   : > { %v15988_v34 = vpop.f32.mrf.mxu1  ;;  %v15990_v31 = vpop.f32.mrf.mxu0  ;;  %v6151_v50 = vld [vmem:[%s20421_s4 + $0x38] sm:$0xff]  ;;  %6514 = vmatpush1.msra.mxu0 %v6191_v60  ;;  %v6189_v60 = vld [vmem:[%s20421_s4 + $0x168] sm:$0xff] }
 0x2d4   : > { %20665 = vst [vmem:[#allocation62_spill] sm:$0xff] %v15986_v15  ;;  %6515 = vmatprep.subr.mxu0 %v15564_v63  ;;  %6305 = vmatpush1.msra.mxu1 %v6151_v50 }
 0x2d5   : > { %v3860_v43 = vpop.f32.mrf.mxu1  ;;  %v3511_v27 = vpop.f32.mrf.mxu0  ;;  %6306 = vmatprep.subr.mxu1 %v15564_v63 }
 0x2d6   : > { %v15999_v22 = vadd.f32 %v3860_v43, %v15764_v0  ;;  %v16005_v26 = vadd.f32 %v3511_v27, %v15810_v41  ;;  %v6190_v0 = vld [vmem:[%s20421_s4 + $0x170] sm:$0xff] }
 0x2d7   : > { %v16007_v15 = vpop.f32.mrf.mxu1  ;;  %v16014_v43 = vpop.f32.mrf.mxu0  ;;  %6516 = vmatpush1.msra.mxu0 %v6190_v0  ;;  %v6150_v41 = vld [vmem:[%s20421_s4 + $0x30] sm:$0xff] }
 0x2d8   : > { %20666 = vst [vmem:[#allocation63_spill] sm:$0xff] %v16005_v26  ;;  %20667 = vst [vmem:[#allocation64_spill] sm:$0xff] %v16014_v43  ;;  %6517 = vmatprep.subr.mxu0 %v15564_v63  ;;  %6307 = vmatpush1.msra.mxu1 %v6150_v41  ;;  %v6149_v43 = vld [vmem:[%s20421_s4 + $0x28] sm:$0xff]  ;;  %v6187_v41 = vld [vmem:[%s20421_s4 + $0x158] sm:$0xff] }
 0x2d9   : > { %v3866_v7 = vpop.f32.mrf.mxu1  ;;  %v3517_v26 = vpop.f32.mrf.mxu0  ;;  %6518 = vmatpush1.msra.mxu0 %v6189_v60  ;;  %6308 = vmatprep.subr.mxu1 %v15564_v63 }
 0x2da   : > { %v16025_v27 = vadd.f32 %v3866_v7, %v15777_v59  ;;  %v16028_v50 = vadd.f32 %v3517_v26, %v15822_v39  ;;  %6519 = vmatprep.subr.mxu0 %v15564_v63  ;;  %v6188_v59 = vld [vmem:[%s20421_s4 + $0x160] sm:$0xff]  ;;  %6309 = vmatpush1.msra.mxu1 %v6149_v43 }
 0x2db   : > { %v16030_v0 = vpop.f32.mrf.mxu1  ;;  %v16040_v7 = vpop.f32.mrf.mxu0  ;;  %6520 = vmatpush1.msra.mxu0 %v6188_v59  ;;  %6310 = vmatprep.subr.mxu1 %v15564_v63  ;;  %v6148_v26 = vld [vmem:[%s20421_s4 + $0x20] sm:$0xff] }
 0x2dc   : > { %20668 = vst [vmem:[#allocation65_spill] sm:$0xff] %v16028_v50  ;;  %20669 = vst [vmem:[#allocation66_spill] sm:$0xff] %v16040_v7  ;;  %6521 = vmatprep.subr.mxu0 %v15564_v63  ;;  %6311 = vmatpush1.msra.mxu1 %v6148_v26  ;;  %v6147_v7 = vld [vmem:[%s20421_s4 + $0x18] sm:$0xff]  ;;  %v6185_v26 = vld [vmem:[%s20421_s4 + $0x148] sm:$0xff] }
 0x2dd   : > { %v3872_v39 = vpop.f32.mrf.mxu1  ;;  %v3523_v50 = vpop.f32.mrf.mxu0  ;;  %6522 = vmatpush1.msra.mxu0 %v6187_v41  ;;  %6312 = vmatprep.subr.mxu1 %v15564_v63 }
 0x2de   : > { %v16051_v60 = vadd.f32 %v3872_v39, %v15790_v1  ;;  %v16054_v43 = vadd.f32 %v3523_v50, %v15834_v21  ;;  %6523 = vmatprep.subr.mxu0 %v15564_v63  ;;  %v6186_v1 = vld [vmem:[%s20421_s4 + $0x150] sm:$0xff]  ;;  %6313 = vmatpush1.msra.mxu1 %v6147_v7 }
 0x2df   : > { %v16056_v59 = vpop.f32.mrf.mxu1  ;;  %v16066_v39 = vpop.f32.mrf.mxu0  ;;  %6524 = vmatpush1.msra.mxu0 %v6186_v1  ;;  %6314 = vmatprep.subr.mxu1 %v15564_v63  ;;  %v6146_v50 = vld [vmem:[%s20421_s4 + $0x10] sm:$0xff] }
 0x2e0   : > { %20670 = vst [vmem:[#allocation67_spill] sm:$0xff] %v16054_v43  ;;  %20671 = vst [vmem:[#allocation68_spill] sm:$0xff] %v16066_v39  ;;  %6525 = vmatprep.subr.mxu0 %v15564_v63  ;;  %6315 = vmatpush1.msra.mxu1 %v6146_v50  ;;  %v6145_v39 = vld [vmem:[%s20421_s4 + $0x8] sm:$0xff]  ;;  %v6183_v50 = vld [vmem:[%s20421_s4 + $0x138] sm:$0xff] }
 0x2e1   : > { %v3878_v21 = vpop.f32.mrf.mxu1  ;;  %v3529_v43 = vpop.f32.mrf.mxu0  ;;  %6526 = vmatpush1.msra.mxu0 %v6185_v26  ;;  %6316 = vmatprep.subr.mxu1 %v15564_v63 }
 0x2e2   : > { %v16077_v41 = vadd.f32 %v3878_v21, %v15803_v38  ;;  %v16080_v7 = vadd.f32 %v3529_v43, %v15846_v6  ;;  %6527 = vmatprep.subr.mxu0 %v15564_v63  ;;  %v6184_v38 = vld [vmem:[%s20421_s4 + $0x140] sm:$0xff]  ;;  %6317 = vmatpush1.msra.mxu1 %v6145_v39 }
 0x2e3   : > { %v16082_v1 = vpop.f32.mrf.mxu1  ;;  %v16092_v21 = vpop.f32.mrf.mxu0  ;;  %6528 = vmatpush1.msra.mxu0 %v6184_v38  ;;  %6318 = vmatprep.subr.mxu1 %v15564_v63  ;;  %v6144_v43 = vld [vmem:[%s20421_s4] sm:$0xff] }
 0x2e4   : > { %20672 = vst [vmem:[#allocation69_spill] sm:$0xff] %v16080_v7  ;;  %20673 = vst [vmem:[#allocation70_spill] sm:$0xff] %v16092_v21  ;;  %6529 = vmatprep.subr.mxu0 %v15564_v63  ;;  %6319 = vmatpush1.msra.mxu1 %v6144_v43  ;;  %v6175_v21 = vld [vmem:[%s20421_s4 + $0xf8] sm:$0xff]  ;;  %v6181_v43 = vld [vmem:[%s20421_s4 + $0x128] sm:$0xff] }
 0x2e5   : > { %v3884_v6 = vpop.f32.mrf.mxu1  ;;  %v3535_v7 = vpop.f32.mrf.mxu0  ;;  %6530 = vmatpush1.msra.mxu0 %v6183_v50  ;;  %6320 = vmatprep.subr.mxu1 %v15564_v63 }
 0x2e6   : > { %v16103_v26 = vadd.f32 %v3884_v6, %v15816_v11  ;;  %v16106_v39 = vadd.f32 %v3535_v7, %v15858_v57  ;;  %6531 = vmatprep.subr.mxu0 %v15564_v63  ;;  %v6182_v11 = vld [vmem:[%s20421_s4 + $0x130] sm:$0xff]  ;;  %6321 = vmatpush2.msra.mxu1 %v6175_v21 }
 0x2e7   : > { %v16108_v38 = vpop.f32.mrf.mxu1  ;;  %v16118_v6 = vpop.f32.mrf.mxu0  ;;  %6532 = vmatpush1.msra.mxu0 %v6182_v11  ;;  %6322 = vmatprep.subr.mxu1 %v15564_v63  ;;  %v6174_v7 = vld [vmem:[%s20421_s4 + $0xf0] sm:$0xff] }
 0x2e8   : > { %20674 = vst [vmem:[#allocation71_spill] sm:$0xff] %v16106_v39  ;;  %20675 = vst [vmem:[#allocation72_spill] sm:$0xff] %v16118_v6  ;;  %6533 = vmatprep.subr.mxu0 %v15564_v63  ;;  %6323 = vmatpush2.msra.mxu1 %v6174_v7  ;;  %v6173_v6 = vld [vmem:[%s20421_s4 + $0xe8] sm:$0xff]  ;;  %v6179_v7 = vld [vmem:[%s20421_s4 + $0x118] sm:$0xff] }
 0x2e9   : > { %v3890_v57 = vpop.f32.mrf.mxu1  ;;  %v3541_v39 = vpop.f32.mrf.mxu0  ;;  %6534 = vmatpush1.msra.mxu0 %v6181_v43  ;;  %6324 = vmatprep.subr.mxu1 %v15564_v63 }
 0x2ea   : > { %v16129_v50 = vadd.f32 %v3890_v57, %v15828_v23  ;;  %v16132_v21 = vadd.f32 %v3541_v39, %v15870_v47  ;;  %6535 = vmatprep.subr.mxu0 %v15564_v63  ;;  %v6180_v23 = vld [vmem:[%s20421_s4 + $0x120] sm:$0xff]  ;;  %6325 = vmatpush2.msra.mxu1 %v6173_v6 }
 0x2eb   : > { %v16134_v11 = vpop.f32.mrf.mxu1  ;;  %v16144_v57 = vpop.f32.mrf.mxu0  ;;  %6536 = vmatpush1.msra.mxu0 %v6180_v23  ;;  %6326 = vmatprep.subr.mxu1 %v15564_v63  ;;  %v6172_v39 = vld [vmem:[%s20421_s4 + $0xe0] sm:$0xff] }
 0x2ec   : > { %20676 = vst [vmem:[#allocation73_spill] sm:$0xff] %v16132_v21  ;;  %20677 = vst [vmem:[#allocation74_spill] sm:$0xff] %v16144_v57  ;;  %6537 = vmatprep.subr.mxu0 %v15564_v63  ;;  %6327 = vmatpush2.msra.mxu1 %v6172_v39  ;;  %v6171_v57 = vld [vmem:[%s20421_s4 + $0xd8] sm:$0xff]  ;;  %v6177_v39 = vld [vmem:[%s20421_s4 + $0x108] sm:$0xff] }
 0x2ed   : > { %v3896_v47 = vpop.f32.mrf.mxu1  ;;  %v3547_v21 = vpop.f32.mrf.mxu0  ;;  %6538 = vmatpush1.msra.mxu0 %v6179_v7  ;;  %6328 = vmatprep.subr.mxu1 %v15564_v63 }
 0x2ee   : > { %v16155_v43 = vadd.f32 %v3896_v47, %v15840_v20  ;;  %v16158_v6 = vadd.f32 %v3547_v21, %v15885_v36  ;;  %6539 = vmatprep.subr.mxu0 %v15564_v63  ;;  %v6178_v20 = vld [vmem:[%s20421_s4 + $0x110] sm:$0xff]  ;;  %6329 = vmatpush2.msra.mxu1 %v6171_v57 }
 0x2ef   : > { %v16160_v23 = vpop.f32.mrf.mxu1  ;;  %v16170_v47 = vpop.f32.mrf.mxu0  ;;  %6540 = vmatpush1.msra.mxu0 %v6178_v20  ;;  %6330 = vmatprep.subr.mxu1 %v15564_v63  ;;  %v6170_v21 = vld [vmem:[%s20421_s4 + $0xd0] sm:$0xff] }
 0x2f0   : > { %20678 = vst [vmem:[#allocation75_spill] sm:$0xff] %v16155_v43  ;;  %20679 = vst [vmem:[#allocation76_spill] sm:$0xff] %v16158_v6  ;;  %6541 = vmatprep.subr.mxu0 %v15564_v63  ;;  %6331 = vmatpush2.msra.mxu1 %v6170_v21  ;;  %v6169_v43 = vld [vmem:[%s20421_s4 + $0xc8] sm:$0xff]  ;;  %v6207_v21 = vld [vmem:[%s20421_s4 + $0x1f8] sm:$0xff] }
 0x2f1   : > { %20680 = vst [vmem:[#allocation77_spill] sm:$0xff] %v16170_v47  ;;  %v3902_v36 = vpop.f32.mrf.mxu1  ;;  %v3553_v6 = vpop.f32.mrf.mxu0  ;;  %6542 = vmatpush1.msra.mxu0 %v6177_v39  ;;  %6332 = vmatprep.subr.mxu1 %v15564_v63 }
 0x2f2   : > { %v16181_v7 = vadd.f32 %v3902_v36, %v15852_v45  ;;  %v16184_v57 = vadd.f32 %v3553_v6, %v15898_v9  ;;  %6543 = vmatprep.subr.mxu0 %v15564_v63  ;;  %v6176_v45 = vld [vmem:[%s20421_s4 + $0x100] sm:$0xff]  ;;  %6333 = vmatpush2.msra.mxu1 %v6169_v43 }
 0x2f3   : > { %v16186_v20 = vpop.f32.mrf.mxu1  ;;  %v16196_v36 = vpop.f32.mrf.mxu0  ;;  %6544 = vmatpush1.msra.mxu0 %v6176_v45  ;;  %6334 = vmatprep.subr.mxu1 %v15564_v63  ;;  %v6168_v6 = vld [vmem:[%s20421_s4 + $0xc0] sm:$0xff] }
 0x2f4   : > { %20681 = vst [vmem:[#allocation78_spill] sm:$0xff] %v16181_v7  ;;  %20682 = vst [vmem:[#allocation79_spill] sm:$0xff] %v16184_v57  ;;  %6545 = vmatprep.subr.mxu0 %v15564_v63  ;;  %6335 = vmatpush2.msra.mxu1 %v6168_v6  ;;  %v6167_v7 = vld [vmem:[%s20421_s4 + $0xb8] sm:$0xff] }
 0x2f5   : > { %20683 = vst [vmem:[#allocation80_spill] sm:$0xff] %v16186_v20  ;;  %20684 = vst [vmem:[#allocation81_spill] sm:$0xff] %v16196_v36  ;;  %v3908_v9 = vpop.f32.mrf.mxu1  ;;  %v3559_v57 = vpop.f32.mrf.mxu0  ;;  %6546 = vmatpush2.msra.mxu0 %v6207_v21  ;;  %6336 = vmatprep.subr.mxu1 %v15564_v63 }
 0x2f6   : > { %v16207_v39 = vadd.f32 %v3908_v9, %v15864_v56  ;;  %v16210_v43 = vadd.f32 %v3559_v57, %v15915_v30  ;;  %6547 = vmatprep.subr.mxu0 %v15564_v63  ;;  %v6206_v56 = vld [vmem:[%s20421_s4 + $0x1f0] sm:$0xff]  ;;  %6337 = vmatpush2.msra.mxu1 %v6167_v7  ;;  %v4556_v7 = vsub.s32 1, %v15680_v28  ;;  %v4028_v28 = vadd.f32 %v15948_v48, %v15707_v13 }
 0x2f7   : > { %v16212_v45 = vpop.f32.mrf.mxu1  ;;  %v16222_v9 = vpop.f32.mrf.mxu0  ;;  %6548 = vmatpush2.msra.mxu0 %v6206_v56  ;;  %6338 = vmatprep.subr.mxu1 %v15564_v63  ;;  %v6166_v57 = vld [vmem:[%s20421_s4 + $0xb0] sm:$0xff]  ;;  %v6165_v56 = vld [vmem:[%s20421_s4 + $0xa8] sm:$0xff] }
 0x2f8   : > { %20685 = vst [vmem:[#allocation82_spill] sm:$0xff] %v16207_v39  ;;  %20686 = vst [vmem:[#allocation83_spill] sm:$0xff] %v16210_v43  ;;  %6549 = vmatprep.subr.mxu0 %v15564_v63  ;;  %6339 = vmatpush2.msra.mxu1 %v6166_v57  ;;  %v16264_v13 = vrot.slane %v15713_v2, %v4556_v7  ;;  %v16272_v48 = vld [vmem:[#allocation5] sm:$0xff] }
 0x2f9   : > { %20687 = vst [vmem:[#allocation84_spill] sm:$0xff] %v16212_v45  ;;  %20688 = vst [vmem:[#allocation85_spill] sm:$0xff] %v16222_v9  ;;  %v3914_v30 = vpop.f32.mrf.mxu1  ;;  %v3565_v21 = vpop.f32.mrf.mxu0  ;;  %6340 = vmatprep.subr.mxu1 %v15564_v63 }
 0x2fa   : > { %v16230_v6 = vadd.f32 %v3914_v30, %v15876_v16  ;;  %v16233_v43 = vadd.f32 %v3565_v21, %v15927_v25  ;;  %6341 = vmatpush2.msra.mxu1 %v6165_v56  ;;  %v6205_v25 = vld [vmem:[%s20421_s4 + $0x1e8] sm:$0xff] }
 0x2fb   : > { %v16235_v39 = vpop.f32.mrf.mxu1  ;;  %v16242_v9 = vpop.f32.mrf.mxu0  ;;  %6342 = vmatprep.subr.mxu1 %v15564_v63  ;;  %6550 = vmatpush2.msra.mxu0 %v6205_v25 }
 0x2fc   : > { %20689 = vst [vmem:[#allocation86_spill] sm:$0xff] %v16230_v6  ;;  %20690 = vst [vmem:[#allocation87_spill] sm:$0xff] %v16233_v43  ;;  %v16256_v43 = vrot.slane %v15701_v61, %v4556_v7  ;;  %6551 = vmatprep.subr.mxu0 %v15564_v63  ;;  %v6204_v6 = vld [vmem:[%s20421_s4 + $0x1e0] sm:$0xff]  ;;  %v20697_v7 = vld [vmem:[#allocation27_spill] sm:$0xff] }
 0x2fd   : > { %20691 = vst [vmem:[#allocation88_spill] sm:$0xff] %v16235_v39  ;;  %20692 = vst [vmem:[#allocation89_spill] sm:$0xff] %v16242_v9  ;;  %v16244_v16 = vpop.f32.mrf.mxu1  ;;  %v4293_v30 = vpop.f32.mrf.mxu0  ;;  %6552 = vmatpush2.msra.mxu0 %v6204_v6  ;;  %v6164_v63 = vld [vmem:[%s20421_s4 + $0xa0] sm:$0xff] }
 0x2fe   : > { %20693 = vst [vmem:[#allocation90_spill] sm:$0xff] %v16244_v16  ;;  %v4484_v21 = vadd.f32 %v4293_v30, %v15937_v29  ;;  %6553 = vmatprep.subr.mxu0 %v16272_v48  ;;  %v4030_v30 = vadd.f32 %v15960_v24, %v15729_v49  ;;  %6343 = vmatpush2.msra.mxu1 %v6164_v63  ;;  %v20698_v49 = vld [vmem:[#allocation9_spill] sm:$0xff]  ;;  %v20702_v63 = vld [vmem:[#allocation30_spill] sm:$0xff] }
 0x2ff   : > { %v16252_v57 = vpop.f32.mrf.mxu1  ;;  %v4295_v56 = vpop.f32.mrf.mxu0  ;;  %6344 = vmatprep.subr.mxu1 %v16272_v48  ;;  %v3133_v24 = vadd.f32 %v15632_v14, %v20698_v49  ;;  %v4032_v14 = vadd.f32 %v15976_v33, %v15742_v17  ;;  %v20707_v33 = vld [vmem:[#allocation31_spill] sm:$0xff] }
 0x300   : > { %20694 = vst [vmem:[#allocation91_spill] sm:$0xff] %v16252_v57  ;;  %v4560_v16 = vmul.f32 %v15704_v55, %v4484_v21  ;;  %v4485_v39 = vadd.f32 %v4295_v56, %v4028_v28  ;;  %v3131_v28 = vadd.f32 %v15617_v32, %v20697_v7  ;;  %v20703_v7 = vld [vmem:[#allocation20_spill] sm:$0xff]  ;;  %v20712_v57 = vld [vmem:[#allocation25_spill] sm:$0xff] }
 0x301   : > { %v3926_v9 = vpop.f32.mrf.mxu1  ;;  %v4299_v61 = vpop.f32.mrf.mxu0 }
 0x302   : > { %v16267_v29 = vadd.f32 %v3926_v9, %v15904_v44  ;;  %v16278_v25 = vadd.f32 %v15720_v46, %v4560_v16  ;;  %v4561_v2 = vmul.f32 %v16256_v43, %v4485_v39  ;;  %v4486_v44 = vadd.f32 %v4299_v61, %v15954_v42  ;;  %v20700_v61 = vld [vmem:[#allocation28_spill] sm:$0xff] }
 0x303   : > { %v16281_v6 = vpop.f32.mrf.mxu1  ;;  %v3129_v9 = vadd.f32 %v15602_v35, %v15317_v37  ;;  %v4301_v21 = vpop.f32.mrf.mxu0  ;;  %v16299_v37 = vadd.f32 %v15647_v3, %v20700_v61  ;;  %v20701_v35 = vld [vmem:[#allocation8_spill] sm:$0xff]  ;;  %v20705_v61 = vld [vmem:[#allocation10_spill] sm:$0xff] }
 0x304   : > { %20695 = vst [vmem:[#allocation92_spill] sm:$0xff] %v16267_v29  ;;  %20696 = vst [vmem:[#allocation93_spill] sm:$0xff] %v16281_v6  ;;  %v16292_v16 = vadd.f32 %v16264_v13, %v4561_v2  ;;  %v4562_v39 = vmul.f32 %v15704_v55, %v4486_v44  ;;  %v4487_v42 = vadd.f32 %v4301_v21, %v4030_v30  ;;  %v6203_v30 = vld [vmem:[%s20421_s4 + $0x1d8] sm:$0xff] }
 0x305   : > { %v16295_v56 = vpop.f32.mrf.mxu1  ;;  %v16303_v32 = vadd.f32 %v15662_v51, %v20701_v35  ;;  %v16307_v29 = vadd.f32 %v20703_v7, %v20702_v63  ;;  %v4305_v2 = vpop.f32.mrf.mxu0  ;;  %6554 = vmatpush2.msra.mxu0 %v6203_v30  ;;  %v20706_v35 = vld [vmem:[#allocation22_spill] sm:$0xff]  ;;  %v20708_v63 = vld [vmem:[#allocation23_spill] sm:$0xff]  ;;  %v20710_v44 = vld [vmem:[#allocation24_spill] sm:$0xff] }
 0x306   : > { %20699 = vst [vmem:[#allocation27_spill] sm:$0xff] %v16295_v56  ;;  %v16316_v3 = vadd.f32 %v15720_v46, %v4562_v39  ;;  %v4563_v51 = vmul.f32 %v16256_v43, %v4487_v42  ;;  %v4488_v49 = vadd.f32 %v4305_v2, %v15965_v40  ;;  %v16324_v17 = vadd.f32 %v20706_v35, %v20705_v61  ;;  %v20709_v56 = vld [vmem:[#allocation11_spill] sm:$0xff]  ;;  %v20711_v39 = vld [vmem:[#allocation32_spill] sm:$0xff] }
 0x307   : > { %v16319_v21 = vpop.f32.mrf.mxu1  ;;  %v16328_v7 = vadd.f32 %v20708_v63, %v20707_v33  ;;  %v16332_v6 = vadd.f32 %v20710_v44, %v20709_v56  ;;  %v16336_v42 = vadd.f32 %v20712_v57, %v20711_v39  ;;  %v6163_v40 = vld [vmem:[%s20421_s4 + $0x98] sm:$0xff]  ;;  %6555 = vmatprep.subr.mxu0 %v16272_v48  ;;  %v20714_v61 = vmax.f32 %v16292_v16, 0.0  ;;  %v20716_v33 = vld [vmem:[#allocation13_spill] sm:$0xff]  ;;  %v20717_v39 = vld [vmem:[#allocation14_spill] sm:$0xff] }
 0x308   : > { %20704 = vst [vmem:[#allocation9_spill] sm:$0xff] %v16319_v21  ;;  %v4307_v21 = vpop.f32.mrf.mxu0  ;;  %v20713_v2 = vld [vmem:[#allocation12_spill] sm:$0xff]  ;;  %v4639_v56 = vadd.f32 %v16264_v13, %v4563_v51  ;;  %v4564_v44 = vmul.f32 %v15704_v55, %v4488_v49  ;;  %6345 = vmatpush2.msra.mxu1 %v6163_v40  ;;  %v16354_v63 = vadd.f32 %v15774_v8, %v20716_v33  ;;  %v20721_v33 = vld [vmem:[#allocation33_spill] sm:$0xff] }
 0x309   : > { %v16344_v30 = vadd.f32 %v15761_v10, %v20713_v2  ;;  %4796 = vst [vmem:[#allocation4] sm:$0xff] %v20714_v61  ;;  %v16350_v57 = vpop.f32.mrf.mxu1  ;;  %v4489_v35 = vadd.f32 %v4307_v21, %v4032_v14  ;;  %v16358_v45 = vadd.f32 %v15787_v4, %v20717_v39  ;;  %v20718_v10 = vld [vmem:[#allocation15_spill] sm:$0xff]  ;;  %v20719_v61 = vld [vmem:[#allocation26_spill] sm:$0xff]  ;;  %6346 = vmatprep.subr.mxu1 %v16272_v48 }
 0x30a   : > { %20715 = vst [vmem:[#allocation28_spill] sm:$0xff] %v16350_v57  ;;  %v16362_v2 = vadd.f32 %v15800_v18, %v20718_v10  ;;  %v4034_v51 = vadd.f32 %v15988_v34, %v20719_v61  ;;  %v4311_v49 = vpop.f32.mrf.mxu0  ;;  %v4703_v14 = vmax.f32 %v4639_v56, 0.0  ;;  %v16368_v21 = vadd.f32 %v15720_v46, %v4564_v44  ;;  %v20722_v34 = vld [vmem:[#allocation34_spill] sm:$0xff]  ;;  %v20723_v10 = vld [vmem:[#allocation40_spill] sm:$0xff]  ;;  %v20728_v57 = vld [vmem:[#allocation43_spill] sm:$0xff] }
 0x30b   : > { %v4565_v8 = vmul.f32 %v16256_v43, %v4489_v35  ;;  %v16371_v40 = vpop.f32.mrf.mxu1  ;;  %v4490_v4 = vadd.f32 %v4311_v49, %v15982_v52  ;;  %v16376_v18 = vadd.f32 %v15813_v53, %v20721_v33  ;;  %v16379_v39 = vadd.f32 %v15819_v58, %v3129_v9  ;;  %v6202_v35 = vld [vmem:[%s20421_s4 + $0x1d0] sm:$0xff]  ;;  %v20725_v33 = vld [vmem:[#allocation41_spill] sm:$0xff] }
 0x30c   : > { %20720 = vst [vmem:[#allocation8_spill] sm:$0xff] %v16371_v40  ;;  %v16383_v61 = vadd.f32 %v20723_v10, %v20722_v34  ;;  %v4700_v56 = vmax.f32 %v16278_v25, 0.0  ;;  %v4313_v44 = vpop.f32.mrf.mxu0  ;;  %4797 = vst [vmem:[#allocation4 + $0x8] sm:$0xff] %v4703_v14  ;;  %6556 = vmatpush2.msra.mxu0 %v6202_v35  ;;  %v16397_v34 = vadd.f32 %v20725_v33, %v3131_v28  ;;  %v20726_v25 = vld [vmem:[#allocation29_spill] sm:$0xff]  ;;  %v20727_v10 = vld [vmem:[#allocation42_spill] sm:$0xff] }
 0x30d   : > { %v16391_v53 = vadd.f32 %v16264_v13, %v4565_v8  ;;  %v4566_v58 = vmul.f32 %v15704_v55, %v4490_v4  ;;  %v16394_v9 = vpop.f32.mrf.mxu1  ;;  %v4491_v49 = vadd.f32 %v4313_v44, %v4034_v51  ;;  %v16401_v40 = vadd.f32 %v20727_v10, %v20726_v25  ;;  %v20729_v52 = vld [vmem:[#allocation7_spill] sm:$0xff]  ;;  %6557 = vmatprep.subr.mxu0 %v16272_v48  ;;  %v6201_v28 = vld [vmem:[%s20421_s4 + $0x1c8] sm:$0xff]  ;;  %v20733_v33 = vld [vmem:[#allocation44_spill] sm:$0xff] }
 0x30e   : > { %20724 = vst [vmem:[#allocation30_spill] sm:$0xff] %v16394_v9  ;;  %v16404_v14 = vadd.f32 %v20728_v57, %v3133_v24  ;;  %v4036_v8 = vadd.f32 %v16007_v15, %v20729_v52  ;;  %v4317_v36 = vpop.f32.mrf.mxu0  ;;  %v6162_v4 = vld [vmem:[%s20421_s4 + $0x90] sm:$0xff]  ;;  %v20730_v51 = vmax.f32 %v16368_v21, 0.0  ;;  %6558 = vmatpush2.msra.mxu0 %v6201_v28  ;;  %v20734_v10 = vld [vmem:[#allocation45_spill] sm:$0xff]  ;;  %v20736_v28 = vld [vmem:[#allocation36_spill] sm:$0xff] }
 0x30f   : > { %v20441_v24 = vmax.f32 %v16391_v53, 0.0  ;;  %v16421_v57 = vadd.f32 %v15720_v46, %v4566_v58  ;;  %v4567_v15 = vmul.f32 %v16256_v43, %v4491_v49  ;;  %v16424_v35 = vpop.f32.mrf.mxu1  ;;  %6347 = vmatpush2.msra.mxu1 %v6162_v4  ;;  %v20732_v52 = vld [vmem:[#allocation35_spill] sm:$0xff]  ;;  %v16432_v9 = vadd.f32 %v20734_v10, %v16299_v37  ;;  %6559 = vmatprep.subr.mxu0 %v16272_v48  ;;  %v6200_v58 = vld [vmem:[%s20421_s4 + $0x1c0] sm:$0xff]  ;;  %v6161_v49 = vld [vmem:[%s20421_s4 + $0x88] sm:$0xff] }
 0x310   : > { %v16417_v44 = vmax.f32 %v4700_v56, %v20730_v51  ;;  %20731 = vst [vmem:[#allocation20_spill] sm:$0xff] %v16424_v35  ;;  %v16428_v25 = vadd.f32 %v20733_v33, %v20732_v52  ;;  %v4492_v56 = vadd.f32 %v4317_v36, %v15999_v22  ;;  %v4319_v51 = vpop.f32.mrf.mxu0  ;;  %6348 = vmatprep.subr.mxu1 %v16272_v48  ;;  %v4702_v4 = vmax.f32 %v16316_v3, 0.0  ;;  %v20737_v33 = vld [vmem:[#allocation46_spill] sm:$0xff] }
 0x311   : > { %20735 = vst [vmem:[#allocation10_spill] sm:$0xff] %v16432_v9  ;;  %4798 = vst [vmem:[#allocation4 + $0x10] sm:$0xff] %v20441_v24  ;;  %v20442_v22 = vmax.f32 %v16421_v57, 0.0  ;;  %v4643_v36 = vadd.f32 %v16264_v13, %v4567_v15  ;;  %v4493_v37 = vadd.f32 %v4319_v51, %v4036_v8  ;;  %6560 = vmatpush2.msra.mxu0 %v6200_v58  ;;  %6349 = vmatpush2.msra.mxu1 %v6161_v49  ;;  %v6199_v15 = vld [vmem:[%s20421_s4 + $0x1b8] sm:$0xff] }
 0x312   : > { %v16450_v52 = vadd.f32 %v15861_v62, %v20736_v28  ;;  %v16454_v10 = vadd.f32 %v20737_v33, %v16303_v32  ;;  %v4568_v3 = vmul.f32 %v15704_v55, %v4492_v56  ;;  %v4323_v35 = vpop.f32.mrf.mxu0  ;;  %6561 = vmatprep.subr.mxu0 %v16272_v48  ;;  %6350 = vmatprep.subr.mxu1 %v16272_v48  ;;  %v6160_v62 = vld [vmem:[%s20421_s4 + $0x80] sm:$0xff]  ;;  %v5887_v8 = vld [vmem:[#allocation5 + $0x1] sm:$0xff]  ;;  %v16469_v56 = vpop.f32.mrf.mxu1 }
 0x313   : > { %v16467_v32 = vmax.f32 %v4702_v4, %v20442_v22  ;;  %v4707_v51 = vmax.f32 %v4643_v36, 0.0  ;;  %v4569_v58 = vmul.f32 %v16256_v43, %v4493_v37  ;;  %v4494_v49 = vadd.f32 %v4323_v35, %v16025_v27  ;;  %6562 = vmatpush2.msra.mxu0 %v6199_v15  ;;  %6351 = vmatpush2.msra.mxu1 %v6160_v62  ;;  %v20739_v28 = vld [vmem:[#allocation16_spill] sm:$0xff]  ;;  %v20740_v33 = vld [vmem:[#allocation47_spill] sm:$0xff] }
 0x314   : > { %20738 = vst [vmem:[#allocation22_spill] sm:$0xff] %v16454_v10  ;;  %v16475_v24 = vadd.f32 %v20740_v33, %v20739_v28  ;;  %v20741_v10 = vld [vmem:[#allocation37_spill] sm:$0xff]  ;;  %v5225_v9 = vld [vmem:[#allocation4 + $0x8] sm:$0x7f]  ;;  %v16480_v36 = vadd.f32 %v15720_v46, %v4568_v3  ;;  %v4325_v22 = vpop.f32.mrf.mxu0  ;;  %6563 = vmatprep.subr.mxu0 %v16272_v48  ;;  %6352 = vmatprep.mubr.f32.mxu1 %v5887_v8  ;;  %v20742_v27 = vmax.f32 %v16292_v16, 0.0  ;;  %v20745_v28 = vld [vmem:[#allocation38_spill] sm:$0xff]  ;;  %v16512_v33 = vpop.f32.mrf.mxu1 }
 0x315   : > { %v4038_v20 = vadd.f32 %v16030_v0, %v20741_v10  ;;  %v5256_v47 = vld [vmem:[#allocation4 + $0x1] sm:$0xff]  ;;  %v5257_v4 = vld [vmem:[#allocation4 + $0x9] sm:$0x7f]  ;;  %4799 = vst [vmem:[#allocation4 + $0x18] sm:$0xff] %v4707_v51  ;;  %v16488_v15 = vadd.f32 %v16264_v13, %v4569_v58  ;;  %v4570_v0 = vmul.f32 %v15704_v55, %v4494_v49  ;;  %6353 = vmatmul.mubr.f32.vlgmr.msra.gmra.mxu1 %v16272_v48  ;;  %v20744_v16 = vld [vmem:[#allocation17_spill] sm:$0xff] }
 0x316   : > { %v16485_v35 = vmax.f32 %v20742_v27, %v5256_v47  ;;  %v5289_v37 = vmax.f32 %v5225_v9, %v5257_v4  ;;  %v6198_v10 = vld [vmem:[%s20421_s4 + $0x1b0] sm:$0xff]  ;;  %v20743_v3 = vld [vmem:[#allocation48_spill] sm:$0xff]  ;;  %v16501_v47 = vadd.f32 %v15888_v5, %v20744_v16  ;;  %v20445_v9 = vmax.f32 %v16480_v36, 0.0  ;;  %v4329_v51 = vpop.f32.mrf.mxu0  ;;  %v6197_v58 = vld [vmem:[%s20421_s4 + $0x1a8] sm:$0xff]  ;;  %6738 = vmatprep.subr.mxu1 %v16272_v48  ;;  %20746 = vst [vmem:[#allocation31_spill] sm:$0xff] %v16512_v33 }
 0x317   : > { %v16497_v62 = vadd.f32 %v20743_v3, %v16307_v29  ;;  %v4495_v8 = vadd.f32 %v4325_v22, %v4038_v20  ;;  %6564 = vmatpush2.msra.mxu0 %v6198_v10  ;;  %v5888_v49 = vld [vmem:[#allocation5 + $0x9] sm:$0xff]  ;;  %v4040_v29 = vadd.f32 %v16056_v59, %v20745_v28  ;;  %v20443_v5 = vmax.f32 %v16488_v15, 0.0  ;;  %v20747_v4 = vld [vmem:[#allocation50_spill] sm:$0xff]  ;;  %v20749_v10 = vld [vmem:[#allocation51_spill] sm:$0xff] }
 0x318   : > { %5320 = vst [vmem:[#allocation4] sm:$0xff] %v16485_v35  ;;  %5321 = vst [vmem:[#allocation4 + $0x8] sm:$0x7f] %v5289_v37  ;;  %v16515_v20 = vadd.f32 %v15720_v46, %v4570_v0  ;;  %v4496_v22 = vadd.f32 %v4329_v51, %v16051_v60  ;;  %6565 = vmatprep.subr.mxu0 %v16272_v48  ;;  %6357 = vmatprep.mubr.f32.mxu1 %v5888_v49  ;;  %v20748_v59 = vld [vmem:[#allocation18_spill] sm:$0xff]  ;;  %v20750_v37 = vmax.f32 %v16368_v21, 0.0  ;;  %v4331_v60 = vpop.f32.mrf.mxu0  ;;  %v6196_v51 = vld [vmem:[%s20421_s4 + $0x1a0] sm:$0xff] }
 0x319   : > { %v16521_v27 = vadd.f32 %v20747_v4, %v16324_v17  ;;  %v16525_v3 = vadd.f32 %v20749_v10, %v20748_v59  ;;  %v4571_v0 = vmul.f32 %v16256_v43, %v4495_v8  ;;  %6566 = vmatpush2.msra.mxu0 %v6197_v58  ;;  %v20751_v17 = vld [vmem:[#allocation52_spill] sm:$0xff]  ;;  %4800 = vst [vmem:[#allocation4 + $0x20] sm:$0xff] %v20443_v5  ;;  %v20752_v8 = vld [vmem:[#allocation19_spill] sm:$0xff]  ;;  %v20753_v58 = vld [vmem:[#allocation53_spill] sm:$0xff] }
 0x31a   : > { %v16531_v16 = vmax.f32 %v20750_v37, %v20445_v9  ;;  %v16539_v49 = vadd.f32 %v20751_v17, %v16328_v7  ;;  %v20444_v28 = vmax.f32 %v16515_v20, 0.0  ;;  %v4572_v21 = vmul.f32 %v15704_v55, %v4496_v22  ;;  %6567 = vmatprep.subr.mxu0 %v16272_v48  ;;  %6358 = vmatmul.mubr.f32.gmra.mxu1 %v16272_v48  ;;  %v20754_v10 = vld [vmem:[#allocation21_spill] sm:$0xff]  ;;  %v4335_v22 = vpop.f32.mrf.mxu0 }
 0x31b   : > { %v4497_v4 = vadd.f32 %v4331_v60, %v4040_v29  ;;  %v16549_v59 = vadd.f32 %v20753_v58, %v20752_v8  ;;  %v16553_v7 = vadd.f32 %v15923_v19, %v16332_v6  ;;  %v16557_v37 = vadd.f32 %v15929_v54, %v20754_v10  ;;  %6568 = vmatpush2.msra.mxu0 %v6196_v51  ;;  %v6195_v29 = vld [vmem:[%s20421_s4 + $0x198] sm:$0xff]  ;;  %v16569_v19 = vpop.f32.mrf.mxu1  ;;  %v20758_v10 = vld [vmem:[#allocation58_spill] sm:$0xff] }
 0x31c   : > { %v4647_v17 = vadd.f32 %v16264_v13, %v4571_v0  ;;  %v20755_v60 = vmax.f32 %v16421_v57, 0.0  ;;  %20756 = vst [vmem:[#allocation23_spill] sm:$0xff] %v16569_v19  ;;  %v16572_v6 = vadd.f32 %v15720_v46, %v4572_v21  ;;  %v4498_v0 = vadd.f32 %v4335_v22, %v16077_v41  ;;  %6569 = vmatprep.subr.mxu0 %v16272_v48  ;;  %v20757_v51 = vld [vmem:[#allocation56_spill] sm:$0xff]  ;;  %v5258_v21 = vld [vmem:[#allocation4 + $0x11] sm:$0xff]  ;;  %v5259_v9 = vld [vmem:[#allocation4 + $0x19] sm:$0x7f] }
 0x31d   : > { %v4573_v54 = vmul.f32 %v16256_v43, %v4497_v4  ;;  %v16579_v58 = vadd.f32 %v20757_v51, %v16336_v42  ;;  %v16583_v57 = vadd.f32 %v20758_v10, %v16344_v30  ;;  %v4337_v4 = vpop.f32.mrf.mxu0  ;;  %6570 = vmatpush2.msra.mxu0 %v6195_v29  ;;  %v20760_v41 = vmax.f32 %v16391_v53, 0.0  ;;  %v20761_v30 = vld [vmem:[#allocation60_spill] sm:$0xff] }
 0x31e   : > { %v16567_v8 = vmax.f32 %v20755_v60, %v20444_v28  ;;  %v20759_v60 = vld [vmem:[#allocation39_spill] sm:$0xff]  ;;  %v5227_v28 = vld [vmem:[#allocation4 + $0x18] sm:$0x7f]  ;;  %v4711_v19 = vmax.f32 %v4647_v17, 0.0  ;;  %v4712_v42 = vmax.f32 %v16572_v6, 0.0  ;;  %6571 = vmatprep.subr.mxu0 %v16272_v48  ;;  %v16601_v17 = vadd.f32 %v20761_v30, %v16354_v63  ;;  %v16610_v63 = vpop.f32.mrf.mxu1 }
 0x31f   : > { %v4042_v5 = vadd.f32 %v16082_v1, %v20759_v60  ;;  %v16589_v22 = vmax.f32 %v20760_v41, %v5258_v21  ;;  %v5291_v33 = vmax.f32 %v5227_v28, %v5259_v9  ;;  %v16593_v51 = vadd.f32 %v16264_v13, %v4573_v54  ;;  %v6194_v1 = vld [vmem:[%s20421_s4 + $0x190] sm:$0xff]  ;;  %v5353_v29 = vld [vmem:[#allocation4 + $0x8] sm:$0x3f]  ;;  %v4341_v60 = vpop.f32.mrf.mxu0 }
 0x320   : > { %v4044_v53 = vadd.f32 %v16108_v38, %v16379_v39  ;;  %v5384_v9 = vld [vmem:[#allocation4 + $0x2] sm:$0xff]  ;;  %v5385_v28 = vld [vmem:[#allocation4 + $0xa] sm:$0x3f]  ;;  %4801 = vst [vmem:[#allocation4 + $0x28] sm:$0xff] %v4711_v19  ;;  %v4574_v54 = vmul.f32 %v15704_v55, %v4498_v0  ;;  %6572 = vmatpush2.msra.mxu0 %v6194_v1  ;;  %v20762_v38 = vmax.f32 %v16480_v36, 0.0  ;;  %v4500_v36 = vadd.f32 %v4341_v60, %v16103_v26  ;;  %v6192_v1 = vld [vmem:[%s20421_s4 + $0x180] sm:$0xff] }
 0x321   : > { %v4499_v10 = vadd.f32 %v4337_v4, %v4042_v5  ;;  %v16607_v21 = vmax.f32 %v16485_v35, %v5384_v9  ;;  %v5417_v41 = vmax.f32 %v5353_v29, %v5385_v28  ;;  %5322 = vst [vmem:[#allocation4 + $0x10] sm:$0xff] %v16589_v22  ;;  %5323 = vst [vmem:[#allocation4 + $0x18] sm:$0x7f] %v5291_v33  ;;  %v20448_v19 = vmax.f32 %v16593_v51, 0.0  ;;  %v6193_v35 = vld [vmem:[%s20421_s4 + $0x188] sm:$0xff]  ;;  %v4343_v4 = vpop.f32.mrf.mxu0 }
 0x322   : > { %v16616_v39 = vmax.f32 %v20762_v38, %v4712_v42  ;;  %6573 = vmatprep.subr.mxu0 %v16272_v48  ;;  %v16625_v5 = vadd.f32 %v15978_v12, %v16358_v45  ;;  %v16628_v33 = vadd.f32 %v15720_v46, %v4574_v54  ;;  %v16637_v30 = vadd.f32 %v15990_v31, %v16362_v2  ;;  %v20763_v12 = vld [vmem:[#allocation64_spill] sm:$0xff]  ;;  %v20764_v9 = vld [vmem:[#allocation66_spill] sm:$0xff] }
 0x323   : > { %v4575_v0 = vmul.f32 %v16256_v43, %v4499_v10  ;;  %6574 = vmatpush2.msra.mxu0 %v6193_v35  ;;  %v16641_v45 = vadd.f32 %v20763_v12, %v16376_v18  ;;  %5448 = vst [vmem:[#allocation4] sm:$0xff] %v16607_v21  ;;  %5449 = vst [vmem:[#allocation4 + $0x8] sm:$0x3f] %v5417_v41  ;;  %v4501_v29 = vadd.f32 %v4343_v4, %v4044_v53  ;;  %v4347_v54 = vpop.f32.mrf.mxu0  ;;  %v20765_v10 = vld [vmem:[#allocation68_spill] sm:$0xff]  ;;  %v16662_v41 = vpop.f32.mrf.mxu1  ;;  %v20767_v35 = vld [vmem:[#allocation70_spill] sm:$0xff] }
 0x324   : > { %4802 = vst [vmem:[#allocation4 + $0x30] sm:$0xff] %v20448_v19  ;;  %6575 = vmatprep.subr.mxu0 %v16272_v48  ;;  %v16651_v31 = vadd.f32 %v20764_v9, %v16383_v61  ;;  %v4714_v2 = vmax.f32 %v16628_v33, 0.0  ;;  %v4576_v28 = vmul.f32 %v15704_v55, %v4500_v36  ;;  %v16658_v60 = vadd.f32 %v20765_v10, %v16401_v40 }
 0x325   : > { %v4651_v18 = vadd.f32 %v16264_v13, %v4575_v0  ;;  %6576 = vmatpush2.msra.mxu0 %v6192_v1  ;;  %v4046_v53 = vadd.f32 %v16134_v11, %v16397_v34  ;;  %v4577_v61 = vmul.f32 %v16256_v43, %v4501_v29  ;;  %v4502_v38 = vadd.f32 %v4347_v54, %v16129_v50  ;;  %v4349_v11 = vpop.f32.mrf.mxu0  ;;  %v20770_v34 = vld [vmem:[#allocation72_spill] sm:$0xff] }
 0x326   : > { %20766 = vst [vmem:[#allocation11_spill] sm:$0xff] %v16658_v60  ;;  %6963 = vmatprep.subr.mxu0 %v16272_v48  ;;  %v16669_v33 = vadd.f32 %v20767_v35, %v16428_v25  ;;  %v20769_v0 = vmax.f32 %v16515_v20, 0.0  ;;  %v16676_v4 = vadd.f32 %v15720_v46, %v4576_v28  ;;  %v16680_v1 = vadd.f32 %v20770_v34, %v16450_v52  ;;  %v20783_v52 = vld [vmem:[#allocation22_spill] sm:$0xff]  ;;  %v20813_v60 = vld [vmem:[#allocation92_spill] sm:$0xff] }
 0x327   : > { %v4715_v40 = vmax.f32 %v4651_v18, 0.0  ;;  %v5229_v50 = vld [vmem:[#allocation4 + $0x28] sm:$0x7f]  ;;  %v16683_v9 = vadd.f32 %v16264_v13, %v4577_v61  ;;  %v4578_v25 = vmul.f32 %v15704_v55, %v4502_v38  ;;  %v4503_v20 = vadd.f32 %v4349_v11, %v4046_v53  ;;  %v4353_v26 = vpop.f32.mrf.mxu0  ;;  %v16696_v53 = vpop.f32.mrf.mxu1 }
 0x328   : > { %20768 = vst [vmem:[#allocation24_spill] sm:$0xff] %v16669_v33  ;;  %v16673_v36 = vmax.f32 %v20769_v0, %v4714_v2  ;;  %20771 = vst [vmem:[#allocation32_spill] sm:$0xff] %v16680_v1  ;;  %v5260_v12 = vld [vmem:[#allocation4 + $0x21] sm:$0xff]  ;;  %v5261_v29 = vld [vmem:[#allocation4 + $0x29] sm:$0x7f]  ;;  %v20772_v28 = vmax.f32 %v16488_v15, 0.0 }
 0x329   : > { %v5355_v54 = vld [vmem:[#allocation4 + $0x18] sm:$0x3f]  ;;  %v5293_v0 = vmax.f32 %v5229_v50, %v5261_v29  ;;  %4803 = vst [vmem:[#allocation4 + $0x38] sm:$0xff] %v4715_v40  ;;  %v20447_v34 = vmax.f32 %v16676_v4, 0.0  ;;  %v20446_v11 = vmax.f32 %v16683_v9, 0.0  ;;  %v16700_v15 = vadd.f32 %v15720_v46, %v4578_v25 }
 0x32a   : > { %v5386_v10 = vld [vmem:[#allocation4 + $0x12] sm:$0xff]  ;;  %v5387_v18 = vld [vmem:[#allocation4 + $0x1a] sm:$0x3f]  ;;  %v16688_v35 = vmax.f32 %v20772_v28, %v5260_v12  ;;  %v4048_v40 = vadd.f32 %v16160_v23, %v16404_v14  ;;  %v5481_v29 = vld [vmem:[#allocation4 + $0x8] sm:$0xf]  ;;  %v4579_v25 = vmul.f32 %v16256_v43, %v4503_v20 }
 0x32b   : > { %v16694_v61 = vmax.f32 %v16589_v22, %v5386_v10  ;;  %v5419_v38 = vmax.f32 %v5355_v54, %v5387_v18  ;;  %v20773_v50 = vld [vmem:[#allocation74_spill] sm:$0xff]  ;;  %v5513_v28 = vld [vmem:[#allocation4 + $0xc] sm:$0xf]  ;;  %5325 = vst [vmem:[#allocation4 + $0x28] sm:$0x7f] %v5293_v0  ;;  %v16713_v22 = vmax.f32 %v4712_v42, %v20447_v34  ;;  %v4355_v54 = vpop.f32.mrf.mxu0  ;;  %4804 = vst [vmem:[#allocation4 + $0x40] sm:$0xff] %v20446_v11  ;;  %v16734_v11 = vpop.f32.mrf.mxu1 }
 0x32c   : > { %v16704_v12 = vadd.f32 %v20773_v50, %v16475_v24  ;;  %5324 = vst [vmem:[#allocation4 + $0x20] sm:$0xff] %v16688_v35  ;;  %v20775_v24 = vld [vmem:[#allocation77_spill] sm:$0xff]  ;;  %v5545_v18 = vmax.f32 %v5481_v29, %v5513_v28  ;;  %v20449_v23 = vmax.f32 %v16700_v15, 0.0  ;;  %v20777_v14 = vld [vmem:[#allocation75_spill] sm:$0xff]  ;;  %v20778_v42 = vld [vmem:[#allocation10_spill] sm:$0xff]  ;;  %v4505_v29 = vadd.f32 %v4355_v54, %v4048_v40 }
 0x32d   : > { %v16718_v10 = vadd.f32 %v20775_v24, %v16501_v47  ;;  %5450 = vst [vmem:[#allocation4 + $0x10] sm:$0xff] %v16694_v61  ;;  %5451 = vst [vmem:[#allocation4 + $0x18] sm:$0x3f] %v5419_v38  ;;  %v4504_v6 = vadd.f32 %v4353_v26, %v20777_v14  ;;  %v20779_v0 = vld [vmem:[#allocation80_spill] sm:$0xff]  ;;  %v4655_v47 = vadd.f32 %v16264_v13, %v4579_v25  ;;  %v4359_v28 = vpop.f32.mrf.mxu0  ;;  %v20780_v38 = vld [vmem:[#allocation81_spill] sm:$0xff] }
 0x32e   : > { %20774 = vst [vmem:[#allocation25_spill] sm:$0xff] %v16704_v12  ;;  %v4050_v50 = vadd.f32 %v20779_v0, %v20778_v42  ;;  %v5512_v20 = vld [vmem:[#allocation4 + $0x4] sm:$0xff]  ;;  %v16732_v24 = vadd.f32 %v20780_v38, %v16525_v3  ;;  %v16738_v26 = vmax.f32 %v4714_v2, %v20449_v23  ;;  %v20782_v42 = vld [vmem:[#allocation78_spill] sm:$0xff]  ;;  %v20785_v40 = vld [vmem:[#allocation85_spill] sm:$0xff]  ;;  %v16764_v12 = vpop.f32.mrf.mxu1 }
 0x32f   : > { %20776 = vst [vmem:[#allocation12_spill] sm:$0xff] %v16718_v10  ;;  %5577 = vst [vmem:[#allocation4 + $0x8] sm:$0xf] %v5545_v18  ;;  %v4580_v14 = vmul.f32 %v15704_v55, %v4504_v6  ;;  %v4506_v0 = vadd.f32 %v4359_v28, %v20782_v42  ;;  %v20784_v34 = vld [vmem:[#allocation84_spill] sm:$0xff]  ;;  %v16746_v54 = vadd.f32 %v20785_v40, %v16549_v59  ;;  %v4719_v3 = vmax.f32 %v4655_v47, 0.0  ;;  %v4361_v38 = vpop.f32.mrf.mxu0 }
 0x330   : > { %20781 = vst [vmem:[#allocation13_spill] sm:$0xff] %v16732_v24  ;;  %v4052_v25 = vadd.f32 %v20784_v34, %v20783_v52  ;;  %v4581_v18 = vmul.f32 %v16256_v43, %v4505_v29  ;;  %v5231_v19 = vld [vmem:[#allocation4 + $0x38] sm:$0x7f]  ;;  %v4507_v52 = vadd.f32 %v4361_v38, %v4050_v50  ;;  %v20787_v34 = vld [vmem:[#allocation88_spill] sm:$0xff]  ;;  %v20788_v47 = vmax.f32 %v16593_v51, 0.0 }
 0x331   : > { %20786 = vst [vmem:[#allocation14_spill] sm:$0xff] %v16746_v54  ;;  %v5262_v24 = vld [vmem:[#allocation4 + $0x31] sm:$0xff]  ;;  %v5263_v10 = vld [vmem:[#allocation4 + $0x39] sm:$0x7f]  ;;  %v16752_v6 = vadd.f32 %v15720_v46, %v4580_v14  ;;  %v4582_v28 = vmul.f32 %v15704_v55, %v4506_v0  ;;  %v4054_v59 = vadd.f32 %v20787_v34, %v16497_v62  ;;  %4805 = vst [vmem:[#allocation4 + $0x48] sm:$0xff] %v4719_v3  ;;  %v4365_v23 = vpop.f32.mrf.mxu0 }
 0x332   : > { %v16759_v42 = vmax.f32 %v20788_v47, %v5262_v24  ;;  %v5295_v29 = vmax.f32 %v5231_v19, %v5263_v10  ;;  %v16762_v40 = vadd.f32 %v16264_v13, %v4581_v18  ;;  %v5357_v2 = vld [vmem:[#allocation4 + $0x28] sm:$0x3f]  ;;  %v4583_v62 = vmul.f32 %v16256_v43, %v4507_v52  ;;  %v20789_v51 = vld [vmem:[#allocation82_spill] sm:$0xff]  ;;  %v20790_v19 = vld [vmem:[#allocation89_spill] sm:$0xff] }
 0x333   : > { %v5388_v54 = vld [vmem:[#allocation4 + $0x22] sm:$0xff]  ;;  %v5389_v14 = vld [vmem:[#allocation4 + $0x2a] sm:$0x3f]  ;;  %v16768_v0 = vadd.f32 %v15720_v46, %v4582_v28  ;;  %v4508_v24 = vadd.f32 %v4365_v23, %v20789_v51  ;;  %v16774_v10 = vadd.f32 %v20790_v19, %v16557_v37  ;;  %v4367_v47 = vpop.f32.mrf.mxu0  ;;  %v5544_v52 = vmax.f32 %v16607_v21, %v5512_v20 }
 0x334   : > { %v5483_v3 = vld [vmem:[#allocation4 + $0x18] sm:$0xf]  ;;  %v5515_v18 = vld [vmem:[#allocation4 + $0x1c] sm:$0xf]  ;;  %v16777_v38 = vmax.f32 %v16688_v35, %v5388_v54  ;;  %v5421_v34 = vmax.f32 %v5357_v2, %v5389_v14  ;;  %5326 = vst [vmem:[#allocation4 + $0x30] sm:$0xff] %v16759_v42  ;;  %v20450_v28 = vmax.f32 %v16762_v40, 0.0  ;;  %v4659_v21 = vadd.f32 %v16264_v13, %v4583_v62 }
 0x335   : > { %20791 = vst [vmem:[#allocation15_spill] sm:$0xff] %v16774_v10  ;;  %5327 = vst [vmem:[#allocation4 + $0x38] sm:$0x7f] %v5295_v29  ;;  %v5547_v50 = vmax.f32 %v5483_v3, %v5515_v18  ;;  %v20792_v23 = vmax.f32 %v16752_v6, 0.0  ;;  %v20793_v37 = vmax.f32 %v16676_v4, 0.0  ;;  %v20451_v19 = vmax.f32 %v16768_v0, 0.0  ;;  %v4371_v29 = vpop.f32.mrf.mxu0  ;;  %v16798_v18 = vpop.f32.mrf.mxu1 }
 0x336   : > { %v20794_v35 = vld [vmem:[#allocation49_spill] sm:$0xff]  ;;  %v20795_v54 = vld [vmem:[#allocation90_spill] sm:$0xff]  ;;  %v5624_v14 = vld [vmem:[#allocation4 + $0x8] sm:$0xff]  ;;  %5452 = vst [vmem:[#allocation4 + $0x20] sm:$0xff] %v16777_v38  ;;  %v4584_v4 = vmul.f32 %v15704_v55, %v4508_v24  ;;  %v4509_v20 = vadd.f32 %v4367_v47, %v4052_v25  ;;  %v4723_v25 = vmax.f32 %v4659_v21, 0.0 }
 0x337   : > { %v16786_v51 = vmax.f32 %v20793_v37, %v20792_v23  ;;  %v4055_v2 = vadd.f32 %v20795_v54, %v20794_v35  ;;  %v16791_v10 = vld [vmem:[#allocation4 + $0x14] sm:$0xff]  ;;  %5453 = vst [vmem:[#allocation4 + $0x28] sm:$0x3f] %v5421_v34  ;;  %4806 = vst [vmem:[#allocation4 + $0x50] sm:$0xff] %v20450_v28  ;;  %v5640_v3 = vmax.f32 %v5544_v52, %v5624_v14  ;;  %v20796_v34 = vmax.f32 %v16700_v15, 0.0  ;;  %v20798_v62 = vld [vmem:[#allocation91_spill] sm:$0xff]  ;;  %v4373_v52 = vpop.f32.mrf.mxu0 }
 0x338   : > { %5579 = vst [vmem:[#allocation4 + $0x18] sm:$0xf] %v5547_v50  ;;  %v20797_v35 = vld [vmem:[#allocation86_spill] sm:$0xff]  ;;  %v4056_v24 = vadd.f32 %v20798_v62, %v16521_v27  ;;  %v16812_v47 = vadd.f32 %v15720_v46, %v4584_v4  ;;  %v4585_v50 = vmul.f32 %v16256_v43, %v4509_v20  ;;  %v20799_v14 = vld [vmem:[#allocation93_spill] sm:$0xff]  ;;  %v5233_v15 = vld [vmem:[#allocation4 + $0x48] sm:$0x7f]  ;;  %v4511_v21 = vadd.f32 %v4373_v52, %v4054_v59  ;;  %v16834_v59 = vpop.f32.mrf.mxu1 }
 0x339   : > { %v16806_v37 = vmax.f32 %v20796_v34, %v20451_v19  ;;  %v4510_v54 = vadd.f32 %v4371_v29, %v20797_v35  ;;  %v16817_v23 = vadd.f32 %v20799_v14, %v16539_v49  ;;  %5656 = vst [vmem:[#allocation4] sm:$0xff] %v5640_v3  ;;  %v5264_v34 = vld [vmem:[#allocation4 + $0x41] sm:$0xff]  ;;  %v5265_v28 = vld [vmem:[#allocation4 + $0x49] sm:$0x7f]  ;;  %v20800_v4 = vmax.f32 %v16683_v9, 0.0  ;;  %4807 = vst [vmem:[#allocation4 + $0x58] sm:$0xff] %v4723_v25  ;;  %v4377_v3 = vpop.f32.mrf.mxu0 }
 0x33a   : > { %v5297_v20 = vmax.f32 %v5233_v15, %v5265_v28  ;;  %v20452_v62 = vmax.f32 %v16812_v47, 0.0  ;;  %v16828_v49 = vadd.f32 %v16264_v13, %v4585_v50  ;;  %v20801_v14 = vld [vmem:[#allocation54_spill] sm:$0xff]  ;;  %v20802_v19 = vld [vmem:[#allocation27_spill] sm:$0xff]  ;;  %20803 = vst [vmem:[#allocation26_spill] sm:$0xff] %v16834_v59  ;;  %v4587_v28 = vmul.f32 %v16256_v43, %v4511_v21 }
 0x33b   : > { %v4586_v27 = vmul.f32 %v15704_v55, %v4510_v54  ;;  %v16824_v35 = vmax.f32 %v20800_v4, %v5264_v34  ;;  %v16832_v1 = vadd.f32 %v20802_v19, %v20801_v14  ;;  %v4512_v25 = vadd.f32 %v4377_v3, %v4055_v2  ;;  %v20807_v14 = vld [vmem:[#allocation28_spill] sm:$0xff] }
 0x33c   : > { %v5359_v29 = vld [vmem:[#allocation4 + $0x38] sm:$0x3f]  ;;  %5329 = vst [vmem:[#allocation4 + $0x48] sm:$0x7f] %v5297_v20  ;;  %v20804_v19 = vmax.f32 %v16752_v6, 0.0  ;;  %v20453_v34 = vmax.f32 %v16828_v49, 0.0  ;;  %v5546_v21 = vmax.f32 %v16694_v61, %v16791_v10 }
 0x33d   : > { %v5390_v33 = vld [vmem:[#allocation4 + $0x32] sm:$0xff]  ;;  %v5391_v54 = vld [vmem:[#allocation4 + $0x3a] sm:$0x3f]  ;;  %v16837_v9 = vadd.f32 %v15720_v46, %v4586_v27  ;;  %5328 = vst [vmem:[#allocation4 + $0x40] sm:$0xff] %v16824_v35  ;;  %v4379_v27 = vpop.f32.mrf.mxu0  ;;  %v20806_v6 = vld [vmem:[#allocation55_spill] sm:$0xff] }
 0x33e   : > { %v16841_v52 = vmax.f32 %v16759_v42, %v5390_v33  ;;  %v5423_v50 = vmax.f32 %v5359_v29, %v5391_v54  ;;  %v16848_v15 = vmax.f32 %v20804_v19, %v20452_v62  ;;  %v5485_v2 = vld [vmem:[#allocation4 + $0x28] sm:$0xf]  ;;  %v5517_v4 = vld [vmem:[#allocation4 + $0x2c] sm:$0xf]  ;;  %v4663_v42 = vadd.f32 %v16264_v13, %v4587_v28  ;;  %v20805_v20 = vld [vmem:[#allocation9_spill] sm:$0xff]  ;;  %4808 = vst [vmem:[#allocation4 + $0x60] sm:$0xff] %v20453_v34 }
 0x33f   : > { %v20454_v33 = vmax.f32 %v16837_v9, 0.0  ;;  %v4588_v29 = vmul.f32 %v15704_v55, %v4512_v25  ;;  %v16858_v3 = vadd.f32 %v20805_v20, %v16553_v7  ;;  %v16862_v54 = vadd.f32 %v20807_v14, %v20806_v6  ;;  %v5625_v19 = vld [vmem:[#allocation4 + $0x18] sm:$0xff]  ;;  %v4383_v10 = vpop.f32.mrf.mxu0  ;;  %v16869_v25 = vld [vmem:[#allocation4 + $0x24] sm:$0xff]  ;;  %v16871_v7 = vpop.f32.mrf.mxu1  ;;  %v20811_v61 = vld [vmem:[#allocation57_spill] sm:$0xff] }
 0x340   : > { %v5549_v62 = vmax.f32 %v5485_v2, %v5517_v4  ;;  %5454 = vst [vmem:[#allocation4 + $0x30] sm:$0xff] %v16841_v52  ;;  %5455 = vst [vmem:[#allocation4 + $0x38] sm:$0x3f] %v5423_v50  ;;  %v5641_v28 = vmax.f32 %v5546_v21, %v5625_v19  ;;  %v20809_v20 = vmax.f32 %v16768_v0, 0.0  ;;  %v4727_v4 = vmax.f32 %v4663_v42, 0.0  ;;  %v20810_v6 = vld [vmem:[#allocation8_spill] sm:$0xff] }
 0x341   : > { %20808 = vst [vmem:[#allocation33_spill] sm:$0xff] %v16871_v7  ;;  %v16880_v50 = vadd.f32 %v15720_v46, %v4588_v29  ;;  %v16884_v14 = vadd.f32 %v20810_v6, %v16579_v58  ;;  %v20812_v21 = vld [vmem:[#allocation30_spill] sm:$0xff]  ;;  %v4513_v34 = vadd.f32 %v4379_v27, %v4056_v24  ;;  %v4514_v7 = vadd.f32 %v4383_v10, %v20813_v60  ;;  %v4385_v59 = vpop.f32.mrf.mxu0  ;;  %v20814_v0 = vld [vmem:[#allocation20_spill] sm:$0xff] }
 0x342   : > { %v16877_v2 = vmax.f32 %v20809_v20, %v20454_v33  ;;  %v16888_v19 = vadd.f32 %v20812_v21, %v20811_v61  ;;  %5581 = vst [vmem:[#allocation4 + $0x28] sm:$0xf] %v5549_v62  ;;  %5657 = vst [vmem:[#allocation4 + $0x10] sm:$0xff] %v5641_v28  ;;  %v16893_v42 = vadd.f32 %v20814_v0, %v16583_v57  ;;  %v5235_v29 = vld [vmem:[#allocation4 + $0x58] sm:$0x7f]  ;;  %v20815_v24 = vmax.f32 %v16762_v40, 0.0  ;;  %v16915_v0 = vpop.f32.mrf.mxu1 }
 0x343   : > { %v5266_v20 = vld [vmem:[#allocation4 + $0x51] sm:$0xff]  ;;  %v5267_v33 = vld [vmem:[#allocation4 + $0x59] sm:$0x7f]  ;;  %4809 = vst [vmem:[#allocation4 + $0x68] sm:$0xff] %v4727_v4  ;;  %v20455_v61 = vmax.f32 %v16880_v50, 0.0  ;;  %v4515_v62 = vadd.f32 %v4385_v59, %v16817_v23  ;;  %v4589_v10 = vmul.f32 %v16256_v43, %v4513_v34  ;;  %v4590_v57 = vmul.f32 %v15704_v55, %v4514_v7  ;;  %v4389_v28 = vpop.f32.mrf.mxu0  ;;  %v6223_v6 = vld [vmem:[%s20421_s4 + $0x278] sm:$0xff] }
 0x344   : > { %v16901_v60 = vmax.f32 %v20815_v24, %v5266_v20  ;;  %v5299_v27 = vmax.f32 %v5235_v29, %v5267_v33  ;;  %v6222_v4 = vld [vmem:[%s20421_s4 + $0x270] sm:$0xff]  ;;  %v5361_v40 = vld [vmem:[#allocation4 + $0x48] sm:$0x3f]  ;;  %20817 = vst [vmem:[#allocation34_spill] sm:$0xff] %v16915_v0  ;;  %v20818_v34 = vmax.f32 %v16812_v47, 0.0  ;;  %v4516_v20 = vadd.f32 %v4389_v28, %v16832_v1  ;;  %6739 = vmatpush1.msra.mxu1 %v6223_v6  ;;  %v6221_v1 = vld [vmem:[%s20421_s4 + $0x268] sm:$0xff] }
 0x345   : > { %v20816_v21 = vld [vmem:[#allocation59_spill] sm:$0xff]  ;;  %v5393_v33 = vld [vmem:[#allocation4 + $0x4a] sm:$0x3f]  ;;  %v4591_v29 = vmul.f32 %v16256_v43, %v4515_v62  ;;  %v16933_v58 = vadd.f32 %v15720_v46, %v4590_v57  ;;  %v4391_v47 = vpop.f32.mrf.mxu0  ;;  %6740 = vmatprep.subr.mxu1 %v16272_v48 }
 0x346   : > { %v16913_v23 = vadd.f32 %v16469_v56, %v20816_v21  ;;  %v5392_v59 = vld [vmem:[#allocation4 + $0x42] sm:$0xff]  ;;  %v16921_v7 = vmax.f32 %v20818_v34, %v20455_v61  ;;  %v5425_v56 = vmax.f32 %v5361_v40, %v5393_v33  ;;  %5330 = vst [vmem:[#allocation4 + $0x50] sm:$0xff] %v16901_v60  ;;  %5331 = vst [vmem:[#allocation4 + $0x58] sm:$0x7f] %v5299_v27  ;;  %6741 = vmatpush1.msra.mxu1 %v6222_v4 }
 0x347   : > { %v16926_v24 = vmax.f32 %v16824_v35, %v5392_v59  ;;  %v16930_v21 = vadd.f32 %v16264_v13, %v4589_v10  ;;  %v20819_v35 = vld [vmem:[#allocation31_spill] sm:$0xff]  ;;  %v5487_v28 = vld [vmem:[#allocation4 + $0x38] sm:$0xf]  ;;  %v5519_v6 = vld [vmem:[#allocation4 + $0x3c] sm:$0xf]  ;;  %v4667_v10 = vadd.f32 %v16264_v13, %v4591_v29  ;;  %v4592_v57 = vmul.f32 %v15704_v55, %v4516_v20  ;;  %v4395_v34 = vpop.f32.mrf.mxu0  ;;  %6742 = vmatprep.subr.mxu1 %v16272_v48 }
 0x348   : > { %v16941_v62 = vadd.f32 %v20819_v35, %v16601_v17  ;;  %v16945_v27 = vmax.f32 %v16786_v51, %v16921_v7  ;;  %v5548_v40 = vmax.f32 %v16777_v38, %v16869_v25  ;;  %v5551_v59 = vmax.f32 %v5487_v28, %v5519_v6  ;;  %5457 = vst [vmem:[#allocation4 + $0x48] sm:$0x3f] %v5425_v56  ;;  %v6220_v29 = vld [vmem:[%s20421_s4 + $0x260] sm:$0xff]  ;;  %v20821_v4 = vld [vmem:[#allocation23_spill] sm:$0xff]  ;;  %v16964_v28 = vpop.f32.mrf.mxu1 }
 0x349   : > { %5456 = vst [vmem:[#allocation4 + $0x40] sm:$0xff] %v16926_v24  ;;  %v20820_v20 = vld [vmem:[#allocation61_spill] sm:$0xff]  ;;  %v5626_v38 = vld [vmem:[#allocation4 + $0x28] sm:$0xff]  ;;  %20822 = vst [vmem:[#allocation40_spill] sm:$0xff] %v16964_v28  ;;  %v20823_v56 = vmax.f32 %v16417_v44, %v16616_v39  ;;  %v4731_v61 = vmax.f32 %v4667_v10, 0.0  ;;  %v16973_v33 = vadd.f32 %v15720_v46, %v4592_v57  ;;  %6743 = vmatpush1.msra.mxu1 %v6221_v1  ;;  %v20826_v10 = vmax.f32 %v16933_v58, 0.0 }
 0x34a   : > { %v16960_v35 = vadd.f32 %v20821_v4, %v20820_v20  ;;  %v16962_v25 = vld [vmem:[#allocation4 + $0x34] sm:$0xff]  ;;  %v6219_v20 = vld [vmem:[%s20421_s4 + $0x258] sm:$0xff]  ;;  %v5642_v4 = vmax.f32 %v5548_v40, %v5626_v38  ;;  %v16980_v17 = vadd.f32 %v16610_v63, %v16625_v5  ;;  %v20827_v1 = vmax.f32 %v16837_v9, 0.0  ;;  %v4397_v40 = vpop.f32.mrf.mxu0  ;;  %6744 = vmatprep.subr.mxu1 %v16272_v48 }
 0x34b   : > { %v16970_v6 = vmax.f32 %v20823_v56, %v16945_v27  ;;  %5583 = vst [vmem:[#allocation4 + $0x38] sm:$0xf] %v5551_v59  ;;  %v5237_v28 = vld [vmem:[#allocation4 + $0x68] sm:$0x7f]  ;;  %v20825_v56 = vmax.f32 %v16930_v21, 0.0  ;;  %v20828_v63 = vmax.f32 %v16828_v49, 0.0  ;;  %6745 = vmatpush1.msra.mxu1 %v6220_v29 }
 0x34c   : > { %v5268_v0 = vld [vmem:[#allocation4 + $0x61] sm:$0xff]  ;;  %v5269_v44 = vld [vmem:[#allocation4 + $0x69] sm:$0x7f]  ;;  %v16988_v57 = vmax.f32 %v20827_v1, %v20826_v10  ;;  %4811 = vst [vmem:[#allocation4 + $0x78] sm:$0xff] %v4731_v61  ;;  %v20456_v38 = vmax.f32 %v16973_v33, 0.0  ;;  %5658 = vst [vmem:[#allocation4 + $0x20] sm:$0xff] %v5642_v4  ;;  %6746 = vmatprep.subr.mxu1 %v16272_v48  ;;  %v17014_v61 = vadd.f32 %v16696_v53, %v16637_v30 }
 0x34d   : > { %20824 = vst [vmem:[#allocation41_spill] sm:$0xff] %v16970_v6  ;;  %4810 = vst [vmem:[#allocation4 + $0x70] sm:$0xff] %v20825_v56  ;;  %v4517_v6 = vadd.f32 %v4391_v47, %v16858_v3  ;;  %v16994_v5 = vmax.f32 %v20828_v63, %v5268_v0  ;;  %v5301_v59 = vmax.f32 %v5237_v28, %v5269_v44  ;;  %v20829_v9 = vld [vmem:[#allocation62_spill] sm:$0xff]  ;;  %v4401_v47 = vpop.f32.mrf.mxu0  ;;  %6747 = vmatpush1.msra.mxu1 %v6219_v20 }
 0x34e   : > { %v4518_v56 = vadd.f32 %v4395_v34, %v16862_v54  ;;  %v17000_v10 = vadd.f32 %v16662_v41, %v20829_v9  ;;  %v17004_v3 = vmax.f32 %v16806_v37, %v16988_v57  ;;  %v4519_v0 = vadd.f32 %v4397_v40, %v16884_v14  ;;  %v6218_v54 = vld [vmem:[%s20421_s4 + $0x250] sm:$0xff]  ;;  %v17016_v41 = vpop.f32.mrf.mxu1  ;;  %v5363_v34 = vld [vmem:[#allocation4 + $0x58] sm:$0x3f]  ;;  %6748 = vmatprep.subr.mxu1 %v16272_v48 }
 0x34f   : > { %v4593_v49 = vmul.f32 %v16256_v43, %v4517_v6  ;;  %v5394_v29 = vld [vmem:[#allocation4 + $0x52] sm:$0xff]  ;;  %v5395_v28 = vld [vmem:[#allocation4 + $0x5a] sm:$0x3f]  ;;  %5332 = vst [vmem:[#allocation4 + $0x60] sm:$0xff] %v16994_v5  ;;  %5333 = vst [vmem:[#allocation4 + $0x68] sm:$0x7f] %v5301_v59  ;;  %v4520_v44 = vadd.f32 %v4401_v47, %v16888_v19  ;;  %v20831_v1 = vmax.f32 %v16467_v32, %v16673_v36  ;;  %6749 = vmatpush1.msra.mxu1 %v6218_v54 }
 0x350   : > { %v20830_v14 = vmax.f32 %v16880_v50, 0.0  ;;  %v4594_v4 = vmul.f32 %v15704_v55, %v4518_v56  ;;  %v17028_v30 = vmax.f32 %v16901_v60, %v5394_v29  ;;  %v5427_v53 = vmax.f32 %v5363_v34, %v5395_v28  ;;  %v4403_v50 = vpop.f32.mrf.mxu0  ;;  %v6217_v19 = vld [vmem:[%s20421_s4 + $0x248] sm:$0xff]  ;;  %v5489_v20 = vld [vmem:[#allocation4 + $0x48] sm:$0xf]  ;;  %v5521_v60 = vld [vmem:[#allocation4 + $0x4c] sm:$0xf] }
 0x351   : > { %v17034_v40 = vmax.f32 %v20831_v1, %v17004_v3  ;;  %v17037_v63 = vadd.f32 %v16264_v13, %v4593_v49  ;;  %v4595_v56 = vmul.f32 %v16256_v43, %v4519_v0  ;;  %v4596_v9 = vmul.f32 %v15704_v55, %v4520_v44  ;;  %v17057_v28 = vld [vmem:[#allocation5] sm:$0xff]  ;;  %v6216_v0 = vld [vmem:[%s20421_s4 + $0x240] sm:$0xff]  ;;  %v6215_v1 = vld [vmem:[%s20421_s4 + $0x238] sm:$0xff] }
 0x352   : > { %v17023_v6 = vmax.f32 %v20830_v14, %v20456_v38  ;;  %v17048_v32 = vadd.f32 %v15720_v46, %v4594_v4  ;;  %v5550_v48 = vmax.f32 %v16841_v52, %v16962_v25  ;;  %v5553_v49 = vmax.f32 %v5489_v20, %v5521_v60  ;;  %5458 = vst [vmem:[#allocation4 + $0x50] sm:$0xff] %v17028_v30  ;;  %v4407_v29 = vpop.f32.mrf.mxu0  ;;  %v5627_v54 = vld [vmem:[#allocation4 + $0x38] sm:$0xff]  ;;  %v17063_v14 = vld [vmem:[#allocation4 + $0x44] sm:$0xff]  ;;  %v17065_v52 = vpop.f32.mrf.mxu1 }
 0x353   : > { %20832 = vst [vmem:[#allocation29_spill] sm:$0xff] %v17034_v40  ;;  %5459 = vst [vmem:[#allocation4 + $0x58] sm:$0x3f] %v5427_v53  ;;  %v20457_v47 = vmax.f32 %v17037_v63, 0.0  ;;  %v4521_v34 = vadd.f32 %v4403_v50, %v16893_v42  ;;  %6750 = vmatprep.subr.mxu1 %v17057_v28  ;;  %v20833_v25 = vmax.f32 %v16531_v16, %v16713_v22  ;;  %v20834_v50 = vld [vmem:[#allocation63_spill] sm:$0xff]  ;;  %v20835_v42 = vmax.f32 %v16930_v21, 0.0 }
 0x354   : > { %v17045_v59 = vmax.f32 %v16848_v15, %v17023_v6  ;;  %v4671_v44 = vadd.f32 %v16264_v13, %v4595_v56  ;;  %v17076_v53 = vadd.f32 %v15720_v46, %v4596_v9  ;;  %6751 = vmatpush1.msra.mxu1 %v6217_v19  ;;  %v17083_v20 = vadd.f32 %v16734_v11, %v20834_v50  ;;  %v5239_v16 = vld [vmem:[#allocation4 + $0x78] sm:$0x7f]  ;;  %v4409_v9 = vpop.f32.mrf.mxu0 }
 0x355   : > { %v5643_v60 = vmax.f32 %v5550_v48, %v5627_v54  ;;  %5585 = vst [vmem:[#allocation4 + $0x48] sm:$0xf] %v5553_v49  ;;  %v5271_v38 = vld [vmem:[#allocation4 + $0x79] sm:$0x7f]  ;;  %4812 = vst [vmem:[#allocation4 + $0x80] sm:$0xff] %v20457_v47  ;;  %v4597_v56 = vmul.f32 %v16256_v43, %v4521_v34  ;;  %v4522_v19 = vadd.f32 %v4407_v29, %v16913_v23  ;;  %6752 = vmatprep.subr.mxu1 %v17057_v28  ;;  %v6214_v23 = vld [vmem:[%s20421_s4 + $0x230] sm:$0xff] }
 0x356   : > { %v17071_v4 = vmax.f32 %v20833_v25, %v17045_v59  ;;  %v5270_v25 = vld [vmem:[#allocation4 + $0x71] sm:$0xff]  ;;  %v5303_v11 = vmax.f32 %v5239_v16, %v5271_v38  ;;  %v20836_v48 = vmax.f32 %v17048_v32, 0.0  ;;  %v20837_v49 = vmax.f32 %v16933_v58, 0.0  ;;  %6753 = vmatpush1.msra.mxu1 %v6216_v0  ;;  %v5365_v34 = vld [vmem:[#allocation4 + $0x68] sm:$0x3f]  ;;  %v4413_v16 = vpop.f32.mrf.mxu0  ;;  %v17110_v0 = vpop.f32.mrf.mxu1 }
 0x357   : > { %v17092_v40 = vmax.f32 %v20835_v42, %v5270_v25  ;;  %v4735_v50 = vmax.f32 %v4671_v44, 0.0  ;;  %5659 = vst [vmem:[#allocation4 + $0x30] sm:$0xff] %v5643_v60  ;;  %v5396_v29 = vld [vmem:[#allocation4 + $0x62] sm:$0xff]  ;;  %v5397_v47 = vld [vmem:[#allocation4 + $0x6a] sm:$0x3f]  ;;  %v4736_v21 = vmax.f32 %v17076_v53, 0.0  ;;  %v17105_v38 = vadd.f32 %v16264_v13, %v4597_v56  ;;  %6754 = vmatprep.subr.mxu1 %v17057_v28 }
 0x358   : > { %v17098_v54 = vmax.f32 %v20837_v49, %v20836_v48  ;;  %v4598_v42 = vmul.f32 %v15704_v55, %v4522_v19  ;;  %v4523_v58 = vadd.f32 %v4409_v9, %v16941_v62  ;;  %v17113_v44 = vmax.f32 %v16994_v5, %v5396_v29  ;;  %5335 = vst [vmem:[#allocation4 + $0x78] sm:$0x7f] %v5303_v11  ;;  %v4415_v11 = vpop.f32.mrf.mxu0 }
 0x359   : > { %v5429_v60 = vmax.f32 %v5365_v34, %v5397_v47  ;;  %5334 = vst [vmem:[#allocation4 + $0x70] sm:$0xff] %v17092_v40  ;;  %4813 = vst [vmem:[#allocation4 + $0x88] sm:$0xff] %v4735_v50  ;;  %v4524_v56 = vadd.f32 %v4413_v16, %v16960_v35  ;;  %6755 = vmatpush1.msra.mxu1 %v6215_v1  ;;  %v20838_v62 = vmax.f32 %v16973_v33, 0.0  ;;  %v20458_v5 = vmax.f32 %v17105_v38, 0.0  ;;  %v6213_v35 = vld [vmem:[%s20421_s4 + $0x228] sm:$0xff] }
 0x35a   : > { %v17118_v25 = vmax.f32 %v16877_v2, %v17098_v54  ;;  %v17129_v47 = vadd.f32 %v15720_v46, %v4598_v42  ;;  %v4599_v9 = vmul.f32 %v16256_v43, %v4523_v58  ;;  %6756 = vmatprep.subr.mxu1 %v17057_v28  ;;  %v17138_v1 = vadd.f32 %v16764_v12, %v16641_v45  ;;  %v5491_v33 = vld [vmem:[#allocation4 + $0x58] sm:$0xf]  ;;  %v5523_v48 = vld [vmem:[#allocation4 + $0x5c] sm:$0xf]  ;;  %v4419_v58 = vpop.f32.mrf.mxu0 }
 0x35b   : > { %v17125_v19 = vmax.f32 %v20838_v62, %v4736_v21  ;;  %5460 = vst [vmem:[#allocation4 + $0x60] sm:$0xff] %v17113_v44  ;;  %5461 = vst [vmem:[#allocation4 + $0x68] sm:$0x3f] %v5429_v60  ;;  %v20839_v49 = vmax.f32 %v16567_v8, %v16738_v26  ;;  %v4600_v34 = vmul.f32 %v15704_v55, %v4524_v56  ;;  %6757 = vmatpush1.msra.mxu1 %v6214_v23  ;;  %v17162_v16 = vld [vmem:[#allocation4 + $0x54] sm:$0xff] }
 0x35c   : > { %v4525_v29 = vadd.f32 %v4415_v11, %v16980_v17  ;;  %v5552_v45 = vmax.f32 %v16926_v24, %v17063_v14  ;;  %v5555_v12 = vmax.f32 %v5491_v33, %v5523_v48  ;;  %4814 = vst [vmem:[#allocation4 + $0x90] sm:$0xff] %v20458_v5  ;;  %v20459_v8 = vmax.f32 %v17129_v47, 0.0  ;;  %6758 = vmatprep.subr.mxu1 %v17057_v28  ;;  %v6212_v17 = vld [vmem:[%s20421_s4 + $0x220] sm:$0xff]  ;;  %v5628_v23 = vld [vmem:[#allocation4 + $0x48] sm:$0xff]  ;;  %v17164_v24 = vpop.f32.mrf.mxu1 }
 0x35d   : > { %v17145_v50 = vmax.f32 %v20839_v49, %v17118_v25  ;;  %v17153_v42 = vmax.f32 %v16921_v7, %v17125_v19  ;;  %v4675_v7 = vadd.f32 %v16264_v13, %v4599_v9  ;;  %v17168_v14 = vadd.f32 %v15720_v46, %v4600_v34  ;;  %6759 = vmatpush1.msra.mxu1 %v6213_v35  ;;  %v20841_v62 = vld [vmem:[#allocation65_spill] sm:$0xff] }
 0x35e   : > { %v4601_v60 = vmul.f32 %v16256_v43, %v4525_v29  ;;  %v4526_v56 = vadd.f32 %v4419_v58, %v17000_v10  ;;  %v17174_v11 = vadd.f32 %v16798_v18, %v20841_v62  ;;  %v5644_v33 = vmax.f32 %v5552_v45, %v5628_v23  ;;  %5587 = vst [vmem:[#allocation4 + $0x58] sm:$0xf] %v5555_v12  ;;  %v4421_v10 = vpop.f32.mrf.mxu0  ;;  %v6211_v18 = vld [vmem:[%s20421_s4 + $0x218] sm:$0xff]  ;;  %v20844_v45 = vld [vmem:[#allocation26_spill] sm:$0xff]  ;;  %v20845_v58 = vld [vmem:[#allocation67_spill] sm:$0xff]  ;;  %v17214_v5 = vpop.f32.mrf.mxu1 }
 0x35f   : > { %20840 = vst [vmem:[#allocation42_spill] sm:$0xff] %v17145_v50  ;;  %v20842_v48 = vmax.f32 %v16616_v39, %v16786_v51  ;;  %v20843_v9 = vmax.f32 %v17048_v32, 0.0  ;;  %6760 = vmatprep.subr.mxu1 %v17057_v28  ;;  %v4739_v35 = vmax.f32 %v4675_v7, 0.0  ;;  %v4740_v29 = vmax.f32 %v17168_v14, 0.0  ;;  %v6210_v32 = vld [vmem:[%s20421_s4 + $0x210] sm:$0xff]  ;;  %v20846_v23 = vld [vmem:[#allocation33_spill] sm:$0xff] }
 0x360   : > { %v17194_v39 = vadd.f32 %v16264_v13, %v4601_v60  ;;  %v4602_v51 = vmul.f32 %v15704_v55, %v4526_v56  ;;  %6761 = vmatpush1.msra.mxu1 %v6212_v17  ;;  %v17202_v12 = vadd.f32 %v20844_v45, %v16651_v31  ;;  %v17206_v62 = vadd.f32 %v20846_v23, %v20845_v58  ;;  %v5367_v7 = vld [vmem:[#allocation4 + $0x78] sm:$0x3f]  ;;  %v5241_v58 = vld [vmem:[#allocation4 + $0x88] sm:$0x7f] }
 0x361   : > { %v17180_v49 = vmax.f32 %v20842_v48, %v17153_v42  ;;  %v17186_v34 = vmax.f32 %v20843_v9, %v20459_v8  ;;  %5660 = vst [vmem:[#allocation4 + $0x40] sm:$0xff] %v5644_v33  ;;  %v5398_v48 = vld [vmem:[#allocation4 + $0x72] sm:$0xff]  ;;  %v5399_v60 = vld [vmem:[#allocation4 + $0x7a] sm:$0x3f]  ;;  %v4527_v17 = vadd.f32 %v4421_v10, %v17014_v61  ;;  %v4425_v9 = vpop.f32.mrf.mxu0  ;;  %6762 = vmatprep.subr.mxu1 %v17057_v28  ;;  %v5272_v33 = vld [vmem:[#allocation4 + $0x81] sm:$0xff]  ;;  %v20847_v50 = vmax.f32 %v17037_v63, 0.0 }
 0x362   : > { %v17217_v31 = vmax.f32 %v17092_v40, %v5398_v48  ;;  %v5431_v45 = vmax.f32 %v5367_v7, %v5399_v60  ;;  %v5273_v23 = vld [vmem:[#allocation4 + $0x89] sm:$0x7f]  ;;  %4815 = vst [vmem:[#allocation4 + $0x98] sm:$0xff] %v4739_v35  ;;  %v20460_v61 = vmax.f32 %v17194_v39, 0.0  ;;  %6763 = vmatpush1.msra.mxu1 %v6211_v18  ;;  %v20848_v35 = vmax.f32 %v16673_v36, %v16806_v37  ;;  %v6209_v18 = vld [vmem:[%s20421_s4 + $0x208] sm:$0xff]  ;;  %v20849_v63 = vld [vmem:[#allocation11_spill] sm:$0xff] }
 0x363   : > { %v17210_v56 = vmax.f32 %v16988_v57, %v17186_v34  ;;  %v17223_v57 = vmax.f32 %v4736_v21, %v4740_v29  ;;  %v5493_v10 = vld [vmem:[#allocation4 + $0x68] sm:$0xf]  ;;  %v5525_v8 = vld [vmem:[#allocation4 + $0x6c] sm:$0xf]  ;;  %v17228_v40 = vmax.f32 %v20847_v50, %v5272_v33  ;;  %v5305_v7 = vmax.f32 %v5241_v58, %v5273_v23  ;;  %v4427_v21 = vpop.f32.mrf.mxu0  ;;  %6764 = vmatprep.subr.mxu1 %v17057_v28  ;;  %v20850_v50 = vld [vmem:[#allocation34_spill] sm:$0xff] }
 0x364   : > { %v17237_v53 = vadd.f32 %v15720_v46, %v4602_v51  ;;  %v17245_v60 = vadd.f32 %v20850_v50, %v20849_v63  ;;  %v5557_v58 = vmax.f32 %v5493_v10, %v5525_v8  ;;  %5462 = vst [vmem:[#allocation4 + $0x70] sm:$0xff] %v17217_v31  ;;  %5463 = vst [vmem:[#allocation4 + $0x78] sm:$0x3f] %v5431_v45  ;;  %6765 = vmatpush1.msra.mxu1 %v6210_v32  ;;  %v17257_v33 = vld [vmem:[#allocation4 + $0x64] sm:$0xff]  ;;  %v6208_v32 = vld [vmem:[%s20421_s4 + $0x200] sm:$0xff] }
 0x365   : > { %v17234_v48 = vmax.f32 %v20848_v35, %v17210_v56  ;;  %v17250_v36 = vmax.f32 %v17023_v6, %v17223_v57  ;;  %4816 = vst [vmem:[#allocation4 + $0xa0] sm:$0xff] %v20460_v61  ;;  %v4603_v37 = vmul.f32 %v16256_v43, %v4527_v17  ;;  %v5554_v51 = vmax.f32 %v17028_v30, %v17162_v16  ;;  %v4431_v23 = vpop.f32.mrf.mxu0  ;;  %v20851_v17 = vld [vmem:[#allocation69_spill] sm:$0xff]  ;;  %v20852_v30 = vld [vmem:[#allocation40_spill] sm:$0xff]  ;;  %v5629_v10 = vld [vmem:[#allocation4 + $0x58] sm:$0xff]  ;;  %v17271_v35 = vpop.f32.mrf.mxu1 }
 0x366   : > { %5336 = vst [vmem:[#allocation4 + $0x80] sm:$0xff] %v17228_v40  ;;  %5337 = vst [vmem:[#allocation4 + $0x88] sm:$0x7f] %v5305_v7  ;;  %v4742_v8 = vmax.f32 %v17237_v53, 0.0  ;;  %v4528_v45 = vadd.f32 %v4425_v9, %v17083_v20  ;;  %v4529_v6 = vadd.f32 %v4427_v21, %v17138_v1  ;;  %6766 = vmatprep.subr.mxu1 %v17057_v28  ;;  %v20854_v63 = vmax.f32 %v17129_v47, 0.0 }
 0x367   : > { %v17269_v16 = vadd.f32 %v20852_v30, %v20851_v17  ;;  %5589 = vst [vmem:[#allocation4 + $0x68] sm:$0xf] %v5557_v58  ;;  %v20853_v20 = vmax.f32 %v16713_v22, %v16848_v15  ;;  %v4679_v9 = vadd.f32 %v16264_v13, %v4603_v37  ;;  %v4530_v7 = vadd.f32 %v4431_v23, %v17174_v11  ;;  %v4433_v30 = vpop.f32.mrf.mxu0  ;;  %v6239_v22 = vld [vmem:[%s20421_s4 + $0x2f8] sm:$0xff] }
 0x368   : > { %6767 = vmatpush1.msra.mxu1 %v6209_v18  ;;  %v5645_v21 = vmax.f32 %v5554_v51, %v5629_v10  ;;  %v17285_v50 = vmax.f32 %v20854_v63, %v4742_v8  ;;  %v4604_v58 = vmul.f32 %v15704_v55, %v4528_v45  ;;  %v4605_v17 = vmul.f32 %v16256_v43, %v4529_v6  ;;  %v20855_v15 = vld [vmem:[#allocation24_spill] sm:$0xff]  ;;  %v6238_v51 = vld [vmem:[%s20421_s4 + $0x2f0] sm:$0xff] }
 0x369   : > { %v17277_v1 = vmax.f32 %v20853_v20, %v17250_v36  ;;  %6768 = vmatprep.subr.mxu1 %v17057_v28  ;;  %v17295_v11 = vadd.f32 %v17016_v41, %v20855_v15  ;;  %v4743_v18 = vmax.f32 %v4679_v9, 0.0  ;;  %v4606_v47 = vmul.f32 %v15704_v55, %v4530_v7  ;;  %v20856_v45 = vld [vmem:[#allocation71_spill] sm:$0xff]  ;;  %v5243_v23 = vld [vmem:[#allocation4 + $0x98] sm:$0x7f]  ;;  %v17317_v7 = vpop.f32.mrf.mxu1 }
 0x36a   : > { %v4531_v37 = vadd.f32 %v4433_v30, %v17202_v12  ;;  %6769 = vmatpush1.msra.mxu1 %v6208_v32  ;;  %v17304_v6 = vadd.f32 %v17065_v52, %v20856_v45  ;;  %5661 = vst [vmem:[#allocation4 + $0x50] sm:$0xff] %v5645_v21  ;;  %v5274_v10 = vld [vmem:[#allocation4 + $0x91] sm:$0xff]  ;;  %v5275_v20 = vld [vmem:[#allocation4 + $0x99] sm:$0x7f]  ;;  %v17308_v41 = vmax.f32 %v17098_v54, %v17285_v50  ;;  %v4437_v32 = vpop.f32.mrf.mxu0  ;;  %v20857_v52 = vmax.f32 %v17105_v38, 0.0  ;;  %v20858_v30 = vld [vmem:[#allocation32_spill] sm:$0xff] }
 0x36b   : > { %v17311_v9 = vadd.f32 %v15720_v46, %v4604_v58  ;;  %v17314_v12 = vadd.f32 %v16264_v13, %v4605_v17  ;;  %6770 = vmatprep.subr.mxu1 %v17057_v28  ;;  %v5307_v63 = vmax.f32 %v5243_v23, %v5275_v20  ;;  %4817 = vst [vmem:[#allocation4 + $0xa8] sm:$0xff] %v4743_v18  ;;  %v5495_v15 = vld [vmem:[#allocation4 + $0x78] sm:$0xf]  ;;  %v5527_v45 = vld [vmem:[#allocation4 + $0x7c] sm:$0xf] }
 0x36c   : > { %v17321_v21 = vmax.f32 %v20857_v52, %v5274_v10  ;;  %v17324_v54 = vadd.f32 %v15720_v46, %v4606_v47  ;;  %v4607_v58 = vmul.f32 %v16256_v43, %v4531_v37  ;;  %6771 = vmatpush2.msra.mxu1 %v6239_v22  ;;  %v17329_v17 = vadd.f32 %v17110_v0, %v20858_v30  ;;  %v4439_v23 = vpop.f32.mrf.mxu0  ;;  %v6237_v0 = vld [vmem:[%s20421_s4 + $0x2e8] sm:$0xff] }
 0x36d   : > { %v20859_v38 = vmax.f32 %v16738_v26, %v16877_v2  ;;  %v4744_v18 = vmax.f32 %v17311_v9, 0.0  ;;  %v4532_v47 = vadd.f32 %v4437_v32, %v17206_v62  ;;  %6772 = vmatprep.subr.mxu1 %v17057_v28  ;;  %v5556_v22 = vmax.f32 %v17113_v44, %v17257_v33  ;;  %v5369_v20 = vld [vmem:[#allocation4 + $0x88] sm:$0x3f]  ;;  %5339 = vst [vmem:[#allocation4 + $0x98] sm:$0x7f] %v5307_v63  ;;  %v17348_v30 = vld [vmem:[#allocation4 + $0x74] sm:$0xff] }
 0x36e   : > { %v5559_v37 = vmax.f32 %v5495_v15, %v5527_v45  ;;  %v5400_v52 = vld [vmem:[#allocation4 + $0x82] sm:$0xff]  ;;  %v5401_v26 = vld [vmem:[#allocation4 + $0x8a] sm:$0x3f]  ;;  %5338 = vst [vmem:[#allocation4 + $0x90] sm:$0xff] %v17321_v21  ;;  %v4745_v2 = vmax.f32 %v17314_v12, 0.0  ;;  %v4683_v62 = vadd.f32 %v16264_v13, %v4607_v58  ;;  %6773 = vmatpush2.msra.mxu1 %v6238_v51  ;;  %v4746_v33 = vmax.f32 %v17324_v54, 0.0  ;;  %v4443_v63 = vpop.f32.mrf.mxu0  ;;  %v17364_v15 = vpop.f32.mrf.mxu1 }
 0x36f   : > { %v17335_v10 = vmax.f32 %v20859_v38, %v17308_v41  ;;  %v5630_v32 = vld [vmem:[#allocation4 + $0x68] sm:$0xff]  ;;  %v17351_v38 = vmax.f32 %v17228_v40, %v5400_v52  ;;  %v5433_v61 = vmax.f32 %v5369_v20, %v5401_v26  ;;  %v17357_v44 = vmax.f32 %v4740_v29, %v4744_v18  ;;  %6774 = vmatprep.subr.mxu1 %v17057_v28  ;;  %v6236_v51 = vld [vmem:[%s20421_s4 + $0x2e0] sm:$0xff] }
 0x370   : > { %v5646_v58 = vmax.f32 %v5556_v22, %v5630_v32  ;;  %5591 = vst [vmem:[#allocation4 + $0x78] sm:$0xf] %v5559_v37  ;;  %4818 = vst [vmem:[#allocation4 + $0xb0] sm:$0xff] %v4745_v2  ;;  %v4747_v40 = vmax.f32 %v4683_v62, 0.0  ;;  %v4608_v14 = vmul.f32 %v15704_v55, %v4532_v47  ;;  %v4533_v29 = vadd.f32 %v4439_v23, %v17245_v60  ;;  %v20860_v45 = vld [vmem:[#allocation73_spill] sm:$0xff]  ;;  %v4445_v47 = vpop.f32.mrf.mxu0  ;;  %v20863_v9 = vld [vmem:[#allocation76_spill] sm:$0xff] }
 0x371   : > { %6775 = vmatpush2.msra.mxu1 %v6237_v0  ;;  %v17372_v20 = vadd.f32 %v17164_v24, %v20860_v45  ;;  %5464 = vst [vmem:[#allocation4 + $0x80] sm:$0xff] %v17351_v38  ;;  %5465 = vst [vmem:[#allocation4 + $0x88] sm:$0x3f] %v5433_v61  ;;  %v17377_v22 = vmax.f32 %v17125_v19, %v17357_v44  ;;  %v17383_v37 = vmax.f32 %v4742_v8, %v4746_v33  ;;  %v6235_v24 = vld [vmem:[%s20421_s4 + $0x2d8] sm:$0xff]  ;;  %v20861_v61 = vld [vmem:[#allocation25_spill] sm:$0xff] }
 0x372   : > { %v4534_v60 = vadd.f32 %v4443_v63, %v17269_v16  ;;  %6776 = vmatprep.subr.mxu1 %v17057_v28  ;;  %v17392_v23 = vadd.f32 %v17214_v5, %v20861_v61  ;;  %5662 = vst [vmem:[#allocation4 + $0x60] sm:$0xff] %v5646_v58  ;;  %4819 = vst [vmem:[#allocation4 + $0xb8] sm:$0xff] %v4747_v40  ;;  %v17395_v19 = vadd.f32 %v15720_v46, %v4608_v14  ;;  %v6234_v16 = vld [vmem:[%s20421_s4 + $0x2d0] sm:$0xff]  ;;  %v5245_v52 = vld [vmem:[#allocation4 + $0xa8] sm:$0x7f]  ;;  %v4449_v63 = vpop.f32.mrf.mxu0 }
 0x373   : > { %v4609_v53 = vmul.f32 %v16256_v43, %v4533_v29  ;;  %v4535_v8 = vadd.f32 %v4445_v47, %v17295_v11  ;;  %6777 = vmatpush2.msra.mxu1 %v6236_v51  ;;  %v5558_v0 = vmax.f32 %v17217_v31, %v17348_v30  ;;  %v5276_v5 = vld [vmem:[#allocation4 + $0xa1] sm:$0xff]  ;;  %v5277_v26 = vld [vmem:[#allocation4 + $0xa9] sm:$0x7f]  ;;  %v17408_v32 = vmax.f32 %v17186_v34, %v17383_v37  ;;  %v17412_v51 = vpop.f32.mrf.mxu1  ;;  %v6232_v54 = vld [vmem:[%s20421_s4 + $0x2c0] sm:$0xff] }
 0x374   : > { %v4610_v11 = vmul.f32 %v15704_v55, %v4534_v60  ;;  %6778 = vmatprep.subr.mxu1 %v17057_v28  ;;  %v20862_v58 = vmax.f32 %v17194_v39, 0.0  ;;  %v5309_v30 = vmax.f32 %v5245_v52, %v5277_v26  ;;  %v4748_v40 = vmax.f32 %v17395_v19, 0.0  ;;  %v5371_v34 = vld [vmem:[#allocation4 + $0x98] sm:$0x3f]  ;;  %v4451_v52 = vpop.f32.mrf.mxu0 }
 0x375   : > { %v17420_v14 = vadd.f32 %v16264_v13, %v4609_v53  ;;  %6779 = vmatpush2.msra.mxu1 %v6235_v24  ;;  %v5402_v29 = vld [vmem:[#allocation4 + $0x92] sm:$0xff]  ;;  %v5403_v45 = vld [vmem:[#allocation4 + $0x9a] sm:$0x3f]  ;;  %v4611_v39 = vmul.f32 %v16256_v43, %v4535_v8  ;;  %v4536_v61 = vadd.f32 %v4449_v63, %v17304_v6 }
 0x376   : > { %v17416_v31 = vmax.f32 %v20862_v58, %v5276_v5  ;;  %v17425_v47 = vadd.f32 %v15720_v46, %v4610_v11  ;;  %6780 = vmatprep.subr.mxu1 %v17057_v28  ;;  %v17431_v53 = vmax.f32 %v17321_v21, %v5402_v29  ;;  %v5435_v24 = vmax.f32 %v5371_v34, %v5403_v45  ;;  %v6233_v6 = vld [vmem:[%s20421_s4 + $0x2c8] sm:$0xff] }
 0x377   : > { %5341 = vst [vmem:[#allocation4 + $0xa8] sm:$0x7f] %v5309_v30  ;;  %v17438_v5 = vmax.f32 %v4744_v18, %v4748_v40  ;;  %v4749_v8 = vmax.f32 %v17420_v14, 0.0  ;;  %6781 = vmatpush2.msra.mxu1 %v6234_v16  ;;  %v5631_v26 = vld [vmem:[#allocation4 + $0x78] sm:$0xff]  ;;  %v4687_v11 = vadd.f32 %v16264_v13, %v4611_v39  ;;  %v4612_v63 = vmul.f32 %v15704_v55, %v4536_v61  ;;  %v4455_v30 = vpop.f32.mrf.mxu0  ;;  %v4016_v16 = vpop.f32.mrf.mxu1  ;;  %v20864_v61 = vld [vmem:[#allocation12_spill] sm:$0xff] }
 0x378   : > { %5340 = vst [vmem:[#allocation4 + $0xa0] sm:$0xff] %v17416_v31  ;;  %v4750_v21 = vmax.f32 %v17425_v47, 0.0  ;;  %v4537_v58 = vadd.f32 %v4451_v52, %v17329_v17  ;;  %6782 = vmatprep.subr.mxu1 %v17057_v28  ;;  %v4083_v18 = vadd.f32 %v17271_v35, %v20863_v9  ;;  %v5647_v34 = vmax.f32 %v5558_v0, %v5631_v26  ;;  %v5497_v29 = vld [vmem:[#allocation4 + $0x88] sm:$0xf]  ;;  %v5529_v45 = vld [vmem:[#allocation4 + $0x8c] sm:$0xf] }
 0x379   : > { %5466 = vst [vmem:[#allocation4 + $0x90] sm:$0xff] %v17431_v53  ;;  %5467 = vst [vmem:[#allocation4 + $0x98] sm:$0x3f] %v5435_v24  ;;  %v17454_v39 = vmax.f32 %v17223_v57, %v17438_v5  ;;  %v4538_v17 = vadd.f32 %v4455_v30, %v17372_v20  ;;  %6783 = vmatpush2.msra.mxu1 %v6233_v6  ;;  %v4084_v35 = vadd.f32 %v17317_v7, %v20864_v61  ;;  %v5247_v0 = vld [vmem:[#allocation4 + $0xb8] sm:$0x7f]  ;;  %v4457_v60 = vpop.f32.mrf.mxu0  ;;  %v17468_v20 = vld [vmem:[#allocation4 + $0x84] sm:$0xff] }
 0x37a   : > { %4820 = vst [vmem:[#allocation4 + $0xc0] sm:$0xff] %v4749_v8  ;;  %v5561_v52 = vmax.f32 %v5497_v29, %v5529_v45  ;;  %v5278_v26 = vld [vmem:[#allocation4 + $0xb1] sm:$0xff]  ;;  %v5279_v9 = vld [vmem:[#allocation4 + $0xb9] sm:$0x7f]  ;;  %v17465_v24 = vmax.f32 %v4746_v33, %v4750_v21  ;;  %v4751_v57 = vmax.f32 %v4687_v11, 0.0  ;;  %6784 = vmatprep.subr.mxu1 %v17057_v28  ;;  %5663 = vst [vmem:[#allocation4 + $0x70] sm:$0xff] %v5647_v34 }
 0x37b   : > { %v17472_v7 = vmax.f32 %v4745_v2, %v5278_v26  ;;  %v5311_v6 = vmax.f32 %v5247_v0, %v5279_v9  ;;  %v17477_v29 = vadd.f32 %v15720_v46, %v4612_v63  ;;  %v4613_v12 = vmul.f32 %v16256_v43, %v4537_v58  ;;  %v4461_v34 = vpop.f32.mrf.mxu0  ;;  %6785 = vmatpush2.msra.mxu1 %v6232_v54  ;;  %v20865_v63 = vld [vmem:[#allocation79_spill] sm:$0xff]  ;;  %v20866_v61 = vld [vmem:[#allocation13_spill] sm:$0xff] }
 0x37c   : > { %5593 = vst [vmem:[#allocation4 + $0x88] sm:$0xf] %v5561_v52  ;;  %v17484_v33 = vmax.f32 %v17285_v50, %v17465_v24  ;;  %4821 = vst [vmem:[#allocation4 + $0xc8] sm:$0xff] %v4751_v57  ;;  %v4614_v2 = vmul.f32 %v15704_v55, %v4538_v17  ;;  %v4539_v11 = vadd.f32 %v4457_v60, %v17392_v23  ;;  %v4018_v52 = vpop.f32.mrf.mxu1  ;;  %6786 = vmatprep.subr.mxu1 %v17057_v28 }
 0x37d   : > { %v4085_v45 = vadd.f32 %v17364_v15, %v20865_v63  ;;  %v4086_v0 = vadd.f32 %v17412_v51, %v20866_v61  ;;  %5342 = vst [vmem:[#allocation4 + $0xb0] sm:$0xff] %v17472_v7  ;;  %5343 = vst [vmem:[#allocation4 + $0xb8] sm:$0x7f] %v5311_v6  ;;  %v4752_v50 = vmax.f32 %v17477_v29, 0.0  ;;  %v4540_v26 = vadd.f32 %v4461_v34, %v4083_v18  ;;  %v4463_v57 = vpop.f32.mrf.mxu0  ;;  %v6229_v29 = vld [vmem:[%s20421_s4 + $0x2a8] sm:$0xff] }
 0x37e   : > { %v5373_v58 = vld [vmem:[#allocation4 + $0xa8] sm:$0x3f]  ;;  %v17499_v15 = vadd.f32 %v16264_v13, %v4613_v12  ;;  %v17502_v51 = vadd.f32 %v15720_v46, %v4614_v2  ;;  %v4615_v9 = vmul.f32 %v16256_v43, %v4539_v11  ;;  %v20867_v2 = vld [vmem:[#allocation83_spill] sm:$0xff]  ;;  %v4022_v19 = vpop.f32.mrf.mxu1 }
 0x37f   : > { %v5404_v17 = vld [vmem:[#allocation4 + $0xa2] sm:$0xff]  ;;  %v5405_v23 = vld [vmem:[#allocation4 + $0xaa] sm:$0x3f]  ;;  %v17512_v54 = vmax.f32 %v4748_v40, %v4752_v50  ;;  %v4616_v34 = vmul.f32 %v15704_v55, %v4540_v26  ;;  %v4087_v63 = vadd.f32 %v4016_v16, %v20867_v2  ;;  %v5560_v40 = vmax.f32 %v17351_v38, %v17468_v20 }
 0x380   : > { %v17506_v6 = vmax.f32 %v17416_v31, %v5404_v17  ;;  %v5437_v18 = vmax.f32 %v5373_v58, %v5405_v23  ;;  %v6231_v12 = vld [vmem:[%s20421_s4 + $0x2b8] sm:$0xff]  ;;  %v5499_v11 = vld [vmem:[#allocation4 + $0x98] sm:$0xf]  ;;  %v5531_v61 = vld [vmem:[#allocation4 + $0x9c] sm:$0xf]  ;;  %v4753_v31 = vmax.f32 %v17499_v15, 0.0  ;;  %v4691_v58 = vadd.f32 %v16264_v13, %v4615_v9  ;;  %v4467_v23 = vpop.f32.mrf.mxu0  ;;  %v4024_v47 = vpop.f32.mrf.mxu1 }
 0x381   : > { %v4541_v17 = vadd.f32 %v4463_v57, %v4084_v35  ;;  %6787 = vmatpush2.msra.mxu1 %v6231_v12  ;;  %v5563_v26 = vmax.f32 %v5499_v11, %v5531_v61  ;;  %v17526_v16 = vmax.f32 %v17357_v44, %v17512_v54  ;;  %v4754_v2 = vmax.f32 %v17502_v51, 0.0  ;;  %v17530_v9 = vld [vmem:[#allocation4 + $0x94] sm:$0xff] }
 0x382   : > { %5468 = vst [vmem:[#allocation4 + $0xa0] sm:$0xff] %v17506_v6  ;;  %5469 = vst [vmem:[#allocation4 + $0xa8] sm:$0x3f] %v5437_v18  ;;  %6788 = vmatprep.subr.mxu1 %v17057_v28  ;;  %v4755_v35 = vmax.f32 %v4691_v58, 0.0  ;;  %v17535_v38 = vadd.f32 %v15720_v46, %v4616_v34  ;;  %v4542_v57 = vadd.f32 %v4467_v23, %v4085_v45  ;;  %v4469_v18 = vpop.f32.mrf.mxu0  ;;  %v20868_v12 = vld [vmem:[#allocation14_spill] sm:$0xff]  ;;  %v6228_v51 = vld [vmem:[%s20421_s4 + $0x2a0] sm:$0xff] }
 0x383   : > { %4822 = vst [vmem:[#allocation4 + $0xd0] sm:$0xff] %v4753_v31  ;;  %v4617_v20 = vmul.f32 %v16256_v43, %v4541_v17  ;;  %v4088_v44 = vadd.f32 %v4018_v52, %v20868_v12  ;;  %v5632_v11 = vld [vmem:[#allocation4 + $0x88] sm:$0xff]  ;;  %5595 = vst [vmem:[#allocation4 + $0x98] sm:$0xf] %v5563_v26  ;;  %v17545_v58 = vmax.f32 %v4750_v21, %v4754_v2 }
 0x384   : > { %v5249_v61 = vld [vmem:[#allocation4 + $0xc8] sm:$0x7f]  ;;  %v4543_v34 = vadd.f32 %v4469_v18, %v4086_v0  ;;  %v17547_v30 = vmax.f32 %v5560_v40, %v5632_v11  ;;  %v5375_v45 = vld [vmem:[#allocation4 + $0xb8] sm:$0x3f]  ;;  %4823 = vst [vmem:[#allocation4 + $0xd8] sm:$0xff] %v4755_v35  ;;  %v4756_v26 = vmax.f32 %v17535_v38, 0.0  ;;  %v4473_v62 = vpop.f32.mrf.mxu0  ;;  %v4618_v14 = vmul.f32 %v15704_v55, %v4542_v57 }
 0x385   : > { %v5280_v60 = vld [vmem:[#allocation4 + $0xc1] sm:$0xff]  ;;  %v5406_v17 = vld [vmem:[#allocation4 + $0xb2] sm:$0xff]  ;;  %v5407_v23 = vld [vmem:[#allocation4 + $0xba] sm:$0x3f]  ;;  %v17555_v12 = vadd.f32 %v16264_v13, %v4617_v20  ;;  %v17562_v18 = vmax.f32 %v17383_v37, %v17545_v58 }
 0x386   : > { %v17551_v52 = vmax.f32 %v4749_v8, %v5280_v60  ;;  %v17558_v21 = vmax.f32 %v17472_v7, %v5406_v17  ;;  %v5439_v0 = vmax.f32 %v5375_v45, %v5407_v23  ;;  %v5281_v40 = vld [vmem:[#allocation4 + $0xc9] sm:$0x7f]  ;;  %v6230_v8 = vld [vmem:[%s20421_s4 + $0x2b0] sm:$0xff]  ;;  %5664 = vst [vmem:[#allocation4 + $0x80] sm:$0xff] %v17547_v30  ;;  %v17574_v7 = vmax.f32 %v4752_v50, %v4756_v26  ;;  %v4475_v20 = vpop.f32.mrf.mxu0 }
 0x387   : > { %v5313_v60 = vmax.f32 %v5249_v61, %v5281_v40  ;;  %v4757_v37 = vmax.f32 %v17555_v12, 0.0  ;;  %v4619_v35 = vmul.f32 %v16256_v43, %v4543_v34  ;;  %6789 = vmatpush2.msra.mxu1 %v6230_v8  ;;  %v17582_v11 = vadd.f32 %v15720_v46, %v4618_v14  ;;  %v20869_v50 = vld [vmem:[#allocation87_spill] sm:$0xff]  ;;  %v6227_v38 = vld [vmem:[%s20421_s4 + $0x298] sm:$0xff] }
 0x388   : > { %5344 = vst [vmem:[#allocation4 + $0xc0] sm:$0xff] %v17551_v52  ;;  %5470 = vst [vmem:[#allocation4 + $0xb0] sm:$0xff] %v17558_v21  ;;  %v4544_v61 = vadd.f32 %v4473_v62, %v4087_v63  ;;  %v4545_v45 = vadd.f32 %v4475_v20, %v4088_v44  ;;  %6790 = vmatprep.subr.mxu1 %v17057_v28  ;;  %v4089_v34 = vadd.f32 %v4022_v19, %v20869_v50  ;;  %v20870_v17 = vld [vmem:[#allocation15_spill] sm:$0xff]  ;;  %v4479_v63 = vpop.f32.mrf.mxu0 }
 0x389   : > { %5471 = vst [vmem:[#allocation4 + $0xb8] sm:$0x3f] %v5439_v0  ;;  %v4090_v23 = vadd.f32 %v4024_v47, %v20870_v17  ;;  %v5501_v40 = vld [vmem:[#allocation4 + $0xa8] sm:$0xf]  ;;  %v5533_v0 = vld [vmem:[#allocation4 + $0xac] sm:$0xf]  ;;  %v17592_v8 = vmax.f32 %v17438_v5, %v17574_v7  ;;  %v4695_v62 = vadd.f32 %v16264_v13, %v4619_v35  ;;  %6791 = vmatpush2.msra.mxu1 %v6229_v29 }
 0x38a   : > { %5345 = vst [vmem:[#allocation4 + $0xc8] sm:$0x7f] %v5313_v60  ;;  %4824 = vst [vmem:[#allocation4 + $0xe0] sm:$0xff] %v4757_v37  ;;  %v5562_v44 = vmax.f32 %v17431_v53, %v17530_v9  ;;  %v5565_v19 = vmax.f32 %v5501_v40, %v5533_v0  ;;  %v20462_v47 = vmax.f32 %v17582_v11, 0.0  ;;  %v4620_v14 = vmul.f32 %v15704_v55, %v4544_v61  ;;  %v17602_v60 = vld [vmem:[#allocation4 + $0x98] sm:$0xff]  ;;  %v17604_v5 = vld [vmem:[#allocation4 + $0xa4] sm:$0xff]  ;;  %v4481_v17 = vpop.f32.mrf.mxu0 }
 0x38b   : > { %6792 = vmatprep.subr.mxu1 %v17057_v28  ;;  %v5125_v20 = vmax.f32 %v17250_v36, %v17592_v8  ;;  %v4759_v35 = vmax.f32 %v4695_v62, 0.0  ;;  %v4621_v29 = vmul.f32 %v16256_v43, %v4545_v45  ;;  %v4546_v50 = vadd.f32 %v4479_v63, %v4089_v34  ;;  %v5251_v9 = vld [vmem:[#allocation4 + $0xd8] sm:$0x7f] }
 0x38c   : > { %v17610_v53 = vmax.f32 %v5562_v44, %v17602_v60  ;;  %5597 = vst [vmem:[#allocation4 + $0xa8] sm:$0xf] %v5565_v19  ;;  %v5282_v61 = vld [vmem:[#allocation4 + $0xd1] sm:$0xff]  ;;  %v5283_v40 = vld [vmem:[#allocation4 + $0xd9] sm:$0x7f]  ;;  %v17616_v0 = vmax.f32 %v4754_v2, %v20462_v47  ;;  %v4696_v36 = vadd.f32 %v15720_v46, %v4620_v14  ;;  %v4547_v62 = vadd.f32 %v4481_v17, %v4090_v23 }
 0x38d   : > { %v17621_v45 = vmax.f32 %v4753_v31, %v5282_v61  ;;  %v5315_v34 = vmax.f32 %v5251_v9, %v5283_v40  ;;  %4825 = vst [vmem:[#allocation4 + $0xe8] sm:$0xff] %v4759_v35  ;;  %v17624_v63 = vadd.f32 %v16264_v13, %v4621_v29  ;;  %v4622_v44 = vmul.f32 %v15704_v55, %v4546_v50 }
 0x38e   : > { %5665 = vst [vmem:[#allocation4 + $0x90] sm:$0xff] %v17610_v53  ;;  %v17633_v2 = vmax.f32 %v17465_v24, %v17616_v0  ;;  %v17635_v15 = vmax.f32 %v4696_v36, 0.0  ;;  %6793 = vmatpush2.msra.mxu1 %v6228_v51  ;;  %v5564_v31 = vmax.f32 %v17506_v6, %v17604_v5  ;;  %v17645_v24 = vmul.f32 %v16256_v43, %v4547_v62 }
 0x38f   : > { %5346 = vst [vmem:[#allocation4 + $0xd0] sm:$0xff] %v17621_v45  ;;  %5347 = vst [vmem:[#allocation4 + $0xd8] sm:$0x7f] %v5315_v34  ;;  %v20461_v14 = vmax.f32 %v17624_v63, 0.0  ;;  %v4698_v35 = vadd.f32 %v15720_v46, %v4622_v44  ;;  %6794 = vmatprep.subr.mxu1 %v17057_v28  ;;  %v20872_v51 = vmax.f32 %v17045_v59, %v17454_v39 }
 0x390   : > { %v5503_v23 = vld [vmem:[#allocation4 + $0xb8] sm:$0xf]  ;;  %v5535_v55 = vld [vmem:[#allocation4 + $0xbc] sm:$0xf]  ;;  %v17655_v61 = vmax.f32 %v4756_v26, %v17635_v15  ;;  %v17662_v40 = vmax.f32 %v17574_v7, %v17635_v15  ;;  %v17666_v36 = vmax.f32 %v17592_v8, %v17635_v15  ;;  %v20871_v7 = vmax.f32 %v17153_v42, %v17526_v16  ;;  %6795 = vmatpush2.msra.mxu1 %v6227_v38  ;;  %v5760_v38 = vld [vmem:[#allocation4 + $0x10] sm:$0xff] }
 0x391   : > { %v17639_v19 = vld [vmem:[#allocation4 + $0xb4] sm:$0xff]  ;;  %v5567_v6 = vmax.f32 %v5503_v23, %v5535_v55  ;;  %v5377_v5 = vld [vmem:[#allocation4 + $0xc8] sm:$0x3f]  ;;  %4826 = vst [vmem:[#allocation4 + $0xf0] sm:$0xff] %v20461_v14  ;;  %v5206_v62 = vmax.f32 %v5125_v20, %v17635_v15  ;;  %v5766_v20 = vld [vmem:[#allocation4 + $0x40] sm:$0xff]  ;;  %v17695_v55 = vmax.f32 %v4698_v35, 0.0  ;;  %6796 = vmatprep.subr.mxu1 %v17057_v28  ;;  %v20873_v59 = vmax.f32 %v16945_v27, %v17377_v22 }
 0x392   : > { %v5408_v50 = vld [vmem:[#allocation4 + $0xc2] sm:$0xff]  ;;  %v5409_v17 = vld [vmem:[#allocation4 + $0xca] sm:$0x3f]  ;;  %v5131_v26 = vmax.f32 %v17526_v16, %v17655_v61  ;;  %v5204_v8 = vmax.f32 %v20871_v7, %v17655_v61  ;;  %v5198_v44 = vmax.f32 %v17277_v1, %v17666_v36  ;;  %v5202_v42 = vmax.f32 %v20872_v51, %v17662_v40  ;;  %v5764_v23 = vld [vmem:[#allocation4 + $0x30] sm:$0xff] }
 0x393   : > { %v17658_v46 = vmax.f32 %v17551_v52, %v5408_v50  ;;  %v5441_v43 = vmax.f32 %v5377_v5, %v5409_v17  ;;  %5599 = vst [vmem:[#allocation4 + $0xb8] sm:$0xf] %v5567_v6  ;;  %v17675_v52 = vmax.f32 %v17512_v54, %v17655_v61  ;;  %v17684_v34 = vld [vmem:[#allocation4 + $0xa8] sm:$0xff]  ;;  %v5129_v54 = vmax.f32 %v17454_v39, %v17662_v40  ;;  %v5762_v16 = vld [vmem:[#allocation4 + $0x20] sm:$0xff]  ;;  %v5768_v51 = vld [vmem:[#allocation4 + $0x50] sm:$0xff] }
 0x394   : > { %v5650_v6 = vmax.f32 %v5564_v31, %v17684_v34  ;;  %v5253_v5 = vld [vmem:[#allocation4 + $0xe8] sm:$0x7f]  ;;  %v5770_v14 = vld [vmem:[#allocation4 + $0x60] sm:$0xff]  ;;  %v17711_v57 = vadd.f32 %v5764_v23, %v5198_v44 }
 0x395   : > { %5472 = vst [vmem:[#allocation4 + $0xc0] sm:$0xff] %v17658_v46  ;;  %5473 = vst [vmem:[#allocation4 + $0xc8] sm:$0x3f] %v5441_v43  ;;  %v5284_v50 = vld [vmem:[#allocation4 + $0xe1] sm:$0xff]  ;;  %v5285_v17 = vld [vmem:[#allocation4 + $0xe9] sm:$0x7f]  ;;  %v5127_v1 = vmax.f32 %v17377_v22, %v17675_v52  ;;  %v5196_v43 = vmax.f32 %v17180_v49, %v5131_v26  ;;  %v5200_v39 = vmax.f32 %v20873_v59, %v17675_v52 }
 0x396   : > { %v17708_v35 = vmax.f32 %v4757_v37, %v5284_v50  ;;  %v5317_v7 = vmax.f32 %v5253_v5, %v5285_v17  ;;  %v5194_v31 = vmax.f32 %v17071_v4, %v5129_v54  ;;  %v6226_v49 = vld [vmem:[%s20421_s4 + $0x290] sm:$0xff]  ;;  %5666 = vst [vmem:[#allocation4 + $0xa0] sm:$0xff] %v5650_v6  ;;  %v5379_v9 = vld [vmem:[#allocation4 + $0xd8] sm:$0x3f]  ;;  %v20874_v59 = vld [vmem:[#allocation41_spill] sm:$0xff]  ;;  %v17721_v5 = vadd.f32 %v5768_v51, %v5202_v42 }
 0x397   : > { %v5410_v27 = vld [vmem:[#allocation4 + $0xd2] sm:$0xff]  ;;  %v5411_v22 = vld [vmem:[#allocation4 + $0xda] sm:$0x3f]  ;;  %v5192_v29 = vmax.f32 %v20874_v59, %v5127_v1  ;;  %v17717_v12 = vadd.f32 %v5762_v16, %v5196_v43  ;;  %v17719_v37 = vadd.f32 %v5766_v20, %v5200_v39  ;;  %6797 = vmatpush2.msra.mxu1 %v6226_v49  ;;  %v5758_v23 = vld [vmem:[#allocation4] sm:$0xff]  ;;  %v17729_v47 = vadd.f32 %v5770_v14, %v5204_v8 }
 0x398   : > { %v17724_v4 = vmax.f32 %v17621_v45, %v5410_v27  ;;  %v5443_v44 = vmax.f32 %v5379_v9, %v5411_v22  ;;  %5348 = vst [vmem:[#allocation4 + $0xe0] sm:$0xff] %v17708_v35  ;;  %5349 = vst [vmem:[#allocation4 + $0xe8] sm:$0x7f] %v5317_v7  ;;  %v5772_v50 = vld [vmem:[#allocation4 + $0x70] sm:$0xff]  ;;  %v17727_v17 = vadd.f32 %v5760_v38, %v5194_v31  ;;  %6798 = vmatprep.subr.mxu1 %v17057_v28  ;;  %v6225_v14 = vld [vmem:[%s20421_s4 + $0x288] sm:$0xff] }
 0x399   : > { %5829 = vst [vmem:[#allocation5 + $0x61] sm:$0xff] %v17711_v57  ;;  %v5790_v42 = vadd.f32 %v5758_v23, %v5192_v29  ;;  %v17733_v16 = vadd.f32 %v5772_v50, %v5206_v62  ;;  %v17736_v45 = vadd.f32 %v17547_v30, %v5127_v1  ;;  %v17739_v9 = vadd.f32 %v17610_v53, %v5129_v54  ;;  %v17778_v1 = vld [vmem:[#allocation5] sm:$0xff]  ;;  %v5761_v51 = vld [vmem:[#allocation4 + $0x18] sm:$0xff]  ;;  %v5763_v59 = vld [vmem:[#allocation4 + $0x28] sm:$0xff] }
 0x39a   : > { %5833 = vst [vmem:[#allocation5 + $0x91] sm:$0xff] %v17721_v5  ;;  %5827 = vst [vmem:[#allocation5 + $0x49] sm:$0xff] %v17717_v12  ;;  %v17747_v28 = vld [vmem:[#allocation4 + $0xb8] sm:$0xff]  ;;  %v17750_v30 = vadd.f32 %v5650_v6, %v5131_v26  ;;  %v20875_v53 = vmax.f32 %v17582_v11, 0.0  ;;  %v17761_v8 = vmax.f32 %v17616_v0, %v17695_v55  ;;  %v17765_v62 = vmax.f32 %v17633_v2, %v17695_v55  ;;  %v17822_v50 = vld [vmem:[%s20421_s4 + $0x478] sm:$0xff] }
 0x39b   : > { %5831 = vst [vmem:[#allocation5 + $0x79] sm:$0xff] %v17719_v37  ;;  %5474 = vst [vmem:[#allocation4 + $0xd0] sm:$0xff] %v17724_v4  ;;  %6799 = vmatpush2.msra.mxu1 %v6225_v14  ;;  %v20876_v26 = vmax.f32 %v17558_v21, %v17639_v19  ;;  %v20877_v11 = vmax.f32 %v17308_v41, %v17633_v2  ;;  %6362 = vmatprep.mubr.f32.mxu1 %v5790_v42  ;;  %v20879_v49 = vld [vmem:[#allocation42_spill] sm:$0xff] }
 0x39c   : > { %5475 = vst [vmem:[#allocation4 + $0xd8] sm:$0x3f] %v5443_v44  ;;  %5825 = vst [vmem:[#allocation5 + $0x31] sm:$0xff] %v17727_v17  ;;  %v17757_v29 = vmax.f32 %v20875_v53, %v17695_v55  ;;  %v5505_v20 = vld [vmem:[#allocation4 + $0xc8] sm:$0xf]  ;;  %6800 = vmatprep.subr.mxu1 %v17778_v1  ;;  %v5130_v43 = vmax.f32 %v17484_v33, %v17761_v8  ;;  %v17790_v39 = vadd.f32 %v16264_v13, %v17645_v24  ;;  %v5765_v13 = vld [vmem:[#allocation4 + $0x38] sm:$0xff] }
 0x39d   : > { %5835 = vst [vmem:[#allocation5 + $0xa9] sm:$0xff] %v17729_v47  ;;  %v5651_v54 = vmax.f32 %v20876_v26, %v17747_v28  ;;  %v5537_v6 = vld [vmem:[#allocation4 + $0xcc] sm:$0xf]  ;;  %5837 = vst [vmem:[#allocation5 + $0xc1] sm:$0xff] %v17733_v16  ;;  %v5207_v0 = vmax.f32 %v20877_v11, %v17695_v55  ;;  %v17792_v41 = vld [vmem:[#allocation4 + $0xc4] sm:$0xff]  ;;  %v20878_v7 = vmax.f32 %v17118_v25, %v17484_v33 }
 0x39e   : > { %5841 = vst [vmem:[#allocation5 + $0xf1] sm:$0xff] %v17739_v9  ;;  %5823 = vst [vmem:[#allocation5 + $0x19] sm:$0xff] %v5790_v42  ;;  %v5569_v21 = vmax.f32 %v5505_v20, %v5537_v6  ;;  %v17784_v19 = vmax.f32 %v17545_v58, %v17757_v29  ;;  %v5132_v38 = vmax.f32 %v17562_v18, %v17757_v29  ;;  %v6224_v24 = vld [vmem:[%s20421_s4 + $0x280] sm:$0xff]  ;;  %v5769_v44 = vld [vmem:[#allocation4 + $0x58] sm:$0xff] }
 0x39f   : > { %5839 = vst [vmem:[#allocation5 + $0xd9] sm:$0xff] %v17736_v45  ;;  %5843 = vst [vmem:[#allocation5 + $0x109] sm:$0xff] %v17750_v30  ;;  %v17795_v2 = vadd.f32 %v5651_v54, %v17666_v36  ;;  %v5199_v58 = vmax.f32 %v17335_v10, %v17765_v62  ;;  %v5203_v31 = vmax.f32 %v20878_v7, %v17761_v8  ;;  %v5773_v23 = vld [vmem:[#allocation4 + $0x78] sm:$0xff]  ;;  %6801 = vmatpush2.msra.mxu1 %v6224_v24  ;;  %v5381_v42 = vld [vmem:[#allocation4 + $0xe8] sm:$0x3f] }
 0x3a0   : > { %5667 = vst [vmem:[#allocation4 + $0xb0] sm:$0xff] %v5651_v54  ;;  %5601 = vst [vmem:[#allocation4 + $0xc8] sm:$0xf] %v5569_v21  ;;  %v5128_v36 = vmax.f32 %v17408_v32, %v17784_v19  ;;  %v5195_v27 = vmax.f32 %v20879_v49, %v5130_v43  ;;  %v20880_v10 = vmax.f32 %v17004_v3, %v17408_v32  ;;  %v5412_v14 = vld [vmem:[#allocation4 + $0xe2] sm:$0xff]  ;;  %v5413_v53 = vld [vmem:[#allocation4 + $0xea] sm:$0x3f]  ;;  %12769 = vmatprep.subr.mxu1 %v17822_v50 }
 0x3a1   : > { %v20881_v25 = vmax.f32 %v17210_v56, %v17562_v18  ;;  %5845 = vst [vmem:[#allocation5 + $0x121] sm:$0xff] %v17795_v2  ;;  %v5197_v3 = vmax.f32 %v17234_v48, %v5132_v38  ;;  %v17826_v32 = vadd.f32 %v5765_v13, %v5199_v58  ;;  %v17828_v56 = vadd.f32 %v5769_v44, %v5203_v31  ;;  %v5919_v26 = vld [vmem:[#allocation5 + $0x2] sm:$0xff]  ;;  %v20882_v6 = vld [vmem:[#allocation29_spill] sm:$0xff] }
 0x3a2   : > { %v5201_v22 = vmax.f32 %v20880_v10, %v17784_v19  ;;  %v17830_v18 = vadd.f32 %v5773_v23, %v5207_v0  ;;  %v17834_v54 = vmax.f32 %v17708_v35, %v5412_v14  ;;  %v5445_v20 = vmax.f32 %v5381_v42, %v5413_v53  ;;  %v5767_v21 = vld [vmem:[#allocation4 + $0x48] sm:$0xff] }
 0x3a3   : > { %v5205_v33 = vmax.f32 %v20881_v25, %v17757_v29  ;;  %v5193_v11 = vmax.f32 %v20882_v6, %v5128_v36  ;;  %v5771_v7 = vld [vmem:[#allocation4 + $0x68] sm:$0xff]  ;;  %v17837_v49 = vadd.f32 %v5761_v51, %v5195_v27  ;;  %v5507_v48 = vld [vmem:[#allocation4 + $0xd8] sm:$0xf]  ;;  %v5539_v58 = vld [vmem:[#allocation4 + $0xdc] sm:$0xf]  ;;  %v17839_v13 = vadd.f32 %v5763_v59, %v5197_v3  ;;  %5830 = vst [vmem:[#allocation5 + $0x69] sm:$0xff] %v17826_v32 }
 0x3a4   : > { %v5775_v24 = vld [vmem:[#allocation4 + $0x88] sm:$0xff]  ;;  %v17841_v0 = vadd.f32 %v5767_v21, %v5201_v22  ;;  %5834 = vst [vmem:[#allocation5 + $0x99] sm:$0xff] %v17828_v56  ;;  %5838 = vst [vmem:[#allocation5 + $0xc9] sm:$0xff] %v17830_v18  ;;  %v5571_v35 = vmax.f32 %v5507_v48, %v5539_v58  ;;  %v17852_v27 = vadd.f32 %v17602_v60, %v5130_v43  ;;  %v4763_v60 = vmax.f32 %v17790_v39, 0.0  ;;  %v6253_v39 = vld [vmem:[%s20421_s4 + $0x368] sm:$0xff] }
 0x3a5   : > { %v5759_v31 = vld [vmem:[#allocation4 + $0x8] sm:$0xff]  ;;  %v17843_v10 = vadd.f32 %v5771_v7, %v5205_v33  ;;  %v17845_v25 = vadd.f32 %v5775_v24, %v5128_v36  ;;  %5476 = vst [vmem:[#allocation4 + $0xe0] sm:$0xff] %v17834_v54  ;;  %5477 = vst [vmem:[#allocation4 + $0xe8] sm:$0x3f] %v5445_v20  ;;  %v5951_v22 = vld [vmem:[#allocation5 + $0x18] sm:$0xff]  ;;  %v17859_v59 = vadd.f32 %v17684_v34, %v5132_v38  ;;  %v20883_v24 = vmax.f32 %v17624_v63, 0.0 }
 0x3a6   : > { %v5791_v51 = vadd.f32 %v5759_v31, %v5193_v11  ;;  %5826 = vst [vmem:[#allocation5 + $0x39] sm:$0xff] %v17837_v49  ;;  %v6255_v36 = vld [vmem:[%s20421_s4 + $0x378] sm:$0xff]  ;;  %v5538_v33 = vld [vmem:[#allocation4 + $0xd4] sm:$0xff]  ;;  %v17863_v44 = vadd.f32 %v17747_v28, %v17765_v62  ;;  %5828 = vst [vmem:[#allocation5 + $0x51] sm:$0xff] %v17839_v13  ;;  %6577 = vmatprep.mubr.f32.mxu0 %v5951_v22  ;;  %6363 = vmatmul.mubr.f32.gmra.mxu1 %v5951_v22 }
 0x3a7   : > { %5836 = vst [vmem:[#allocation5 + $0xb1] sm:$0xff] %v17843_v10  ;;  %5832 = vst [vmem:[#allocation5 + $0x81] sm:$0xff] %v17841_v0  ;;  %v5568_v34 = vmax.f32 %v17658_v46, %v17792_v41  ;;  %6578 = vmatmul.mubr.f32.vlgmr.msra.gmra.mxu0 %v5919_v26  ;;  %v6254_v28 = vld [vmem:[%s20421_s4 + $0x370] sm:$0xff]  ;;  %v5636_v62 = vld [vmem:[#allocation4 + $0xc8] sm:$0xff]  ;;  %v5570_v42 = vmax.f32 %v17724_v4, %v5538_v33 }
 0x3a8   : > { %5840 = vst [vmem:[#allocation5 + $0xe1] sm:$0xff] %v17845_v25  ;;  %5603 = vst [vmem:[#allocation4 + $0xd8] sm:$0xf] %v5571_v35  ;;  %6367 = vmatprep.mubr.f32.mxu1 %v5791_v51  ;;  %6964 = vmatpush1.msra.mxu0 %v6255_v36  ;;  %v17879_v46 = vadd.f32 %v5636_v62, %v17784_v19  ;;  %v6252_v19 = vld [vmem:[%s20421_s4 + $0x360] sm:$0xff]  ;;  %v6250_v63 = vld [vmem:[%s20421_s4 + $0x350] sm:$0xff] }
 0x3a9   : > { %5842 = vst [vmem:[#allocation5 + $0xf9] sm:$0xff] %v17852_v27  ;;  %5824 = vst [vmem:[#allocation5 + $0x21] sm:$0xff] %v5791_v51  ;;  %v5652_v43 = vmax.f32 %v5568_v34, %v5636_v62  ;;  %6965 = vmatprep.subr.mxu0 %v17778_v1  ;;  %v5920_v53 = vld [vmem:[#allocation5 + $0xa] sm:$0xff] }
 0x3aa   : > { %5844 = vst [vmem:[#allocation5 + $0x111] sm:$0xff] %v17859_v59  ;;  %5846 = vst [vmem:[#allocation5 + $0x129] sm:$0xff] %v17863_v44  ;;  %6966 = vmatpush1.msra.mxu0 %v6254_v28  ;;  %v17905_v31 = vld [vmem:[#allocation5 + $0x30] sm:$0xff] }
 0x3ab   : > { %4827 = vst [vmem:[#allocation4 + $0xf8] sm:$0xff] %v4763_v60  ;;  %5668 = vst [vmem:[#allocation4 + $0xc0] sm:$0xff] %v5652_v43  ;;  %v17886_v41 = vadd.f32 %v5652_v43, %v17675_v52  ;;  %6967 = vmatprep.subr.mxu0 %v17778_v1  ;;  %v6251_v52 = vld [vmem:[%s20421_s4 + $0x358] sm:$0xff]  ;;  %v6248_v60 = vld [vmem:[%s20421_s4 + $0x340] sm:$0xff] }
 0x3ac   : > { %5848 = vst [vmem:[#allocation5 + $0x141] sm:$0xff] %v17879_v46  ;;  %v5509_v38 = vld [vmem:[#allocation4 + $0xe8] sm:$0xf]  ;;  %v5541_v23 = vld [vmem:[#allocation4 + $0xec] sm:$0xf]  ;;  %6968 = vmatpush1.msra.mxu0 %v6253_v39 }
 0x3ad   : > { %v5573_v14 = vmax.f32 %v5509_v38, %v5541_v23  ;;  %5847 = vst [vmem:[#allocation5 + $0x139] sm:$0xff] %v17886_v41  ;;  %6969 = vmatprep.subr.mxu0 %v17778_v1  ;;  %v5540_v26 = vld [vmem:[#allocation4 + $0xe4] sm:$0xff]  ;;  %v17965_v23 = vld [vmem:[#allocation5 + $0x3a] sm:$0xff] }
 0x3ae   : > { %6970 = vmatpush1.msra.mxu0 %v6252_v19  ;;  %v5572_v51 = vmax.f32 %v17834_v54, %v5540_v26  ;;  %v17939_v54 = vld [vmem:[#allocation5 + $0x48] sm:$0xff]  ;;  %v17957_v19 = vld [vmem:[#allocation5 + $0x50] sm:$0xff]  ;;  %v6246_v38 = vld [vmem:[%s20421_s4 + $0x330] sm:$0xff] }
 0x3af   : > { %v5637_v3 = vld [vmem:[#allocation4 + $0xd8] sm:$0xff]  ;;  %5605 = vst [vmem:[#allocation4 + $0xe8] sm:$0xf] %v5573_v14  ;;  %6971 = vmatprep.subr.mxu0 %v17778_v1  ;;  %v6244_v14 = vld [vmem:[%s20421_s4 + $0x320] sm:$0xff]  ;;  %v17985_v26 = vld [vmem:[#allocation5 + $0x68] sm:$0xff] }
 0x3b0   : > { %v5952_v20 = vld [vmem:[#allocation5 + $0x20] sm:$0xff]  ;;  %v5653_v6 = vmax.f32 %v5570_v42, %v5637_v3  ;;  %v17900_v11 = vadd.f32 %v5637_v3, %v17761_v8  ;;  %6972 = vmatpush1.msra.mxu0 %v6251_v52  ;;  %v6249_v8 = vld [vmem:[%s20421_s4 + $0x348] sm:$0xff]  ;;  %v17980_v3 = vld [vmem:[#allocation5 + $0x4a] sm:$0xff] }
 0x3b1   : > { %6582 = vmatprep.mubr.f32.mxu0 %v5952_v20  ;;  %6368 = vmatmul.mubr.f32.gmra.mxu1 %v5952_v20  ;;  %v17972_v42 = vld [vmem:[#allocation5 + $0x60] sm:$0xff]  ;;  %v6243_v20 = vld [vmem:[%s20421_s4 + $0x318] sm:$0xff] }
 0x3b2   : > { %v5255_v4 = vld [vmem:[#allocation4 + $0xf8] sm:$0x7f]  ;;  %6583 = vmatmul.mubr.f32.gmra.mxu0 %v5920_v53  ;;  %6372 = vmatprep.mubr.f32.mxu1 %v17727_v17  ;;  %5669 = vst [vmem:[#allocation4 + $0xd0] sm:$0xff] %v5653_v6  ;;  %v5816_v35 = vadd.f32 %v5653_v6, %v17662_v40  ;;  %5850 = vst [vmem:[#allocation5 + $0x159] sm:$0xff] %v17900_v11 }
 0x3b3   : > { %v5286_v21 = vld [vmem:[#allocation4 + $0xf1] sm:$0xff]  ;;  %v5287_v7 = vld [vmem:[#allocation4 + $0xf9] sm:$0x7f]  ;;  %6587 = vmatprep.mubr.f32.mxu0 %v17905_v31  ;;  %6973 = vmatprep.subr.mxu0 %v17778_v1 }
 0x3b4   : > { %v5318_v48 = vmax.f32 %v20883_v24, %v5286_v21  ;;  %v5319_v58 = vmax.f32 %v5255_v4, %v5287_v7  ;;  %5849 = vst [vmem:[#allocation5 + $0x151] sm:$0xff] %v5816_v35  ;;  %v17915_v17 = vld [vmem:[#allocation5 + $0x1a] sm:$0xff]  ;;  %6974 = vmatpush1.msra.mxu0 %v6250_v63  ;;  %v17993_v4 = vld [vmem:[#allocation5 + $0x52] sm:$0xff]  ;;  %v18008_v24 = vld [vmem:[#allocation5 + $0x62] sm:$0xff] }
 0x3b5   : > { %6373 = vmatmul.mubr.f32.gmra.mxu1 %v17905_v31  ;;  %v17920_v40 = vld [vmem:[#allocation5 + $0x38] sm:$0xff]  ;;  %6975 = vmatprep.subr.mxu0 %v17778_v1 }
 0x3b6   : > { %5350 = vst [vmem:[#allocation4 + $0xf0] sm:$0xff] %v5318_v48  ;;  %5351 = vst [vmem:[#allocation4 + $0xf8] sm:$0x7f] %v5319_v58  ;;  %6588 = vmatmul.mubr.f32.gmra.mxu0 %v17915_v17  ;;  %6377 = vmatprep.mubr.f32.mxu1 %v17837_v49  ;;  %v5638_v22 = vld [vmem:[#allocation4 + $0xe8] sm:$0xff]  ;;  %v18000_v21 = vld [vmem:[#allocation5 + $0x78] sm:$0xff] }
 0x3b7   : > { %6592 = vmatprep.mubr.f32.mxu0 %v17920_v40  ;;  %v5654_v36 = vmax.f32 %v5572_v51, %v5638_v22  ;;  %v17929_v33 = vadd.f32 %v5638_v22, %v17757_v29  ;;  %v17932_v49 = vld [vmem:[#allocation5 + $0x22] sm:$0xff]  ;;  %6976 = vmatpush1.msra.mxu0 %v6249_v8  ;;  %v6241_v7 = vld [vmem:[%s20421_s4 + $0x308] sm:$0xff]  ;;  %v6240_v58 = vld [vmem:[%s20421_s4 + $0x300] sm:$0xff] }
 0x3b8   : > { %6977 = vmatprep.subr.mxu0 %v17778_v1  ;;  %v18025_v51 = vld [vmem:[#allocation5 + $0x6a] sm:$0xff] }
 0x3b9   : > { %6378 = vmatmul.mubr.f32.gmra.mxu1 %v17920_v40  ;;  %5670 = vst [vmem:[#allocation4 + $0xe0] sm:$0xff] %v5654_v36  ;;  %v5818_v34 = vadd.f32 %v5654_v36, %v17655_v61  ;;  %5852 = vst [vmem:[#allocation5 + $0x171] sm:$0xff] %v17929_v33  ;;  %6978 = vmatpush1.msra.mxu0 %v6248_v60  ;;  %v17951_v61 = vld [vmem:[#allocation5 + $0x32] sm:$0xff] }
 0x3ba   : > { %6593 = vmatmul.mubr.f32.gmra.mxu0 %v17932_v49  ;;  %6382 = vmatprep.mubr.f32.mxu1 %v17717_v12  ;;  %v6247_v12 = vld [vmem:[%s20421_s4 + $0x338] sm:$0xff]  ;;  %v18032_v22 = vld [vmem:[#allocation5 + $0x90] sm:$0xff]  ;;  %v6269_v60 = vld [vmem:[%s20421_s4 + $0x3e8] sm:$0xff] }
 0x3bb   : > { %6597 = vmatprep.mubr.f32.mxu0 %v17939_v54  ;;  %5851 = vst [vmem:[#allocation5 + $0x169] sm:$0xff] %v5818_v34  ;;  %6979 = vmatprep.subr.mxu0 %v17778_v1  ;;  %v18058_v34 = vld [vmem:[#allocation5 + $0x82] sm:$0xff] }
 0x3bc   : > { %6980 = vmatpush1.msra.mxu0 %v6247_v12  ;;  %v18093_v12 = vld [vmem:[#allocation5 + $0xc0] sm:$0xff] }
 0x3bd   : > { %v5383_v29 = vld [vmem:[#allocation4 + $0xf8] sm:$0x3f]  ;;  %6383 = vmatmul.mubr.f32.gmra.mxu1 %v17939_v54  ;;  %6981 = vmatprep.subr.mxu0 %v17778_v1 }
 0x3be   : > { %v5414_v28 = vld [vmem:[#allocation4 + $0xf2] sm:$0xff]  ;;  %v5415_v62 = vld [vmem:[#allocation4 + $0xfa] sm:$0x3f]  ;;  %6598 = vmatmul.mubr.f32.gmra.mxu0 %v17951_v61  ;;  %6387 = vmatprep.mubr.f32.mxu1 %v17839_v13 }
 0x3bf   : > { %v17945_v43 = vmax.f32 %v5318_v48, %v5414_v28  ;;  %v5447_v39 = vmax.f32 %v5383_v29, %v5415_v62  ;;  %6602 = vmatprep.mubr.f32.mxu0 %v17957_v19  ;;  %6982 = vmatpush1.msra.mxu0 %v6246_v38  ;;  %v6245_v13 = vld [vmem:[%s20421_s4 + $0x328] sm:$0xff]  ;;  %v18065_v29 = vld [vmem:[#allocation5 + $0xa8] sm:$0xff]  ;;  %v6264_v38 = vld [vmem:[%s20421_s4 + $0x3c0] sm:$0xff] }
 0x3c0   : > { %6983 = vmatprep.subr.mxu0 %v17778_v1  ;;  %v6267_v28 = vld [vmem:[%s20421_s4 + $0x3d8] sm:$0xff]  ;;  %v18073_v62 = vld [vmem:[#allocation5 + $0x92] sm:$0xff] }
 0x3c1   : > { %5478 = vst [vmem:[#allocation4 + $0xf0] sm:$0xff] %v17945_v43  ;;  %5479 = vst [vmem:[#allocation4 + $0xf8] sm:$0x3f] %v5447_v39  ;;  %6388 = vmatmul.mubr.f32.gmra.mxu1 %v17957_v19  ;;  %6984 = vmatpush1.msra.mxu0 %v6245_v13  ;;  %v18086_v39 = vld [vmem:[#allocation5 + $0x9a] sm:$0xff]  ;;  %v18101_v13 = vld [vmem:[#allocation5 + $0xaa] sm:$0xff] }
 0x3c2   : > { %6603 = vmatmul.mubr.f32.gmra.mxu0 %v17965_v23  ;;  %6392 = vmatprep.mubr.f32.mxu1 %v17711_v57 }
 0x3c3   : > { %6607 = vmatprep.mubr.f32.mxu0 %v17972_v42  ;;  %6985 = vmatprep.subr.mxu0 %v17778_v1 }
 0x3c4   : > { %6986 = vmatpush1.msra.mxu0 %v6244_v14  ;;  %v6263_v14 = vld [vmem:[%s20421_s4 + $0x3b8] sm:$0xff] }
 0x3c5   : > { %6393 = vmatmul.mubr.f32.gmra.mxu1 %v17972_v42  ;;  %6987 = vmatprep.subr.mxu0 %v17778_v1 }
 0x3c6   : > { %6608 = vmatmul.mubr.f32.gmra.mxu0 %v17980_v3  ;;  %6397 = vmatprep.mubr.f32.mxu1 %v17826_v32  ;;  %v6242_v32 = vld [vmem:[%s20421_s4 + $0x310] sm:$0xff] }
 0x3c7   : > { %6612 = vmatprep.mubr.f32.mxu0 %v17985_v26  ;;  %6988 = vmatpush1.msra.mxu0 %v6243_v20  ;;  %v6261_v20 = vld [vmem:[%s20421_s4 + $0x3a8] sm:$0xff] }
 0x3c8   : > { %v5511_v53 = vld [vmem:[#allocation4 + $0xf8] sm:$0xf]  ;;  %v5543_v52 = vld [vmem:[#allocation4 + $0xfc] sm:$0xf]  ;;  %6989 = vmatprep.subr.mxu0 %v17778_v1 }
 0x3c9   : > { %v5575_v57 = vmax.f32 %v5511_v53, %v5543_v52  ;;  %v5542_v6 = vld [vmem:[#allocation4 + $0xf4] sm:$0xff]  ;;  %6398 = vmatmul.mubr.f32.gmra.mxu1 %v17985_v26  ;;  %6990 = vmatpush1.msra.mxu0 %v6242_v32  ;;  %v18131_v32 = vld [vmem:[#allocation5 + $0xc2] sm:$0xff] }
 0x3ca   : > { %6613 = vmatmul.mubr.f32.gmra.mxu0 %v17993_v4  ;;  %6402 = vmatprep.mubr.f32.mxu1 %v17719_v37  ;;  %v5574_v48 = vmax.f32 %v17945_v43, %v5542_v6  ;;  %v18014_v37 = vld [vmem:[#allocation5 + $0x80] sm:$0xff]  ;;  %v18114_v53 = vld [vmem:[#allocation5 + $0xb2] sm:$0xff] }
 0x3cb   : > { %5607 = vst [vmem:[#allocation4 + $0xf8] sm:$0xf] %v5575_v57  ;;  %6617 = vmatprep.mubr.f32.mxu0 %v18000_v21  ;;  %6991 = vmatprep.subr.mxu0 %v17778_v1  ;;  %v6266_v43 = vld [vmem:[%s20421_s4 + $0x3d0] sm:$0xff]  ;;  %v18121_v52 = vld [vmem:[#allocation5 + $0xd8] sm:$0xff] }
 0x3cc   : > { %6992 = vmatpush1.msra.mxu0 %v6241_v7  ;;  %v6260_v7 = vld [vmem:[%s20421_s4 + $0x3a0] sm:$0xff] }
 0x3cd   : > { %6403 = vmatmul.mubr.f32.gmra.mxu1 %v18000_v21  ;;  %6993 = vmatprep.subr.mxu0 %v17778_v1 }
 0x3ce   : > { %6618 = vmatmul.mubr.f32.gmra.mxu0 %v18008_v24  ;;  %6407 = vmatprep.mubr.f32.mxu1 %v17841_v0  ;;  %v6271_v0 = vld [vmem:[%s20421_s4 + $0x3f8] sm:$0xff] }
 0x3cf   : > { %6622 = vmatprep.mubr.f32.mxu0 %v18014_v37  ;;  %6994 = vmatpush1.msra.mxu0 %v6240_v58 }
 0x3d0   : > { %6995 = vmatprep.subr.mxu0 %v17778_v1 }
 0x3d1   : > { %6408 = vmatmul.mubr.f32.gmra.mxu1 %v18014_v37  ;;  %6996 = vmatpush2.msra.mxu0 %v6271_v0  ;;  %v6258_v0 = vld [vmem:[%s20421_s4 + $0x390] sm:$0xff] }
 0x3d2   : > { %v5639_v35 = vld [vmem:[#allocation4 + $0xf8] sm:$0xff]  ;;  %6623 = vmatmul.mubr.f32.gmra.mxu0 %v18025_v51  ;;  %6412 = vmatprep.mubr.f32.mxu1 %v17721_v5 }
 0x3d3   : > { %v5655_v63 = vmax.f32 %v5574_v48, %v5639_v35  ;;  %v18022_v8 = vadd.f32 %v5639_v35, %v17695_v55  ;;  %6627 = vmatprep.mubr.f32.mxu0 %v18032_v22  ;;  %v6270_v55 = vld [vmem:[%s20421_s4 + $0x3f0] sm:$0xff]  ;;  %6997 = vmatprep.subr.mxu0 %v17778_v1  ;;  %v18146_v35 = vld [vmem:[#allocation5 + $0xca] sm:$0xff] }
 0x3d4   : > { %v18045_v5 = vld [vmem:[#allocation5 + $0x7a] sm:$0xff]  ;;  %6998 = vmatpush2.msra.mxu0 %v6270_v55 }
 0x3d5   : > { %20884 = vst [vmem:[#allocation43_spill] sm:$0xff] %v18022_v8  ;;  %5671 = vst [vmem:[#allocation4 + $0xf0] sm:$0xff] %v5655_v63  ;;  %v18035_v36 = vadd.f32 %v5655_v63, %v17635_v15  ;;  %6413 = vmatmul.mubr.f32.gmra.mxu1 %v18032_v22  ;;  %v18050_v15 = vld [vmem:[#allocation5 + $0x98] sm:$0xff]  ;;  %6999 = vmatprep.subr.mxu0 %v17778_v1  ;;  %v18123_v57 = vpop.f32.mrf.mxu1  ;;  %v18153_v63 = vld [vmem:[#allocation5 + $0xf0] sm:$0xff] }
 0x3d6   : > { %5854 = vst [vmem:[#allocation5 + $0x189] sm:$0xff] %v18022_v8  ;;  %6628 = vmatmul.mubr.f32.gmra.mxu0 %v18045_v5  ;;  %6417 = vmatprep.mubr.f32.mxu1 %v17828_v56  ;;  %v6268_v56 = vld [vmem:[%s20421_s4 + $0x3e0] sm:$0xff]  ;;  %20886 = vst [vmem:[#allocation35_spill] sm:$0xff] %v18123_v57  ;;  %v18161_v55 = vld [vmem:[#allocation5 + $0xda] sm:$0xff] }
 0x3d7   : > { %20885 = vst [vmem:[#allocation7_spill] sm:$0xff] %v18035_v36  ;;  %5853 = vst [vmem:[#allocation5 + $0x181] sm:$0xff] %v18035_v36  ;;  %6632 = vmatprep.mubr.f32.mxu0 %v18050_v15  ;;  %7000 = vmatpush2.msra.mxu0 %v6269_v60  ;;  %v6356_v6 = vpop.f32.mrf.mxu1  ;;  %v6257_v60 = vld [vmem:[%s20421_s4 + $0x388] sm:$0xff]  ;;  %v18269_v8 = vld [vmem:[#allocation5 + $0x16a] sm:$0xff] }
 0x3d8   : > { %7001 = vmatprep.subr.mxu0 %v17778_v1  ;;  %v18232_v6 = vld [vmem:[#allocation5 + $0x150] sm:$0xff]  ;;  %v5983_v57 = vld [vmem:[#allocation5 + $0x19] sm:$0xff] }
 0x3d9   : > { %6418 = vmatmul.mubr.f32.gmra.mxu1 %v18050_v15  ;;  %7002 = vmatpush2.msra.mxu0 %v6268_v56  ;;  %v18174_v56 = vld [vmem:[#allocation5 + $0xe2] sm:$0xff] }
 0x3da   : > { %6633 = vmatmul.mubr.f32.gmra.mxu0 %v18058_v34  ;;  %6422 = vmatprep.mubr.f32.mxu1 %v17729_v47  ;;  %v18078_v47 = vld [vmem:[#allocation5 + $0xb0] sm:$0xff]  ;;  %v18141_v48 = vpop.f32.mrf.mxu1 }
 0x3db   : > { %6637 = vmatprep.mubr.f32.mxu0 %v18065_v29  ;;  %7003 = vmatprep.subr.mxu0 %v17778_v1  ;;  %20887 = vst [vmem:[#allocation44_spill] sm:$0xff] %v18141_v48 }
 0x3dc   : > { %7004 = vmatpush2.msra.mxu0 %v6267_v28  ;;  %v6361_v58 = vpop.f32.mrf.mxu1  ;;  %v18181_v28 = vld [vmem:[#allocation5 + $0x108] sm:$0xff] }
 0x3dd   : > { %6423 = vmatmul.mubr.f32.gmra.mxu1 %v18065_v29  ;;  %7005 = vmatprep.subr.mxu0 %v17778_v1  ;;  %v18244_v58 = vld [vmem:[#allocation5 + $0x142] sm:$0xff] }
 0x3de   : > { %6638 = vmatmul.mubr.f32.gmra.mxu0 %v18073_v62  ;;  %6427 = vmatprep.mubr.f32.mxu1 %v17843_v10  ;;  %v6265_v10 = vld [vmem:[%s20421_s4 + $0x3c8] sm:$0xff]  ;;  %v18265_v48 = vld [vmem:[#allocation5 + $0x180] sm:$0xff]  ;;  %v18276_v36 = vld [vmem:[#allocation5 + $0x188] sm:$0xff] }
 0x3df   : > { %6642 = vmatprep.mubr.f32.mxu0 %v18078_v47  ;;  %7006 = vmatpush2.msra.mxu0 %v6266_v43  ;;  %v18186_v43 = vld [vmem:[#allocation5 + $0xf2] sm:$0xff]  ;;  %20888 = vst [vmem:[#allocation45_spill] sm:$0xff] %v18265_v48 }
 0x3e0   : > { %7007 = vmatprep.subr.mxu0 %v17778_v1 }
 0x3e1   : > { %6428 = vmatmul.mubr.f32.gmra.mxu1 %v18078_v47  ;;  %7008 = vmatpush2.msra.mxu0 %v6265_v10  ;;  %v18190_v10 = vld [vmem:[#allocation5 + $0x110] sm:$0xff] }
 0x3e2   : > { %6643 = vmatmul.mubr.f32.gmra.mxu0 %v18086_v39  ;;  %6432 = vmatprep.mubr.f32.mxu1 %v17733_v16  ;;  %v18106_v16 = vld [vmem:[#allocation5 + $0xc8] sm:$0xff] }
 0x3e3   : > { %6647 = vmatprep.mubr.f32.mxu0 %v18093_v12  ;;  %7009 = vmatprep.subr.mxu0 %v17778_v1 }
 0x3e4   : > { %7010 = vmatpush2.msra.mxu0 %v6264_v38  ;;  %v18202_v38 = vld [vmem:[#allocation5 + $0x10a] sm:$0xff] }
 0x3e5   : > { %6433 = vmatmul.mubr.f32.gmra.mxu1 %v18093_v12  ;;  %7011 = vmatprep.subr.mxu0 %v17778_v1 }
 0x3e6   : > { %6648 = vmatmul.mubr.f32.gmra.mxu0 %v18101_v13  ;;  %6437 = vmatprep.mubr.f32.mxu1 %v17830_v18  ;;  %v6262_v18 = vld [vmem:[%s20421_s4 + $0x3b0] sm:$0xff] }
 0x3e7   : > { %6652 = vmatprep.mubr.f32.mxu0 %v18106_v16  ;;  %7012 = vmatpush2.msra.mxu0 %v6263_v14  ;;  %v18210_v14 = vld [vmem:[#allocation5 + $0x112] sm:$0xff] }
 0x3e8   : > { %7013 = vmatprep.subr.mxu0 %v17778_v1 }
 0x3e9   : > { %6438 = vmatmul.mubr.f32.gmra.mxu1 %v18106_v16  ;;  %7014 = vmatpush2.msra.mxu0 %v6262_v18  ;;  %v18218_v18 = vld [vmem:[#allocation5 + $0x122] sm:$0xff] }
 0x3ea   : > { %6653 = vmatmul.mubr.f32.gmra.mxu0 %v18114_v53  ;;  %6442 = vmatprep.mubr.f32.mxu1 %v17736_v45  ;;  %v18136_v45 = vld [vmem:[#allocation5 + $0xe0] sm:$0xff] }
 0x3eb   : > { %6657 = vmatprep.mubr.f32.mxu0 %v18121_v52  ;;  %7015 = vmatprep.subr.mxu0 %v17778_v1 }
 0x3ec   : > { %7016 = vmatpush2.msra.mxu0 %v6261_v20  ;;  %v18226_v20 = vld [vmem:[#allocation5 + $0x12a] sm:$0xff] }
 0x3ed   : > { %6443 = vmatmul.mubr.f32.gmra.mxu1 %v18121_v52  ;;  %7017 = vmatprep.subr.mxu0 %v17778_v1 }
 0x3ee   : > { %6658 = vmatmul.mubr.f32.gmra.mxu0 %v18131_v32  ;;  %6447 = vmatprep.mubr.f32.mxu1 %v17845_v25  ;;  %v6259_v25 = vld [vmem:[%s20421_s4 + $0x398] sm:$0xff] }
 0x3ef   : > { %6662 = vmatprep.mubr.f32.mxu0 %v18136_v45  ;;  %7018 = vmatpush2.msra.mxu0 %v6260_v7  ;;  %v18240_v7 = vld [vmem:[#allocation5 + $0x158] sm:$0xff] }
 0x3f0   : > { %7019 = vmatprep.subr.mxu0 %v17778_v1 }
 0x3f1   : > { %6448 = vmatmul.mubr.f32.gmra.mxu1 %v18136_v45  ;;  %7020 = vmatpush2.msra.mxu0 %v6259_v25  ;;  %v18246_v25 = vld [vmem:[#allocation5 + $0x169] sm:$0xff] }
 0x3f2   : > { %6663 = vmatmul.mubr.f32.gmra.mxu0 %v18146_v35  ;;  %6452 = vmatprep.mubr.f32.mxu1 %v17739_v9  ;;  %v18166_v9 = vld [vmem:[#allocation5 + $0xf8] sm:$0xff] }
 0x3f3   : > { %6667 = vmatprep.mubr.f32.mxu0 %v18153_v63  ;;  %7021 = vmatprep.subr.mxu0 %v17778_v1 }
 0x3f4   : > { %7022 = vmatpush2.msra.mxu0 %v6258_v0  ;;  %v18250_v0 = vld [vmem:[#allocation5 + $0x168] sm:$0xff] }
 0x3f5   : > { %6453 = vmatmul.mubr.f32.gmra.mxu1 %v18153_v63  ;;  %7023 = vmatprep.subr.mxu0 %v17778_v1 }
 0x3f6   : > { %6668 = vmatmul.mubr.f32.gmra.mxu0 %v18161_v55  ;;  %6457 = vmatprep.mubr.f32.mxu1 %v17852_v27  ;;  %v6256_v27 = vld [vmem:[%s20421_s4 + $0x380] sm:$0xff] }
 0x3f7   : > { %6672 = vmatprep.mubr.f32.mxu0 %v18166_v9  ;;  %7024 = vmatpush2.msra.mxu0 %v6257_v60  ;;  %v18258_v60 = vld [vmem:[#allocation5 + $0x170] sm:$0xff] }
 0x3f8   : > { %7025 = vmatprep.subr.mxu0 %v17778_v1  ;;  %v18198_v1 = vld [vmem:[#allocation5 + $0x120] sm:$0xff] }
 0x3f9   : > { %6458 = vmatmul.mubr.f32.gmra.mxu1 %v18166_v9  ;;  %7026 = vmatpush2.msra.mxu0 %v6256_v27  ;;  %v18262_v27 = vld [vmem:[#allocation5 + $0x15a] sm:$0xff] }
 0x3fa   : > { %6673 = vmatmul.mubr.f32.gmra.mxu0 %v18174_v56  ;;  %6462 = vmatprep.mubr.f32.mxu1 %v17750_v30  ;;  %v18194_v30 = vld [vmem:[#allocation5 + $0xfa] sm:$0xff] }
 0x3fb   : > { %6677 = vmatprep.mubr.f32.mxu0 %v18181_v28 }
 0x3fd   : > { %6463 = vmatmul.mubr.f32.gmra.mxu1 %v18181_v28 }
 0x3fe   : > { %6678 = vmatmul.mubr.f32.gmra.mxu0 %v18186_v43  ;;  %6467 = vmatprep.mubr.f32.mxu1 %v17859_v59  ;;  %v18206_v59 = vld [vmem:[#allocation5 + $0x128] sm:$0xff] }
 0x3ff   : > { %6682 = vmatprep.mubr.f32.mxu0 %v18190_v10 }
 0x401   : > { %6468 = vmatmul.mubr.f32.gmra.mxu1 %v18190_v10 }
 0x402   : > { %6683 = vmatmul.mubr.f32.gmra.mxu0 %v18194_v30  ;;  %6472 = vmatprep.mubr.f32.mxu1 %v17795_v2  ;;  %v18214_v2 = vld [vmem:[#allocation5 + $0x138] sm:$0xff] }
 0x403   : > { %6687 = vmatprep.mubr.f32.mxu0 %v18198_v1 }
 0x405   : > { %6473 = vmatmul.mubr.f32.gmra.mxu1 %v18198_v1 }
 0x406   : > { %6688 = vmatmul.mubr.f32.gmra.mxu0 %v18202_v38  ;;  %6477 = vmatprep.mubr.f32.mxu1 %v17863_v44  ;;  %v18222_v44 = vld [vmem:[#allocation5 + $0x140] sm:$0xff] }
 0x407   : > { %6692 = vmatprep.mubr.f32.mxu0 %v18206_v59 }
 0x409   : > { %6478 = vmatmul.mubr.f32.gmra.mxu1 %v18206_v59 }
 0x40a   : > { %6693 = vmatmul.mubr.f32.gmra.mxu0 %v18210_v14  ;;  %6482 = vmatprep.mubr.f32.mxu1 %v17886_v41  ;;  %v18228_v41 = vld [vmem:[#allocation5 + $0x151] sm:$0xff] }
 0x40b   : > { %6697 = vmatprep.mubr.f32.mxu0 %v18214_v2 }
 0x40d   : > { %6483 = vmatmul.mubr.f32.gmra.mxu1 %v18214_v2 }
 0x40e   : > { %6698 = vmatmul.mubr.f32.gmra.mxu0 %v18218_v18  ;;  %6487 = vmatprep.mubr.f32.mxu1 %v17879_v46  ;;  %v18236_v46 = vld [vmem:[#allocation5 + $0x13a] sm:$0xff] }
 0x40f   : > { %6702 = vmatprep.mubr.f32.mxu0 %v18222_v44 }
 0x411   : > { %6488 = vmatmul.mubr.f32.gmra.mxu1 %v18222_v44 }
 0x412   : > { %6703 = vmatmul.mubr.f32.gmra.mxu0 %v18226_v20  ;;  %6492 = vmatprep.mubr.f32.mxu1 %v18228_v41 }
 0x413   : > { %6707 = vmatprep.mubr.f32.mxu0 %v18232_v6 }
 0x415   : > { %6493 = vmatmul.mubr.f32.gmra.mxu1 %v18232_v6 }
 0x416   : > { %6708 = vmatmul.mubr.f32.gmra.mxu0 %v18236_v46  ;;  %6497 = vmatprep.mubr.f32.mxu1 %v17900_v11  ;;  %v18254_v11 = vld [vmem:[#allocation5 + $0x152] sm:$0xff] }
 0x417   : > { %6712 = vmatprep.mubr.f32.mxu0 %v18240_v7 }
 0x419   : > { %6498 = vmatmul.mubr.f32.gmra.mxu1 %v18240_v7 }
 0x41a   : > { %6713 = vmatmul.mubr.f32.gmra.mxu0 %v18244_v58  ;;  %6502 = vmatprep.mubr.f32.mxu1 %v18246_v25 }
 0x41b   : > { %6717 = vmatprep.mubr.f32.mxu0 %v18250_v0 }
 0x41d   : > { %6503 = vmatmul.mubr.f32.gmra.mxu1 %v18250_v0 }
 0x41e   : > { %6718 = vmatmul.mubr.f32.gmra.mxu0 %v18254_v11  ;;  %6507 = vmatprep.mubr.f32.mxu1 %v17929_v33  ;;  %v6286_v33 = vld [vmem:[%s20421_s4 + $0x470] sm:$0xff] }
 0x41f   : > { %6722 = vmatprep.mubr.f32.mxu0 %v18258_v60 }
 0x421   : > { %6508 = vmatmul.mubr.f32.gmra.mxu1 %v18258_v60 }
 0x422   : > { %6723 = vmatmul.mubr.f32.gmra.mxu0 %v18262_v27  ;;  %6802 = vmatprep.mubr.f32.mxu1 %v17915_v17  ;;  %v5984_v17 = vld [vmem:[#allocation5 + $0x21] sm:$0xff] }
 0x423   : > { %6727 = vmatprep.mubr.f32.mxu0 %v18265_v48  ;;  %v18280_v48 = vld [vmem:[#allocation5 + $0x172] sm:$0xff] }
 0x425   : > { %6803 = vmatmul.mubr.f32.vlgmr.msra.gmra.mxu1 %v5983_v57  ;;  %v6285_v57 = vld [vmem:[%s20421_s4 + $0x468] sm:$0xff] }
 0x426   : > { %6728 = vmatmul.mubr.f32.gmra.mxu0 %v18269_v8  ;;  %12770 = vmatpush3.msra.mxu1 %v17822_v50  ;;  %v6080_v50 = vld [vmem:[#allocation5 + $0x31] sm:$0xff] }
 0x427   : > { %6732 = vmatprep.mubr.f32.mxu0 %v18276_v36  ;;  %6807 = vmatprep.mubr.f32.mxu1 %v17932_v49  ;;  %v6284_v49 = vld [vmem:[%s20421_s4 + $0x460] sm:$0xff] }
 0x428   : > { %12771 = vmatprep.subr.mxu1 %v6286_v33 }
 0x429   : > { %6808 = vmatmul.mubr.f32.gmra.mxu1 %v5984_v17  ;;  %v6081_v17 = vld [vmem:[#allocation5 + $0x39] sm:$0xff] }
 0x42a   : > { %6733 = vmatmul.mubr.f32.gmra.mxu0 %v18280_v48  ;;  %6812 = vmatprep.mubr.f32.mxu1 %v17951_v61  ;;  %v6283_v61 = vld [vmem:[%s20421_s4 + $0x458] sm:$0xff] }
 0x42b   : > { %7027 = vmatprep.mubr.f32.mxu0 %v6080_v50  ;;  %12772 = vmatpush3.msra.mxu1 %v6286_v33  ;;  %v6082_v33 = vld [vmem:[#allocation5 + $0x49] sm:$0xff] }
 0x42c   : > { %12773 = vmatprep.subr.mxu1 %v6285_v57 }
 0x42d   : > { %6813 = vmatmul.mubr.f32.gmra.mxu1 %v6080_v50 }
 0x42e   : > { %7028 = vmatmul.mubr.f32.vlgmr.msra.gmra.mxu0 %v17905_v31  ;;  %6817 = vmatprep.mubr.f32.mxu1 %v17965_v23  ;;  %v6282_v31 = vld [vmem:[%s20421_s4 + $0x450] sm:$0xff]  ;;  %v6083_v23 = vld [vmem:[#allocation5 + $0x51] sm:$0xff] }
 0x42f   : > { %7032 = vmatprep.mubr.f32.mxu0 %v6081_v17  ;;  %12774 = vmatpush3.msra.mxu1 %v6285_v57 }
 0x430   : > { %12775 = vmatprep.subr.mxu1 %v6284_v49 }
 0x431   : > { %6818 = vmatmul.mubr.f32.gmra.mxu1 %v6081_v17 }
 0x432   : > { %7033 = vmatmul.mubr.f32.gmra.mxu0 %v17920_v40  ;;  %6822 = vmatprep.mubr.f32.mxu1 %v17980_v3  ;;  %v6281_v40 = vld [vmem:[%s20421_s4 + $0x448] sm:$0xff]  ;;  %v6084_v3 = vld [vmem:[#allocation5 + $0x61] sm:$0xff] }
 0x433   : > { %7037 = vmatprep.mubr.f32.mxu0 %v6082_v33  ;;  %12776 = vmatpush3.msra.mxu1 %v6284_v49 }
 0x434   : > { %12777 = vmatprep.subr.mxu1 %v6283_v61 }
 0x435   : > { %6823 = vmatmul.mubr.f32.gmra.mxu1 %v6082_v33 }
 0x436   : > { %7038 = vmatmul.mubr.f32.gmra.mxu0 %v17939_v54  ;;  %6827 = vmatprep.mubr.f32.mxu1 %v17993_v4  ;;  %v6280_v54 = vld [vmem:[%s20421_s4 + $0x440] sm:$0xff] }
 0x437   : > { %7042 = vmatprep.mubr.f32.mxu0 %v6083_v23  ;;  %12778 = vmatpush3.msra.mxu1 %v6283_v61  ;;  %v6085_v4 = vld [vmem:[#allocation5 + $0x69] sm:$0xff] }
 0x438   : > { %12779 = vmatprep.subr.mxu1 %v6282_v31 }
 0x439   : > { %6828 = vmatmul.mubr.f32.gmra.mxu1 %v6083_v23 }
 0x43a   : > { %7043 = vmatmul.mubr.f32.gmra.mxu0 %v17957_v19  ;;  %6832 = vmatprep.mubr.f32.mxu1 %v18008_v24  ;;  %v6279_v19 = vld [vmem:[%s20421_s4 + $0x438] sm:$0xff]  ;;  %v6086_v24 = vld [vmem:[#allocation5 + $0x79] sm:$0xff] }
 0x43b   : > { %7047 = vmatprep.mubr.f32.mxu0 %v6084_v3  ;;  %12780 = vmatpush3.msra.mxu1 %v6282_v31 }
 0x43c   : > { %12781 = vmatprep.subr.mxu1 %v6281_v40 }
 0x43d   : > { %6833 = vmatmul.mubr.f32.gmra.mxu1 %v6084_v3 }
 0x43e   : > { %7048 = vmatmul.mubr.f32.gmra.mxu0 %v17972_v42  ;;  %6837 = vmatprep.mubr.f32.mxu1 %v18025_v51  ;;  %v6278_v42 = vld [vmem:[%s20421_s4 + $0x430] sm:$0xff] }
 0x43f   : > { %7052 = vmatprep.mubr.f32.mxu0 %v6085_v4  ;;  %12782 = vmatpush3.msra.mxu1 %v6281_v40  ;;  %v6087_v51 = vld [vmem:[#allocation5 + $0x81] sm:$0xff] }
 0x440   : > { %12783 = vmatprep.subr.mxu1 %v6280_v54  ;;  %v6100_v40 = vld [vmem:[#allocation5 + $0x121] sm:$0xff] }
 0x441   : > { %6838 = vmatmul.mubr.f32.gmra.mxu1 %v6085_v4 }
 0x442   : > { %7053 = vmatmul.mubr.f32.gmra.mxu0 %v17985_v26  ;;  %6842 = vmatprep.mubr.f32.mxu1 %v18045_v5  ;;  %v6277_v26 = vld [vmem:[%s20421_s4 + $0x428] sm:$0xff] }
 0x443   : > { %7057 = vmatprep.mubr.f32.mxu0 %v6086_v24  ;;  %12784 = vmatpush3.msra.mxu1 %v6280_v54  ;;  %v6088_v5 = vld [vmem:[#allocation5 + $0x91] sm:$0xff] }
 0x444   : > { %12785 = vmatprep.subr.mxu1 %v6279_v19 }
 0x445   : > { %6843 = vmatmul.mubr.f32.gmra.mxu1 %v6086_v24 }
 0x446   : > { %7058 = vmatmul.mubr.f32.gmra.mxu0 %v18000_v21  ;;  %6847 = vmatprep.mubr.f32.mxu1 %v18058_v34  ;;  %v6276_v21 = vld [vmem:[%s20421_s4 + $0x420] sm:$0xff]  ;;  %v6089_v34 = vld [vmem:[#allocation5 + $0x99] sm:$0xff] }
 0x447   : > { %7062 = vmatprep.mubr.f32.mxu0 %v6087_v51  ;;  %12786 = vmatpush3.msra.mxu1 %v6279_v19  ;;  %v6101_v19 = vld [vmem:[#allocation5 + $0x129] sm:$0xff] }
 0x448   : > { %12787 = vmatprep.subr.mxu1 %v6278_v42 }
 0x449   : > { %6848 = vmatmul.mubr.f32.gmra.mxu1 %v6087_v51 }
 0x44a   : > { %7063 = vmatmul.mubr.f32.gmra.mxu0 %v18014_v37  ;;  %6852 = vmatprep.mubr.f32.mxu1 %v18073_v62  ;;  %v6275_v37 = vld [vmem:[%s20421_s4 + $0x418] sm:$0xff] }
 0x44b   : > { %7067 = vmatprep.mubr.f32.mxu0 %v6088_v5  ;;  %12788 = vmatpush3.msra.mxu1 %v6278_v42  ;;  %v6090_v62 = vld [vmem:[#allocation5 + $0xa9] sm:$0xff] }
 0x44c   : > { %12789 = vmatprep.subr.mxu1 %v6277_v26 }
 0x44d   : > { %6853 = vmatmul.mubr.f32.gmra.mxu1 %v6088_v5 }
 0x44e   : > { %7068 = vmatmul.mubr.f32.gmra.mxu0 %v18032_v22  ;;  %6857 = vmatprep.mubr.f32.mxu1 %v18086_v39  ;;  %v6274_v22 = vld [vmem:[%s20421_s4 + $0x410] sm:$0xff]  ;;  %v6091_v39 = vld [vmem:[#allocation5 + $0xb1] sm:$0xff] }
 0x44f   : > { %7072 = vmatprep.mubr.f32.mxu0 %v6089_v34  ;;  %12790 = vmatpush3.msra.mxu1 %v6277_v26  ;;  %v6102_v26 = vld [vmem:[#allocation5 + $0x139] sm:$0xff] }
 0x450   : > { %12791 = vmatprep.subr.mxu1 %v6276_v21 }
 0x451   : > { %6858 = vmatmul.mubr.f32.gmra.mxu1 %v6089_v34 }
 0x452   : > { %7073 = vmatmul.mubr.f32.gmra.mxu0 %v18050_v15  ;;  %6862 = vmatprep.mubr.f32.mxu1 %v18101_v13  ;;  %v6273_v15 = vld [vmem:[%s20421_s4 + $0x408] sm:$0xff]  ;;  %v6092_v13 = vld [vmem:[#allocation5 + $0xc1] sm:$0xff] }
 0x453   : > { %7077 = vmatprep.mubr.f32.mxu0 %v6090_v62  ;;  %12792 = vmatpush3.msra.mxu1 %v6276_v21 }
 0x454   : > { %12793 = vmatprep.subr.mxu1 %v6275_v37 }
 0x455   : > { %6863 = vmatmul.mubr.f32.gmra.mxu1 %v6090_v62 }
 0x456   : > { %7078 = vmatmul.mubr.f32.gmra.mxu0 %v18065_v29  ;;  %6867 = vmatprep.mubr.f32.mxu1 %v18114_v53  ;;  %v6272_v29 = vld [vmem:[%s20421_s4 + $0x400] sm:$0xff] }
 0x457   : > { %7082 = vmatprep.mubr.f32.mxu0 %v6091_v39  ;;  %12794 = vmatpush3.msra.mxu1 %v6275_v37  ;;  %v6093_v53 = vld [vmem:[#allocation5 + $0xc9] sm:$0xff]  ;;  %v6103_v37 = vld [vmem:[#allocation5 + $0x141] sm:$0xff] }
 0x458   : > { %12795 = vmatprep.subr.mxu1 %v6274_v22 }
 0x459   : > { %6868 = vmatmul.mubr.f32.gmra.mxu1 %v6091_v39 }
 0x45a   : > { %7083 = vmatmul.mubr.f32.gmra.mxu0 %v18078_v47  ;;  %6872 = vmatprep.mubr.f32.mxu1 %v18131_v32  ;;  %v18355_v47 = vld [vmem:[%s20424_s7] sm:$0xf]  ;;  %v6094_v32 = vld [vmem:[#allocation5 + $0xd9] sm:$0xff] }
 0x45b   : > { %7087 = vmatprep.mubr.f32.mxu0 %v6092_v13  ;;  %12796 = vmatpush3.msra.mxu1 %v6274_v22 }
 0x45c   : > { %12797 = vmatprep.subr.mxu1 %v6273_v15 }
 0x45d   : > { %6873 = vmatmul.mubr.f32.gmra.mxu1 %v6092_v13 }
 0x45e   : > { %7088 = vmatmul.mubr.f32.gmra.mxu0 %v18093_v12  ;;  %6877 = vmatprep.mubr.f32.mxu1 %v18146_v35  ;;  %v6095_v12 = vld [vmem:[#allocation5 + $0xe1] sm:$0xff] }
 0x45f   : > { %7092 = vmatprep.mubr.f32.mxu0 %v6093_v53  ;;  %12798 = vmatpush3.msra.mxu1 %v6273_v15 }
 0x460   : > { %12799 = vmatprep.subr.mxu1 %v6272_v29 }
 0x461   : > { %6878 = vmatmul.mubr.f32.gmra.mxu1 %v6093_v53  ;;  %v6105_v53 = vld [vmem:[#allocation5 + $0x159] sm:$0xff] }
 0x462   : > { %7093 = vmatmul.mubr.f32.gmra.mxu0 %v18106_v16  ;;  %6882 = vmatprep.mubr.f32.mxu1 %v18161_v55  ;;  %v6096_v16 = vld [vmem:[#allocation5 + $0xf1] sm:$0xff] }
 0x463   : > { %7097 = vmatprep.mubr.f32.mxu0 %v6094_v32  ;;  %12800 = vmatpush3.msra.mxu1 %v6272_v29 }
 0x464   : > { %12849 = vmatprep.subr.msk.mxu1 %vm727_vm0, %v18355_v47 }
 0x465   : > { %6883 = vmatmul.mubr.f32.gmra.mxu1 %v6094_v32 }
 0x466   : > { %7098 = vmatmul.mubr.f32.gmra.mxu0 %v18121_v52  ;;  %6887 = vmatprep.mubr.f32.mxu1 %v18174_v56  ;;  %v6364_v35 = vpop.f32.mrf.mxu1  ;;  %v6097_v52 = vld [vmem:[#allocation5 + $0xf9] sm:$0xff] }
 0x467   : > { %7102 = vmatprep.mubr.f32.mxu0 %v6095_v12  ;;  %v18363_v57 = vpop.f32.mrf.mxu0 }
 0x468   : > { %v6366_v55 = vpop.f32.mrf.mxu1 }
 0x469   : > { %6888 = vmatmul.mubr.f32.gmra.mxu1 %v6095_v12  ;;  %v6581_v50 = vpop.f32.mrf.mxu0 }
 0x46a   : > { %7103 = vmatmul.mubr.f32.gmra.mxu0 %v18136_v45  ;;  %6892 = vmatprep.mubr.f32.mxu1 %v18186_v43  ;;  %v6098_v45 = vld [vmem:[#allocation5 + $0x109] sm:$0xff]  ;;  %v6107_v50 = vld [vmem:[#allocation5 + $0x171] sm:$0xff] }
 0x46b   : > { %7107 = vmatprep.mubr.f32.mxu0 %v6096_v16 }
 0x46d   : > { %6893 = vmatmul.mubr.f32.gmra.mxu1 %v6096_v16 }
 0x46e   : > { %7108 = vmatmul.mubr.f32.gmra.mxu0 %v18153_v63  ;;  %6897 = vmatprep.mubr.f32.mxu1 %v18194_v30  ;;  %v6099_v63 = vld [vmem:[#allocation5 + $0x111] sm:$0xff] }
 0x46f   : > { %7112 = vmatprep.mubr.f32.mxu0 %v6097_v52 }
 0x471   : > { %v6369_v56 = vpop.f32.mrf.mxu1  ;;  %6898 = vmatmul.mubr.f32.gmra.mxu1 %v6097_v52 }
 0x472   : > { %v18369_v49 = vpop.f32.mrf.mxu0  ;;  %7113 = vmatmul.mubr.f32.gmra.mxu0 %v18166_v9  ;;  %6902 = vmatprep.mubr.f32.mxu1 %v18202_v38 }
 0x473   : > { %7117 = vmatprep.mubr.f32.mxu0 %v6098_v45  ;;  %v6371_v43 = vpop.f32.mrf.mxu1 }
 0x474   : > { %v6586_v17 = vpop.f32.mrf.mxu0  ;;  %v18413_v43 = vld [vmem:[#allocation5 + $0x182] sm:$0xff] }
 0x475   : > { %v6374_v61 = vpop.f32.mrf.mxu1  ;;  %6903 = vmatmul.mubr.f32.gmra.mxu1 %v6098_v45 }
 0x476   : > { %v6589_v33 = vpop.f32.mrf.mxu0  ;;  %7118 = vmatmul.mubr.f32.gmra.mxu0 %v18181_v28  ;;  %6907 = vmatprep.mubr.f32.mxu1 %v18210_v14 }
 0x477   : > { %v18375_v30 = vadd.f32 %v6589_v33, %v6364_v35  ;;  %7122 = vmatprep.mubr.f32.mxu0 %v6099_v63  ;;  %v6376_v31 = vpop.f32.mrf.mxu1 }
 0x478   : > { %v6591_v23 = vpop.f32.mrf.mxu0  ;;  %v18421_v31 = vld [vmem:[#allocation5 + $0x18a] sm:$0xff] }
 0x479   : > { %v6379_v9 = vpop.f32.mrf.mxu1  ;;  %6908 = vmatmul.mubr.f32.gmra.mxu1 %v6099_v63 }
 0x47a   : > { %v6594_v38 = vpop.f32.mrf.mxu0  ;;  %7123 = vmatmul.mubr.f32.gmra.mxu0 %v18190_v10  ;;  %6912 = vmatprep.mubr.f32.mxu1 %v18218_v18 }
 0x47b   : > { %v18379_v3 = vadd.f32 %v6594_v38, %v6369_v56  ;;  %7127 = vmatprep.mubr.f32.mxu0 %v6100_v40  ;;  %v6381_v28 = vpop.f32.mrf.mxu1 }
 0x47c   : > { %v6596_v54 = vpop.f32.mrf.mxu0 }
 0x47d   : > { %v6384_v14 = vpop.f32.mrf.mxu1  ;;  %6913 = vmatmul.mubr.f32.gmra.mxu1 %v6100_v40  ;;  %v6110_v54 = vld [vmem:[#allocation5 + $0x199] sm:$0xff] }
 0x47e   : > { %v6599_v4 = vpop.f32.mrf.mxu0  ;;  %7128 = vmatmul.mubr.f32.gmra.mxu0 %v18198_v1  ;;  %6917 = vmatprep.mubr.f32.mxu1 %v18226_v20 }
 0x47f   : > { %v18383_v24 = vadd.f32 %v6599_v4, %v6374_v61  ;;  %7132 = vmatprep.mubr.f32.mxu0 %v6101_v19  ;;  %v6386_v10 = vpop.f32.mrf.mxu1  ;;  %v6112_v4 = vld [vmem:[#allocation5 + $0x32] sm:$0xff] }
 0x480   : > { %v6601_v42 = vpop.f32.mrf.mxu0 }
 0x481   : > { %v6389_v18 = vpop.f32.mrf.mxu1  ;;  %6918 = vmatmul.mubr.f32.gmra.mxu1 %v6101_v19 }
 0x482   : > { %v6604_v51 = vpop.f32.mrf.mxu0  ;;  %7133 = vmatmul.mubr.f32.gmra.mxu0 %v18206_v59  ;;  %6922 = vmatprep.mubr.f32.mxu1 %v18236_v46 }
 0x483   : > { %v18387_v5 = vadd.f32 %v6604_v51, %v6379_v9  ;;  %7137 = vmatprep.mubr.f32.mxu0 %v6102_v26  ;;  %v6391_v1 = vpop.f32.mrf.mxu1  ;;  %v20890_v9 = vld [vmem:[#allocation45_spill] sm:$0xff]  ;;  %v6113_v51 = vld [vmem:[#allocation5 + $0x3a] sm:$0xff] }
 0x484   : > { %v6606_v21 = vpop.f32.mrf.mxu0 }
 0x485   : > { %v6394_v20 = vpop.f32.mrf.mxu1  ;;  %6923 = vmatmul.mubr.f32.gmra.mxu1 %v6102_v26  ;;  %v6111_v26 = vld [vmem:[#allocation5 + $0x1a1] sm:$0xff] }
 0x486   : > { %v6609_v34 = vpop.f32.mrf.mxu0  ;;  %7138 = vmatmul.mubr.f32.gmra.mxu0 %v18214_v2  ;;  %6927 = vmatprep.mubr.f32.mxu1 %v18244_v58 }
 0x487   : > { %v18391_v62 = vadd.f32 %v6609_v34, %v6384_v14  ;;  %7142 = vmatprep.mubr.f32.mxu0 %v6103_v37  ;;  %v6396_v59 = vpop.f32.mrf.mxu1  ;;  %v6114_v34 = vld [vmem:[#allocation5 + $0x4a] sm:$0xff] }
 0x488   : > { %v6611_v22 = vpop.f32.mrf.mxu0 }
 0x489   : > { %v6399_v46 = vpop.f32.mrf.mxu1  ;;  %6928 = vmatmul.mubr.f32.gmra.mxu1 %v6103_v37  ;;  %v6115_v22 = vld [vmem:[#allocation5 + $0x52] sm:$0xff] }
 0x48a   : > { %v6614_v39 = vpop.f32.mrf.mxu0  ;;  %7143 = vmatmul.mubr.f32.gmra.mxu0 %v18222_v44  ;;  %6932 = vmatprep.mubr.f32.mxu1 %v18254_v11 }
 0x48b   : > { %v18395_v15 = vadd.f32 %v6614_v39, %v6389_v18  ;;  %7147 = vmatprep.mubr.f32.mxu0 %v18228_v41  ;;  %v6401_v2 = vpop.f32.mrf.mxu1  ;;  %v6116_v39 = vld [vmem:[#allocation5 + $0x62] sm:$0xff] }
 0x48c   : > { %v6616_v13 = vpop.f32.mrf.mxu0 }
 0x48d   : > { %v6404_v58 = vpop.f32.mrf.mxu1  ;;  %6933 = vmatmul.mubr.f32.gmra.mxu1 %v18228_v41 }
 0x48e   : > { %v6619_v29 = vpop.f32.mrf.mxu0  ;;  %7148 = vmatmul.mubr.f32.gmra.mxu0 %v18232_v6  ;;  %6937 = vmatprep.mubr.f32.mxu1 %v18262_v27 }
 0x48f   : > { %v18401_v32 = vadd.f32 %v6619_v29, %v6394_v20  ;;  %7152 = vmatprep.mubr.f32.mxu0 %v6105_v53  ;;  %v6406_v44 = vpop.f32.mrf.mxu1  ;;  %v13375_v20 = vld [vmem:[#allocation5] sm:$0xff] }
 0x490   : > { %v6621_v11 = vpop.f32.mrf.mxu0  ;;  %v6118_v44 = vld [vmem:[#allocation5 + $0x7a] sm:$0xff] }
 0x491   : > { %v6409_v12 = vpop.f32.mrf.mxu1  ;;  %6938 = vmatmul.mubr.f32.gmra.mxu1 %v6105_v53  ;;  %v6117_v53 = vld [vmem:[#allocation5 + $0x6a] sm:$0xff] }
 0x492   : > { %v6624_v35 = vpop.f32.mrf.mxu0  ;;  %7153 = vmatmul.mubr.f32.gmra.mxu0 %v18240_v7  ;;  %6942 = vmatprep.mubr.f32.mxu1 %v18269_v8 }
 0x493   : > { %v18405_v16 = vadd.f32 %v6624_v35, %v6399_v46  ;;  %7157 = vmatprep.mubr.f32.mxu0 %v18246_v25  ;;  %v6411_v41 = vpop.f32.mrf.mxu1 }
 0x494   : > { %v6626_v6 = vpop.f32.mrf.mxu0 }
 0x495   : > { %v6414_v27 = vpop.f32.mrf.mxu1  ;;  %6943 = vmatmul.mubr.f32.gmra.mxu1 %v18246_v25  ;;  %v6119_v6 = vld [vmem:[#allocation5 + $0x82] sm:$0xff] }
 0x496   : > { %v6629_v55 = vpop.f32.mrf.mxu0  ;;  %7158 = vmatmul.mubr.f32.gmra.mxu0 %v18250_v0  ;;  %6947 = vmatprep.mubr.f32.mxu1 %v18280_v48  ;;  %v20889_v0 = vld [vmem:[#allocation7_spill] sm:$0xff] }
 0x497   : > { %v18411_v52 = vadd.f32 %v6629_v55, %v6404_v58  ;;  %7162 = vmatprep.mubr.f32.mxu0 %v6107_v50  ;;  %v6416_v7 = vpop.f32.mrf.mxu1  ;;  %v6120_v55 = vld [vmem:[#allocation5 + $0x92] sm:$0xff] }
 0x498   : > { %v6631_v56 = vpop.f32.mrf.mxu0 }
 0x499   : > { %v6419_v45 = vpop.f32.mrf.mxu1  ;;  %6948 = vmatmul.mubr.f32.gmra.mxu1 %v6107_v50 }
 0x49a   : > { %v6634_v17 = vpop.f32.mrf.mxu0  ;;  %7163 = vmatmul.mubr.f32.gmra.mxu0 %v18258_v60  ;;  %6952 = vmatprep.mubr.f32.mxu1 %v18413_v43  ;;  %v20891_v60 = vld [vmem:[#allocation43_spill] sm:$0xff] }
 0x49b   : > { %v18417_v25 = vadd.f32 %v6634_v17, %v6409_v12  ;;  %7167 = vmatprep.mubr.f32.mxu0 %v20889_v0  ;;  %v6421_v61 = vpop.f32.mrf.mxu1  ;;  %v6121_v17 = vld [vmem:[#allocation5 + $0x9a] sm:$0xff] }
 0x49c   : > { %v6636_v33 = vpop.f32.mrf.mxu0 }
 0x49d   : > { %v6424_v63 = vpop.f32.mrf.mxu1  ;;  %6953 = vmatmul.mubr.f32.gmra.mxu1 %v20889_v0  ;;  %v12080_v0 = vld [vmem:[%s20427_s10 + $0x4] sm:$0xf]  ;;  %v6122_v33 = vld [vmem:[#allocation5 + $0xaa] sm:$0xff] }
 0x49e   : > { %v6639_v23 = vpop.f32.mrf.mxu0  ;;  %7168 = vmatmul.mubr.f32.gmra.mxu0 %v20890_v9  ;;  %6957 = vmatprep.mubr.f32.mxu1 %v18421_v31 }
 0x49f   : > { %v18425_v38 = vadd.f32 %v6639_v23, %v6414_v27  ;;  %7172 = vmatprep.mubr.f32.mxu0 %v20891_v60  ;;  %v6426_v40 = vpop.f32.mrf.mxu1  ;;  %12899 = vmatprep.subr.msk.mxu0 %vm727_vm0, %v12080_v0 }
 0x4a0   : > { %v6641_v28 = vpop.f32.mrf.mxu0  ;;  %12900 = vmatpush3.msk.msra.mxu0 %vm727_vm0, %v12080_v0  ;;  %v6123_v40 = vld [vmem:[#allocation5 + $0xb2] sm:$0xff]  ;;  %v6133_v0 = vld [vmem:[#allocation5 + $0x12a] sm:$0xff] }
 0x4a1   : > { %v6429_v14 = vpop.f32.mrf.mxu1  ;;  %6958 = vmatmul.mubr.f32.gmra.mxu1 %v20891_v60 }
 0x4a2   : > { %v6644_v19 = vpop.f32.mrf.mxu0  ;;  %7173 = vmatmul.mubr.f32.gmra.mxu0 %v18276_v36  ;;  %12801 = vmatprep.mubr.f32.mxu1 %v6112_v4 }
 0x4a3   : > { %v18430_v10 = vadd.f32 %v6644_v19, %v6419_v45  ;;  %v6431_v42 = vpop.f32.mrf.mxu1  ;;  %7177 = vmatprep.mubr.f32.mxu0 %v6110_v54  ;;  %v6124_v54 = vld [vmem:[#allocation5 + $0xc2] sm:$0xff] }
 0x4a4   : > { %v6646_v18 = vpop.f32.mrf.mxu0 }
 0x4a5   : > { %v6434_v1 = vpop.f32.mrf.mxu1  ;;  %12802 = vmatmul.mubr.f32.vlgmr.msra.gmra.mxu1 %v6113_v51  ;;  %v6125_v18 = vld [vmem:[#allocation5 + $0xca] sm:$0xff] }
 0x4a6   : > { %v6649_v21 = vpop.f32.mrf.mxu0  ;;  %7178 = vmatmul.mubr.f32.gmra.mxu0 %v13375_v20  ;;  %12850 = vmatpush3.msk.msra.mxu1 %vm727_vm0, %v18355_v47 }
 0x4a7   : > { %v18434_v37 = vadd.f32 %v6649_v21, %v6424_v63  ;;  %12804 = vmatprep.mubr.f32.mxu1 %v6114_v34  ;;  %v6436_v36 = vpop.f32.mrf.mxu1  ;;  %7182 = vmatprep.mubr.f32.mxu0 %v6111_v26  ;;  %v6126_v26 = vld [vmem:[#allocation5 + $0xda] sm:$0xff] }
 0x4a8   : > { %v6651_v59 = vpop.f32.mrf.mxu0  ;;  %v6127_v36 = vld [vmem:[#allocation5 + $0xe2] sm:$0xff] }
 0x4a9   : > { %v6439_v46 = vpop.f32.mrf.mxu1  ;;  %12805 = vmatmul.mubr.f32.gmra.mxu1 %v6115_v22  ;;  %v6128_v22 = vld [vmem:[#allocation5 + $0xf2] sm:$0xff] }
 0x4aa   : > { %v6654_v2 = vpop.f32.mrf.mxu0  ;;  %7183 = vmatmul.mubr.f32.gmra.mxu0 %v13375_v20  ;;  %12807 = vmatprep.mubr.f32.mxu1 %v6116_v39 }
 0x4ab   : > { %v18436_v13 = vadd.f32 %v6654_v2, %v6429_v14  ;;  %v6441_v58 = vpop.f32.mrf.mxu1 }
 0x4ac   : > { %v6656_v29 = vpop.f32.mrf.mxu0 }
 0x4ad   : > { %v6444_v47 = vpop.f32.mrf.mxu1  ;;  %12808 = vmatmul.mubr.f32.gmra.mxu1 %v6117_v53  ;;  %v6129_v29 = vld [vmem:[#allocation5 + $0xfa] sm:$0xff] }
 0x4ae   : > { %v6659_v11 = vpop.f32.mrf.mxu0  ;;  %12810 = vmatprep.mubr.f32.mxu1 %v6118_v44 }
 0x4af   : > { %v18438_v12 = vadd.f32 %v6659_v11, %v6434_v1  ;;  %v6446_v35 = vpop.f32.mrf.mxu1 }
 0x4b0   : > { %v6661_v41 = vpop.f32.mrf.mxu0 }
 0x4b1   : > { %v6449_v27 = vpop.f32.mrf.mxu1  ;;  %12811 = vmatmul.mubr.f32.gmra.mxu1 %v6119_v6  ;;  %v6131_v6 = vld [vmem:[#allocation5 + $0x112] sm:$0xff] }
 0x4b2   : > { %v6664_v50 = vpop.f32.mrf.mxu0  ;;  %12813 = vmatprep.mubr.f32.mxu1 %v6120_v55  ;;  %v6132_v55 = vld [vmem:[#allocation5 + $0x122] sm:$0xff] }
 0x4b3   : > { %v18440_v7 = vadd.f32 %v6664_v50, %v6439_v46  ;;  %v6451_v56 = vpop.f32.mrf.mxu1 }
 0x4b4   : > { %v6666_v45 = vpop.f32.mrf.mxu0 }
 0x4b5   : > { %v6454_v61 = vpop.f32.mrf.mxu1  ;;  %12814 = vmatmul.mubr.f32.gmra.mxu1 %v6121_v17 }
 0x4b6   : > { %v6669_v63 = vpop.f32.mrf.mxu0  ;;  %12816 = vmatprep.mubr.f32.mxu1 %v6122_v33  ;;  %v6134_v33 = vld [vmem:[#allocation5 + $0x13a] sm:$0xff] }
 0x4b7   : > { %v18447_v23 = vadd.f32 %v6669_v63, %v6444_v47  ;;  %v6456_v9 = vpop.f32.mrf.mxu1  ;;  %v6130_v47 = vld [vmem:[#allocation5 + $0x10a] sm:$0xff] }
 0x4b8   : > { %v6671_v60 = vpop.f32.mrf.mxu0 }
 0x4b9   : > { %v6459_v28 = vpop.f32.mrf.mxu1  ;;  %12817 = vmatmul.mubr.f32.gmra.mxu1 %v6123_v40 }
 0x4ba   : > { %v6674_v14 = vpop.f32.mrf.mxu0  ;;  %12819 = vmatprep.mubr.f32.mxu1 %v6124_v54 }
 0x4bb   : > { %v18449_v4 = vadd.f32 %v6674_v14, %v6449_v27  ;;  %v6461_v19 = vpop.f32.mrf.mxu1  ;;  %v6136_v14 = vld [vmem:[#allocation5 + $0x152] sm:$0xff] }
 0x4bc   : > { %v6676_v42 = vpop.f32.mrf.mxu0 }
 0x4bd   : > { %v6464_v51 = vpop.f32.mrf.mxu1  ;;  %12820 = vmatmul.mubr.f32.gmra.mxu1 %v6125_v18 }
 0x4be   : > { %v6679_v1 = vpop.f32.mrf.mxu0  ;;  %12822 = vmatprep.mubr.f32.mxu1 %v6126_v26  ;;  %v6137_v26 = vld [vmem:[#allocation5 + $0x15a] sm:$0xff] }
 0x4bf   : > { %v18451_v21 = vadd.f32 %v6679_v1, %v6454_v61  ;;  %v6466_v20 = vpop.f32.mrf.mxu1 }
 0x4c0   : > { %v6681_v34 = vpop.f32.mrf.mxu0 }
 0x4c1   : > { %v6469_v59 = vpop.f32.mrf.mxu1  ;;  %12823 = vmatmul.mubr.f32.gmra.mxu1 %v6127_v36 }
 0x4c2   : > { %v6684_v46 = vpop.f32.mrf.mxu0  ;;  %12825 = vmatprep.mubr.f32.mxu1 %v6128_v22 }
 0x4c3   : > { %v18453_v39 = vadd.f32 %v6684_v46, %v6459_v28  ;;  %v6471_v2 = vpop.f32.mrf.mxu1  ;;  %v6135_v28 = vld [vmem:[#allocation5 + $0x142] sm:$0xff] }
 0x4c4   : > { %v6686_v58 = vpop.f32.mrf.mxu0 }
 0x4c5   : > { %v6474_v53 = vpop.f32.mrf.mxu1  ;;  %12826 = vmatmul.mubr.f32.gmra.mxu1 %v6129_v29  ;;  %v6142_v29 = vld [vmem:[#allocation5 + $0x19a] sm:$0xff] }
 0x4c6   : > { %v6689_v44 = vpop.f32.mrf.mxu0  ;;  %12828 = vmatprep.mubr.f32.mxu1 %v6130_v47 }
 0x4c7   : > { %v18455_v11 = vadd.f32 %v6689_v44, %v6464_v51  ;;  %v6476_v35 = vpop.f32.mrf.mxu1  ;;  %v6143_v44 = vld [vmem:[#allocation5 + $0x1a2] sm:$0xff] }
 0x4c8   : > { %v6691_v41 = vpop.f32.mrf.mxu0 }
 0x4c9   : > { %v6479_v27 = vpop.f32.mrf.mxu1  ;;  %12829 = vmatmul.mubr.f32.gmra.mxu1 %v6131_v6 }
 0x4ca   : > { %v6694_v50 = vpop.f32.mrf.mxu0  ;;  %12831 = vmatprep.mubr.f32.mxu1 %v6132_v55  ;;  %v7492_v55 = vld [vmem:[%s13788_s21 + $0x8] sm:$0xff] }
 0x4cb   : > { %v18457_v56 = vadd.f32 %v6694_v50, %v6469_v59  ;;  %v6481_v45 = vpop.f32.mrf.mxu1 }
 0x4cc   : > { %v6696_v17 = vpop.f32.mrf.mxu0 }
 0x4cd   : > { %v6484_v61 = vpop.f32.mrf.mxu1  ;;  %12832 = vmatmul.mubr.f32.gmra.mxu1 %v6133_v0  ;;  %v20892_v17 = vld [vmem:[#allocation35_spill] sm:$0xff] }
 0x4ce   : > { %v6699_v63 = vpop.f32.mrf.mxu0  ;;  %12834 = vmatprep.mubr.f32.mxu1 %v6134_v33  ;;  %v6580_v0 = vadd.f32 %v18363_v57, %v20892_v17 }
 0x4cf   : > { %v18459_v9 = vadd.f32 %v6699_v63, %v6474_v53  ;;  %v6486_v60 = vpop.f32.mrf.mxu1 }
 0x4d0   : > { %v6701_v40 = vpop.f32.mrf.mxu0 }
 0x4d1   : > { %v6489_v54 = vpop.f32.mrf.mxu1  ;;  %12835 = vmatmul.mubr.f32.gmra.mxu1 %v6135_v28  ;;  %v7494_v40 = vld [vmem:[%s13788_s21 + $0x18] sm:$0xff] }
 0x4d2   : > { %v6704_v19 = vpop.f32.mrf.mxu0  ;;  %12837 = vmatprep.mubr.f32.mxu1 %v6136_v14  ;;  %v7495_v14 = vld [vmem:[%s13788_s21 + $0x20] sm:$0xff] }
 0x4d3   : > { %v18461_v42 = vadd.f32 %v6704_v19, %v6479_v27  ;;  %v6491_v18 = vpop.f32.mrf.mxu1  ;;  %v20893_v19 = vld [vmem:[#allocation44_spill] sm:$0xff] }
 0x4d4   : > { %v6706_v51 = vpop.f32.mrf.mxu0  ;;  %v6585_v18 = vadd.f32 %v18369_v49, %v20893_v19 }
 0x4d5   : > { %v6494_v1 = vpop.f32.mrf.mxu1  ;;  %12838 = vmatmul.mubr.f32.gmra.mxu1 %v6137_v26 }
 0x4d6   : > { %v6709_v20 = vpop.f32.mrf.mxu0  ;;  %12840 = vmatprep.mubr.f32.mxu1 %v18269_v8 }
 0x4d7   : > { %v18464_v34 = vadd.f32 %v6709_v20, %v6484_v61  ;;  %v6496_v36 = vpop.f32.mrf.mxu1  ;;  %v7496_v20 = vld [vmem:[%s13788_s21 + $0x28] sm:$0xff] }
 0x4d8   : > { %v6711_v59 = vpop.f32.mrf.mxu0 }
 0x4d9   : > { %v6499_v22 = vpop.f32.mrf.mxu1  ;;  %12841 = vmatmul.mubr.f32.gmra.mxu1 %v18280_v48  ;;  %v7491_v48 = vld [vmem:[%s13788_s21] sm:$0xff] }
 0x4da   : > { %v6714_v46 = vpop.f32.mrf.mxu0  ;;  %12843 = vmatprep.mubr.f32.mxu1 %v18413_v43 }
 0x4db   : > { %v18468_v2 = vadd.f32 %v6714_v46, %v6489_v54  ;;  %v6501_v58 = vpop.f32.mrf.mxu1 }
 0x4dc   : > { %v6716_v53 = vpop.f32.mrf.mxu0 }
 0x4dd   : > { %v6504_v47 = vpop.f32.mrf.mxu1  ;;  %12844 = vmatmul.mubr.f32.gmra.mxu1 %v18421_v31  ;;  %v7493_v31 = vld [vmem:[%s13788_s21 + $0x10] sm:$0xff]  ;;  %v7498_v53 = vld [vmem:[%s13788_s21 + $0x38] sm:$0xff] }
 0x4de   : > { %v6719_v8 = vpop.f32.mrf.mxu0  ;;  %12846 = vmatprep.mubr.f32.mxu1 %v6142_v29 }
 0x4df   : > { %v18471_v35 = vadd.f32 %v6719_v8, %v6494_v1  ;;  %v6506_v41 = vpop.f32.mrf.mxu1 }
 0x4e0   : > { %v6721_v6 = vpop.f32.mrf.mxu0 }
 0x4e1   : > { %v6509_v43 = vpop.f32.mrf.mxu1  ;;  %12847 = vmatmul.mubr.f32.gmra.mxu1 %v6143_v44  ;;  %v7499_v44 = vld [vmem:[%s13788_s21 + $0x40] sm:$0xff] }
 0x4e2   : > { %v6724_v27 = vpop.f32.mrf.mxu0  ;;  %12851 = vmatprep.mubr.msk.f32.mxu1 %vm441_vm1, %v7491_v48 }
 0x4e3   : > { %v18476_v50 = vadd.f32 %v6724_v27, %v6499_v22  ;;  %v6511_v45 = vpop.f32.mrf.mxu1  ;;  %v7497_v22 = vld [vmem:[%s13788_s21 + $0x30] sm:$0xff] }
 0x4e4   : > { %v6726_v61 = vpop.f32.mrf.mxu0  ;;  %v7501_v45 = vld [vmem:[%s13788_s21 + $0x50] sm:$0xff] }
 0x4e5   : > { %v6804_v33 = vpop.f32.mrf.mxu1  ;;  %12852 = vmatmul.mubr.msk.f32.vlgmr.msra.gmra.mxu1 %vm441_vm1, %v7492_v55 }
 0x4e6   : > { %v6729_v63 = vpop.f32.mrf.mxu0  ;;  %v6805_v60 = vadd.f32 %v6804_v33, %v6580_v0  ;;  %12854 = vmatprep.mubr.msk.f32.mxu1 %vm441_vm1, %v7493_v31 }
 0x4e7   : > { %v18484_v28 = vadd.f32 %v6729_v63, %v6504_v47  ;;  %v6806_v54 = vpop.f32.mrf.mxu1 }
 0x4e8   : > { %v6731_v51 = vpop.f32.mrf.mxu0 }
 0x4e9   : > { %v6809_v57 = vpop.f32.mrf.mxu1  ;;  %12855 = vmatmul.mubr.msk.f32.gmra.mxu1 %vm441_vm1, %v7494_v40 }
 0x4ea   : > { %v6734_v26 = vpop.f32.mrf.mxu0  ;;  %v6810_v1 = vadd.f32 %v6809_v57, %v6585_v18  ;;  %12857 = vmatprep.mubr.msk.f32.mxu1 %vm441_vm1, %v7495_v14  ;;  %v7505_v57 = vld [vmem:[%s13788_s21 + $0x70] sm:$0xff] }
 0x4eb   : > { %v18492_v36 = vadd.f32 %v6734_v26, %v6509_v43  ;;  %v6811_v59 = vpop.f32.mrf.mxu1 }
 0x4ec   : > { %v6736_v46 = vpop.f32.mrf.mxu0 }
 0x4ed   : > { %v6814_v58 = vpop.f32.mrf.mxu1  ;;  %12858 = vmatmul.mubr.msk.f32.gmra.mxu1 %vm441_vm1, %v7496_v20 }
 0x4ee   : > { %v6815_v49 = vadd.f32 %v6814_v58, %v18375_v30  ;;  %v7029_v29 = vpop.f32.mrf.mxu0  ;;  %12860 = vmatprep.mubr.msk.f32.mxu1 %vm441_vm1, %v7497_v22  ;;  %v7500_v30 = vld [vmem:[%s13788_s21 + $0x48] sm:$0xff]  ;;  %v7507_v58 = vld [vmem:[%s13788_s21 + $0x80] sm:$0xff] }
 0x4ef   : > { %v18499_v47 = vadd.f32 %v7029_v29, %v6805_v60  ;;  %v6816_v8 = vpop.f32.mrf.mxu1  ;;  %v7503_v60 = vld [vmem:[%s13788_s21 + $0x60] sm:$0xff] }
 0x4f0   : > { %v7031_v41 = vpop.f32.mrf.mxu0 }
 0x4f1   : > { %v6819_v48 = vpop.f32.mrf.mxu1  ;;  %12861 = vmatmul.mubr.msk.f32.gmra.mxu1 %vm441_vm1, %v7498_v53 }
 0x4f2   : > { %v6820_v6 = vadd.f32 %v6819_v48, %v18379_v3  ;;  %v7034_v43 = vpop.f32.mrf.mxu0  ;;  %12863 = vmatprep.mubr.msk.f32.mxu1 %vm441_vm1, %v7499_v44  ;;  %v7502_v3 = vld [vmem:[%s13788_s21 + $0x58] sm:$0xff]  ;;  %v7509_v48 = vld [vmem:[%s13788_s21 + $0x90] sm:$0xff] }
 0x4f3   : > { %v18506_v27 = vadd.f32 %v7034_v43, %v6810_v1  ;;  %v6821_v55 = vpop.f32.mrf.mxu1 }
 0x4f4   : > { %v7036_v31 = vpop.f32.mrf.mxu0 }
 0x4f5   : > { %v6824_v17 = vpop.f32.mrf.mxu1  ;;  %12864 = vmatmul.mubr.msk.f32.gmra.mxu1 %vm441_vm1, %v7500_v30 }
 0x4f6   : > { %v6825_v0 = vadd.f32 %v6824_v17, %v18383_v24  ;;  %v7039_v61 = vpop.f32.mrf.mxu0  ;;  %12866 = vmatprep.mubr.msk.f32.mxu1 %vm441_vm1, %v7501_v45  ;;  %v7504_v24 = vld [vmem:[%s13788_s21 + $0x68] sm:$0xff]  ;;  %v7511_v17 = vld [vmem:[%s13788_s21 + $0xa0] sm:$0xff] }
 0x4f7   : > { %v18513_v33 = vadd.f32 %v7039_v61, %v6815_v49  ;;  %v6826_v63 = vpop.f32.mrf.mxu1 }
 0x4f8   : > { %v7041_v40 = vpop.f32.mrf.mxu0 }
 0x4f9   : > { %v6829_v54 = vpop.f32.mrf.mxu1  ;;  %12867 = vmatmul.mubr.msk.f32.gmra.mxu1 %vm441_vm1, %v7502_v3 }
 0x4fa   : > { %v6830_v14 = vadd.f32 %v6829_v54, %v18387_v5  ;;  %v7044_v19 = vpop.f32.mrf.mxu0  ;;  %12869 = vmatprep.mubr.msk.f32.mxu1 %vm441_vm1, %v7503_v60  ;;  %v7506_v5 = vld [vmem:[%s13788_s21 + $0x78] sm:$0xff]  ;;  %v7513_v54 = vld [vmem:[%s13788_s21 + $0xb0] sm:$0xff] }
 0x4fb   : > { %v18520_v18 = vadd.f32 %v7044_v19, %v6820_v6  ;;  %v6831_v51 = vpop.f32.mrf.mxu1 }
 0x4fc   : > { %v7046_v26 = vpop.f32.mrf.mxu0 }
 0x4fd   : > { %v6834_v1 = vpop.f32.mrf.mxu1  ;;  %12870 = vmatmul.mubr.msk.f32.gmra.mxu1 %vm441_vm1, %v7504_v24 }
 0x4fe   : > { %v6835_v20 = vadd.f32 %v6834_v1, %v18391_v62  ;;  %v7049_v59 = vpop.f32.mrf.mxu0  ;;  %12872 = vmatprep.mubr.msk.f32.mxu1 %vm441_vm1, %v7505_v57  ;;  %v7508_v62 = vld [vmem:[%s13788_s21 + $0x88] sm:$0xff]  ;;  %v7515_v1 = vld [vmem:[%s13788_s21 + $0xc0] sm:$0xff] }
 0x4ff   : > { %v18527_v22 = vadd.f32 %v7049_v59, %v6825_v0  ;;  %v6836_v46 = vpop.f32.mrf.mxu1 }
 0x500   : > { %v7051_v49 = vpop.f32.mrf.mxu0 }
 0x501   : > { %v6839_v29 = vpop.f32.mrf.mxu1  ;;  %12873 = vmatmul.mubr.msk.f32.gmra.mxu1 %vm441_vm1, %v7506_v5 }
 0x502   : > { %v6840_v53 = vadd.f32 %v6839_v29, %v18395_v15  ;;  %v7054_v8 = vpop.f32.mrf.mxu0  ;;  %12875 = vmatprep.mubr.msk.f32.mxu1 %vm441_vm1, %v7507_v58  ;;  %v7510_v15 = vld [vmem:[%s13788_s21 + $0x98] sm:$0xff]  ;;  %v7517_v29 = vld [vmem:[%s13788_s21 + $0xd0] sm:$0xff] }
 0x503   : > { %v18534_v44 = vadd.f32 %v7054_v8, %v6830_v14  ;;  %v6841_v41 = vpop.f32.mrf.mxu1 }
 0x504   : > { %v7056_v6 = vpop.f32.mrf.mxu0 }
 0x505   : > { %v6844_v43 = vpop.f32.mrf.mxu1  ;;  %12876 = vmatmul.mubr.msk.f32.gmra.mxu1 %vm441_vm1, %v7508_v62 }
 0x506   : > { %v6845_v30 = vadd.f32 %v6844_v43, %v18401_v32  ;;  %v7059_v55 = vpop.f32.mrf.mxu0  ;;  %12878 = vmatprep.mubr.msk.f32.mxu1 %vm441_vm1, %v7509_v48  ;;  %v7512_v32 = vld [vmem:[%s13788_s21 + $0xa8] sm:$0xff]  ;;  %v7519_v43 = vld [vmem:[%s13788_s21 + $0xe0] sm:$0xff] }
 0x507   : > { %v18541_v45 = vadd.f32 %v7059_v55, %v6835_v20  ;;  %v6846_v31 = vpop.f32.mrf.mxu1 }
 0x508   : > { %v7061_v0 = vpop.f32.mrf.mxu0 }
 0x509   : > { %v6849_v61 = vpop.f32.mrf.mxu1  ;;  %12879 = vmatmul.mubr.msk.f32.gmra.mxu1 %vm441_vm1, %v7510_v15 }
 0x50a   : > { %v6850_v3 = vadd.f32 %v6849_v61, %v18405_v16  ;;  %v7064_v63 = vpop.f32.mrf.mxu0  ;;  %12881 = vmatprep.mubr.msk.f32.mxu1 %vm441_vm1, %v7511_v17  ;;  %v7514_v16 = vld [vmem:[%s13788_s21 + $0xb8] sm:$0xff]  ;;  %v7521_v61 = vld [vmem:[%s13788_s21 + $0xf0] sm:$0xff] }
 0x50b   : > { %v18548_v60 = vadd.f32 %v7064_v63, %v6840_v53  ;;  %v6851_v40 = vpop.f32.mrf.mxu1 }
 0x50c   : > { %v7066_v14 = vpop.f32.mrf.mxu0 }
 0x50d   : > { %v6854_v19 = vpop.f32.mrf.mxu1  ;;  %12882 = vmatmul.mubr.msk.f32.gmra.mxu1 %vm441_vm1, %v7512_v32 }
 0x50e   : > { %v6855_v24 = vadd.f32 %v6854_v19, %v18411_v52  ;;  %v7069_v51 = vpop.f32.mrf.mxu0  ;;  %12884 = vmatprep.mubr.msk.f32.mxu1 %vm441_vm1, %v7513_v54  ;;  %v7516_v52 = vld [vmem:[%s13788_s21 + $0xc8] sm:$0xff]  ;;  %v7522_v54 = vld [vmem:[%s13788_s21 + $0xf8] sm:$0xff] }
 0x50f   : > { %v18555_v57 = vadd.f32 %v7069_v51, %v6845_v30  ;;  %v6856_v26 = vpop.f32.mrf.mxu1 }
 0x510   : > { %v7071_v20 = vpop.f32.mrf.mxu0 }
 0x511   : > { %v6859_v59 = vpop.f32.mrf.mxu1  ;;  %12885 = vmatmul.mubr.msk.f32.gmra.mxu1 %vm441_vm1, %v7514_v16 }
 0x512   : > { %v6860_v5 = vadd.f32 %v6859_v59, %v18417_v25  ;;  %v7074_v46 = vpop.f32.mrf.mxu0  ;;  %12887 = vmatprep.mubr.msk.f32.mxu1 %vm441_vm1, %v7515_v1  ;;  %v7518_v25 = vld [vmem:[%s13788_s21 + $0xd8] sm:$0xff] }
 0x513   : > { %v18562_v58 = vadd.f32 %v7074_v46, %v6850_v3  ;;  %v6861_v49 = vpop.f32.mrf.mxu1 }
 0x514   : > { %v7076_v53 = vpop.f32.mrf.mxu0 }
 0x515   : > { %v6864_v8 = vpop.f32.mrf.mxu1  ;;  %12888 = vmatmul.mubr.msk.f32.gmra.mxu1 %vm441_vm1, %v7516_v52 }
 0x516   : > { %v6865_v62 = vadd.f32 %v6864_v8, %v18425_v38  ;;  %v7079_v41 = vpop.f32.mrf.mxu0  ;;  %12890 = vmatprep.mubr.msk.f32.mxu1 %vm441_vm1, %v7517_v29  ;;  %v7520_v38 = vld [vmem:[%s13788_s21 + $0xe8] sm:$0xff] }
 0x517   : > { %v18569_v48 = vadd.f32 %v7079_v41, %v6855_v24  ;;  %v6866_v6 = vpop.f32.mrf.mxu1 }
 0x518   : > { %v7081_v30 = vpop.f32.mrf.mxu0 }
 0x519   : > { %v6869_v55 = vpop.f32.mrf.mxu1  ;;  %12891 = vmatmul.mubr.msk.f32.gmra.mxu1 %vm441_vm1, %v7518_v25 }
 0x51a   : > { %v6870_v15 = vadd.f32 %v6869_v55, %v18430_v10  ;;  %v7084_v31 = vpop.f32.mrf.mxu0  ;;  %12893 = vmatprep.mubr.msk.f32.mxu1 %vm441_vm1, %v7519_v43 }
 0x51b   : > { %v18576_v17 = vadd.f32 %v7084_v31, %v6860_v5  ;;  %v6871_v0 = vpop.f32.mrf.mxu1 }
 0x51c   : > { %v7086_v3 = vpop.f32.mrf.mxu0 }
 0x51d   : > { %v6874_v63 = vpop.f32.mrf.mxu1  ;;  %12894 = vmatmul.mubr.msk.f32.gmra.mxu1 %vm441_vm1, %v7520_v38 }
 0x51e   : > { %v6875_v32 = vadd.f32 %v6874_v63, %v18434_v37  ;;  %v7089_v40 = vpop.f32.mrf.mxu0  ;;  %12896 = vmatprep.mubr.msk.f32.mxu1 %vm441_vm1, %v7521_v61 }
 0x51f   : > { %v18583_v14 = vadd.f32 %v7089_v40, %v6865_v62  ;;  %v6876_v10 = vpop.f32.mrf.mxu1 }
 0x520   : > { %v7091_v19 = vpop.f32.mrf.mxu0 }
 0x521   : > { %v6879_v24 = vpop.f32.mrf.mxu1  ;;  %12897 = vmatmul.mubr.msk.f32.gmra.mxu1 %vm441_vm1, %v7522_v54 }
 0x522   : > { %v6880_v51 = vadd.f32 %v6879_v24, %v18436_v13  ;;  %v7094_v16 = vpop.f32.mrf.mxu0 }
 0x523   : > { %v18587_v26 = vadd.f32 %v7094_v16, %v6870_v15  ;;  %v6881_v1 = vpop.f32.mrf.mxu1  ;;  %v8077_v16 = vld [vmem:[#allocation6] sm:$0xff] }
 0x524   : > { %v7096_v20 = vpop.f32.mrf.mxu0  ;;  %12951 = vmatprep.mubr.msk.f32.mxu1 %vm441_vm1, %v8077_v16 }
 0x525   : > { %v6884_v59 = vpop.f32.mrf.mxu1 }
 0x526   : > { %v6885_v37 = vadd.f32 %v6884_v59, %v18438_v12  ;;  %v7099_v5 = vpop.f32.mrf.mxu0  ;;  %v8078_v59 = vld [vmem:[#allocation6 + $0x8] sm:$0xff] }
 0x527   : > { %v18590_v46 = vadd.f32 %v7099_v5, %v6875_v32  ;;  %v6886_v52 = vpop.f32.mrf.mxu1 }
 0x528   : > { %v7101_v49 = vpop.f32.mrf.mxu0 }
 0x529   : > { %v6889_v29 = vpop.f32.mrf.mxu1 }
 0x52a   : > { %v6890_v53 = vadd.f32 %v6889_v29, %v18440_v7  ;;  %v7104_v8 = vpop.f32.mrf.mxu0 }
 0x52b   : > { %v18593_v62 = vadd.f32 %v7104_v8, %v6880_v51  ;;  %v6891_v13 = vpop.f32.mrf.mxu1  ;;  %v8110_v51 = vld [vmem:[#allocation6 + $0x1] sm:$0xff] }
 0x52c   : > { %v7106_v41 = vpop.f32.mrf.mxu0  ;;  %12901 = vmatprep.mubr.msk.f32.mxu0 %vm441_vm1, %v8110_v51 }
 0x52d   : > { %v6894_v25 = vpop.f32.mrf.mxu1 }
 0x52e   : > { %v6895_v6 = vadd.f32 %v6894_v25, %v18447_v23  ;;  %v7109_v43 = vpop.f32.mrf.mxu0 }
 0x52f   : > { %v18596_v30 = vadd.f32 %v7109_v43, %v6885_v37  ;;  %v6896_v12 = vpop.f32.mrf.mxu1  ;;  %v12147_v37 = vld [vmem:[%s20427_s10 + $0x8] sm:$0xf] }
 0x530   : > { %v7111_v55 = vpop.f32.mrf.mxu0  ;;  %12999 = vmatprep.subr.msk.mxu0 %vm727_vm0, %v12147_v37 }
 0x531   : > { %v6899_v15 = vpop.f32.mrf.mxu1 }
 0x532   : > { %v6900_v31 = vadd.f32 %v6899_v15, %v18449_v4  ;;  %v7114_v38 = vpop.f32.mrf.mxu0  ;;  %v8109_v4 = vld [vmem:[%s20427_s10] sm:$0xf] }
 0x533   : > { %v18599_v0 = vadd.f32 %v7114_v38, %v6890_v53  ;;  %v6901_v7 = vpop.f32.mrf.mxu1  ;;  %12949 = vmatprep.subr.msk.mxu1 %vm727_vm0, %v8109_v4 }
 0x534   : > { %v7116_v61 = vpop.f32.mrf.mxu0  ;;  %12950 = vmatpush3.msk.msra.mxu1 %vm727_vm0, %v8109_v4 }
 0x535   : > { %v6904_v3 = vpop.f32.mrf.mxu1  ;;  %12952 = vmatmul.mubr.msk.f32.vlgmr.msra.gmra.mxu1 %vm441_vm1, %v8078_v59 }
 0x536   : > { %v6905_v63 = vadd.f32 %v6904_v3, %v18451_v21  ;;  %v7119_v32 = vpop.f32.mrf.mxu0 }
 0x537   : > { %v18602_v40 = vadd.f32 %v7119_v32, %v6895_v6  ;;  %v6906_v23 = vpop.f32.mrf.mxu1 }
 0x538   : > { %v7121_v54 = vpop.f32.mrf.mxu0 }
 0x539   : > { %v6909_v10 = vpop.f32.mrf.mxu1 }
 0x53a   : > { %v6910_v19 = vadd.f32 %v6909_v10, %v18453_v39  ;;  %v7124_v24 = vpop.f32.mrf.mxu0  ;;  %v8111_v39 = vld [vmem:[#allocation6 + $0x9] sm:$0xff] }
 0x53b   : > { %v18608_v1 = vadd.f32 %v7124_v24, %v6900_v31  ;;  %v6911_v20 = vpop.f32.mrf.mxu1  ;;  %12902 = vmatmul.mubr.msk.f32.vlgmr.msra.gmra.mxu0 %vm441_vm1, %v8111_v39 }
 0x53c   : > { %v7126_v21 = vpop.f32.mrf.mxu0  ;;  %13000 = vmatpush3.msk.msra.mxu0 %vm727_vm0, %v12147_v37 }
 0x53d   : > { %v6914_v5 = vpop.f32.mrf.mxu1 }
 0x53e   : > { %v6915_v52 = vadd.f32 %v6914_v5, %v18455_v11  ;;  %v7129_v49 = vpop.f32.mrf.mxu0 }
 0x53f   : > { %v18621_v29 = vadd.f32 %v7129_v49, %v6905_v63  ;;  %v6916_v53 = vpop.f32.mrf.mxu1 }
 0x540   : > { %v7131_v8 = vpop.f32.mrf.mxu0 }
 0x541   : > { %v6919_v13 = vpop.f32.mrf.mxu1 }
 0x542   : > { %v6920_v41 = vadd.f32 %v6919_v13, %v18457_v56  ;;  %v7134_v25 = vpop.f32.mrf.mxu0 }
 0x543   : > { %v18625_v6 = vadd.f32 %v7134_v25, %v6910_v19  ;;  %v6921_v43 = vpop.f32.mrf.mxu1 }
 0x544   : > { %v7136_v12 = vpop.f32.mrf.mxu0 }
 0x545   : > { %v6924_v55 = vpop.f32.mrf.mxu1 }
 0x546   : > { %v6925_v11 = vadd.f32 %v6924_v55, %v18459_v9  ;;  %v7139_v15 = vpop.f32.mrf.mxu0 }
 0x547   : > { %v18628_v31 = vadd.f32 %v7139_v15, %v6915_v52  ;;  %v6926_v38 = vpop.f32.mrf.mxu1 }
 0x548   : > { %v7141_v7 = vpop.f32.mrf.mxu0 }
 0x549   : > { %v6929_v61 = vpop.f32.mrf.mxu1 }
 0x54a   : > { %v6930_v3 = vadd.f32 %v6929_v61, %v18461_v42  ;;  %v7144_v63 = vpop.f32.mrf.mxu0 }
 0x54b   : > { %v18631_v32 = vadd.f32 %v7144_v63, %v6920_v41  ;;  %v6931_v56 = vpop.f32.mrf.mxu1 }
 0x54c   : > { %v7146_v23 = vpop.f32.mrf.mxu0 }
 0x54d   : > { %v6934_v54 = vpop.f32.mrf.mxu1 }
 0x54e   : > { %v6935_v10 = vadd.f32 %v6934_v54, %v18464_v34  ;;  %v7149_v19 = vpop.f32.mrf.mxu0 }
 0x54f   : > { %v18634_v24 = vadd.f32 %v7149_v19, %v6925_v11  ;;  %v6936_v9 = vpop.f32.mrf.mxu1 }
 0x550   : > { %v7151_v4 = vpop.f32.mrf.mxu0 }
 0x551   : > { %20894 = vst [vmem:[#allocation36_spill] sm:$0xff] %v18634_v24  ;;  %v6939_v51 = vpop.f32.mrf.mxu1 }
 0x552   : > { %v6940_v16 = vadd.f32 %v6939_v51, %v18468_v2  ;;  %v7154_v20 = vpop.f32.mrf.mxu0 }
 0x553   : > { %v18637_v21 = vadd.f32 %v7154_v20, %v6930_v3  ;;  %v6941_v42 = vpop.f32.mrf.mxu1 }
 0x554   : > { %v7156_v39 = vpop.f32.mrf.mxu0 }
 0x555   : > { %v6944_v59 = vpop.f32.mrf.mxu1  ;;  %v12181_v39 = vld [vmem:[%s20427_s10 + $0xc] sm:$0xf] }
 0x556   : > { %v6945_v37 = vadd.f32 %v6944_v59, %v18471_v35  ;;  %v7159_v5 = vpop.f32.mrf.mxu0  ;;  %13049 = vmatprep.subr.msk.mxu1 %vm727_vm0, %v12181_v39  ;;  %v18662_v59 = vld [vmem:[%s20427_s10 + $0x10] sm:$0xf] }
 0x557   : > { %v18640_v52 = vadd.f32 %v7159_v5, %v6935_v10  ;;  %v6946_v34 = vpop.f32.mrf.mxu1  ;;  %20901 = vst [vmem:[#allocation38_spill] sm:$0xff] %v18662_v59  ;;  %13050 = vmatpush3.msk.msra.mxu1 %vm727_vm0, %v12181_v39  ;;  %13099 = vmatprep.subr.msk.mxu0 %vm727_vm0, %v18662_v59  ;;  %v18715_v59 = vld [vmem:[%s20422_s5] ss:$0 sm:$0xff] }
 0x558   : > { %v7161_v49 = vpop.f32.mrf.mxu0 }
 0x559   : > { %20895 = vst [vmem:[#allocation46_spill] sm:$0xff] %v18640_v52  ;;  %v6949_v53 = vpop.f32.mrf.mxu1 }
 0x55a   : > { %v6950_v8 = vadd.f32 %v6949_v53, %v18476_v50  ;;  %v7164_v13 = vpop.f32.mrf.mxu0 }
 0x55b   : > { %v18643_v41 = vadd.f32 %v7164_v13, %v6940_v16  ;;  %v6951_v2 = vpop.f32.mrf.mxu1 }
 0x55c   : > { %v7166_v25 = vpop.f32.mrf.mxu0 }
 0x55d   : > { %20896 = vst [vmem:[#allocation16_spill] sm:$0xff] %v18643_v41  ;;  %v6954_v43 = vpop.f32.mrf.mxu1 }
 0x55e   : > { %v6955_v12 = vadd.f32 %v6954_v43, %v18484_v28  ;;  %v7169_v55 = vpop.f32.mrf.mxu0 }
 0x55f   : > { %v18646_v11 = vadd.f32 %v7169_v55, %v6945_v37  ;;  %v6956_v35 = vpop.f32.mrf.mxu1 }
 0x560   : > { %v7171_v15 = vpop.f32.mrf.mxu0 }
 0x561   : > { %20897 = vst [vmem:[#allocation47_spill] sm:$0xff] %v18646_v11  ;;  %v6959_v38 = vpop.f32.mrf.mxu1 }
 0x562   : > { %v6960_v7 = vadd.f32 %v6959_v38, %v18492_v36  ;;  %v7174_v61 = vpop.f32.mrf.mxu0 }
 0x563   : > { %v18649_v3 = vadd.f32 %v7174_v61, %v6950_v8  ;;  %v6961_v50 = vpop.f32.mrf.mxu1 }
 0x564   : > { %v7176_v63 = vpop.f32.mrf.mxu0 }
 0x565   : > { %20898 = vst [vmem:[#allocation37_spill] sm:$0xff] %v18649_v3  ;;  %v12803_v56 = vpop.f32.mrf.mxu1 }
 0x566   : > { %v7179_v23 = vpop.f32.mrf.mxu0  ;;  %v7260_v39 = vadd.f32 %v12803_v56, %v18506_v27  ;;  %v18732_v56 = vld [vmem:[%s20423_s6] ss:$0 sm:$0xff] }
 0x567   : > { %v18651_v54 = vadd.f32 %v7179_v23, %v6955_v12  ;;  %v7254_v10 = vpop.f32.mrf.mxu1 }
 0x568   : > { %v7181_v19 = vpop.f32.mrf.mxu0  ;;  %v7421_v27 = vmul.f32 %v18715_v59, %v7260_v39 }
 0x569   : > { %20899 = vst [vmem:[#allocation48_spill] sm:$0xff] %v18651_v54  ;;  %v12806_v28 = vpop.f32.mrf.mxu1 }
 0x56a   : > { %v7184_v9 = vpop.f32.mrf.mxu0  ;;  %v7270_v11 = vadd.f32 %v12806_v28, %v18520_v18 }
 0x56b   : > { %v18653_v4 = vadd.f32 %v7184_v9, %v6960_v7  ;;  %v7264_v51 = vpop.f32.mrf.mxu1 }
 0x56c   : > { %v7186_v16 = vpop.f32.mrf.mxu0  ;;  %v7423_v28 = vmul.f32 %v18715_v59, %v7270_v11 }
 0x56d   : > { %20900 = vst [vmem:[#allocation17_spill] sm:$0xff] %v18653_v4  ;;  %v12809_v20 = vpop.f32.mrf.mxu1  ;;  %v7255_v4 = vadd.f32 %v7254_v10, %v18499_v47  ;;  %v18738_v47 = vld [vmem:[%s20426_s9] ss:$0 sm:$0xff] }
 0x56e   : > { %v7280_v39 = vadd.f32 %v12809_v20, %v18534_v44  ;;  %v7462_v44 = vadd.f32 %v18732_v56, %v7423_v28 }
 0x56f   : > { %v7274_v42 = vpop.f32.mrf.mxu1  ;;  %v7420_v18 = vmul.f32 %v18715_v59, %v7255_v4 }
 0x570   : > { %v7425_v20 = vmul.f32 %v18715_v59, %v7280_v39 }
 0x571   : > { %v12812_v36 = vpop.f32.mrf.mxu1  ;;  %v7459_v4 = vadd.f32 %v18732_v56, %v7420_v18 }
 0x573   : > { %v7284_v37 = vpop.f32.mrf.mxu1 }
 0x575   : > { %v18667_v5 = vpop.f32.mrf.mxu1 }
 0x577   : > { %v18669_v34 = vpop.f32.mrf.mxu1 }
 0x579   : > { %v18671_v49 = vpop.f32.mrf.mxu1 }
 0x57b   : > { %v18673_v53 = vpop.f32.mrf.mxu1 }
 0x57d   : > { %v18675_v8 = vpop.f32.mrf.mxu1 }
 0x57f   : > { %v18677_v13 = vpop.f32.mrf.mxu1 }
 0x581   : > { %v18679_v2 = vpop.f32.mrf.mxu1 }
 0x583   : > { %v18681_v25 = vpop.f32.mrf.mxu1 }
 0x585   : > { %v18683_v43 = vpop.f32.mrf.mxu1 }
 0x587   : > { %v18685_v12 = vpop.f32.mrf.mxu1 }
 0x589   : > { %v18687_v55 = vpop.f32.mrf.mxu1 }
 0x58b   : > { %v18689_v35 = vpop.f32.mrf.mxu1 }
 0x58d   : > { %v18691_v15 = vpop.f32.mrf.mxu1 }
 0x58f   : > { %v18693_v38 = vpop.f32.mrf.mxu1 }
 0x591   : > { %v18695_v7 = vpop.f32.mrf.mxu1 }
 0x593   : > { %v18697_v61 = vpop.f32.mrf.mxu1 }
 0x595   : > { %v18699_v50 = vpop.f32.mrf.mxu1 }
 0x597   : > { %v18701_v63 = vpop.f32.mrf.mxu1 }
 0x598   : > { %20902 = vst [vmem:[#allocation50_spill] sm:$0xff] %v18701_v63 }
 0x599   : > { %v18703_v23 = vpop.f32.mrf.mxu1 }
 0x59a   : > { %20903 = vst [vmem:[#allocation18_spill] sm:$0xff] %v18703_v23  ;;  %v7275_v23 = vadd.f32 %v7274_v42, %v18527_v22 }
 0x59b   : > { %v18705_v19 = vpop.f32.mrf.mxu1 }
 0x59c   : > { %20904 = vst [vmem:[#allocation51_spill] sm:$0xff] %v18705_v19  ;;  %v7460_v19 = vadd.f32 %v18732_v56, %v7421_v27  ;;  %v7290_v27 = vadd.f32 %v12812_v36, %v18548_v60 }
 0x59d   : > { %v18707_v9 = vpop.f32.mrf.mxu1 }
 0x59e   : > { %20905 = vst [vmem:[#allocation52_spill] sm:$0xff] %v18707_v9  ;;  %v18726_v9 = vld [vmem:[%s20425_s8] ss:$0 sm:$0xff]  ;;  %v7427_v39 = vmul.f32 %v18715_v59, %v7290_v27 }
 0x59f   : > { %v18709_v16 = vpop.f32.mrf.mxu1 }
 0x5a0   : > { %20906 = vst [vmem:[#allocation19_spill] sm:$0xff] %v18709_v16 }
 0x5a1   : > { %v18717_v54 = vpop.f32.mrf.mxu1 }
 0x5a2   : > { %20907 = vst [vmem:[#allocation53_spill] sm:$0xff] %v18717_v54  ;;  %v7265_v54 = vadd.f32 %v7264_v51, %v18513_v33 }
 0x5a3   : > { %v18721_v3 = vpop.f32.mrf.mxu1 }
 0x5a4   : > { %20908 = vst [vmem:[#allocation21_spill] sm:$0xff] %v18721_v3  ;;  %v7422_v51 = vmul.f32 %v18715_v59, %v7265_v54 }
 0x5a5   : > { %v12853_v16 = vpop.f32.mrf.mxu1 }
 0x5a6   : > { %v7856_v10 = vmul.f32 %v12853_v16, %v18726_v9  ;;  %v7461_v42 = vadd.f32 %v18732_v56, %v7422_v51 }
 0x5a7   : > { %v7689_v3 = vpop.f32.mrf.mxu1 }
 0x5a8   : > { %v7895_v52 = vadd.f32 %v18738_v47, %v7856_v10  ;;  %v7855_v33 = vmul.f32 %v18726_v9, %v7689_v3 }
 0x5a9   : > { %v12856_v41 = vpop.f32.mrf.mxu1 }
 0x5aa   : > { %v7927_v63 = vadd.f32 %v7895_v52, %v7460_v19  ;;  %v7894_v16 = vadd.f32 %v18738_v47, %v7855_v33  ;;  %v7858_v11 = vmul.f32 %v12856_v41, %v18726_v9  ;;  %v7424_v52 = vmul.f32 %v18715_v59, %v7275_v23 }
 0x5ab   : > { %v7699_v10 = vpop.f32.mrf.mxu1  ;;  %v7285_v19 = vadd.f32 %v7284_v37, %v18541_v45  ;;  %v7300_v33 = vadd.f32 %v18667_v5, %v18562_v58 }
 0x5ac   : > { %v7959_v3 = vmax.f32 %v7927_v63, 0.0  ;;  %v7926_v24 = vadd.f32 %v7894_v16, %v7459_v4  ;;  %v7897_v54 = vadd.f32 %v18738_v47, %v7858_v11  ;;  %v7857_v22 = vmul.f32 %v18726_v9, %v7699_v10  ;;  %v18780_v10 = vld [vmem:[%s20427_s10 + $0x14] sm:$0xf] }
 0x5ad   : > { %v12859_v41 = vpop.f32.mrf.mxu1  ;;  %v7464_v63 = vadd.f32 %v18732_v56, %v7425_v20  ;;  %v7463_v4 = vadd.f32 %v18732_v56, %v7424_v52  ;;  %v7426_v16 = vmul.f32 %v18715_v59, %v7285_v19  ;;  %v7295_v11 = vadd.f32 %v18669_v34, %v18555_v57  ;;  %13149 = vmatprep.subr.msk.mxu1 %vm727_vm0, %v18780_v10 }
 0x5ae   : > { %8046 = vst.msk [vmem:[#allocation6 + $0x21] sm:$0xff] %vm441_vm1, %v7959_v3  ;;  %v7958_v18 = vmax.f32 %v7926_v24, 0.0  ;;  %v7929_v28 = vadd.f32 %v7897_v54, %v7462_v44  ;;  %v7896_v60 = vadd.f32 %v18738_v47, %v7857_v22  ;;  %v7860_v36 = vmul.f32 %v12859_v41, %v18726_v9 }
 0x5af   : > { %v7709_v51 = vpop.f32.mrf.mxu1  ;;  %v7466_v3 = vadd.f32 %v18732_v56, %v7427_v39  ;;  %v7429_v54 = vmul.f32 %v18715_v59, %v7300_v33  ;;  %v7310_v57 = vadd.f32 %v18671_v49, %v18576_v17  ;;  %v7465_v41 = vadd.f32 %v18732_v56, %v7426_v16 }
 0x5b0   : > { %8045 = vst.msk [vmem:[#allocation6 + $0x19] sm:$0xff] %vm441_vm1, %v7958_v18  ;;  %v7961_v45 = vmax.f32 %v7929_v28, 0.0  ;;  %v7928_v37 = vadd.f32 %v7896_v60, %v7461_v42  ;;  %v7899_v23 = vadd.f32 %v18738_v47, %v7860_v36  ;;  %v7859_v24 = vmul.f32 %v18726_v9, %v7709_v51 }
 0x5b1   : > { %v12862_v44 = vpop.f32.mrf.mxu1  ;;  %v7428_v18 = vmul.f32 %v18715_v59, %v7295_v11  ;;  %v7305_v28 = vadd.f32 %v18673_v53, %v18569_v48  ;;  %v7468_v39 = vadd.f32 %v18732_v56, %v7429_v54  ;;  %v7431_v33 = vmul.f32 %v18715_v59, %v7310_v57 }
 0x5b2   : > { %8048 = vst.msk [vmem:[#allocation6 + $0x39] sm:$0xff] %vm441_vm1, %v7961_v45  ;;  %v7960_v58 = vmax.f32 %v7928_v37, 0.0  ;;  %v7931_v5 = vadd.f32 %v7899_v23, %v7464_v63  ;;  %v7898_v20 = vadd.f32 %v18738_v47, %v7859_v24  ;;  %v7862_v27 = vmul.f32 %v12862_v44, %v18726_v9 }
 0x5b3   : > { %v7719_v34 = vpop.f32.mrf.mxu1  ;;  %v7320_v51 = vadd.f32 %v18675_v8, %v18587_v26  ;;  %v7467_v8 = vadd.f32 %v18732_v56, %v7428_v18  ;;  %v7430_v11 = vmul.f32 %v18715_v59, %v7305_v28  ;;  %v7315_v44 = vadd.f32 %v18677_v13, %v18583_v14 }
 0x5b4   : > { %8047 = vst.msk [vmem:[#allocation6 + $0x31] sm:$0xff] %vm441_vm1, %v7960_v58  ;;  %v7963_v22 = vmax.f32 %v7931_v5, 0.0  ;;  %v7930_v42 = vadd.f32 %v7898_v20, %v7463_v4  ;;  %v7901_v52 = vadd.f32 %v18738_v47, %v7862_v27  ;;  %v7861_v19 = vmul.f32 %v18726_v9, %v7719_v34 }
 0x5b5   : > { %v12865_v17 = vpop.f32.mrf.mxu1  ;;  %v18815_v26 = vld [vmem:[#allocation6 + $0x21] sm:$0xff]  ;;  %v7470_v54 = vadd.f32 %v18732_v56, %v7431_v33  ;;  %v7433_v57 = vmul.f32 %v18715_v59, %v7320_v51  ;;  %v7330_v14 = vadd.f32 %v18679_v2, %v18593_v62  ;;  %v7469_v2 = vadd.f32 %v18732_v56, %v7430_v11 }
 0x5b6   : > { %8050 = vst.msk [vmem:[#allocation6 + $0x51] sm:$0xff] %vm441_vm1, %v7963_v22  ;;  %v7962_v49 = vmax.f32 %v7930_v42, 0.0  ;;  %v7933_v60 = vadd.f32 %v7901_v52, %v7466_v3  ;;  %v7900_v36 = vadd.f32 %v18738_v47, %v7861_v19  ;;  %v7864_v63 = vmul.f32 %v12865_v17, %v18726_v9 }
 0x5b7   : > { %v7729_v45 = vpop.f32.mrf.mxu1  ;;  %v18802_v37 = vld [vmem:[#allocation6 + $0x19] sm:$0xff]  ;;  %v7432_v28 = vmul.f32 %v18715_v59, %v7315_v44  ;;  %v7325_v17 = vadd.f32 %v18681_v25, %v18590_v46  ;;  %v7472_v33 = vadd.f32 %v18732_v56, %v7433_v57  ;;  %v7435_v51 = vmul.f32 %v18715_v59, %v7330_v14 }
 0x5b8   : > { %v18804_v48 = vld [vmem:[#allocation6 + $0x18] sm:$0xff]  ;;  %v18806_v53 = vld [vmem:[#allocation6 + $0x20] sm:$0xff]  ;;  %8049 = vst.msk [vmem:[#allocation6 + $0x49] sm:$0xff] %vm441_vm1, %v7962_v49  ;;  %v7965_v23 = vmax.f32 %v7933_v60, 0.0  ;;  %v7932_v24 = vadd.f32 %v7900_v36, %v7465_v41  ;;  %v7903_v4 = vadd.f32 %v18738_v47, %v7864_v63  ;;  %v7863_v16 = vmul.f32 %v18726_v9, %v7729_v45  ;;  %12904 = vmatprep.mubr.msk.f32.mxu0 %vm441_vm1, %v18802_v37 }
 0x5b9   : > { %12954 = vmatprep.mubr.msk.f32.mxu1 %vm441_vm1, %v18804_v48  ;;  %v12868_v58 = vpop.f32.mrf.mxu1  ;;  %12905 = vmatmul.mubr.msk.f32.gmra.mxu0 %vm441_vm1, %v18815_v26  ;;  %v18845_v62 = vld [vmem:[#allocation6 + $0x39] sm:$0xff]  ;;  %v7340_v46 = vadd.f32 %v18683_v43, %v18599_v0  ;;  %v7471_v43 = vadd.f32 %v18732_v56, %v7432_v28  ;;  %v7434_v44 = vmul.f32 %v18715_v59, %v7325_v17 }
 0x5ba   : > { %12955 = vmatmul.mubr.msk.f32.gmra.mxu1 %vm441_vm1, %v18806_v53  ;;  %8052 = vst.msk [vmem:[#allocation6 + $0x69] sm:$0xff] %vm441_vm1, %v7965_v23  ;;  %v7964_v5 = vmax.f32 %v7932_v24, 0.0  ;;  %v7935_v20 = vadd.f32 %v7903_v4, %v7468_v39  ;;  %v7902_v27 = vadd.f32 %v18738_v47, %v7863_v16  ;;  %v7866_v3 = vmul.f32 %v12868_v58, %v18726_v9 }
 0x5bb   : > { %v7739_v13 = vpop.f32.mrf.mxu1  ;;  %v18832_v34 = vld [vmem:[#allocation6 + $0x31] sm:$0xff]  ;;  %v7335_v58 = vadd.f32 %v18685_v12, %v18596_v30  ;;  %v7474_v57 = vadd.f32 %v18732_v56, %v7435_v51  ;;  %v7437_v14 = vmul.f32 %v18715_v59, %v7340_v46  ;;  %v7350_v30 = vadd.f32 %v18687_v55, %v18608_v1 }
 0x5bc   : > { %v18834_v22 = vld [vmem:[#allocation6 + $0x30] sm:$0xff]  ;;  %v18836_v42 = vld [vmem:[#allocation6 + $0x38] sm:$0xff]  ;;  %8051 = vst.msk [vmem:[#allocation6 + $0x61] sm:$0xff] %vm441_vm1, %v7964_v5  ;;  %v7967_v52 = vmax.f32 %v7935_v20, 0.0  ;;  %v7934_v19 = vadd.f32 %v7902_v27, %v7467_v8  ;;  %v7905_v41 = vadd.f32 %v18738_v47, %v7866_v3  ;;  %v7865_v18 = vmul.f32 %v18726_v9, %v7739_v13  ;;  %12907 = vmatprep.mubr.msk.f32.mxu0 %vm441_vm1, %v18832_v34 }
 0x5bd   : > { %20909 = vst [vmem:[#allocation56_spill] sm:$0xff] %v18836_v42  ;;  %12957 = vmatprep.mubr.msk.f32.mxu1 %vm441_vm1, %v18834_v22  ;;  %v12871_v49 = vpop.f32.mrf.mxu1  ;;  %12908 = vmatmul.mubr.msk.f32.gmra.mxu0 %vm441_vm1, %v18845_v62  ;;  %v18875_v0 = vld [vmem:[#allocation6 + $0x51] sm:$0xff]  ;;  %v7473_v55 = vadd.f32 %v18732_v56, %v7434_v44  ;;  %v7436_v17 = vmul.f32 %v18715_v59, %v7335_v58 }
 0x5be   : > { %12958 = vmatmul.mubr.msk.f32.gmra.mxu1 %vm441_vm1, %v18836_v42  ;;  %8054 = vst.msk [vmem:[#allocation6 + $0x81] sm:$0xff] %vm441_vm1, %v7967_v52  ;;  %v7966_v60 = vmax.f32 %v7934_v19, 0.0  ;;  %v7937_v36 = vadd.f32 %v7905_v41, %v7470_v54  ;;  %v7904_v63 = vadd.f32 %v18738_v47, %v7865_v18  ;;  %v7868_v39 = vmul.f32 %v12871_v49, %v18726_v9 }
 0x5bf   : > { %v7749_v25 = vpop.f32.mrf.mxu1  ;;  %v18862_v45 = vld [vmem:[#allocation6 + $0x49] sm:$0xff]  ;;  %v7345_v49 = vadd.f32 %v18689_v35, %v18602_v40  ;;  %v7476_v51 = vadd.f32 %v18732_v56, %v7437_v14  ;;  %v7439_v46 = vmul.f32 %v18715_v59, %v7350_v30  ;;  %v7360_v40 = vadd.f32 %v18691_v15, %v18625_v6 }
 0x5c0   : > { %v18864_v23 = vld [vmem:[#allocation6 + $0x48] sm:$0xff]  ;;  %v18866_v24 = vld [vmem:[#allocation6 + $0x50] sm:$0xff]  ;;  %8053 = vst.msk [vmem:[#allocation6 + $0x79] sm:$0xff] %vm441_vm1, %v7966_v60  ;;  %v7969_v4 = vmax.f32 %v7937_v36, 0.0  ;;  %v7936_v16 = vadd.f32 %v7904_v63, %v7469_v2  ;;  %v7907_v8 = vadd.f32 %v18738_v47, %v7868_v39  ;;  %v7867_v11 = vmul.f32 %v18726_v9, %v7749_v25  ;;  %12910 = vmatprep.mubr.msk.f32.mxu0 %vm441_vm1, %v18862_v45 }
 0x5c1   : > { %20910 = vst [vmem:[#allocation58_spill] sm:$0xff] %v18864_v23  ;;  %20911 = vst [vmem:[#allocation39_spill] sm:$0xff] %v18866_v24  ;;  %12960 = vmatprep.mubr.msk.f32.mxu1 %vm441_vm1, %v18864_v23  ;;  %v12874_v5 = vpop.f32.mrf.mxu1  ;;  %12911 = vmatmul.mubr.msk.f32.gmra.mxu0 %vm441_vm1, %v18875_v0  ;;  %v18905_v1 = vld [vmem:[#allocation6 + $0x69] sm:$0xff]  ;;  %v7475_v15 = vadd.f32 %v18732_v56, %v7436_v17  ;;  %v7438_v58 = vmul.f32 %v18715_v59, %v7345_v49 }
 0x5c2   : > { %12961 = vmatmul.mubr.msk.f32.gmra.mxu1 %vm441_vm1, %v18866_v24  ;;  %8056 = vst.msk [vmem:[#allocation6 + $0x99] sm:$0xff] %vm441_vm1, %v7969_v4  ;;  %v7968_v20 = vmax.f32 %v7936_v16, 0.0  ;;  %v7939_v27 = vadd.f32 %v7907_v8, %v7472_v33  ;;  %v7906_v3 = vadd.f32 %v18738_v47, %v7867_v11  ;;  %v7870_v54 = vmul.f32 %v12874_v5, %v18726_v9 }
 0x5c3   : > { %v7759_v12 = vpop.f32.mrf.mxu1  ;;  %v18892_v13 = vld [vmem:[#allocation6 + $0x61] sm:$0xff]  ;;  %v7355_v5 = vadd.f32 %v18693_v38, %v18621_v29  ;;  %v7478_v14 = vadd.f32 %v18732_v56, %v7439_v46  ;;  %v7441_v30 = vmul.f32 %v18715_v59, %v7360_v40  ;;  %v7370_v29 = vadd.f32 %v18695_v7, %v18631_v32 }
 0x5c4   : > { %v18894_v52 = vld [vmem:[#allocation6 + $0x60] sm:$0xff]  ;;  %v18896_v19 = vld [vmem:[#allocation6 + $0x68] sm:$0xff]  ;;  %8055 = vst.msk [vmem:[#allocation6 + $0x91] sm:$0xff] %vm441_vm1, %v7968_v20  ;;  %v7971_v41 = vmax.f32 %v7939_v27, 0.0  ;;  %v7938_v18 = vadd.f32 %v7906_v3, %v7471_v43  ;;  %v7909_v2 = vadd.f32 %v18738_v47, %v7870_v54  ;;  %v7869_v28 = vmul.f32 %v18726_v9, %v7759_v12  ;;  %12913 = vmatprep.mubr.msk.f32.mxu0 %vm441_vm1, %v18892_v13 }
 0x5c5   : > { %12963 = vmatprep.mubr.msk.f32.mxu1 %vm441_vm1, %v18894_v52  ;;  %v12877_v60 = vpop.f32.mrf.mxu1  ;;  %12914 = vmatmul.mubr.msk.f32.gmra.mxu0 %vm441_vm1, %v18905_v1  ;;  %v18935_v6 = vld [vmem:[#allocation6 + $0x81] sm:$0xff]  ;;  %v7477_v7 = vadd.f32 %v18732_v56, %v7438_v58  ;;  %v7440_v49 = vmul.f32 %v18715_v59, %v7355_v5  ;;  %v7480_v46 = vadd.f32 %v18732_v56, %v7441_v30 }
 0x5c6   : > { %12964 = vmatmul.mubr.msk.f32.gmra.mxu1 %vm441_vm1, %v18896_v19  ;;  %8058 = vst.msk [vmem:[#allocation6 + $0xb1] sm:$0xff] %vm441_vm1, %v7971_v41  ;;  %v7970_v36 = vmax.f32 %v7938_v18, 0.0  ;;  %v7941_v63 = vadd.f32 %v7909_v2, %v7474_v57  ;;  %v7908_v39 = vadd.f32 %v18738_v47, %v7869_v28  ;;  %v7872_v33 = vmul.f32 %v12877_v60, %v18726_v9 }
 0x5c7   : > { %v7769_v35 = vpop.f32.mrf.mxu1  ;;  %v18922_v25 = vld [vmem:[#allocation6 + $0x79] sm:$0xff]  ;;  %v7365_v60 = vadd.f32 %v18697_v61, %v18628_v31  ;;  %v7443_v40 = vmul.f32 %v18715_v59, %v7370_v29  ;;  %v7380_v31 = vadd.f32 %v18699_v50, %v18637_v21  ;;  %v7479_v50 = vadd.f32 %v18732_v56, %v7440_v49 }
 0x5c8   : > { %v18924_v4 = vld [vmem:[#allocation6 + $0x78] sm:$0xff]  ;;  %v18926_v16 = vld [vmem:[#allocation6 + $0x80] sm:$0xff]  ;;  %8057 = vst.msk [vmem:[#allocation6 + $0xa9] sm:$0xff] %vm441_vm1, %v7970_v36  ;;  %v7973_v8 = vmax.f32 %v7941_v63, 0.0  ;;  %v7940_v11 = vadd.f32 %v7908_v39, %v7473_v55  ;;  %v7911_v43 = vadd.f32 %v18738_v47, %v7872_v33  ;;  %v7871_v44 = vmul.f32 %v18726_v9, %v7769_v35  ;;  %12916 = vmatprep.mubr.msk.f32.mxu0 %vm441_vm1, %v18922_v25 }
 0x5c9   : > { %20912 = vst [vmem:[#allocation60_spill] sm:$0xff] %v18924_v4  ;;  %20913 = vst [vmem:[#allocation64_spill] sm:$0xff] %v18926_v16  ;;  %12966 = vmatprep.mubr.msk.f32.mxu1 %vm441_vm1, %v18924_v4  ;;  %v12880_v20 = vpop.f32.mrf.mxu1  ;;  %12917 = vmatmul.mubr.msk.f32.gmra.mxu0 %vm441_vm1, %v18935_v6  ;;  %v18965_v32 = vld [vmem:[#allocation6 + $0x99] sm:$0xff]  ;;  %v7442_v5 = vmul.f32 %v18715_v59, %v7365_v60 }
 0x5ca   : > { %12967 = vmatmul.mubr.msk.f32.gmra.mxu1 %vm441_vm1, %v18926_v16  ;;  %8060 = vst.msk [vmem:[#allocation6 + $0xc9] sm:$0xff] %vm441_vm1, %v7973_v8  ;;  %v7972_v27 = vmax.f32 %v7940_v11, 0.0  ;;  %v7943_v3 = vadd.f32 %v7911_v43, %v7476_v51  ;;  %v7910_v54 = vadd.f32 %v18738_v47, %v7871_v44  ;;  %v7874_v57 = vmul.f32 %v12880_v20, %v18726_v9  ;;  %v20918_v20 = vld [vmem:[#allocation36_spill] sm:$0xff] }
 0x5cb   : > { %v7779_v38 = vpop.f32.mrf.mxu1  ;;  %v18952_v12 = vld [vmem:[#allocation6 + $0x91] sm:$0xff] }
 0x5cc   : > { %v18954_v41 = vld [vmem:[#allocation6 + $0x90] sm:$0xff]  ;;  %v18956_v18 = vld [vmem:[#allocation6 + $0x98] sm:$0xff]  ;;  %8059 = vst.msk [vmem:[#allocation6 + $0xc1] sm:$0xff] %vm441_vm1, %v7972_v27  ;;  %v7975_v2 = vmax.f32 %v7943_v3, 0.0  ;;  %v7942_v28 = vadd.f32 %v7910_v54, %v7475_v15  ;;  %v7913_v55 = vadd.f32 %v18738_v47, %v7874_v57  ;;  %v7873_v17 = vmul.f32 %v18726_v9, %v7779_v38  ;;  %12919 = vmatprep.mubr.msk.f32.mxu0 %vm441_vm1, %v18952_v12  ;;  %v20919_v27 = vld [vmem:[#allocation50_spill] sm:$0xff] }
 0x5cd   : > { %20914 = vst [vmem:[#allocation66_spill] sm:$0xff] %v18954_v41  ;;  %20915 = vst [vmem:[#allocation68_spill] sm:$0xff] %v18956_v18  ;;  %12969 = vmatprep.mubr.msk.f32.mxu1 %vm441_vm1, %v18954_v41  ;;  %v12883_v36 = vpop.f32.mrf.mxu1  ;;  %12920 = vmatmul.mubr.msk.f32.gmra.mxu0 %vm441_vm1, %v18965_v32  ;;  %v18995_v21 = vld [vmem:[#allocation6 + $0xb1] sm:$0xff]  ;;  %v7375_v3 = vadd.f32 %v20919_v27, %v20918_v20  ;;  %v7482_v38 = vadd.f32 %v18732_v56, %v7443_v40 }
 0x5ce   : > { %12970 = vmatmul.mubr.msk.f32.gmra.mxu1 %vm441_vm1, %v18956_v18  ;;  %8062 = vst.msk [vmem:[#allocation6 + $0xe1] sm:$0xff] %vm441_vm1, %v7975_v2  ;;  %v7974_v63 = vmax.f32 %v7942_v28, 0.0  ;;  %v7945_v39 = vadd.f32 %v7913_v55, %v7478_v14  ;;  %v7912_v33 = vadd.f32 %v18738_v47, %v7873_v17  ;;  %v7876_v51 = vmul.f32 %v12883_v36, %v18726_v9  ;;  %v20920_v28 = vld [vmem:[#allocation16_spill] sm:$0xff]  ;;  %v20921_v55 = vld [vmem:[#allocation18_spill] sm:$0xff] }
 0x5cf   : > { %v7789_v61 = vpop.f32.mrf.mxu1  ;;  %v18982_v35 = vld [vmem:[#allocation6 + $0xa9] sm:$0xff]  ;;  %v7445_v2 = vmul.f32 %v18715_v59, %v7380_v31  ;;  %v7390_v17 = vadd.f32 %v20921_v55, %v20920_v28  ;;  %v7481_v40 = vadd.f32 %v18732_v56, %v7442_v5  ;;  %v7444_v31 = vmul.f32 %v18715_v59, %v7375_v3 }
 0x5d0   : > { %v18984_v8 = vld [vmem:[#allocation6 + $0xa8] sm:$0xff]  ;;  %v18986_v11 = vld [vmem:[#allocation6 + $0xb0] sm:$0xff]  ;;  %8061 = vst.msk [vmem:[#allocation6 + $0xd9] sm:$0xff] %vm441_vm1, %v7974_v63  ;;  %v7977_v43 = vmax.f32 %v7945_v39, 0.0  ;;  %v7944_v44 = vadd.f32 %v7912_v33, %v7477_v7  ;;  %v7915_v15 = vadd.f32 %v18738_v47, %v7876_v51  ;;  %v7875_v58 = vmul.f32 %v18726_v9, %v7789_v61  ;;  %12922 = vmatprep.mubr.msk.f32.mxu0 %vm441_vm1, %v18982_v35 }
 0x5d1   : > { %20916 = vst [vmem:[#allocation70_spill] sm:$0xff] %v18984_v8  ;;  %20917 = vst [vmem:[#allocation72_spill] sm:$0xff] %v18986_v11  ;;  %12972 = vmatprep.mubr.msk.f32.mxu1 %vm441_vm1, %v18984_v8  ;;  %v12886_v54 = vpop.f32.mrf.mxu1  ;;  %12923 = vmatmul.mubr.msk.f32.gmra.mxu0 %vm441_vm1, %v18995_v21  ;;  %v20924_v61 = vld [vmem:[#allocation46_spill] sm:$0xff]  ;;  %v7484_v27 = vadd.f32 %v18732_v56, %v7445_v2  ;;  %v7447_v3 = vmul.f32 %v18715_v59, %v7390_v17 }
 0x5d2   : > { %12973 = vmatmul.mubr.msk.f32.gmra.mxu1 %vm441_vm1, %v18986_v11  ;;  %8064 = vst.msk [vmem:[#allocation6 + $0xf9] sm:$0xff] %vm441_vm1, %v7977_v43  ;;  %v7976_v57 = vmax.f32 %v7944_v44, 0.0  ;;  %v7947_v14 = vadd.f32 %v7915_v15, %v7480_v46  ;;  %v7914_v30 = vadd.f32 %v18738_v47, %v7875_v58  ;;  %v7878_v29 = vmul.f32 %v12886_v54, %v18726_v9  ;;  %v19025_v46 = vld [vmem:[#allocation6 + $0xc9] sm:$0xff]  ;;  %v20926_v54 = vld [vmem:[#allocation37_spill] sm:$0xff] }
 0x5d3   : > { %v7799_v7 = vpop.f32.mrf.mxu1  ;;  %v19012_v49 = vld [vmem:[#allocation6 + $0xc1] sm:$0xff]  ;;  %v20925_v43 = vld [vmem:[#allocation51_spill] sm:$0xff] }
 0x5d4   : > { %v19014_v60 = vld [vmem:[#allocation6 + $0xc0] sm:$0xff]  ;;  %v19016_v36 = vld [vmem:[#allocation6 + $0xc8] sm:$0xff]  ;;  %8063 = vst.msk [vmem:[#allocation6 + $0xf1] sm:$0xff] %vm441_vm1, %v7976_v57  ;;  %v7979_v63 = vmax.f32 %v7947_v14, 0.0  ;;  %v7946_v39 = vadd.f32 %v7914_v30, %v7479_v50  ;;  %v7917_v33 = vadd.f32 %v18738_v47, %v7878_v29  ;;  %v7877_v51 = vmul.f32 %v18726_v9, %v7799_v7  ;;  %12925 = vmatprep.mubr.msk.f32.mxu0 %vm441_vm1, %v19012_v49  ;;  %v20927_v57 = vld [vmem:[#allocation52_spill] sm:$0xff] }
 0x5d5   : > { %20922 = vst [vmem:[#allocation74_spill] sm:$0xff] %v19014_v60  ;;  %20923 = vst [vmem:[#allocation77_spill] sm:$0xff] %v19016_v36  ;;  %12975 = vmatprep.mubr.msk.f32.mxu1 %vm441_vm1, %v19014_v60  ;;  %v7385_v44 = vadd.f32 %v20925_v43, %v20924_v61  ;;  %v12889_v15 = vpop.f32.mrf.mxu1  ;;  %12926 = vmatmul.mubr.msk.f32.gmra.mxu0 %vm441_vm1, %v19025_v46  ;;  %v7400_v14 = vadd.f32 %v20927_v57, %v20926_v54  ;;  %v19055_v17 = vld [vmem:[#allocation6 + $0xe1] sm:$0xff]  ;;  %v20932_v61 = vld [vmem:[#allocation19_spill] sm:$0xff] }
 0x5d6   : > { %12976 = vmatmul.mubr.msk.f32.gmra.mxu1 %vm441_vm1, %v19016_v36  ;;  %8066 = vst.msk [vmem:[#allocation6 + $0x111] sm:$0xff] %vm441_vm1, %v7979_v63  ;;  %v7978_v58 = vmax.f32 %v7946_v39, 0.0  ;;  %v7949_v50 = vadd.f32 %v7917_v33, %v7482_v38  ;;  %v7916_v20 = vadd.f32 %v18738_v47, %v7877_v51  ;;  %v7880_v5 = vmul.f32 %v12889_v15, %v18726_v9  ;;  %v20931_v51 = vld [vmem:[#allocation47_spill] sm:$0xff]  ;;  %v20934_v54 = vld [vmem:[#allocation53_spill] sm:$0xff] }
 0x5d7   : > { %v7809_v30 = vpop.f32.mrf.mxu1  ;;  %v19042_v29 = vld [vmem:[#allocation6 + $0xd9] sm:$0xff]  ;;  %20930 = vst [vmem:[#allocation80_spill] sm:$0xff] %v19055_v17  ;;  %v7483_v39 = vadd.f32 %v18732_v56, %v7444_v31  ;;  %v7446_v33 = vmul.f32 %v18715_v59, %v7385_v44  ;;  %v7395_v43 = vadd.f32 %v20932_v61, %v20931_v51  ;;  %v7486_v44 = vadd.f32 %v18732_v56, %v7447_v3 }
 0x5d8   : > { %v19044_v28 = vld [vmem:[#allocation6 + $0xd8] sm:$0xff]  ;;  %v19046_v55 = vld [vmem:[#allocation6 + $0xe0] sm:$0xff]  ;;  %8065 = vst.msk [vmem:[#allocation6 + $0x109] sm:$0xff] %vm441_vm1, %v7978_v58  ;;  %v7981_v38 = vmax.f32 %v7949_v50, 0.0  ;;  %v7948_v7 = vadd.f32 %v7916_v20, %v7481_v40  ;;  %v7919_v63 = vadd.f32 %v18738_v47, %v7880_v5  ;;  %v7879_v2 = vmul.f32 %v18726_v9, %v7809_v30  ;;  %12928 = vmatprep.mubr.msk.f32.mxu0 %vm441_vm1, %v19042_v29 }
 0x5d9   : > { %20928 = vst [vmem:[#allocation75_spill] sm:$0xff] %v19044_v28  ;;  %20929 = vst [vmem:[#allocation10_spill] sm:$0xff] %v19046_v55  ;;  %12978 = vmatprep.mubr.msk.f32.mxu1 %vm441_vm1, %v19044_v28  ;;  %v12892_v40 = vpop.f32.mrf.mxu1  ;;  %12929 = vmatmul.mubr.msk.f32.gmra.mxu0 %vm441_vm1, %v19055_v17  ;;  %v7449_v20 = vmul.f32 %v18715_v59, %v7400_v14  ;;  %v20933_v5 = vld [vmem:[#allocation17_spill] sm:$0xff] }
 0x5da   : > { %12979 = vmatmul.mubr.msk.f32.gmra.mxu1 %vm441_vm1, %v19046_v55  ;;  %8068 = vst.msk [vmem:[#allocation6 + $0x129] sm:$0xff] %vm441_vm1, %v7981_v38  ;;  %v7980_v15 = vmax.f32 %v7948_v7, 0.0  ;;  %v7951_v58 = vadd.f32 %v7919_v63, %v7484_v27  ;;  %v7918_v50 = vadd.f32 %v18738_v47, %v7879_v2  ;;  %v7882_v31 = vmul.f32 %v12892_v40, %v18726_v9  ;;  %v19085_v14 = vld [vmem:[#allocation6 + $0xf9] sm:$0xff] }
 0x5db   : > { %v7410_v57 = vadd.f32 %v20934_v54, %v20933_v5  ;;  %v7819_v30 = vpop.f32.mrf.mxu1  ;;  %v19072_v51 = vld [vmem:[#allocation6 + $0xf1] sm:$0xff]  ;;  %20937 = vst [vmem:[#allocation22_spill] sm:$0xff] %v19085_v14  ;;  %v7485_v63 = vadd.f32 %v18732_v56, %v7446_v33  ;;  %v7448_v2 = vmul.f32 %v18715_v59, %v7395_v43  ;;  %v7488_v43 = vadd.f32 %v18732_v56, %v7449_v20 }
 0x5dc   : > { %v19074_v61 = vld [vmem:[#allocation6 + $0xf0] sm:$0xff]  ;;  %v19076_v17 = vld [vmem:[#allocation6 + $0xf8] sm:$0xff]  ;;  %8067 = vst.msk [vmem:[#allocation6 + $0x121] sm:$0xff] %vm441_vm1, %v7980_v15  ;;  %v7983_v27 = vmax.f32 %v7951_v58, 0.0  ;;  %v7950_v38 = vadd.f32 %v7918_v50, %v7483_v39  ;;  %v7921_v7 = vadd.f32 %v18738_v47, %v7882_v31  ;;  %v7881_v3 = vmul.f32 %v18726_v9, %v7819_v30  ;;  %12931 = vmatprep.mubr.msk.f32.mxu0 %vm441_vm1, %v19072_v51  ;;  %v20939_v15 = vld [vmem:[#allocation21_spill] sm:$0xff] }
 0x5dd   : > { %20935 = vst [vmem:[#allocation81_spill] sm:$0xff] %v19074_v61  ;;  %20936 = vst [vmem:[#allocation78_spill] sm:$0xff] %v19076_v17  ;;  %12981 = vmatprep.mubr.msk.f32.mxu1 %vm441_vm1, %v19074_v61  ;;  %v20938_v40 = vld [vmem:[#allocation48_spill] sm:$0xff]  ;;  %v12895_v39 = vpop.f32.mrf.mxu1  ;;  %12932 = vmatmul.mubr.msk.f32.gmra.mxu0 %vm441_vm1, %v19085_v14  ;;  %v7451_v54 = vmul.f32 %v18715_v59, %v7410_v57  ;;  %v7487_v57 = vadd.f32 %v18732_v56, %v7448_v2 }
 0x5de   : > { %v7405_v58 = vadd.f32 %v20939_v15, %v20938_v40  ;;  %12982 = vmatmul.mubr.msk.f32.gmra.mxu1 %vm441_vm1, %v19076_v17  ;;  %8070 = vst.msk [vmem:[#allocation6 + $0x141] sm:$0xff] %vm441_vm1, %v7983_v27  ;;  %v7982_v50 = vmax.f32 %v7950_v38, 0.0  ;;  %v7953_v31 = vadd.f32 %v7921_v7, %v7486_v44  ;;  %v7920_v5 = vadd.f32 %v18738_v47, %v7881_v3  ;;  %v19113_v20 = vld [vmem:[#allocation6 + $0x111] sm:$0xff] }
 0x5df   : > { %v7884_v33 = vmul.f32 %v12895_v39, %v18726_v9  ;;  %v7829_v30 = vpop.f32.mrf.mxu1  ;;  %v19100_v40 = vld [vmem:[#allocation6 + $0x109] sm:$0xff]  ;;  %20943 = vst [vmem:[#allocation82_spill] sm:$0xff] %v19113_v20 }
 0x5e0   : > { %20940 = vst [vmem:[#allocation84_spill] sm:$0xff] %v19100_v40  ;;  %v19102_v15 = vld [vmem:[#allocation6 + $0x108] sm:$0xff]  ;;  %v19104_v14 = vld [vmem:[#allocation6 + $0x110] sm:$0xff]  ;;  %8069 = vst.msk [vmem:[#allocation6 + $0x139] sm:$0xff] %vm441_vm1, %v7982_v50  ;;  %v7985_v27 = vmax.f32 %v7953_v31, 0.0  ;;  %v7952_v38 = vadd.f32 %v7920_v5, %v7485_v63  ;;  %v7883_v7 = vmul.f32 %v18726_v9, %v7829_v30  ;;  %12934 = vmatprep.mubr.msk.f32.mxu0 %vm441_vm1, %v19100_v40 }
 0x5e1   : > { %20941 = vst [vmem:[#allocation85_spill] sm:$0xff] %v19102_v15  ;;  %20942 = vst [vmem:[#allocation88_spill] sm:$0xff] %v19104_v14  ;;  %v7923_v44 = vadd.f32 %v18738_v47, %v7884_v33  ;;  %12984 = vmatprep.mubr.msk.f32.mxu1 %vm441_vm1, %v19102_v15  ;;  %v7450_v3 = vmul.f32 %v18715_v59, %v7405_v58  ;;  %v12898_v39 = vpop.f32.mrf.mxu1  ;;  %12935 = vmatmul.mubr.msk.f32.gmra.mxu0 %vm441_vm1, %v19113_v20 }
 0x5e2   : > { %12985 = vmatmul.mubr.msk.f32.gmra.mxu1 %vm441_vm1, %v19104_v14  ;;  %8072 = vst.msk [vmem:[#allocation6 + $0x159] sm:$0xff] %vm441_vm1, %v7985_v27  ;;  %v7984_v63 = vmax.f32 %v7952_v38, 0.0  ;;  %v7922_v31 = vadd.f32 %v18738_v47, %v7883_v7  ;;  %v7886_v5 = vmul.f32 %v12898_v39, %v18726_v9  ;;  %v7490_v33 = vadd.f32 %v18732_v56, %v7451_v54  ;;  %v19138_v54 = vld [vmem:[#allocation6 + $0x129] sm:$0xff] }
 0x5e3   : > { %v7955_v50 = vadd.f32 %v7923_v44, %v7488_v43  ;;  %v7839_v2 = vpop.f32.mrf.mxu1  ;;  %v19125_v30 = vld [vmem:[#allocation6 + $0x121] sm:$0xff]  ;;  %v7489_v38 = vadd.f32 %v18732_v56, %v7450_v3 }
 0x5e4   : > { %v19127_v59 = vld [vmem:[#allocation6 + $0x120] sm:$0xff]  ;;  %v19129_v58 = vld [vmem:[#allocation6 + $0x128] sm:$0xff]  ;;  %8071 = vst.msk [vmem:[#allocation6 + $0x151] sm:$0xff] %vm441_vm1, %v7984_v63  ;;  %v7954_v40 = vadd.f32 %v7922_v31, %v7487_v57  ;;  %v7925_v27 = vadd.f32 %v18738_v47, %v7886_v5  ;;  %v7885_v43 = vmul.f32 %v18726_v9, %v7839_v2  ;;  %12937 = vmatprep.mubr.msk.f32.mxu0 %vm441_vm1, %v19125_v30 }
 0x5e5   : > { %20944 = vst [vmem:[#allocation89_spill] sm:$0xff] %v19127_v59  ;;  %20945 = vst [vmem:[#allocation49_spill] sm:$0xff] %v19129_v58  ;;  %v7987_v20 = vmax.f32 %v7955_v50, 0.0  ;;  %12987 = vmatprep.mubr.msk.f32.mxu1 %vm441_vm1, %v19127_v59  ;;  %12938 = vmatmul.mubr.msk.f32.gmra.mxu0 %vm441_vm1, %v19138_v54  ;;  %v19158_v56 = vld [vmem:[#allocation6 + $0x141] sm:$0xff] }
 0x5e6   : > { %12988 = vmatmul.mubr.msk.f32.gmra.mxu1 %vm441_vm1, %v19129_v58  ;;  %v7986_v44 = vmax.f32 %v7954_v40, 0.0  ;;  %v7957_v9 = vadd.f32 %v7925_v27, %v7490_v33  ;;  %v7924_v7 = vadd.f32 %v18738_v47, %v7885_v43  ;;  %v8792_v33 = vld [vmem:[#allocation6 + $0x2] sm:$0xff] }
 0x5e7   : > { %8074 = vst.msk [vmem:[#allocation6 + $0x171] sm:$0xff] %vm441_vm1, %v7987_v20  ;;  %v19147_v57 = vld [vmem:[#allocation6 + $0x139] sm:$0xff] }
 0x5e8   : > { %v19149_v39 = vld [vmem:[#allocation6 + $0x138] sm:$0xff]  ;;  %v19151_v63 = vld [vmem:[#allocation6 + $0x140] sm:$0xff]  ;;  %8073 = vst.msk [vmem:[#allocation6 + $0x169] sm:$0xff] %vm441_vm1, %v7986_v44  ;;  %v7989_v50 = vmax.f32 %v7957_v9, 0.0  ;;  %v7956_v31 = vadd.f32 %v7924_v7, %v7489_v38  ;;  %12940 = vmatprep.mubr.msk.f32.mxu0 %vm441_vm1, %v19147_v57  ;;  %v8793_v44 = vld [vmem:[#allocation6 + $0xa] sm:$0xff] }
 0x5e9   : > { %20946 = vst [vmem:[#allocation90_spill] sm:$0xff] %v19149_v39  ;;  %20947 = vst [vmem:[#allocation86_spill] sm:$0xff] %v19151_v63  ;;  %12990 = vmatprep.mubr.msk.f32.mxu1 %vm441_vm1, %v19149_v39  ;;  %12941 = vmatmul.mubr.msk.f32.gmra.mxu0 %vm441_vm1, %v19158_v56  ;;  %v19176_v5 = vld [vmem:[#allocation6 + $0x159] sm:$0xff] }
 0x5ea   : > { %12991 = vmatmul.mubr.msk.f32.gmra.mxu1 %vm441_vm1, %v19151_v63  ;;  %8076 = vst.msk [vmem:[#allocation6 + $0x189] sm:$0xff] %vm441_vm1, %v7989_v50  ;;  %v7988_v47 = vmax.f32 %v7956_v31, 0.0  ;;  %v19204_v9 = vld [vmem:[#allocation6 + $0x1a] sm:$0xff]  ;;  %v19234_v31 = vld [vmem:[#allocation6 + $0x32] sm:$0xff] }
 0x5eb   : > { %v19165_v40 = vld [vmem:[#allocation6 + $0x151] sm:$0xff]  ;;  %v19214_v50 = vld [vmem:[%s20427_s10 + $0x1c] sm:$0xf] }
 0x5ec   : > { %v19167_v20 = vld [vmem:[#allocation6 + $0x150] sm:$0xff]  ;;  %v19169_v3 = vld [vmem:[#allocation6 + $0x158] sm:$0xff]  ;;  %8075 = vst.msk [vmem:[#allocation6 + $0x181] sm:$0xff] %vm441_vm1, %v7988_v47  ;;  %12943 = vmatprep.mubr.msk.f32.mxu0 %vm441_vm1, %v19165_v40 }
 0x5ed   : > { %20948 = vst [vmem:[#allocation91_spill] sm:$0xff] %v19167_v20  ;;  %20949 = vst [vmem:[#allocation93_spill] sm:$0xff] %v19169_v3  ;;  %12993 = vmatprep.mubr.msk.f32.mxu1 %vm441_vm1, %v19167_v20  ;;  %12944 = vmatmul.mubr.msk.f32.gmra.mxu0 %vm441_vm1, %v19176_v5  ;;  %v19209_v7 = vld [vmem:[%s20427_s10 + $0x18] sm:$0xf]  ;;  %v19246_v47 = vld [vmem:[#allocation6 + $0x4a] sm:$0xff] }
 0x5ee   : > { %12994 = vmatmul.mubr.msk.f32.gmra.mxu1 %vm441_vm1, %v19169_v3  ;;  %v19192_v38 = vld [vmem:[#allocation6 + $0x171] sm:$0xff] }
 0x5ef   : > { %v19182_v2 = vld [vmem:[#allocation6 + $0x169] sm:$0xff] }
 0x5f0   : > { %v19184_v27 = vld [vmem:[#allocation6 + $0x168] sm:$0xff]  ;;  %v19186_v43 = vld [vmem:[#allocation6 + $0x170] sm:$0xff]  ;;  %12946 = vmatprep.mubr.msk.f32.mxu0 %vm441_vm1, %v19182_v2 }
 0x5f1   : > { %20950 = vst [vmem:[#allocation54_spill] sm:$0xff] %v19184_v27  ;;  %12996 = vmatprep.mubr.msk.f32.mxu1 %vm441_vm1, %v19184_v27  ;;  %12947 = vmatmul.mubr.msk.f32.gmra.mxu0 %vm441_vm1, %v19192_v38 }
 0x5f2   : > { %12997 = vmatmul.mubr.msk.f32.gmra.mxu1 %vm441_vm1, %v19186_v43  ;;  %13001 = vmatprep.mubr.msk.f32.mxu0 %vm441_vm1, %v8792_v33 }
 0x5f3   : > { %13051 = vmatprep.mubr.msk.f32.mxu1 %vm441_vm1, %v18804_v48  ;;  %v20951_v48 = vld [vmem:[#allocation38_spill] sm:$0xff] }
 0x5f5   : > { %13002 = vmatmul.mubr.msk.f32.vlgmr.msra.gmra.mxu0 %vm441_vm1, %v8793_v44  ;;  %v12953_v44 = vpop.f32.mrf.mxu1 }
 0x5f6   : > { %13052 = vmatmul.mubr.msk.f32.vlgmr.msra.gmra.mxu1 %vm441_vm1, %v18806_v53  ;;  %13100 = vmatpush3.msk.msra.mxu0 %vm727_vm0, %v20951_v48  ;;  %v19224_v53 = vld [vmem:[#allocation6 + $0x22] sm:$0xff] }
 0x5f7   : > { %13004 = vmatprep.mubr.msk.f32.mxu0 %vm441_vm1, %v19204_v9  ;;  %13054 = vmatprep.mubr.msk.f32.mxu1 %vm441_vm1, %v18834_v22 }
 0x5f8   : > { %13150 = vmatpush3.msk.msra.mxu1 %vm727_vm0, %v18780_v10  ;;  %13199 = vmatprep.subr.msk.mxu0 %vm727_vm0, %v19209_v7  ;;  %v19240_v10 = vld [vmem:[#allocation6 + $0x3a] sm:$0xff] }
 0x5f9   : > { %13249 = vmatprep.subr.msk.mxu1 %vm727_vm0, %v19214_v50  ;;  %13005 = vmatmul.mubr.msk.f32.gmra.mxu0 %vm441_vm1, %v19224_v53 }
 0x5fa   : > { %13055 = vmatmul.mubr.msk.f32.gmra.mxu1 %vm441_vm1, %v18836_v42  ;;  %13007 = vmatprep.mubr.msk.f32.mxu0 %vm441_vm1, %v19234_v31  ;;  %v19266_v42 = vld [vmem:[#allocation6 + $0x6a] sm:$0xff] }
 0x5fb   : > { %13057 = vmatprep.mubr.msk.f32.mxu1 %vm441_vm1, %v18864_v23  ;;  %v12903_v33 = vpop.f32.mrf.mxu0  ;;  %v19254_v23 = vld [vmem:[#allocation6 + $0x52] sm:$0xff] }
 0x5fc   : > { %v19252_v48 = vadd.f32 %v12953_v44, %v12903_v33  ;;  %v19272_v33 = vld [vmem:[#allocation6 + $0x7a] sm:$0xff]  ;;  %v19278_v44 = vld [vmem:[#allocation6 + $0x82] sm:$0xff] }
 0x5fd   : > { %13008 = vmatmul.mubr.msk.f32.gmra.mxu0 %vm441_vm1, %v19240_v10 }
 0x5fe   : > { %13058 = vmatmul.mubr.msk.f32.gmra.mxu1 %vm441_vm1, %v18866_v24  ;;  %13010 = vmatprep.mubr.msk.f32.mxu0 %vm441_vm1, %v19246_v47  ;;  %20952 = vst [vmem:[#allocation27_spill] sm:$0xff] %v19252_v48  ;;  %v19260_v24 = vld [vmem:[#allocation6 + $0x62] sm:$0xff]  ;;  %v19284_v48 = vld [vmem:[#allocation6 + $0x92] sm:$0xff] }
 0x5ff   : > { %13060 = vmatprep.mubr.msk.f32.mxu1 %vm441_vm1, %v18894_v52 }
 0x601   : > { %13011 = vmatmul.mubr.msk.f32.gmra.mxu0 %vm441_vm1, %v19254_v23 }
 0x602   : > { %13061 = vmatmul.mubr.msk.f32.gmra.mxu1 %vm441_vm1, %v18896_v19  ;;  %13013 = vmatprep.mubr.msk.f32.mxu0 %vm441_vm1, %v19260_v24 }
 0x603   : > { %13063 = vmatprep.mubr.msk.f32.mxu1 %vm441_vm1, %v18924_v4  ;;  %v19394_v4 = vld [vmem:[#allocation6 + $0x180] sm:$0xff] }
 0x604   : > { %20953 = vst [vmem:[#allocation9_spill] sm:$0xff] %v19394_v4 }
 0x605   : > { %13014 = vmatmul.mubr.msk.f32.gmra.mxu0 %vm441_vm1, %v19266_v42 }
 0x606   : > { %13064 = vmatmul.mubr.msk.f32.gmra.mxu1 %vm441_vm1, %v18926_v16  ;;  %13016 = vmatprep.mubr.msk.f32.mxu0 %vm441_vm1, %v19272_v33  ;;  %v19290_v16 = vld [vmem:[#allocation6 + $0x9a] sm:$0xff] }
 0x607   : > { %13066 = vmatprep.mubr.msk.f32.mxu1 %vm441_vm1, %v18954_v41  ;;  %v19296_v41 = vld [vmem:[#allocation6 + $0xaa] sm:$0xff] }
 0x609   : > { %13017 = vmatmul.mubr.msk.f32.gmra.mxu0 %vm441_vm1, %v19278_v44 }
 0x60a   : > { %13067 = vmatmul.mubr.msk.f32.gmra.mxu1 %vm441_vm1, %v18956_v18  ;;  %13019 = vmatprep.mubr.msk.f32.mxu0 %vm441_vm1, %v19284_v48  ;;  %v19302_v18 = vld [vmem:[#allocation6 + $0xb2] sm:$0xff] }
 0x60b   : > { %13069 = vmatprep.mubr.msk.f32.mxu1 %vm441_vm1, %v18984_v8  ;;  %v19308_v8 = vld [vmem:[#allocation6 + $0xc2] sm:$0xff] }
 0x60d   : > { %13020 = vmatmul.mubr.msk.f32.gmra.mxu0 %vm441_vm1, %v19290_v16 }
 0x60e   : > { %13070 = vmatmul.mubr.msk.f32.gmra.mxu1 %vm441_vm1, %v18986_v11  ;;  %13022 = vmatprep.mubr.msk.f32.mxu0 %vm441_vm1, %v19296_v41  ;;  %v19314_v11 = vld [vmem:[#allocation6 + $0xca] sm:$0xff] }
 0x60f   : > { %13072 = vmatprep.mubr.msk.f32.mxu1 %vm441_vm1, %v19014_v60  ;;  %v19320_v60 = vld [vmem:[#allocation6 + $0xda] sm:$0xff] }
 0x611   : > { %13023 = vmatmul.mubr.msk.f32.gmra.mxu0 %vm441_vm1, %v19302_v18 }
 0x612   : > { %13073 = vmatmul.mubr.msk.f32.gmra.mxu1 %vm441_vm1, %v19016_v36  ;;  %13025 = vmatprep.mubr.msk.f32.mxu0 %vm441_vm1, %v19308_v8  ;;  %v19326_v36 = vld [vmem:[#allocation6 + $0xe2] sm:$0xff] }
 0x613   : > { %13075 = vmatprep.mubr.msk.f32.mxu1 %vm441_vm1, %v19044_v28  ;;  %v19332_v28 = vld [vmem:[#allocation6 + $0xf2] sm:$0xff] }
 0x615   : > { %13026 = vmatmul.mubr.msk.f32.gmra.mxu0 %vm441_vm1, %v19314_v11 }
 0x616   : > { %13076 = vmatmul.mubr.msk.f32.gmra.mxu1 %vm441_vm1, %v19046_v55  ;;  %13028 = vmatprep.mubr.msk.f32.mxu0 %vm441_vm1, %v19320_v60  ;;  %v19338_v55 = vld [vmem:[#allocation6 + $0xfa] sm:$0xff] }
 0x617   : > { %13078 = vmatprep.mubr.msk.f32.mxu1 %vm441_vm1, %v19074_v61  ;;  %v19344_v61 = vld [vmem:[#allocation6 + $0x10a] sm:$0xff] }
 0x619   : > { %13029 = vmatmul.mubr.msk.f32.gmra.mxu0 %vm441_vm1, %v19326_v36 }
 0x61a   : > { %13079 = vmatmul.mubr.msk.f32.gmra.mxu1 %vm441_vm1, %v19076_v17  ;;  %13031 = vmatprep.mubr.msk.f32.mxu0 %vm441_vm1, %v19332_v28  ;;  %v19350_v17 = vld [vmem:[#allocation6 + $0x112] sm:$0xff] }
 0x61b   : > { %13081 = vmatprep.mubr.msk.f32.mxu1 %vm441_vm1, %v19102_v15  ;;  %v19356_v15 = vld [vmem:[#allocation6 + $0x122] sm:$0xff] }
 0x61d   : > { %13032 = vmatmul.mubr.msk.f32.gmra.mxu0 %vm441_vm1, %v19338_v55 }
 0x61e   : > { %13082 = vmatmul.mubr.msk.f32.gmra.mxu1 %vm441_vm1, %v19104_v14  ;;  %13034 = vmatprep.mubr.msk.f32.mxu0 %vm441_vm1, %v19344_v61  ;;  %v19362_v14 = vld [vmem:[#allocation6 + $0x12a] sm:$0xff] }
 0x61f   : > { %13084 = vmatprep.mubr.msk.f32.mxu1 %vm441_vm1, %v19127_v59  ;;  %v19368_v59 = vld [vmem:[#allocation6 + $0x13a] sm:$0xff] }
 0x621   : > { %13035 = vmatmul.mubr.msk.f32.gmra.mxu0 %vm441_vm1, %v19350_v17 }
 0x622   : > { %13085 = vmatmul.mubr.msk.f32.gmra.mxu1 %vm441_vm1, %v19129_v58  ;;  %13037 = vmatprep.mubr.msk.f32.mxu0 %vm441_vm1, %v19356_v15  ;;  %v19374_v58 = vld [vmem:[#allocation6 + $0x142] sm:$0xff] }
 0x623   : > { %13087 = vmatprep.mubr.msk.f32.mxu1 %vm441_vm1, %v19149_v39  ;;  %v19380_v39 = vld [vmem:[#allocation6 + $0x152] sm:$0xff] }
 0x625   : > { %13038 = vmatmul.mubr.msk.f32.gmra.mxu0 %vm441_vm1, %v19362_v14 }
 0x626   : > { %13088 = vmatmul.mubr.msk.f32.gmra.mxu1 %vm441_vm1, %v19151_v63  ;;  %13040 = vmatprep.mubr.msk.f32.mxu0 %vm441_vm1, %v19368_v59  ;;  %v19386_v63 = vld [vmem:[#allocation6 + $0x15a] sm:$0xff] }
 0x627   : > { %13090 = vmatprep.mubr.msk.f32.mxu1 %vm441_vm1, %v19167_v20  ;;  %v19392_v20 = vld [vmem:[#allocation6 + $0x16a] sm:$0xff] }
 0x629   : > { %13041 = vmatmul.mubr.msk.f32.gmra.mxu0 %vm441_vm1, %v19374_v58 }
 0x62a   : > { %13091 = vmatmul.mubr.msk.f32.gmra.mxu1 %vm441_vm1, %v19169_v3  ;;  %13043 = vmatprep.mubr.msk.f32.mxu0 %vm441_vm1, %v19380_v39  ;;  %v19400_v3 = vld [vmem:[#allocation6 + $0x172] sm:$0xff] }
 0x62b   : > { %13093 = vmatprep.mubr.msk.f32.mxu1 %vm441_vm1, %v19184_v27  ;;  %v19402_v27 = vld [vmem:[#allocation6 + $0x188] sm:$0xff] }
 0x62d   : > { %13044 = vmatmul.mubr.msk.f32.gmra.mxu0 %vm441_vm1, %v19386_v63 }
 0x62e   : > { %13094 = vmatmul.mubr.msk.f32.gmra.mxu1 %vm441_vm1, %v19186_v43  ;;  %13046 = vmatprep.mubr.msk.f32.mxu0 %vm441_vm1, %v19392_v20 }
 0x62f   : > { %13096 = vmatprep.mubr.msk.f32.mxu1 %vm441_vm1, %v19394_v4  ;;  %v19419_v4 = vld [vmem:[%s20427_s10 + $0x20] sm:$0xf] }
 0x631   : > { %13047 = vmatmul.mubr.msk.f32.gmra.mxu0 %vm441_vm1, %v19400_v3 }
 0x632   : > { %13097 = vmatmul.mubr.msk.f32.gmra.mxu1 %vm441_vm1, %v19402_v27  ;;  %13101 = vmatprep.mubr.msk.f32.mxu0 %vm441_vm1, %v18802_v37  ;;  %v20954_v37 = vld [vmem:[#allocation80_spill] sm:$0xff] }
 0x633   : > { %13151 = vmatprep.mubr.msk.f32.mxu1 %vm441_vm1, %v19204_v9  ;;  %v20956_v9 = vld [vmem:[#allocation84_spill] sm:$0xff] }
 0x635   : > { %13102 = vmatmul.mubr.msk.f32.vlgmr.msra.gmra.mxu0 %vm441_vm1, %v18815_v26  ;;  %v20955_v26 = vld [vmem:[#allocation22_spill] sm:$0xff] }
 0x636   : > { %13152 = vmatmul.mubr.msk.f32.vlgmr.msra.gmra.mxu1 %vm441_vm1, %v19224_v53  ;;  %13200 = vmatpush3.msk.msra.mxu0 %vm727_vm0, %v19209_v7  ;;  %v20957_v7 = vld [vmem:[#allocation82_spill] sm:$0xff] }
 0x637   : > { %13104 = vmatprep.mubr.msk.f32.mxu0 %vm441_vm1, %v18832_v34  ;;  %13154 = vmatprep.mubr.msk.f32.mxu1 %vm441_vm1, %v19234_v31 }
 0x638   : > { %13250 = vmatpush3.msk.msra.mxu1 %vm727_vm0, %v19214_v50  ;;  %13299 = vmatprep.subr.msk.mxu0 %vm727_vm0, %v19419_v4 }
 0x639   : > { %13105 = vmatmul.mubr.msk.f32.gmra.mxu0 %vm441_vm1, %v18845_v62 }
 0x63a   : > { %13155 = vmatmul.mubr.msk.f32.gmra.mxu1 %vm441_vm1, %v19240_v10  ;;  %13107 = vmatprep.mubr.msk.f32.mxu0 %vm441_vm1, %v18862_v45 }
 0x63b   : > { %13157 = vmatprep.mubr.msk.f32.mxu1 %vm441_vm1, %v19246_v47 }
 0x63d   : > { %13108 = vmatmul.mubr.msk.f32.gmra.mxu0 %vm441_vm1, %v18875_v0 }
 0x63e   : > { %13158 = vmatmul.mubr.msk.f32.gmra.mxu1 %vm441_vm1, %v19254_v23  ;;  %13110 = vmatprep.mubr.msk.f32.mxu0 %vm441_vm1, %v18892_v13 }
 0x63f   : > { %13160 = vmatprep.mubr.msk.f32.mxu1 %vm441_vm1, %v19260_v24 }
 0x641   : > { %13111 = vmatmul.mubr.msk.f32.gmra.mxu0 %vm441_vm1, %v18905_v1 }
 0x642   : > { %13161 = vmatmul.mubr.msk.f32.gmra.mxu1 %vm441_vm1, %v19266_v42  ;;  %13113 = vmatprep.mubr.msk.f32.mxu0 %vm441_vm1, %v18922_v25 }
 0x643   : > { %13163 = vmatprep.mubr.msk.f32.mxu1 %vm441_vm1, %v19272_v33 }
 0x645   : > { %13114 = vmatmul.mubr.msk.f32.gmra.mxu0 %vm441_vm1, %v18935_v6 }
 0x646   : > { %13164 = vmatmul.mubr.msk.f32.gmra.mxu1 %vm441_vm1, %v19278_v44  ;;  %13116 = vmatprep.mubr.msk.f32.mxu0 %vm441_vm1, %v18952_v12 }
 0x647   : > { %13166 = vmatprep.mubr.msk.f32.mxu1 %vm441_vm1, %v19284_v48 }
 0x649   : > { %13117 = vmatmul.mubr.msk.f32.gmra.mxu0 %vm441_vm1, %v18965_v32 }
 0x64a   : > { %13167 = vmatmul.mubr.msk.f32.gmra.mxu1 %vm441_vm1, %v19290_v16  ;;  %13119 = vmatprep.mubr.msk.f32.mxu0 %vm441_vm1, %v18982_v35 }
 0x64b   : > { %13169 = vmatprep.mubr.msk.f32.mxu1 %vm441_vm1, %v19296_v41 }
 0x64d   : > { %13120 = vmatmul.mubr.msk.f32.gmra.mxu0 %vm441_vm1, %v18995_v21 }
 0x64e   : > { %13170 = vmatmul.mubr.msk.f32.gmra.mxu1 %vm441_vm1, %v19302_v18  ;;  %13122 = vmatprep.mubr.msk.f32.mxu0 %vm441_vm1, %v19012_v49 }
 0x64f   : > { %13172 = vmatprep.mubr.msk.f32.mxu1 %vm441_vm1, %v19308_v8 }
 0x651   : > { %13123 = vmatmul.mubr.msk.f32.gmra.mxu0 %vm441_vm1, %v19025_v46 }
 0x652   : > { %13173 = vmatmul.mubr.msk.f32.gmra.mxu1 %vm441_vm1, %v19314_v11  ;;  %13125 = vmatprep.mubr.msk.f32.mxu0 %vm441_vm1, %v19042_v29 }
 0x653   : > { %13175 = vmatprep.mubr.msk.f32.mxu1 %vm441_vm1, %v19320_v60 }
 0x655   : > { %13126 = vmatmul.mubr.msk.f32.gmra.mxu0 %vm441_vm1, %v20954_v37 }
 0x656   : > { %13176 = vmatmul.mubr.msk.f32.gmra.mxu1 %vm441_vm1, %v19326_v36  ;;  %13128 = vmatprep.mubr.msk.f32.mxu0 %vm441_vm1, %v19072_v51 }
 0x657   : > { %13178 = vmatprep.mubr.msk.f32.mxu1 %vm441_vm1, %v19332_v28 }
 0x659   : > { %13129 = vmatmul.mubr.msk.f32.gmra.mxu0 %vm441_vm1, %v20955_v26 }
 0x65a   : > { %13179 = vmatmul.mubr.msk.f32.gmra.mxu1 %vm441_vm1, %v19338_v55  ;;  %13131 = vmatprep.mubr.msk.f32.mxu0 %vm441_vm1, %v20956_v9 }
 0x65b   : > { %13181 = vmatprep.mubr.msk.f32.mxu1 %vm441_vm1, %v19344_v61 }
 0x65d   : > { %13132 = vmatmul.mubr.msk.f32.gmra.mxu0 %vm441_vm1, %v20957_v7 }
 0x65e   : > { %13182 = vmatmul.mubr.msk.f32.gmra.mxu1 %vm441_vm1, %v19350_v17  ;;  %13134 = vmatprep.mubr.msk.f32.mxu0 %vm441_vm1, %v19125_v30  ;;  %v19539_v17 = vld [vmem:[#allocation6 + $0x181] sm:$0xff] }
 0x65f   : > { %13184 = vmatprep.mubr.msk.f32.mxu1 %vm441_vm1, %v19356_v15  ;;  %v19547_v15 = vld [vmem:[#allocation6 + $0x189] sm:$0xff] }
 0x661   : > { %13135 = vmatmul.mubr.msk.f32.gmra.mxu0 %vm441_vm1, %v19138_v54 }
 0x662   : > { %13185 = vmatmul.mubr.msk.f32.gmra.mxu1 %vm441_vm1, %v19362_v14  ;;  %13137 = vmatprep.mubr.msk.f32.mxu0 %vm441_vm1, %v19147_v57  ;;  %v19541_v14 = vld [vmem:[#allocation6 + $0x182] sm:$0xff] }
 0x663   : > { %13187 = vmatprep.mubr.msk.f32.mxu1 %vm441_vm1, %v19368_v59  ;;  %v19549_v59 = vld [vmem:[#allocation6 + $0x18a] sm:$0xff] }
 0x665   : > { %13138 = vmatmul.mubr.msk.f32.gmra.mxu0 %vm441_vm1, %v19158_v56 }
 0x666   : > { %13188 = vmatmul.mubr.msk.f32.gmra.mxu1 %vm441_vm1, %v19374_v58  ;;  %13140 = vmatprep.mubr.msk.f32.mxu0 %vm441_vm1, %v19165_v40  ;;  %v20958_v58 = vld [vmem:[#allocation56_spill] sm:$0xff] }
 0x667   : > { %13190 = vmatprep.mubr.msk.f32.mxu1 %vm441_vm1, %v19380_v39  ;;  %v20959_v39 = vld [vmem:[#allocation58_spill] sm:$0xff] }
 0x669   : > { %13141 = vmatmul.mubr.msk.f32.gmra.mxu0 %vm441_vm1, %v19176_v5 }
 0x66a   : > { %13191 = vmatmul.mubr.msk.f32.gmra.mxu1 %vm441_vm1, %v19386_v63  ;;  %13143 = vmatprep.mubr.msk.f32.mxu0 %vm441_vm1, %v19182_v2  ;;  %v19567_v63 = vpop.f32.mrf.mxu0 }
 0x66b   : > { %13193 = vmatprep.mubr.msk.f32.mxu1 %vm441_vm1, %v19392_v20  ;;  %v19569_v20 = vpop.f32.mrf.mxu1 }
 0x66d   : > { %13144 = vmatmul.mubr.msk.f32.gmra.mxu0 %vm441_vm1, %v19192_v38 }
 0x66e   : > { %13194 = vmatmul.mubr.msk.f32.gmra.mxu1 %vm441_vm1, %v19400_v3  ;;  %13146 = vmatprep.mubr.msk.f32.mxu0 %vm441_vm1, %v19539_v17  ;;  %v20960_v3 = vld [vmem:[#allocation39_spill] sm:$0xff] }
 0x66f   : > { %13196 = vmatprep.mubr.msk.f32.mxu1 %vm441_vm1, %v19541_v14 }
 0x671   : > { %13147 = vmatmul.mubr.msk.f32.gmra.mxu0 %vm441_vm1, %v19547_v15 }
 0x672   : > { %13197 = vmatmul.mubr.msk.f32.gmra.mxu1 %vm441_vm1, %v19549_v59  ;;  %13201 = vmatprep.mubr.msk.f32.mxu0 %vm441_vm1, %v18834_v22 }
 0x673   : > { %13251 = vmatprep.mubr.msk.f32.mxu1 %vm441_vm1, %v18832_v34 }
 0x675   : > { %13202 = vmatmul.mubr.msk.f32.vlgmr.msra.gmra.mxu0 %vm441_vm1, %v20958_v58 }
 0x676   : > { %13252 = vmatmul.mubr.msk.f32.vlgmr.msra.gmra.mxu1 %vm441_vm1, %v18845_v62  ;;  %13300 = vmatpush3.msk.msra.mxu0 %vm727_vm0, %v19419_v4 }
 0x677   : > { %13204 = vmatprep.mubr.msk.f32.mxu0 %vm441_vm1, %v20959_v39  ;;  %13254 = vmatprep.mubr.msk.f32.mxu1 %vm441_vm1, %v18862_v45  ;;  %v20961_v39 = vld [vmem:[#allocation60_spill] sm:$0xff] }
 0x679   : > { %v12906_v34 = vpop.f32.mrf.mxu0  ;;  %13205 = vmatmul.mubr.msk.f32.gmra.mxu0 %vm441_vm1, %v20960_v3 }
 0x67a   : > { %v12956_v22 = vpop.f32.mrf.mxu1  ;;  %13255 = vmatmul.mubr.msk.f32.gmra.mxu1 %vm441_vm1, %v18875_v0  ;;  %13207 = vmatprep.mubr.msk.f32.mxu0 %vm441_vm1, %v18894_v52 }
 0x67b   : > { %v19577_v62 = vadd.f32 %v12956_v22, %v12906_v34  ;;  %13257 = vmatprep.mubr.msk.f32.mxu1 %vm441_vm1, %v18892_v13  ;;  %v8319_v4 = vpop.f32.mrf.mxu0 }
 0x67c   : > { %v8643_v50 = vpop.f32.mrf.mxu1 }
 0x67d   : > { %v19583_v53 = vadd.f32 %v8643_v50, %v8319_v4  ;;  %v12909_v45 = vpop.f32.mrf.mxu0  ;;  %13208 = vmatmul.mubr.msk.f32.gmra.mxu0 %vm441_vm1, %v18896_v19  ;;  %v20962_v4 = vld [vmem:[#allocation64_spill] sm:$0xff] }
 0x67e   : > { %v12959_v58 = vpop.f32.mrf.mxu1  ;;  %13258 = vmatmul.mubr.msk.f32.gmra.mxu1 %vm441_vm1, %v18905_v1  ;;  %13210 = vmatprep.mubr.msk.f32.mxu0 %vm441_vm1, %v20961_v39  ;;  %v20963_v1 = vld [vmem:[#allocation66_spill] sm:$0xff] }
 0x67f   : > { %v19589_v0 = vadd.f32 %v12959_v58, %v12909_v45  ;;  %13260 = vmatprep.mubr.msk.f32.mxu1 %vm441_vm1, %v18922_v25  ;;  %v8329_v13 = vpop.f32.mrf.mxu0 }
 0x680   : > { %v8653_v52 = vpop.f32.mrf.mxu1 }
 0x681   : > { %v19595_v34 = vadd.f32 %v8653_v52, %v8329_v13  ;;  %v12912_v22 = vpop.f32.mrf.mxu0  ;;  %13211 = vmatmul.mubr.msk.f32.gmra.mxu0 %vm441_vm1, %v20962_v4  ;;  %v20964_v13 = vld [vmem:[#allocation68_spill] sm:$0xff]  ;;  %v20965_v52 = vld [vmem:[#allocation70_spill] sm:$0xff] }
 0x682   : > { %v12962_v3 = vpop.f32.mrf.mxu1  ;;  %13261 = vmatmul.mubr.msk.f32.gmra.mxu1 %vm441_vm1, %v18935_v6  ;;  %13213 = vmatprep.mubr.msk.f32.mxu0 %vm441_vm1, %v20963_v1 }
 0x683   : > { %v19601_v19 = vadd.f32 %v12962_v3, %v12912_v22  ;;  %13263 = vmatprep.mubr.msk.f32.mxu1 %vm441_vm1, %v18952_v12  ;;  %v8339_v25 = vpop.f32.mrf.mxu0 }
 0x684   : > { %v8663_v50 = vpop.f32.mrf.mxu1 }
 0x685   : > { %v19607_v45 = vadd.f32 %v8663_v50, %v8339_v25  ;;  %v12915_v58 = vpop.f32.mrf.mxu0  ;;  %13214 = vmatmul.mubr.msk.f32.gmra.mxu0 %vm441_vm1, %v20964_v13  ;;  %v20966_v25 = vld [vmem:[#allocation72_spill] sm:$0xff]  ;;  %v20967_v50 = vld [vmem:[#allocation74_spill] sm:$0xff] }
 0x686   : > { %v12965_v39 = vpop.f32.mrf.mxu1  ;;  %13264 = vmatmul.mubr.msk.f32.gmra.mxu1 %vm441_vm1, %v18965_v32  ;;  %13216 = vmatprep.mubr.msk.f32.mxu0 %vm441_vm1, %v20965_v52 }
 0x687   : > { %v19613_v6 = vadd.f32 %v12965_v39, %v12915_v58  ;;  %13266 = vmatprep.mubr.msk.f32.mxu1 %vm441_vm1, %v18982_v35  ;;  %v8349_v12 = vpop.f32.mrf.mxu0 }
 0x688   : > { %v8673_v22 = vpop.f32.mrf.mxu1 }
 0x689   : > { %v19619_v3 = vadd.f32 %v8673_v22, %v8349_v12  ;;  %v12918_v4 = vpop.f32.mrf.mxu0  ;;  %13217 = vmatmul.mubr.msk.f32.gmra.mxu0 %vm441_vm1, %v20966_v25  ;;  %v20968_v12 = vld [vmem:[#allocation77_spill] sm:$0xff]  ;;  %v20969_v22 = vld [vmem:[#allocation75_spill] sm:$0xff] }
 0x68a   : > { %v12968_v1 = vpop.f32.mrf.mxu1  ;;  %13267 = vmatmul.mubr.msk.f32.gmra.mxu1 %vm441_vm1, %v18995_v21  ;;  %13219 = vmatprep.mubr.msk.f32.mxu0 %vm441_vm1, %v20967_v50 }
 0x68b   : > { %v19625_v32 = vadd.f32 %v12968_v1, %v12918_v4  ;;  %13269 = vmatprep.mubr.msk.f32.mxu1 %vm441_vm1, %v19012_v49  ;;  %v8359_v35 = vpop.f32.mrf.mxu0 }
 0x68c   : > { %v8683_v58 = vpop.f32.mrf.mxu1 }
 0x68d   : > { %v19631_v39 = vadd.f32 %v8683_v58, %v8359_v35  ;;  %v12921_v13 = vpop.f32.mrf.mxu0  ;;  %13220 = vmatmul.mubr.msk.f32.gmra.mxu0 %vm441_vm1, %v20968_v12  ;;  %v20970_v35 = vld [vmem:[#allocation10_spill] sm:$0xff]  ;;  %v20971_v58 = vld [vmem:[#allocation81_spill] sm:$0xff] }
 0x68e   : > { %v12971_v52 = vpop.f32.mrf.mxu1  ;;  %13270 = vmatmul.mubr.msk.f32.gmra.mxu1 %vm441_vm1, %v19025_v46  ;;  %13222 = vmatprep.mubr.msk.f32.mxu0 %vm441_vm1, %v20969_v22 }
 0x68f   : > { %v19637_v21 = vadd.f32 %v12971_v52, %v12921_v13  ;;  %13272 = vmatprep.mubr.msk.f32.mxu1 %vm441_vm1, %v19042_v29  ;;  %v8369_v49 = vpop.f32.mrf.mxu0 }
 0x690   : > { %v8693_v4 = vpop.f32.mrf.mxu1 }
 0x691   : > { %v19643_v1 = vadd.f32 %v8693_v4, %v8369_v49  ;;  %v12924_v25 = vpop.f32.mrf.mxu0  ;;  %13223 = vmatmul.mubr.msk.f32.gmra.mxu0 %vm441_vm1, %v20970_v35  ;;  %v20972_v49 = vld [vmem:[#allocation78_spill] sm:$0xff]  ;;  %v20973_v4 = vld [vmem:[#allocation85_spill] sm:$0xff] }
 0x692   : > { %v12974_v50 = vpop.f32.mrf.mxu1  ;;  %13273 = vmatmul.mubr.msk.f32.gmra.mxu1 %vm441_vm1, %v20954_v37  ;;  %13225 = vmatprep.mubr.msk.f32.mxu0 %vm441_vm1, %v20971_v58 }
 0x693   : > { %v19649_v46 = vadd.f32 %v12974_v50, %v12924_v25  ;;  %13275 = vmatprep.mubr.msk.f32.mxu1 %vm441_vm1, %v19072_v51  ;;  %v8379_v29 = vpop.f32.mrf.mxu0 }
 0x694   : > { %v8703_v13 = vpop.f32.mrf.mxu1 }
 0x695   : > { %v19655_v52 = vadd.f32 %v8703_v13, %v8379_v29  ;;  %v12927_v12 = vpop.f32.mrf.mxu0  ;;  %13226 = vmatmul.mubr.msk.f32.gmra.mxu0 %vm441_vm1, %v20972_v49  ;;  %v20974_v29 = vld [vmem:[#allocation88_spill] sm:$0xff]  ;;  %v20975_v13 = vld [vmem:[#allocation89_spill] sm:$0xff] }
 0x696   : > { %v12977_v22 = vpop.f32.mrf.mxu1  ;;  %13276 = vmatmul.mubr.msk.f32.gmra.mxu1 %vm441_vm1, %v20955_v26  ;;  %13228 = vmatprep.mubr.msk.f32.mxu0 %vm441_vm1, %v20973_v4 }
 0x697   : > { %v19661_v37 = vadd.f32 %v12977_v22, %v12927_v12  ;;  %13278 = vmatprep.mubr.msk.f32.mxu1 %vm441_vm1, %v20956_v9  ;;  %v8389_v51 = vpop.f32.mrf.mxu0 }
 0x698   : > { %v8713_v25 = vpop.f32.mrf.mxu1 }
 0x699   : > { %v19667_v50 = vadd.f32 %v8713_v25, %v8389_v51  ;;  %v12930_v35 = vpop.f32.mrf.mxu0  ;;  %13229 = vmatmul.mubr.msk.f32.gmra.mxu0 %vm441_vm1, %v20974_v29  ;;  %v20976_v51 = vld [vmem:[#allocation49_spill] sm:$0xff]  ;;  %v20977_v25 = vld [vmem:[#allocation90_spill] sm:$0xff] }
 0x69a   : > { %v12980_v58 = vpop.f32.mrf.mxu1  ;;  %13279 = vmatmul.mubr.msk.f32.gmra.mxu1 %vm441_vm1, %v20957_v7  ;;  %13231 = vmatprep.mubr.msk.f32.mxu0 %vm441_vm1, %v20975_v13 }
 0x69b   : > { %v19673_v26 = vadd.f32 %v12980_v58, %v12930_v35  ;;  %13281 = vmatprep.mubr.msk.f32.mxu1 %vm441_vm1, %v19125_v30  ;;  %v8399_v9 = vpop.f32.mrf.mxu0 }
 0x69c   : > { %v8723_v12 = vpop.f32.mrf.mxu1 }
 0x69d   : > { %v19679_v22 = vadd.f32 %v8723_v12, %v8399_v9  ;;  %v12933_v49 = vpop.f32.mrf.mxu0  ;;  %13232 = vmatmul.mubr.msk.f32.gmra.mxu0 %vm441_vm1, %v20976_v51  ;;  %v20978_v9 = vld [vmem:[#allocation86_spill] sm:$0xff]  ;;  %v20979_v12 = vld [vmem:[#allocation91_spill] sm:$0xff] }
 0x69e   : > { %v12983_v4 = vpop.f32.mrf.mxu1  ;;  %13282 = vmatmul.mubr.msk.f32.gmra.mxu1 %vm441_vm1, %v19138_v54  ;;  %13234 = vmatprep.mubr.msk.f32.mxu0 %vm441_vm1, %v20977_v25 }
 0x69f   : > { %v19685_v7 = vadd.f32 %v12983_v4, %v12933_v49  ;;  %13284 = vmatprep.mubr.msk.f32.mxu1 %vm441_vm1, %v19147_v57  ;;  %v8409_v30 = vpop.f32.mrf.mxu0 }
 0x6a0   : > { %v8733_v35 = vpop.f32.mrf.mxu1 }
 0x6a1   : > { %v19691_v58 = vadd.f32 %v8733_v35, %v8409_v30  ;;  %v12936_v29 = vpop.f32.mrf.mxu0  ;;  %13235 = vmatmul.mubr.msk.f32.gmra.mxu0 %vm441_vm1, %v20978_v9  ;;  %v20980_v30 = vld [vmem:[#allocation93_spill] sm:$0xff]  ;;  %v20981_v35 = vld [vmem:[#allocation54_spill] sm:$0xff] }
 0x6a2   : > { %v12986_v13 = vpop.f32.mrf.mxu1  ;;  %13285 = vmatmul.mubr.msk.f32.gmra.mxu1 %vm441_vm1, %v19158_v56  ;;  %13237 = vmatprep.mubr.msk.f32.mxu0 %vm441_vm1, %v20979_v12 }
 0x6a3   : > { %v19697_v54 = vadd.f32 %v12986_v13, %v12936_v29  ;;  %13287 = vmatprep.mubr.msk.f32.mxu1 %vm441_vm1, %v19165_v40  ;;  %v8419_v57 = vpop.f32.mrf.mxu0 }
 0x6a4   : > { %v8743_v49 = vpop.f32.mrf.mxu1 }
 0x6a5   : > { %v19703_v4 = vadd.f32 %v8743_v49, %v8419_v57  ;;  %v12939_v51 = vpop.f32.mrf.mxu0  ;;  %13238 = vmatmul.mubr.msk.f32.gmra.mxu0 %vm441_vm1, %v20980_v30  ;;  %v20982_v57 = vld [vmem:[#allocation9_spill] sm:$0xff] }
 0x6a6   : > { %v12989_v25 = vpop.f32.mrf.mxu1  ;;  %13288 = vmatmul.mubr.msk.f32.gmra.mxu1 %vm441_vm1, %v19176_v5  ;;  %13240 = vmatprep.mubr.msk.f32.mxu0 %vm441_vm1, %v20981_v35 }
 0x6a7   : > { %v19709_v56 = vadd.f32 %v12989_v25, %v12939_v51  ;;  %13290 = vmatprep.mubr.msk.f32.mxu1 %vm441_vm1, %v19182_v2  ;;  %v8429_v40 = vpop.f32.mrf.mxu0  ;;  %v10383_v51 = vld [vmem:[#allocation6 + $0x198] sm:$0xff] }
 0x6a8   : > { %v8753_v29 = vpop.f32.mrf.mxu1  ;;  %v10773_v25 = vld [vmem:[#allocation6 + $0x199] sm:$0xff] }
 0x6a9   : > { %v19715_v13 = vadd.f32 %v8753_v29, %v8429_v40  ;;  %v12942_v9 = vpop.f32.mrf.mxu0  ;;  %13241 = vmatmul.mubr.msk.f32.gmra.mxu0 %vm441_vm1, %v19186_v43 }
 0x6aa   : > { %v12992_v12 = vpop.f32.mrf.mxu1  ;;  %13291 = vmatmul.mubr.msk.f32.gmra.mxu1 %vm441_vm1, %v19192_v38  ;;  %13243 = vmatprep.mubr.msk.f32.mxu0 %vm441_vm1, %v20982_v57  ;;  %v10384_v38 = vld [vmem:[#allocation6 + $0x1a0] sm:$0xff] }
 0x6ab   : > { %v19721_v5 = vadd.f32 %v12992_v12, %v12942_v9  ;;  %13293 = vmatprep.mubr.msk.f32.mxu1 %vm441_vm1, %v19539_v17  ;;  %v8439_v2 = vpop.f32.mrf.mxu0  ;;  %v10774_v17 = vld [vmem:[#allocation6 + $0x1a1] sm:$0xff] }
 0x6ac   : > { %v8763_v49 = vpop.f32.mrf.mxu1 }
 0x6ad   : > { %v19727_v30 = vadd.f32 %v8763_v49, %v8439_v2  ;;  %v12945_v35 = vpop.f32.mrf.mxu0  ;;  %13244 = vmatmul.mubr.msk.f32.gmra.mxu0 %vm441_vm1, %v19402_v27 }
 0x6ae   : > { %v12995_v40 = vpop.f32.mrf.mxu1  ;;  %13294 = vmatmul.mubr.msk.f32.gmra.mxu1 %vm441_vm1, %v19547_v15  ;;  %13246 = vmatprep.mubr.msk.f32.mxu0 %vm441_vm1, %v10383_v51 }
 0x6af   : > { %v19733_v43 = vadd.f32 %v12995_v40, %v12945_v35  ;;  %13296 = vmatprep.mubr.msk.f32.mxu1 %vm441_vm1, %v10773_v25  ;;  %v8449_v29 = vpop.f32.mrf.mxu0  ;;  %v8634_v40 = vadd.f32 %v19569_v20, %v19567_v63 }
 0x6b0   : > { %v8773_v9 = vpop.f32.mrf.mxu1 }
 0x6b1   : > { %v19737_v12 = vadd.f32 %v8773_v9, %v8449_v29  ;;  %v12948_v57 = vpop.f32.mrf.mxu0  ;;  %13247 = vmatmul.mubr.msk.f32.gmra.mxu0 %vm441_vm1, %v10384_v38  ;;  %v20983_v38 = vld [vmem:[#allocation27_spill] sm:$0xff] }
 0x6b2   : > { %v12998_v2 = vpop.f32.mrf.mxu1  ;;  %13297 = vmatmul.mubr.msk.f32.gmra.mxu1 %vm441_vm1, %v10774_v17  ;;  %13301 = vmatprep.mubr.msk.f32.mxu0 %vm441_vm1, %v19234_v31 }
 0x6b3   : > { %v19741_v27 = vadd.f32 %v12998_v2, %v12948_v57  ;;  %v8459_v15 = vpop.f32.mrf.mxu0 }
 0x6b4   : > { %v8783_v49 = vpop.f32.mrf.mxu1 }
 0x6b5   : > { %v19745_v51 = vadd.f32 %v8783_v49, %v8459_v15  ;;  %v13003_v25 = vpop.f32.mrf.mxu0  ;;  %13302 = vmatmul.mubr.msk.f32.vlgmr.msra.gmra.mxu0 %vm441_vm1, %v19240_v10 }
 0x6b6   : > { %v13053_v35 = vpop.f32.mrf.mxu1  ;;  %v9151_v29 = vadd.f32 %v13003_v25, %v20983_v38  ;;  %13304 = vmatprep.mubr.msk.f32.mxu0 %vm441_vm1, %v19246_v47 }
 0x6b7   : > { %v8991_v17 = vpop.f32.mrf.mxu0 }
 0x6b8   : > { %v9381_v9 = vpop.f32.mrf.mxu1  ;;  %v19754_v31 = vadd.f32 %v13053_v35, %v9151_v29  ;;  %v9150_v57 = vadd.f32 %v8991_v17, %v8634_v40 }
 0x6b9   : > { %v13006_v2 = vpop.f32.mrf.mxu0  ;;  %13305 = vmatmul.mubr.msk.f32.gmra.mxu0 %vm441_vm1, %v19254_v23 }
 0x6ba   : > { %v13056_v15 = vpop.f32.mrf.mxu1  ;;  %v19758_v49 = vadd.f32 %v9381_v9, %v9150_v57  ;;  %v9153_v10 = vadd.f32 %v13006_v2, %v19577_v62  ;;  %13307 = vmatprep.mubr.msk.f32.mxu0 %vm441_vm1, %v19260_v24 }
 0x6bb   : > { %v9001_v63 = vpop.f32.mrf.mxu0 }
 0x6bc   : > { %v9391_v20 = vpop.f32.mrf.mxu1  ;;  %v19763_v47 = vadd.f32 %v13056_v15, %v9153_v10  ;;  %v9152_v25 = vadd.f32 %v9001_v63, %v19583_v53 }
 0x6bd   : > { %v13009_v35 = vpop.f32.mrf.mxu0  ;;  %13308 = vmatmul.mubr.msk.f32.gmra.mxu0 %vm441_vm1, %v19266_v42 }
 0x6be   : > { %v13059_v40 = vpop.f32.mrf.mxu1  ;;  %v19768_v38 = vadd.f32 %v9391_v20, %v9152_v25  ;;  %v9155_v23 = vadd.f32 %v13009_v35, %v19589_v0  ;;  %13310 = vmatprep.mubr.msk.f32.mxu0 %vm441_vm1, %v19272_v33 }
 0x6bf   : > { %v9011_v62 = vpop.f32.mrf.mxu0 }
 0x6c0   : > { %v9401_v24 = vpop.f32.mrf.mxu1  ;;  %v19773_v29 = vadd.f32 %v13059_v40, %v9155_v23  ;;  %v9154_v17 = vadd.f32 %v9011_v62, %v19595_v34 }
 0x6c1   : > { %v13012_v9 = vpop.f32.mrf.mxu0  ;;  %13311 = vmatmul.mubr.msk.f32.gmra.mxu0 %vm441_vm1, %v19278_v44 }
 0x6c2   : > { %v13062_v53 = vpop.f32.mrf.mxu1  ;;  %v19778_v57 = vadd.f32 %v9401_v24, %v9154_v17  ;;  %v9157_v42 = vadd.f32 %v13012_v9, %v19601_v19  ;;  %13313 = vmatprep.mubr.msk.f32.mxu0 %vm441_vm1, %v19284_v48 }
 0x6c3   : > { %v9021_v0 = vpop.f32.mrf.mxu0 }
 0x6c4   : > { %v9411_v33 = vpop.f32.mrf.mxu1  ;;  %v19783_v2 = vadd.f32 %v13062_v53, %v9157_v42  ;;  %v9156_v15 = vadd.f32 %v9021_v0, %v19607_v45 }
 0x6c5   : > { %v13015_v10 = vpop.f32.mrf.mxu0  ;;  %13314 = vmatmul.mubr.msk.f32.gmra.mxu0 %vm441_vm1, %v19290_v16 }
 0x6c6   : > { %v13065_v34 = vpop.f32.mrf.mxu1  ;;  %v19788_v63 = vadd.f32 %v9411_v33, %v9156_v15  ;;  %v9159_v44 = vadd.f32 %v13015_v10, %v19613_v6  ;;  %13316 = vmatprep.mubr.msk.f32.mxu0 %vm441_vm1, %v19296_v41 }
 0x6c7   : > { %v9031_v19 = vpop.f32.mrf.mxu0 }
 0x6c8   : > { %v9421_v48 = vpop.f32.mrf.mxu1  ;;  %v19793_v20 = vadd.f32 %v13065_v34, %v9159_v44  ;;  %v9158_v25 = vadd.f32 %v9031_v19, %v19619_v3 }
 0x6c9   : > { %v13018_v35 = vpop.f32.mrf.mxu0  ;;  %13317 = vmatmul.mubr.msk.f32.gmra.mxu0 %vm441_vm1, %v19302_v18 }
 0x6ca   : > { %v13068_v45 = vpop.f32.mrf.mxu1  ;;  %v19798_v40 = vadd.f32 %v9421_v48, %v9158_v25  ;;  %v9161_v16 = vadd.f32 %v13018_v35, %v19625_v32  ;;  %13319 = vmatprep.mubr.msk.f32.mxu0 %vm441_vm1, %v19308_v8  ;;  %v11152_v48 = vld [vmem:[#allocation6 + $0x112] sm:$0xff]  ;;  %v11153_v35 = vld [vmem:[#allocation6 + $0x122] sm:$0xff] }
 0x6cb   : > { %v9041_v6 = vpop.f32.mrf.mxu0 }
 0x6cc   : > { %v9431_v41 = vpop.f32.mrf.mxu1  ;;  %v19803_v23 = vadd.f32 %v13068_v45, %v9161_v16  ;;  %v9160_v62 = vadd.f32 %v9041_v6, %v19631_v39 }
 0x6cd   : > { %v13021_v24 = vpop.f32.mrf.mxu0  ;;  %13320 = vmatmul.mubr.msk.f32.gmra.mxu0 %vm441_vm1, %v19314_v11 }
 0x6ce   : > { %v13071_v3 = vpop.f32.mrf.mxu1  ;;  %v19808_v17 = vadd.f32 %v9431_v41, %v9160_v62  ;;  %v9163_v18 = vadd.f32 %v13021_v24, %v19637_v21  ;;  %13322 = vmatprep.mubr.msk.f32.mxu0 %vm441_vm1, %v19320_v60  ;;  %v11154_v41 = vld [vmem:[#allocation6 + $0x12a] sm:$0xff]  ;;  %v11155_v24 = vld [vmem:[#allocation6 + $0x13a] sm:$0xff] }
 0x6cf   : > { %v9051_v32 = vpop.f32.mrf.mxu0 }
 0x6d0   : > { %v9441_v8 = vpop.f32.mrf.mxu1  ;;  %v19813_v9 = vadd.f32 %v13071_v3, %v9163_v18  ;;  %v9162_v53 = vadd.f32 %v9051_v32, %v19643_v1 }
 0x6d1   : > { %v13024_v42 = vpop.f32.mrf.mxu0  ;;  %13323 = vmatmul.mubr.msk.f32.gmra.mxu0 %vm441_vm1, %v19326_v36 }
 0x6d2   : > { %v13074_v39 = vpop.f32.mrf.mxu1  ;;  %v19818_v0 = vadd.f32 %v9441_v8, %v9162_v53  ;;  %v9165_v11 = vadd.f32 %v13024_v42, %v19649_v46  ;;  %13325 = vmatprep.mubr.msk.f32.mxu0 %vm441_vm1, %v19332_v28  ;;  %v11156_v42 = vld [vmem:[#allocation6 + $0x142] sm:$0xff] }
 0x6d3   : > { %v9061_v21 = vpop.f32.mrf.mxu0 }
 0x6d4   : > { %v9451_v60 = vpop.f32.mrf.mxu1  ;;  %v19823_v33 = vadd.f32 %v13074_v39, %v9165_v11  ;;  %v9164_v15 = vadd.f32 %v9061_v21, %v19655_v52  ;;  %v11157_v11 = vld [vmem:[#allocation6 + $0x152] sm:$0xff] }
 0x6d5   : > { %v13027_v10 = vpop.f32.mrf.mxu0  ;;  %13326 = vmatmul.mubr.msk.f32.gmra.mxu0 %vm441_vm1, %v19338_v55 }
 0x6d6   : > { %v13077_v1 = vpop.f32.mrf.mxu1  ;;  %v19828_v34 = vadd.f32 %v9451_v60, %v9164_v15  ;;  %v9167_v36 = vadd.f32 %v13027_v10, %v19661_v37  ;;  %13328 = vmatprep.mubr.msk.f32.mxu0 %vm441_vm1, %v19344_v61 }
 0x6d7   : > { %v9071_v46 = vpop.f32.mrf.mxu0 }
 0x6d8   : > { %v9461_v28 = vpop.f32.mrf.mxu1  ;;  %v19833_v44 = vadd.f32 %v13077_v1, %v9167_v36  ;;  %v9166_v19 = vadd.f32 %v9071_v46, %v19667_v50  ;;  %v11158_v36 = vld [vmem:[#allocation6 + $0x15a] sm:$0xff] }
 0x6d9   : > { %v13030_v52 = vpop.f32.mrf.mxu0  ;;  %13329 = vmatmul.mubr.msk.f32.gmra.mxu0 %vm441_vm1, %v11152_v48 }
 0x6da   : > { %v13080_v25 = vpop.f32.mrf.mxu1  ;;  %v19837_v55 = vadd.f32 %v9461_v28, %v9166_v19  ;;  %v9169_v45 = vadd.f32 %v13030_v52, %v19673_v26  ;;  %13331 = vmatprep.mubr.msk.f32.mxu0 %vm441_vm1, %v11153_v35  ;;  %v11159_v28 = vld [vmem:[#allocation6 + $0x16a] sm:$0xff] }
 0x6db   : > { %v9081_v37 = vpop.f32.mrf.mxu0 }
 0x6dc   : > { %v9471_v61 = vpop.f32.mrf.mxu1  ;;  %v19841_v16 = vadd.f32 %v13080_v25, %v9169_v45  ;;  %v9168_v6 = vadd.f32 %v9081_v37, %v19679_v22  ;;  %v11160_v45 = vld [vmem:[#allocation6 + $0x172] sm:$0xff] }
 0x6dd   : > { %v13033_v50 = vpop.f32.mrf.mxu0  ;;  %13332 = vmatmul.mubr.msk.f32.gmra.mxu0 %vm441_vm1, %v11154_v41 }
 0x6de   : > { %v13083_v62 = vpop.f32.mrf.mxu1  ;;  %v19845_v3 = vadd.f32 %v9471_v61, %v9168_v6  ;;  %v9171_v18 = vadd.f32 %v13033_v50, %v19685_v7  ;;  %13334 = vmatprep.mubr.msk.f32.mxu0 %vm441_vm1, %v11155_v24  ;;  %v11163_v50 = vld [vmem:[#allocation6 + $0x19a] sm:$0xff] }
 0x6df   : > { %v9091_v26 = vpop.f32.mrf.mxu0 }
 0x6e0   : > { %v9481_v32 = vpop.f32.mrf.mxu1  ;;  %v19849_v8 = vadd.f32 %v13083_v62, %v9171_v18  ;;  %v9170_v53 = vadd.f32 %v9091_v26, %v19691_v58 }
 0x6e1   : > { %v13036_v22 = vpop.f32.mrf.mxu0  ;;  %13335 = vmatmul.mubr.msk.f32.gmra.mxu0 %vm441_vm1, %v11156_v42 }
 0x6e2   : > { %v13086_v39 = vpop.f32.mrf.mxu1  ;;  %v19853_v21 = vadd.f32 %v9481_v32, %v9170_v53  ;;  %v9173_v60 = vadd.f32 %v13036_v22, %v19697_v54  ;;  %13337 = vmatprep.mubr.msk.f32.mxu0 %vm441_vm1, %v11157_v11 }
 0x6e3   : > { %v9101_v7 = vpop.f32.mrf.mxu0 }
 0x6e4   : > { %v9491_v15 = vpop.f32.mrf.mxu1  ;;  %v19857_v10 = vadd.f32 %v13086_v39, %v9173_v60  ;;  %v9172_v1 = vadd.f32 %v9101_v7, %v19703_v4 }
 0x6e5   : > { %v13039_v58 = vpop.f32.mrf.mxu0  ;;  %13338 = vmatmul.mubr.msk.f32.gmra.mxu0 %vm441_vm1, %v11158_v36 }
 0x6e6   : > { %v13089_v46 = vpop.f32.mrf.mxu1  ;;  %v19861_v19 = vadd.f32 %v9491_v15, %v9172_v1  ;;  %v9175_v48 = vadd.f32 %v13039_v58, %v19709_v56  ;;  %13340 = vmatprep.mubr.msk.f32.mxu0 %vm441_vm1, %v11159_v28 }
 0x6e7   : > { %v9111_v54 = vpop.f32.mrf.mxu0 }
 0x6e8   : > { %v9501_v52 = vpop.f32.mrf.mxu1  ;;  %v19865_v25 = vadd.f32 %v13089_v46, %v9175_v48  ;;  %v9174_v35 = vadd.f32 %v9111_v54, %v19715_v13 }
 0x6e9   : > { %v13042_v4 = vpop.f32.mrf.mxu0  ;;  %13341 = vmatmul.mubr.msk.f32.gmra.mxu0 %vm441_vm1, %v11160_v45 }
 0x6ea   : > { %v13092_v37 = vpop.f32.mrf.mxu1  ;;  %v19869_v61 = vadd.f32 %v9501_v52, %v9174_v35  ;;  %v9177_v6 = vadd.f32 %v13042_v4, %v19721_v5  ;;  %13343 = vmatprep.mubr.msk.f32.mxu0 %vm441_vm1, %v19541_v14  ;;  %v11164_v5 = vld [vmem:[#allocation6 + $0x1a2] sm:$0xff] }
 0x6eb   : > { %v9121_v56 = vpop.f32.mrf.mxu0 }
 0x6ec   : > { %v9511_v41 = vpop.f32.mrf.mxu1  ;;  %v19874_v62 = vadd.f32 %v13092_v37, %v9177_v6  ;;  %v9176_v24 = vadd.f32 %v9121_v56, %v19727_v30 }
 0x6ed   : > { %v13045_v13 = vpop.f32.mrf.mxu0  ;;  %13344 = vmatmul.mubr.msk.f32.gmra.mxu0 %vm441_vm1, %v19549_v59 }
 0x6ee   : > { %v13095_v18 = vpop.f32.mrf.mxu1  ;;  %v19879_v26 = vadd.f32 %v9511_v41, %v9176_v24  ;;  %v9179_v32 = vadd.f32 %v13045_v13, %v19733_v43  ;;  %13346 = vmatprep.mubr.msk.f32.mxu0 %vm441_vm1, %v11163_v50 }
 0x6ef   : > { %v9131_v14 = vpop.f32.mrf.mxu0 }
 0x6f0   : > { %v9521_v53 = vpop.f32.mrf.mxu1  ;;  %v19883_v42 = vadd.f32 %v13095_v18, %v9179_v32  ;;  %v9178_v22 = vadd.f32 %v9131_v14, %v19737_v12 }
 0x6f1   : > { %v13048_v39 = vpop.f32.mrf.mxu0  ;;  %13347 = vmatmul.mubr.msk.f32.gmra.mxu0 %vm441_vm1, %v11164_v5 }
 0x6f2   : > { %v13098_v30 = vpop.f32.mrf.mxu1  ;;  %v19887_v11 = vadd.f32 %v9521_v53, %v9178_v22  ;;  %v9181_v59 = vadd.f32 %v13048_v39, %v19741_v27 }
 0x6f3   : > { %v9141_v60 = vpop.f32.mrf.mxu0 }
 0x6f4   : > { %v9531_v7 = vpop.f32.mrf.mxu1  ;;  %v19890_v43 = vadd.f32 %v13098_v30, %v9181_v59  ;;  %v9180_v15 = vadd.f32 %v9141_v60, %v19745_v51 }
 0x6f5   : > { %v13103_v1 = vpop.f32.mrf.mxu0 }
 0x6f6   : > { %v19893_v36 = vpop.f32.mrf.mxu1  ;;  %v19895_v58 = vadd.f32 %v9531_v7, %v9180_v15  ;;  %v19898_v12 = vadd.f32 %v13103_v1, %v19754_v31 }
 0x6f7   : > { %v9771_v46 = vpop.f32.mrf.mxu0 }
 0x6f8   : > { %v19900_v28 = vpop.f32.mrf.mxu1  ;;  %v19903_v48 = vadd.f32 %v9771_v46, %v19758_v49 }
 0x6f9   : > { %v13106_v27 = vpop.f32.mrf.mxu0 }
 0x6fa   : > { %v19905_v54 = vpop.f32.mrf.mxu1  ;;  %v19908_v52 = vadd.f32 %v13106_v27, %v19763_v47 }
 0x6fb   : > { %v9781_v51 = vpop.f32.mrf.mxu0 }
 0x6fc   : > { %v19910_v35 = vpop.f32.mrf.mxu1  ;;  %v19913_v45 = vadd.f32 %v9781_v51, %v19768_v38 }
 0x6fd   : > { %v13109_v31 = vpop.f32.mrf.mxu0 }
 0x6fe   : > { %v19915_v4 = vpop.f32.mrf.mxu1  ;;  %v19918_v37 = vadd.f32 %v13109_v31, %v19773_v29 }
 0x6ff   : > { %v9791_v49 = vpop.f32.mrf.mxu0 }
 0x700   : > { %v19920_v6 = vpop.f32.mrf.mxu1  ;;  %v19923_v56 = vadd.f32 %v9791_v49, %v19778_v57 }
 0x701   : > { %v13112_v47 = vpop.f32.mrf.mxu0 }
 0x702   : > { %v19925_v41 = vpop.f32.mrf.mxu1  ;;  %v19928_v50 = vadd.f32 %v13112_v47, %v19783_v2 }
 0x703   : > { %v9801_v38 = vpop.f32.mrf.mxu0 }
 0x704   : > { %v19930_v24 = vpop.f32.mrf.mxu1  ;;  %v19933_v13 = vadd.f32 %v9801_v38, %v19788_v63 }
 0x705   : > { %v13115_v29 = vpop.f32.mrf.mxu0 }
 0x706   : > { %v19935_v18 = vpop.f32.mrf.mxu1  ;;  %v19938_v32 = vadd.f32 %v13115_v29, %v19793_v20 }
 0x707   : > { %v9811_v57 = vpop.f32.mrf.mxu0 }
 0x708   : > { %v19940_v5 = vpop.f32.mrf.mxu1  ;;  %v19943_v14 = vadd.f32 %v9811_v57, %v19798_v40 }
 0x709   : > { %v13118_v2 = vpop.f32.mrf.mxu0 }
 0x70a   : > { %v19945_v53 = vpop.f32.mrf.mxu1  ;;  %v19948_v22 = vadd.f32 %v13118_v2, %v19803_v23 }
 0x70b   : > { %v9821_v63 = vpop.f32.mrf.mxu0 }
 0x70c   : > { %v19950_v39 = vpop.f32.mrf.mxu1  ;;  %v19953_v30 = vadd.f32 %v9821_v63, %v19808_v17 }
 0x70d   : > { %v13121_v20 = vpop.f32.mrf.mxu0 }
 0x70e   : > { %v19955_v59 = vpop.f32.mrf.mxu1  ;;  %v19958_v60 = vadd.f32 %v13121_v20, %v19813_v9 }
 0x70f   : > { %v9831_v40 = vpop.f32.mrf.mxu0 }
 0x710   : > { %v19960_v7 = vpop.f32.mrf.mxu1  ;;  %v19963_v15 = vadd.f32 %v9831_v40, %v19818_v0 }
 0x711   : > { %v13124_v23 = vpop.f32.mrf.mxu0 }
 0x712   : > { %v19965_v1 = vpop.f32.mrf.mxu1  ;;  %v19968_v46 = vadd.f32 %v13124_v23, %v19823_v33 }
 0x713   : > { %20984 = vst [vmem:[#allocation55_spill] sm:$0xff] %v19965_v1  ;;  %v9841_v17 = vpop.f32.mrf.mxu0 }
 0x714   : > { %v19970_v27 = vpop.f32.mrf.mxu1  ;;  %v19973_v51 = vadd.f32 %v9841_v17, %v19828_v34 }
 0x715   : > { %20985 = vst [vmem:[#allocation28_spill] sm:$0xff] %v19970_v27  ;;  %v13127_v9 = vpop.f32.mrf.mxu0 }
 0x716   : > { %20986 = vst [vmem:[#allocation8_spill] sm:$0xff] %v19973_v51  ;;  %v19975_v31 = vpop.f32.mrf.mxu1  ;;  %v19978_v49 = vadd.f32 %v13127_v9, %v19833_v44 }
 0x717   : > { %20987 = vst [vmem:[#allocation57_spill] sm:$0xff] %v19975_v31  ;;  %v9851_v0 = vpop.f32.mrf.mxu0 }
 0x718   : > { %20988 = vst [vmem:[#allocation30_spill] sm:$0xff] %v19978_v49  ;;  %v19980_v47 = vpop.f32.mrf.mxu1  ;;  %v19983_v38 = vadd.f32 %v9851_v0, %v19837_v55 }
 0x719   : > { %20989 = vst [vmem:[#allocation92_spill] sm:$0xff] %v19980_v47  ;;  %v13130_v33 = vpop.f32.mrf.mxu0 }
 0x71a   : > { %20990 = vst [vmem:[#allocation20_spill] sm:$0xff] %v19983_v38  ;;  %v19985_v29 = vpop.f32.mrf.mxu1  ;;  %v19988_v57 = vadd.f32 %v13130_v33, %v19841_v16 }
 0x71b   : > { %20991 = vst [vmem:[#allocation59_spill] sm:$0xff] %v19985_v29  ;;  %v9861_v34 = vpop.f32.mrf.mxu0 }
 0x71c   : > { %20992 = vst [vmem:[#allocation31_spill] sm:$0xff] %v19988_v57  ;;  %v19990_v2 = vpop.f32.mrf.mxu1  ;;  %v19993_v63 = vadd.f32 %v9861_v34, %v19845_v3 }
 0x71d   : > { %20993 = vst [vmem:[#allocation61_spill] sm:$0xff] %v19990_v2  ;;  %v13133_v44 = vpop.f32.mrf.mxu0 }
 0x71e   : > { %20994 = vst [vmem:[#allocation23_spill] sm:$0xff] %v19993_v63  ;;  %v19995_v20 = vpop.f32.mrf.mxu1  ;;  %v19998_v40 = vadd.f32 %v13133_v44, %v19849_v8 }
 0x71f   : > { %20995 = vst [vmem:[#allocation62_spill] sm:$0xff] %v19995_v20  ;;  %v9871_v55 = vpop.f32.mrf.mxu0 }
 0x720   : > { %20996 = vst [vmem:[#allocation63_spill] sm:$0xff] %v19998_v40  ;;  %v20000_v23 = vpop.f32.mrf.mxu1  ;;  %v20003_v17 = vadd.f32 %v9871_v55, %v19853_v21 }
 0x721   : > { %20997 = vst [vmem:[#allocation65_spill] sm:$0xff] %v20000_v23  ;;  %v13136_v16 = vpop.f32.mrf.mxu0 }
 0x722   : > { %20998 = vst [vmem:[#allocation26_spill] sm:$0xff] %v20003_v17  ;;  %v20005_v9 = vpop.f32.mrf.mxu1  ;;  %v20008_v0 = vadd.f32 %v13136_v16, %v19857_v10 }
 0x723   : > { %20999 = vst [vmem:[#allocation67_spill] sm:$0xff] %v20005_v9  ;;  %v9881_v3 = vpop.f32.mrf.mxu0 }
 0x724   : > { %21000 = vst [vmem:[#allocation33_spill] sm:$0xff] %v20008_v0  ;;  %v20010_v33 = vpop.f32.mrf.mxu1  ;;  %v20013_v34 = vadd.f32 %v9881_v3, %v19861_v19 }
 0x725   : > { %21001 = vst [vmem:[#allocation11_spill] sm:$0xff] %v20010_v33  ;;  %v13139_v8 = vpop.f32.mrf.mxu0 }
 0x726   : > { %21002 = vst [vmem:[#allocation34_spill] sm:$0xff] %v20013_v34  ;;  %v20015_v44 = vpop.f32.mrf.mxu1  ;;  %v20018_v23 = vadd.f32 %v13139_v8, %v19865_v25 }
 0x727   : > { %21003 = vst [vmem:[#allocation69_spill] sm:$0xff] %v20015_v44  ;;  %v9891_v21 = vpop.f32.mrf.mxu0 }
 0x728   : > { %21004 = vst [vmem:[#allocation40_spill] sm:$0xff] %v20018_v23  ;;  %v20020_v55 = vpop.f32.mrf.mxu1  ;;  %v20023_v9 = vadd.f32 %v9891_v21, %v19869_v61 }
 0x729   : > { %21005 = vst [vmem:[#allocation24_spill] sm:$0xff] %v20020_v55  ;;  %v13142_v10 = vpop.f32.mrf.mxu0 }
 0x72a   : > { %21006 = vst [vmem:[#allocation71_spill] sm:$0xff] %v20023_v9  ;;  %v20025_v16 = vpop.f32.mrf.mxu1  ;;  %v20028_v33 = vadd.f32 %v13142_v10, %v19874_v62 }
 0x72b   : > { %21007 = vst [vmem:[#allocation32_spill] sm:$0xff] %v20025_v16  ;;  %v9901_v19 = vpop.f32.mrf.mxu0 }
 0x72c   : > { %21008 = vst [vmem:[#allocation73_spill] sm:$0xff] %v20028_v33  ;;  %v20030_v3 = vpop.f32.mrf.mxu1  ;;  %v20033_v44 = vadd.f32 %v9901_v19, %v19879_v26 }
 0x72d   : > { %21009 = vst [vmem:[#allocation25_spill] sm:$0xff] %v20030_v3  ;;  %v13145_v25 = vpop.f32.mrf.mxu0 }
 0x72e   : > { %21010 = vst [vmem:[#allocation76_spill] sm:$0xff] %v20033_v44  ;;  %v20035_v8 = vpop.f32.mrf.mxu1  ;;  %v20038_v55 = vadd.f32 %v13145_v25, %v19883_v42 }
 0x72f   : > { %21011 = vst [vmem:[#allocation12_spill] sm:$0xff] %v20035_v8  ;;  %v9911_v61 = vpop.f32.mrf.mxu0 }
 0x730   : > { %21012 = vst [vmem:[#allocation79_spill] sm:$0xff] %v20038_v55  ;;  %v20040_v21 = vpop.f32.mrf.mxu1  ;;  %v20043_v16 = vadd.f32 %v9911_v61, %v19887_v11 }
 0x731   : > { %21013 = vst [vmem:[#allocation13_spill] sm:$0xff] %v20040_v21  ;;  %v13148_v62 = vpop.f32.mrf.mxu0 }
 0x732   : > { %21014 = vst [vmem:[#allocation83_spill] sm:$0xff] %v20043_v16  ;;  %v20045_v10 = vpop.f32.mrf.mxu1  ;;  %v20048_v3 = vadd.f32 %v13148_v62, %v19890_v43 }
 0x733   : > { %21015 = vst [vmem:[#allocation14_spill] sm:$0xff] %v20045_v10  ;;  %v9921_v26 = vpop.f32.mrf.mxu0 }
 0x734   : > { %21016 = vst [vmem:[#allocation87_spill] sm:$0xff] %v20048_v3  ;;  %v20050_v19 = vpop.f32.mrf.mxu1  ;;  %v20053_v8 = vadd.f32 %v9921_v26, %v19895_v58 }
 0x735   : > { %21017 = vst [vmem:[#allocation15_spill] sm:$0xff] %v20050_v19  ;;  %v13203_v42 = vpop.f32.mrf.mxu0 }
 0x736   : > { %21018 = vst [vmem:[#allocation41_spill] sm:$0xff] %v20053_v8  ;;  %v13253_v25 = vpop.f32.mrf.mxu1 }
 0x737   : > { %v10552_v55 = vpop.f32.mrf.mxu0 }
 0x738   : > { %v10942_v44 = vpop.f32.mrf.mxu1 }
 0x739   : > { %v13206_v21 = vpop.f32.mrf.mxu0 }
 0x73a   : > { %v13256_v11 = vpop.f32.mrf.mxu1 }
 0x73b   : > { %v10562_v33 = vpop.f32.mrf.mxu0 }
 0x73c   : > { %v20057_v10 = vpop.f32.mrf.mxu1 }
 0x73d   : > { %v13209_v61 = vpop.f32.mrf.mxu0 }
 0x73e   : > { %v20063_v19 = vpop.f32.mrf.mxu1 }
 0x73f   : > { %v20055_v16 = vpop.f32.mrf.mxu0 }
 0x740   : > { %v20069_v8 = vpop.f32.mrf.mxu1 }
 0x741   : > { %v20059_v43 = vpop.f32.mrf.mxu0 }
 0x742   : > { %v20075_v23 = vpop.f32.mrf.mxu1 }
 0x743   : > { %v20061_v62 = vpop.f32.mrf.mxu0 }
 0x744   : > { %v20081_v17 = vpop.f32.mrf.mxu1 }
 0x745   : > { %v20065_v58 = vpop.f32.mrf.mxu0 }
 0x746   : > { %v20087_v2 = vpop.f32.mrf.mxu1 }
 0x747   : > { %v20067_v26 = vpop.f32.mrf.mxu0 }
 0x748   : > { %v20093_v57 = vpop.f32.mrf.mxu1 }
 0x749   : > { %v20071_v3 = vpop.f32.mrf.mxu0 }
 0x74a   : > { %v20099_v31 = vpop.f32.mrf.mxu1 }
 0x74b   : > { %v20073_v9 = vpop.f32.mrf.mxu0 }
 0x74d   : > { %v20077_v34 = vpop.f32.mrf.mxu0 }
 0x74f   : > { %v20079_v0 = vpop.f32.mrf.mxu0 }
 0x750   : > { %21019 = vst [vmem:[#allocation42_spill] sm:$0xff] %v20079_v0 }
 0x751   : > { %v20083_v20 = vpop.f32.mrf.mxu0 }
 0x752   : > { %21020 = vst [vmem:[#allocation29_spill] sm:$0xff] %v20083_v20  ;;  %v20105_v20 = vpop.f32.mrf.mxu1 }
 0x753   : > { %v20085_v40 = vpop.f32.mrf.mxu0 }
 0x754   : > { %21021 = vst [vmem:[#allocation7_spill] sm:$0xff] %v20085_v40 }
 0x755   : > { %v20089_v63 = vpop.f32.mrf.mxu0 }
 0x756   : > { %21022 = vst [vmem:[#allocation45_spill] sm:$0xff] %v20089_v63  ;;  %v20111_v63 = vpop.f32.mrf.mxu1 }
 0x757   : > { %v20091_v29 = vpop.f32.mrf.mxu0  ;;  %21030 = vst [vmem:[#allocation46_spill] sm:$0xff] %v20111_v63 }
 0x758   : > { %21023 = vst [vmem:[#allocation43_spill] sm:$0xff] %v20091_v29 }
 0x759   : > { %v20095_v47 = vpop.f32.mrf.mxu0 }
 0x75a   : > { %21024 = vst [vmem:[#allocation35_spill] sm:$0xff] %v20095_v47  ;;  %v20117_v47 = vpop.f32.mrf.mxu1 }
 0x75b   : > { %v20097_v38 = vpop.f32.mrf.mxu0  ;;  %21033 = vst [vmem:[#allocation52_spill] sm:$0xff] %v20117_v47 }
 0x75c   : > { %21025 = vst [vmem:[#allocation44_spill] sm:$0xff] %v20097_v38 }
 0x75d   : > { %v20101_v49 = vpop.f32.mrf.mxu0 }
 0x75e   : > { %21026 = vst [vmem:[#allocation36_spill] sm:$0xff] %v20101_v49  ;;  %v20123_v49 = vpop.f32.mrf.mxu1 }
 0x75f   : > { %v20103_v27 = vpop.f32.mrf.mxu0  ;;  %21036 = vst [vmem:[#allocation17_spill] sm:$0xff] %v20123_v49 }
 0x760   : > { %21027 = vst [vmem:[#allocation50_spill] sm:$0xff] %v20103_v27 }
 0x761   : > { %v20107_v40 = vpop.f32.mrf.mxu0 }
 0x762   : > { %21028 = vst [vmem:[#allocation16_spill] sm:$0xff] %v20107_v40  ;;  %v10321_v40 = vadd.f32 %v19893_v36, %v19898_v12 }
 0x763   : > { %v20109_v51 = vpop.f32.mrf.mxu0 }
 0x764   : > { %21029 = vst [vmem:[#allocation18_spill] sm:$0xff] %v20109_v51  ;;  %v10712_v63 = vadd.f32 %v13203_v42, %v10321_v40  ;;  %v20150_v40 = vld [vmem:[%s20428_s11] ss:$0 sm:$0xff] }
 0x765   : > { %v20113_v29 = vpop.f32.mrf.mxu0 }
 0x766   : > { %21031 = vst [vmem:[#allocation51_spill] sm:$0xff] %v20113_v29  ;;  %v10320_v29 = vadd.f32 %v19900_v28, %v19903_v48  ;;  %v11102_v36 = vadd.f32 %v13253_v25, %v10712_v63  ;;  %v10325_v28 = vadd.f32 %v19915_v4, %v19918_v37  ;;  %v10326_v25 = vadd.f32 %v19930_v24, %v19933_v13 }
 0x767   : > { %v20115_v0 = vpop.f32.mrf.mxu0  ;;  %v10329_v13 = vadd.f32 %v19935_v18, %v19938_v32 }
 0x768   : > { %21032 = vst [vmem:[#allocation37_spill] sm:$0xff] %v20115_v0  ;;  %v20133_v0 = vpop.f32.mrf.mxu1 }
 0x769   : > { %v20119_v38 = vpop.f32.mrf.mxu0  ;;  %v10720_v18 = vadd.f32 %v20065_v58, %v10329_v13 }
 0x76a   : > { %21034 = vst [vmem:[#allocation47_spill] sm:$0xff] %v20119_v38  ;;  %v10711_v38 = vadd.f32 %v10552_v55, %v10320_v29  ;;  %v10324_v55 = vadd.f32 %v19920_v6, %v19923_v56 }
 0x76b   : > { %v20121_v1 = vpop.f32.mrf.mxu0 }
 0x76c   : > { %21035 = vst [vmem:[#allocation19_spill] sm:$0xff] %v20121_v1  ;;  %v10323_v1 = vadd.f32 %v19905_v54, %v19908_v52  ;;  %v11101_v54 = vadd.f32 %v10942_v44, %v10711_v38  ;;  %v10715_v38 = vadd.f32 %v20055_v16, %v10324_v55 }
 0x76d   : > { %v20125_v27 = vpop.f32.mrf.mxu0 }
 0x76e   : > { %21037 = vst [vmem:[#allocation53_spill] sm:$0xff] %v20125_v27  ;;  %v10322_v27 = vadd.f32 %v19910_v35, %v19913_v45  ;;  %v10714_v12 = vadd.f32 %v13206_v21, %v10323_v1  ;;  %v10716_v35 = vadd.f32 %v13209_v61, %v10325_v28  ;;  %v20157_v45 = vld [vmem:[%s20429_s12] ss:$0 sm:$0xff] }
 0x76f   : > { %v20129_v51 = vpop.f32.mrf.mxu0 }
 0x770   : > { %21038 = vst [vmem:[#allocation48_spill] sm:$0xff] %v20129_v51  ;;  %v20143_v51 = vpop.f32.mrf.mxu1  ;;  %v10713_v52 = vadd.f32 %v10562_v33, %v10322_v27  ;;  %v11104_v37 = vadd.f32 %v13256_v11, %v10714_v12  ;;  %v10327_v27 = vadd.f32 %v19925_v41, %v19928_v50  ;;  %v11106_v11 = vadd.f32 %v20063_v19, %v10716_v35 }
 0x771   : > { %v20135_v47 = vpop.f32.mrf.mxu0  ;;  %v11105_v19 = vadd.f32 %v20069_v8, %v10715_v38 }
 0x772   : > { %v20159_v1 = vpop.f32.mrf.mxu1  ;;  %v11103_v56 = vadd.f32 %v20057_v10, %v10713_v52  ;;  %v10718_v61 = vadd.f32 %v20059_v43, %v10327_v27  ;;  %v10717_v43 = vadd.f32 %v20061_v62, %v10326_v25  ;;  %v10333_v25 = vadd.f32 %v19955_v59, %v19958_v60 }
 0x773   : > { %v20139_v49 = vpop.f32.mrf.mxu0 }
 0x774   : > { %v20179_v50 = vpop.f32.mrf.mxu1  ;;  %v11108_v55 = vadd.f32 %v20075_v23, %v10718_v61  ;;  %v10724_v59 = vadd.f32 %v20077_v34, %v10333_v25 }
 0x775   : > { %v13303_v48 = vpop.f32.mrf.mxu0 }
 0x776   : > { %v11492_v29 = vadd.f32 %v13303_v48, %v11102_v36  ;;  %v20195_v8 = vpop.f32.mrf.mxu1 }
 0x777   : > { %v11332_v4 = vpop.f32.mrf.mxu0 }
 0x778   : > { %v11531_v63 = vmul.f32 %v20150_v40, %v11492_v29  ;;  %v11491_v21 = vadd.f32 %v11332_v4, %v11101_v54  ;;  %v10328_v29 = vadd.f32 %v19940_v5, %v19943_v14  ;;  %v11107_v5 = vadd.f32 %v20081_v17, %v10717_v43  ;;  %v20213_v17 = vpop.f32.mrf.mxu1 }
 0x779   : > { %v13306_v6 = vpop.f32.mrf.mxu0 }
 0x77a   : > { %v11570_v33 = vadd.f32 %v20157_v45, %v11531_v63  ;;  %v11530_v44 = vmul.f32 %v20150_v40, %v11491_v21  ;;  %v11494_v42 = vadd.f32 %v13306_v6, %v11104_v37  ;;  %v10331_v63 = vadd.f32 %v19945_v53, %v19948_v22 }
 0x77b   : > { %v11342_v41 = vpop.f32.mrf.mxu0  ;;  %v10719_v14 = vadd.f32 %v20067_v26, %v10328_v29  ;;  %v10330_v6 = vadd.f32 %v19950_v39, %v19953_v30  ;;  %v21042_v29 = vld [vmem:[#allocation28_spill] sm:$0xff] }
 0x77c   : > { %v11602_v16 = vmax.f32 %v11570_v33, 0.0  ;;  %v11569_v10 = vadd.f32 %v20157_v45, %v11530_v44  ;;  %v11533_v36 = vmul.f32 %v20150_v40, %v11494_v42  ;;  %v11493_v24 = vadd.f32 %v11342_v41, %v11103_v56 }
 0x77d   : > { %v13309_v12 = vpop.f32.mrf.mxu0  ;;  %v11110_v56 = vadd.f32 %v20087_v2, %v10720_v18  ;;  %v10722_v53 = vadd.f32 %v20071_v3, %v10331_v63  ;;  %v11109_v39 = vadd.f32 %v20093_v57, %v10719_v14  ;;  %v10721_v30 = vadd.f32 %v20073_v9, %v10330_v6  ;;  %v20231_v57 = vpop.f32.mrf.mxu1  ;;  %v21043_v18 = vld [vmem:[#allocation46_spill] sm:$0xff] }
 0x77e   : > { %11634 = vst.msk [vmem:[%s20177_s15 + $0x8] sm:$0xff] %vm441_vm1, %v11602_v16  ;;  %v11601_v28 = vmax.f32 %v11569_v10, 0.0  ;;  %v11572_v48 = vadd.f32 %v20157_v45, %v11533_v36  ;;  %v11532_v54 = vmul.f32 %v20150_v40, %v11493_v24  ;;  %v11496_v52 = vadd.f32 %v13309_v12, %v11106_v11  ;;  %v21045_v14 = vld [vmem:[#allocation30_spill] sm:$0xff] }
 0x77f   : > { %v11352_v32 = vpop.f32.mrf.mxu0  ;;  %v10332_v16 = vadd.f32 %v19960_v7, %v19963_v15  ;;  %v11112_v10 = vadd.f32 %v20099_v31, %v10722_v53  ;;  %v11111_v7 = vadd.f32 %v20105_v20, %v10721_v30  ;;  %v21040_v15 = vld [vmem:[#allocation42_spill] sm:$0xff] }
 0x780   : > { %11633 = vst.msk [vmem:[%s20177_s15] sm:$0xff] %vm441_vm1, %v11601_v28  ;;  %v11604_v62 = vmax.f32 %v11572_v48, 0.0  ;;  %v11571_v35 = vadd.f32 %v20157_v45, %v11532_v54  ;;  %v11535_v4 = vmul.f32 %v20150_v40, %v11496_v52  ;;  %v11495_v37 = vadd.f32 %v11352_v32, %v11105_v19  ;;  %v21039_v19 = vld [vmem:[#allocation55_spill] sm:$0xff]  ;;  %v21041_v52 = vld [vmem:[#allocation8_spill] sm:$0xff] }
 0x781   : > { %v13312_v23 = vpop.f32.mrf.mxu0  ;;  %v10335_v43 = vadd.f32 %v21039_v19, %v19968_v46  ;;  %v10723_v31 = vadd.f32 %v21040_v15, %v10332_v16  ;;  %v11114_v32 = vadd.f32 %v21043_v18, %v10724_v59  ;;  %v21044_v46 = vld [vmem:[#allocation29_spill] sm:$0xff] }
 0x782   : > { %11636 = vst.msk [vmem:[%s20177_s15 + $0x18] sm:$0xff] %vm441_vm1, %v11604_v62  ;;  %v11603_v58 = vmax.f32 %v11571_v35, 0.0  ;;  %v11574_v21 = vadd.f32 %v20157_v45, %v11535_v4  ;;  %v11534_v27 = vmul.f32 %v20150_v40, %v11495_v37  ;;  %v11498_v38 = vadd.f32 %v13312_v23, %v11108_v55  ;;  %v20249_v35 = vpop.f32.mrf.mxu1  ;;  %v21046_v23 = vld [vmem:[#allocation57_spill] sm:$0xff] }
 0x783   : > { %v11362_v22 = vpop.f32.mrf.mxu0  ;;  %v10334_v55 = vadd.f32 %v21042_v29, %v21041_v52  ;;  %v10726_v62 = vadd.f32 %v21044_v46, %v10335_v43  ;;  %v21058_v52 = vld [vmem:[#allocation35_spill] sm:$0xff] }
 0x784   : > { %11635 = vst.msk [vmem:[%s20177_s15 + $0x10] sm:$0xff] %vm441_vm1, %v11603_v58  ;;  %v11606_v26 = vmax.f32 %v11574_v21, 0.0  ;;  %v11573_v33 = vadd.f32 %v20157_v45, %v11534_v27  ;;  %v11537_v44 = vmul.f32 %v20150_v40, %v11498_v38  ;;  %v11497_v42 = vadd.f32 %v11362_v22, %v11107_v5  ;;  %v21047_v21 = vld [vmem:[#allocation52_spill] sm:$0xff]  ;;  %v21048_v38 = vld [vmem:[#allocation7_spill] sm:$0xff] }
 0x785   : > { %v13315_v2 = vpop.f32.mrf.mxu0  ;;  %v10337_v58 = vadd.f32 %v21046_v23, %v21045_v14  ;;  %v11113_v27 = vadd.f32 %v21047_v21, %v10723_v31  ;;  %v10725_v6 = vadd.f32 %v21048_v38, %v10334_v55  ;;  %v21062_v38 = vld [vmem:[#allocation26_spill] sm:$0xff] }
 0x786   : > { %11638 = vst.msk [vmem:[%s20177_s15 + $0x28] sm:$0xff] %vm441_vm1, %v11606_v26  ;;  %v11605_v3 = vmax.f32 %v11573_v33, 0.0  ;;  %v11576_v11 = vadd.f32 %v20157_v45, %v11537_v44  ;;  %v11536_v61 = vmul.f32 %v20150_v40, %v11497_v42  ;;  %v11500_v41 = vadd.f32 %v13315_v2, %v11110_v56  ;;  %v21049_v44 = vld [vmem:[#allocation20_spill] sm:$0xff]  ;;  %v21052_v2 = vld [vmem:[#allocation45_spill] sm:$0xff] }
 0x787   : > { %v11372_v60 = vpop.f32.mrf.mxu0  ;;  %v21050_v42 = vld [vmem:[#allocation92_spill] sm:$0xff] }
 0x788   : > { %11637 = vst.msk [vmem:[%s20177_s15 + $0x20] sm:$0xff] %vm441_vm1, %v11605_v3  ;;  %v11608_v9 = vmax.f32 %v11576_v11, 0.0  ;;  %v11575_v36 = vadd.f32 %v20157_v45, %v11536_v61  ;;  %v11539_v24 = vmul.f32 %v20150_v40, %v11500_v41  ;;  %v11499_v13 = vadd.f32 %v11372_v60, %v11109_v39  ;;  %v21051_v39 = vld [vmem:[#allocation17_spill] sm:$0xff]  ;;  %v20267_v61 = vpop.f32.mrf.mxu1  ;;  %v21053_v60 = vld [vmem:[#allocation31_spill] sm:$0xff] }
 0x789   : > { %v13318_v34 = vpop.f32.mrf.mxu0  ;;  %v10336_v25 = vadd.f32 %v21050_v42, %v21049_v44  ;;  %v11116_v30 = vadd.f32 %v21051_v39, %v10726_v62  ;;  %v10728_v3 = vadd.f32 %v21052_v2, %v10337_v58  ;;  %v21066_v2 = vld [vmem:[#allocation67_spill] sm:$0xff] }
 0x78a   : > { %11640 = vst.msk [vmem:[%s20177_s15 + $0x38] sm:$0xff] %vm441_vm1, %v11608_v9  ;;  %v11607_v12 = vmax.f32 %v11575_v36, 0.0  ;;  %v11578_v28 = vadd.f32 %v20157_v45, %v11539_v24  ;;  %v11538_v48 = vmul.f32 %v20150_v40, %v11499_v13  ;;  %v11502_v54 = vadd.f32 %v13318_v34, %v11112_v10  ;;  %v21054_v9 = vld [vmem:[#allocation59_spill] sm:$0xff]  ;;  %v20285_v55 = vpop.f32.mrf.mxu1 }
 0x78b   : > { %v11382_v20 = vpop.f32.mrf.mxu0  ;;  %v10339_v36 = vadd.f32 %v21054_v9, %v21053_v60  ;;  %v11115_v24 = vadd.f32 %v20133_v0, %v10725_v6  ;;  %v21055_v13 = vld [vmem:[#allocation43_spill] sm:$0xff]  ;;  %v21063_v6 = vld [vmem:[#allocation65_spill] sm:$0xff] }
 0x78c   : > { %11639 = vst.msk [vmem:[%s20177_s15 + $0x30] sm:$0xff] %vm441_vm1, %v11607_v12  ;;  %v11610_v4 = vmax.f32 %v11578_v28, 0.0  ;;  %v11577_v37 = vadd.f32 %v20157_v45, %v11538_v48  ;;  %v11541_v63 = vmul.f32 %v20150_v40, %v11502_v54  ;;  %v11501_v5 = vadd.f32 %v11382_v20, %v11111_v7  ;;  %v21056_v12 = vld [vmem:[#allocation23_spill] sm:$0xff]  ;;  %v21057_v28 = vld [vmem:[#allocation61_spill] sm:$0xff] }
 0x78d   : > { %v13321_v56 = vpop.f32.mrf.mxu0  ;;  %v10727_v19 = vadd.f32 %v21055_v13, %v10336_v25  ;;  %v10338_v48 = vadd.f32 %v21057_v28, %v21056_v12  ;;  %v11118_v54 = vadd.f32 %v20143_v51, %v10728_v3  ;;  %v10730_v29 = vadd.f32 %v21058_v52, %v10339_v36  ;;  %v21059_v20 = vld [vmem:[#allocation63_spill] sm:$0xff]  ;;  %v21061_v51 = vld [vmem:[#allocation44_spill] sm:$0xff]  ;;  %v21068_v36 = vld [vmem:[#allocation34_spill] sm:$0xff] }
 0x78e   : > { %11642 = vst.msk [vmem:[%s20177_s15 + $0x48] sm:$0xff] %vm441_vm1, %v11610_v4  ;;  %v11609_v53 = vmax.f32 %v11577_v37, 0.0  ;;  %v11580_v22 = vadd.f32 %v20157_v45, %v11541_v63  ;;  %v11540_v26 = vmul.f32 %v20150_v40, %v11501_v5  ;;  %v11504_v33 = vadd.f32 %v13321_v56, %v11114_v32  ;;  %v21060_v4 = vld [vmem:[#allocation62_spill] sm:$0xff] }
 0x78f   : > { %v11392_v11 = vpop.f32.mrf.mxu0  ;;  %v10341_v37 = vadd.f32 %v21060_v4, %v21059_v20  ;;  %v11117_v63 = vadd.f32 %v20159_v1, %v10727_v19  ;;  %v10729_v5 = vadd.f32 %v21061_v51, %v10338_v48  ;;  %v10340_v56 = vadd.f32 %v21063_v6, %v21062_v38  ;;  %v21071_v48 = vld [vmem:[#allocation40_spill] sm:$0xff]  ;;  %v21074_v4 = vld [vmem:[#allocation71_spill] sm:$0xff]  ;;  %v21077_v6 = vld [vmem:[#allocation73_spill] sm:$0xff] }
 0x790   : > { %11641 = vst.msk [vmem:[%s20177_s15 + $0x40] sm:$0xff] %vm441_vm1, %v11609_v53  ;;  %v11612_v41 = vmax.f32 %v11580_v22, 0.0  ;;  %v11579_v16 = vadd.f32 %v20157_v45, %v11540_v26  ;;  %v11543_v10 = vmul.f32 %v20150_v40, %v11504_v33  ;;  %v11503_v59 = vadd.f32 %v11392_v11, %v11113_v27  ;;  %v21064_v22 = vld [vmem:[#allocation36_spill] sm:$0xff]  ;;  %v20303_v33 = vpop.f32.mrf.mxu1 }
 0x791   : > { %v13324_v43 = vpop.f32.mrf.mxu0  ;;  %v11120_v53 = vadd.f32 %v20179_v50, %v10730_v29  ;;  %v10732_v26 = vadd.f32 %v21064_v22, %v10341_v37  ;;  %v11119_v11 = vadd.f32 %v20195_v8, %v10729_v5  ;;  %v21067_v50 = vld [vmem:[#allocation50_spill] sm:$0xff]  ;;  %v21075_v37 = vld [vmem:[#allocation24_spill] sm:$0xff]  ;;  %v21076_v5 = vld [vmem:[#allocation51_spill] sm:$0xff] }
 0x792   : > { %11644 = vst.msk [vmem:[%s20177_s15 + $0x58] sm:$0xff] %vm441_vm1, %v11612_v41  ;;  %v11611_v7 = vmax.f32 %v11579_v16, 0.0  ;;  %v11582_v15 = vadd.f32 %v20157_v45, %v11543_v10  ;;  %v11542_v31 = vmul.f32 %v20150_v40, %v11503_v59  ;;  %v11506_v34 = vadd.f32 %v13324_v43, %v11116_v30  ;;  %v21065_v30 = vld [vmem:[#allocation33_spill] sm:$0xff]  ;;  %v21070_v43 = vld [vmem:[#allocation16_spill] sm:$0xff] }
 0x793   : > { %v11402_v0 = vpop.f32.mrf.mxu0  ;;  %v10343_v3 = vadd.f32 %v21066_v2, %v21065_v30  ;;  %v10731_v41 = vadd.f32 %v21067_v50, %v10340_v56  ;;  %v11122_v19 = vadd.f32 %v20213_v17, %v10732_v26  ;;  %v21078_v56 = vld [vmem:[#allocation32_spill] sm:$0xff]  ;;  %v21079_v26 = vld [vmem:[#allocation37_spill] sm:$0xff]  ;;  %v21082_v50 = vld [vmem:[#allocation47_spill] sm:$0xff] }
 0x794   : > { %11643 = vst.msk [vmem:[%s20177_s15 + $0x50] sm:$0xff] %vm441_vm1, %v11611_v7  ;;  %v11614_v18 = vmax.f32 %v11582_v15, 0.0  ;;  %v11581_v32 = vadd.f32 %v20157_v45, %v11542_v31  ;;  %v11545_v46 = vmul.f32 %v20150_v40, %v11506_v34  ;;  %v11505_v62 = vadd.f32 %v11402_v0, %v11115_v24  ;;  %v21069_v24 = vld [vmem:[#allocation11_spill] sm:$0xff]  ;;  %v13292_v15 = vpop.f32.mrf.mxu1  ;;  %v21073_v0 = vld [vmem:[#allocation18_spill] sm:$0xff]  ;;  %v21080_v30 = vld [vmem:[#allocation76_spill] sm:$0xff] }
 0x795   : > { %v13327_v14 = vpop.f32.mrf.mxu0  ;;  %v10342_v13 = vadd.f32 %v21069_v24, %v21068_v36  ;;  %v10734_v7 = vadd.f32 %v21070_v43, %v10343_v3  ;;  %v11121_v29 = vadd.f32 %v20231_v57, %v10731_v41  ;;  %v21081_v2 = vld [vmem:[#allocation25_spill] sm:$0xff]  ;;  %v21083_v36 = vld [vmem:[#allocation79_spill] sm:$0xff]  ;;  %v21084_v24 = vld [vmem:[#allocation12_spill] sm:$0xff] }
 0x796   : > { %11646 = vst.msk [vmem:[%s20177_s15 + $0x68] sm:$0xff] %vm441_vm1, %v11614_v18  ;;  %v11613_v23 = vmax.f32 %v11581_v32, 0.0  ;;  %v11584_v58 = vadd.f32 %v20157_v45, %v11545_v46  ;;  %v11544_v21 = vmul.f32 %v20150_v40, %v11505_v62  ;;  %v11508_v27 = vadd.f32 %v13327_v14, %v11118_v54  ;;  %v21072_v54 = vld [vmem:[#allocation69_spill] sm:$0xff]  ;;  %v21085_v43 = vld [vmem:[#allocation19_spill] sm:$0xff] }
 0x797   : > { %v11412_v1 = vpop.f32.mrf.mxu0  ;;  %v10345_v52 = vadd.f32 %v21072_v54, %v21071_v48  ;;  %v10733_v17 = vadd.f32 %v21073_v0, %v10342_v13  ;;  %v11124_v51 = vadd.f32 %v20249_v35, %v10734_v7  ;;  %v10346_v3 = vadd.f32 %v21081_v2, %v21080_v30  ;;  %v21087_v48 = vld [vmem:[#allocation13_spill] sm:$0xff] }
 0x798   : > { %11645 = vst.msk [vmem:[%s20177_s15 + $0x60] sm:$0xff] %vm441_vm1, %v11613_v23  ;;  %v11616_v44 = vmax.f32 %v11584_v58, 0.0  ;;  %v11583_v42 = vadd.f32 %v20157_v45, %v11544_v21  ;;  %v11547_v25 = vmul.f32 %v20150_v40, %v11508_v27  ;;  %v11507_v39 = vadd.f32 %v11412_v1, %v11117_v63  ;;  %v11072_v23 = vpop.f32.mrf.mxu1 }
 0x799   : > { %v13330_v16 = vpop.f32.mrf.mxu0  ;;  %v10344_v63 = vadd.f32 %v21075_v37, %v21074_v4  ;;  %v10736_v14 = vadd.f32 %v21076_v5, %v10345_v52  ;;  %v11123_v22 = vadd.f32 %v20267_v61, %v10733_v17  ;;  %v10349_v13 = vadd.f32 %v21084_v24, %v21083_v36  ;;  %v21090_v4 = vld [vmem:[#allocation14_spill] sm:$0xff] }
 0x79a   : > { %11648 = vst.msk [vmem:[%s20177_s15 + $0x78] sm:$0xff] %vm441_vm1, %v11616_v44  ;;  %v11615_v10 = vmax.f32 %v11583_v42, 0.0  ;;  %v11586_v59 = vadd.f32 %v20157_v45, %v11547_v25  ;;  %v11546_v60 = vmul.f32 %v20150_v40, %v11507_v39  ;;  %v11510_v9 = vadd.f32 %v13330_v16, %v11120_v53  ;;  %v13295_v16 = vpop.f32.mrf.mxu1 }
 0x79b   : > { %v11422_v8 = vpop.f32.mrf.mxu0  ;;  %v10347_v53 = vadd.f32 %v21078_v56, %v21077_v6  ;;  %v10735_v35 = vadd.f32 %v21079_v26, %v10344_v63  ;;  %v21093_v6 = vld [vmem:[#allocation15_spill] sm:$0xff] }
 0x79c   : > { %11647 = vst.msk [vmem:[%s20177_s15 + $0x70] sm:$0xff] %vm441_vm1, %v11615_v10  ;;  %v11618_v31 = vmax.f32 %v11586_v59, 0.0  ;;  %v11585_v34 = vadd.f32 %v20157_v45, %v11546_v60  ;;  %v11549_v12 = vmul.f32 %v20150_v40, %v11510_v9  ;;  %v11509_v28 = vadd.f32 %v11422_v8, %v11119_v11 }
 0x79d   : > { %v13333_v18 = vpop.f32.mrf.mxu0  ;;  %v11126_v11 = vadd.f32 %v20285_v55, %v10736_v14  ;;  %v10738_v41 = vadd.f32 %v21082_v50, %v10347_v53  ;;  %v10737_v55 = vadd.f32 %v21085_v43, %v10346_v3 }
 0x79e   : > { %11650 = vst.msk [vmem:[%s20177_s15 + $0x88] sm:$0xff] %vm441_vm1, %v11618_v31  ;;  %v11617_v32 = vmax.f32 %v11585_v34, 0.0  ;;  %v11588_v46 = vadd.f32 %v20157_v45, %v11549_v12  ;;  %v11548_v62 = vmul.f32 %v20150_v40, %v11509_v28  ;;  %v11512_v20 = vadd.f32 %v13333_v18, %v11122_v19  ;;  %v21086_v28 = vld [vmem:[#allocation83_spill] sm:$0xff] }
 0x79f   : > { %v11432_v57 = vpop.f32.mrf.mxu0  ;;  %v11125_v19 = vadd.f32 %v20303_v33, %v10735_v35  ;;  %v10348_v54 = vadd.f32 %v21087_v48, %v21086_v28  ;;  %v11128_v52 = vadd.f32 %v13292_v15, %v10738_v41  ;;  %v11082_v33 = vpop.f32.mrf.mxu1  ;;  %v11127_v63 = vadd.f32 %v11072_v23, %v10737_v55 }
 0x7a0   : > { %11649 = vst.msk [vmem:[%s20177_s15 + $0x80] sm:$0xff] %vm441_vm1, %v11617_v32  ;;  %v11620_v58 = vmax.f32 %v11588_v46, 0.0  ;;  %v11587_v21 = vadd.f32 %v20157_v45, %v11548_v62  ;;  %v11551_v27 = vmul.f32 %v20150_v40, %v11512_v20  ;;  %v11511_v38 = vadd.f32 %v11432_v57, %v11121_v29  ;;  %v21088_v29 = vld [vmem:[#allocation53_spill] sm:$0xff]  ;;  %v21089_v20 = vld [vmem:[#allocation87_spill] sm:$0xff] }
 0x7a1   : > { %v13336_v1 = vpop.f32.mrf.mxu0  ;;  %v10740_v0 = vadd.f32 %v21088_v29, %v10349_v13  ;;  %v10351_v37 = vadd.f32 %v21090_v4, %v21089_v20  ;;  %v13298_v14 = vpop.f32.mrf.mxu1 }
 0x7a2   : > { %11652 = vst.msk [vmem:[%s20177_s15 + $0x98] sm:$0xff] %vm441_vm1, %v11620_v58  ;;  %v11619_v44 = vmax.f32 %v11587_v21, 0.0  ;;  %v11590_v42 = vadd.f32 %v20157_v45, %v11551_v27  ;;  %v11550_v25 = vmul.f32 %v20150_v40, %v11511_v38  ;;  %v11514_v39 = vadd.f32 %v13336_v1, %v11124_v51  ;;  %v21091_v51 = vld [vmem:[#allocation48_spill] sm:$0xff]  ;;  %v21092_v38 = vld [vmem:[#allocation41_spill] sm:$0xff] }
 0x7a3   : > { %v11442_v61 = vpop.f32.mrf.mxu0  ;;  %v10739_v5 = vadd.f32 %v21091_v51, %v10348_v54  ;;  %v10350_v56 = vadd.f32 %v21093_v6, %v21092_v38  ;;  %v11130_v53 = vadd.f32 %v13295_v16, %v10740_v0  ;;  %v11092_v30 = vpop.f32.mrf.mxu1 }
 0x7a4   : > { %11651 = vst.msk [vmem:[%s20177_s15 + $0x90] sm:$0xff] %vm441_vm1, %v11619_v44  ;;  %v11622_v10 = vmax.f32 %v11590_v42, 0.0  ;;  %v11589_v59 = vadd.f32 %v20157_v45, %v11550_v25  ;;  %v11553_v60 = vmul.f32 %v20150_v40, %v11514_v39  ;;  %v11513_v9 = vadd.f32 %v11442_v61, %v11123_v22 }
 0x7a5   : > { %v13339_v7 = vpop.f32.mrf.mxu0  ;;  %v10742_v22 = vadd.f32 %v20135_v47, %v10351_v37  ;;  %v11129_v42 = vadd.f32 %v11082_v33, %v10739_v5  ;;  %v10741_v25 = vadd.f32 %v20139_v49, %v10350_v56 }
 0x7a6   : > { %11654 = vst.msk [vmem:[%s20177_s15 + $0xa8] sm:$0xff] %vm441_vm1, %v11622_v10  ;;  %v11621_v8 = vmax.f32 %v11589_v59, 0.0  ;;  %v11592_v31 = vadd.f32 %v20157_v45, %v11553_v60  ;;  %v11552_v34 = vmul.f32 %v20150_v40, %v11513_v9  ;;  %v11516_v12 = vadd.f32 %v13339_v7, %v11126_v11 }
 0x7a7   : > { %v11452_v17 = vpop.f32.mrf.mxu0  ;;  %v11132_v50 = vadd.f32 %v13298_v14, %v10742_v22  ;;  %v11131_v59 = vadd.f32 %v11092_v30, %v10741_v25 }
 0x7a8   : > { %11653 = vst.msk [vmem:[%s20177_s15 + $0xa0] sm:$0xff] %vm441_vm1, %v11621_v8  ;;  %v11624_v18 = vmax.f32 %v11592_v31, 0.0  ;;  %v11591_v32 = vadd.f32 %v20157_v45, %v11552_v34  ;;  %v11555_v46 = vmul.f32 %v20150_v40, %v11516_v12  ;;  %v11515_v62 = vadd.f32 %v11452_v17, %v11125_v19 }
 0x7a9   : > { %v13342_v15 = vpop.f32.mrf.mxu0 }
 0x7aa   : > { %11656 = vst.msk [vmem:[%s20177_s15 + $0xb8] sm:$0xff] %vm441_vm1, %v11624_v18  ;;  %v11623_v57 = vmax.f32 %v11591_v32, 0.0  ;;  %v11594_v58 = vadd.f32 %v20157_v45, %v11555_v46  ;;  %v11554_v21 = vmul.f32 %v20150_v40, %v11515_v62  ;;  %v11518_v27 = vadd.f32 %v13342_v15, %v11128_v52 }
 0x7ab   : > { %v11462_v23 = vpop.f32.mrf.mxu0 }
 0x7ac   : > { %11655 = vst.msk [vmem:[%s20177_s15 + $0xb0] sm:$0xff] %vm441_vm1, %v11623_v57  ;;  %v11626_v26 = vmax.f32 %v11594_v58, 0.0  ;;  %v11593_v35 = vadd.f32 %v20157_v45, %v11554_v21  ;;  %v11557_v1 = vmul.f32 %v20150_v40, %v11518_v27  ;;  %v11517_v44 = vadd.f32 %v11462_v23, %v11127_v63 }
 0x7ad   : > { %v13345_v39 = vpop.f32.mrf.mxu0 }
 0x7ae   : > { %11658 = vst.msk [vmem:[%s20177_s15 + $0xc8] sm:$0xff] %vm441_vm1, %v11626_v26  ;;  %v11625_v2 = vmax.f32 %v11593_v35, 0.0  ;;  %v11596_v47 = vadd.f32 %v20157_v45, %v11557_v1  ;;  %v11556_v3 = vmul.f32 %v20150_v40, %v11517_v44  ;;  %v11520_v11 = vadd.f32 %v13345_v39, %v11130_v53 }
 0x7af   : > { %v11472_v41 = vpop.f32.mrf.mxu0 }
 0x7b0   : > { %11657 = vst.msk [vmem:[%s20177_s15 + $0xc0] sm:$0xff] %vm441_vm1, %v11625_v2  ;;  %v11628_v61 = vmax.f32 %v11596_v47, 0.0  ;;  %v11595_v16 = vadd.f32 %v20157_v45, %v11556_v3  ;;  %v11559_v49 = vmul.f32 %v20150_v40, %v11520_v11  ;;  %v11519_v10 = vadd.f32 %v11472_v41, %v11129_v42 }
 0x7b1   : > { %v13348_v60 = vpop.f32.mrf.mxu0 }
 0x7b2   : > { %11660 = vst.msk [vmem:[%s20177_s15 + $0xd8] sm:$0xff] %vm441_vm1, %v11628_v61  ;;  %v11627_v9 = vmax.f32 %v11595_v16, 0.0  ;;  %v11598_v36 = vadd.f32 %v20157_v45, %v11559_v49  ;;  %v11558_v24 = vmul.f32 %v20150_v40, %v11519_v10  ;;  %v11522_v13 = vadd.f32 %v13348_v60, %v11132_v50 }
 0x7b3   : > { %v11482_v19 = vpop.f32.mrf.mxu0 }
 0x7b4   : > { %11659 = vst.msk [vmem:[%s20177_s15 + $0xd0] sm:$0xff] %vm441_vm1, %v11627_v9  ;;  %v11630_v43 = vmax.f32 %v11598_v36, 0.0  ;;  %v11597_v55 = vadd.f32 %v20157_v45, %v11558_v24  ;;  %v11561_v7 = vmul.f32 %v20150_v40, %v11522_v13  ;;  %v11521_v8 = vadd.f32 %v11482_v19, %v11131_v59 }
 0x7b6   : > { %11662 = vst.msk [vmem:[%s20177_s15 + $0xe8] sm:$0xff] %vm441_vm1, %v11630_v43  ;;  %v11629_v31 = vmax.f32 %v11597_v55, 0.0  ;;  %v11600_v34 = vadd.f32 %v20157_v45, %v11561_v7  ;;  %v11560_v12 = vmul.f32 %v20150_v40, %v11521_v8 }
 0x7b8   : > { %11661 = vst.msk [vmem:[%s20177_s15 + $0xe0] sm:$0xff] %vm441_vm1, %v11629_v31  ;;  %v11632_v28 = vmax.f32 %v11600_v34, 0.0  ;;  %v11599_v48 = vadd.f32 %v20157_v45, %v11560_v12 }
 0x7ba   : > { %11664 = vst.msk [vmem:[%s20177_s15 + $0xf8] sm:$0xff] %vm441_vm1, %v11632_v28  ;;  %v11631_v54 = vmax.f32 %v11599_v48, 0.0 }
 0x7bc   : > { %11663 = vst.msk [vmem:[%s20177_s15 + $0xf0] sm:$0xff] %vm441_vm1, %v11631_v54 }
 0x7bd PF: > { %s23_s25 = sadd.s32 1, %s13382_s25  }
 0x7be   : > { %p20_p4 = scmp.ge.s32.totalorder %s23_s25, 4  }
 0x7c0   :  { %22 = sbr.rel (!%p20_p4) target bundleno = 1 (0x1), region = 128 }

</bundles_post_ra>
